<compile_context>
chip_gen: v6e
topology: v6e:2x2x1
jax: 0.10.0
libtpu: 0.0.40
codegen_flags: <defaults>
</compile_context>

<pallas_src>
import functools

import jax
import jax.numpy as jnp
from jax import lax
from jax.experimental import pallas as pl
from jax.experimental.pallas import tpu as pltpu


def _sigmoid(z):
    # tanh-form sigmoid: EUP tanh, no exp(-z) overflow; identical formula in
    # kernel and pure-JAX reference.
    return 0.5 * (jnp.tanh(0.5 * z) + 1.0)


def decoder_kernel(x_ref, enc_ref, h0_ref, w_emb_ref, w_ctx_ref, w_hh_ref,
                   b_ref, w_out_ref, b_out_ref, out_ref, gemb_sc, hall_sc,
                   *, n_steps, hidden, v_tile, softmax_approx, unroll_steps):
    H = hidden
    f32 = jnp.float32
    bt = h0_ref.shape[0]                      # batch tile handled by this cell
    wd = x_ref.shape[2]

    # ---- prologue: embedding contribution to the gates for ALL steps -------
    # One (n_steps*bt, Wd) x (Wd, 4H) MXU matmul (+ folded bias) instead of
    # n_steps tiny M=bt matmuls on the serial chain.
    x2 = x_ref[...].reshape(n_steps * bt, wd)          # leading-dim merge
    gemb = jnp.dot(x2, w_emb_ref[...], preferred_element_type=f32) + b_ref[...]
    gemb_sc[...] = gemb.reshape(n_steps, bt, 4 * H)

    # ---- hoisted single encoder load; attention stays all-f32 on VPU/XLU ---
    enc = enc_ref[...]                                 # (bt, T, H) f32
    h = h0_ref[...].astype(f32)                        # (bt, H)
    c = jnp.zeros((bt, H), f32)

    def step(t, h, c):
        # dot-product attention: VPU multiply + XLU reduce (no M=1 MXU matmuls)
        scores = jnp.sum(enc * h[:, None, :], axis=-1)            # (bt, T)
        m = jnp.max(scores, axis=-1, keepdims=True)
        e = jnp.exp(scores - m)
        denom = jnp.sum(e, axis=-1, keepdims=True)
        p = e * pl.reciprocal(denom, approx=softmax_approx)       # EUP slot
        context = jnp.sum(p[:, :, None] * enc, axis=1)            # (bt, H) f32

        # recurrent gate matmuls: two accumulating MXU dots (no per-step concat)
        gates = (gemb_sc[t]
                 + jnp.dot(context.astype(w_ctx_ref.dtype), w_ctx_ref[...],
                           preferred_element_type=f32)
                 + jnp.dot(h.astype(w_hh_ref.dtype), w_hh_ref[...],
                           preferred_element_type=f32))           # (bt, 4H)

        # gate elementwise math stays f32 (v5e VPU/EUP have no bf16)
        i_g = _sigmoid(gates[:, 0 * H:1 * H])
        f_g = _sigmoid(gates[:, 1 * H:2 * H])
        g_g = jnp.tanh(gates[:, 2 * H:3 * H])
        o_g = _sigmoid(gates[:, 3 * H:4 * H])
        c_new = f_g * c + i_g * g_g
        h_new = o_g * jnp.tanh(c_new)
        hall_sc[t] = h_new.astype(hall_sc.dtype)                  # stash h_t
        return h_new, c_new

    if n_steps <= unroll_steps:
        # fully unrolled: straight-line code, full LLO scheduling visibility
        for t in range(n_steps):
            h, c = step(t, h, c)
    else:
        # long targets: bounded unroll keeps the Mosaic program small
        def body(t, carry):
            return step(t, *carry)
        h, c = lax.fori_loop(0, n_steps, body, (h, c), unroll=8)

    # ---- epilogue: vocab projection for all steps, tiled over V -------------
    # Dense, lane-aligned stores (block last dims = (bt, v_tile)); V tiling
    # bounds VMEM at production vocab sizes (v7x has 64 MiB).
    hs = hall_sc[...].reshape(n_steps * bt, H)          # mxu_dtype, no bulk cast
    n_vt = w_out_ref.shape[1] // v_tile
    for vt in range(n_vt):
        v0 = vt * v_tile
        logits = (jnp.dot(hs, w_out_ref[:, v0:v0 + v_tile],
                          preferred_element_type=f32)
                  + b_out_ref[:, v0:v0 + v_tile])                 # (n*bt, vt)
        out_ref[:, :, v0:v0 + v_tile] = logits.reshape(
            n_steps, bt, v_tile).astype(out_ref.dtype)


def decoder_forward(params, encoder_last_hidden_state, encoder_output, targets,
                    *, mxu_dtype=jnp.bfloat16, softmax_approx=True,
                    unroll_steps=32, max_v_tile=2048):
    emb = params["embedding"]        # (V, Wd)
    w_ih = params["w_ih"]            # (Wd + H, 4H)   (pre-transposed)
    w_hh = params["w_hh"]            # (H, 4H)        (pre-transposed)
    b = params["b"]                  # (1, 4H)        (b_ih + b_hh)
    w_out = params["w_out"]          # (H, V)         (pre-transposed)
    b_out = params["b_out"]          # (1, V)

    B, T, H = encoder_output.shape
    V, Wd = emb.shape
    S = targets.shape[1]
    n_steps = S - 1

    # TPU layout guards (lane = 128, sublane = 8)
    assert B % 8 == 0, "batch must be a multiple of 8 (sublane)"
    assert H % 128 == 0 and Wd % 128 == 0 and V % 128 == 0, \
        "hidden/word_dim/vocab must be multiples of 128 (lane)"

    # Batch tiling: two tiles for B >= 16 so v7x's two TensorCores each run an
    # independent batch-slice recurrence ("parallel" grid axis); at B = 8 the
    # grid degenerates to a single cell.
    bt = B // 2 if (B >= 16 and (B // 2) % 8 == 0) else B
    n_btiles = B // bt

    # V tile for the epilogue projection (VMEM scaling guard, esp. v7x 64 MiB)
    v_tile = V
    if V > max_v_tile:
        for cand in range(max_v_tile, 127, -128):
            if V % cand == 0:
                v_tile = cand
                break

    h0 = encoder_last_hidden_state[0].astype(jnp.float32)          # (B, H)

    # deterministic teacher forcing: embed targets[:, :-1] (gather = XLA glue)
    targ_emb = emb[targets[:, :-1]]                                # (B, n, Wd)
    x = jnp.transpose(targ_emb, (1, 0, 2)).astype(mxu_dtype)       # (n, B, Wd)

    # split weights so the non-recurrent part is hoisted into the prologue and
    # the recurrent part feeds two accumulating dots (no per-step concat)
    w_emb = w_ih[:Wd].astype(mxu_dtype)                            # (Wd, 4H)
    w_ctx = w_ih[Wd:].astype(mxu_dtype)                            # (H, 4H)
    w_hh_c = w_hh.astype(mxu_dtype)                                # (H, 4H)
    w_out_c = w_out.astype(mxu_dtype)                              # (H, V)
    enc_f32 = encoder_output.astype(jnp.float32)                   # attn in f32

    kernel = functools.partial(
        decoder_kernel, n_steps=n_steps, hidden=H, v_tile=v_tile,
        softmax_approx=softmax_approx, unroll_steps=unroll_steps)

    out_tm = pl.pallas_call(
        kernel,
        out_shape=jax.ShapeDtypeStruct((n_steps, B, V), jnp.float32),
        grid=(n_btiles,),
        in_specs=[
            pl.BlockSpec((n_steps, bt, Wd), lambda i: (0, i, 0)),   # x (time-major)
            pl.BlockSpec((bt, T, H), lambda i: (i, 0, 0)),          # encoder_output
            pl.BlockSpec((bt, H), lambda i: (i, 0)),                # h0
            pl.BlockSpec((Wd, 4 * H), lambda i: (0, 0)),            # w_emb
            pl.BlockSpec((H, 4 * H), lambda i: (0, 0)),             # w_ctx
            pl.BlockSpec((H, 4 * H), lambda i: (0, 0)),             # w_hh
            pl.BlockSpec((1, 4 * H), lambda i: (0, 0)),             # b
            pl.BlockSpec((H, V), lambda i: (0, 0)),                 # w_out
            pl.BlockSpec((1, V), lambda i: (0, 0)),                 # b_out
        ],
        out_specs=pl.BlockSpec((n_steps, bt, V), lambda i: (0, i, 0)),
        scratch_shapes=[
            pltpu.VMEM((n_steps, bt, 4 * H), jnp.float32),   # gate-emb contrib
            pltpu.VMEM((n_steps, bt, H), mxu_dtype),         # stashed hiddens
        ],
        compiler_params=pltpu.CompilerParams(
            dimension_semantics=("parallel",),
            vmem_limit_bytes=32 * 1024 * 1024),
    )(x, enc_f32, h0, w_emb, w_ctx, w_hh_c, b.astype(jnp.float32),
      w_out_c, b_out.astype(jnp.float32))

    # cheap layout fix-up outside the kernel (dense time-major store inside)
    seq_logprob = jnp.transpose(out_tm, (1, 0, 2))                 # (B, n, V)
    seq_predictions = jnp.argmax(seq_logprob, axis=2)
    return seq_logprob, seq_predictions


def ref_forward(params, encoder_last_hidden_state, encoder_output, targets):
    """Pure-JAX reference mirroring the PyTorch forward (teacher forcing)."""
    emb, w_ih, w_hh, b = (params["embedding"], params["w_ih"],
                          params["w_hh"], params["b"])
    w_out, b_out = params["w_out"], params["b_out"]
    B, T, H = encoder_output.shape
    S = targets.shape[1]
    h = encoder_last_hidden_state[0]
    c = jnp.zeros_like(h)
    targ_emb = emb[targets]
    outs = []
    for i in range(S - 1):
        scores = jnp.sum(encoder_output * h[:, None, :], axis=-1)
        m = jnp.max(scores, axis=-1, keepdims=True)
        e = jnp.exp(scores - m)
        attn = e / jnp.sum(e, axis=-1, keepdims=True)
        context = jnp.sum(attn[:, :, None] * encoder_output, axis=1)
        x = jnp.concatenate([targ_emb[:, i], context], axis=1)
        gates = x @ w_ih + h @ w_hh + b
        i_g = _sigmoid(gates[:, 0 * H:1 * H])
        f_g = _sigmoid(gates[:, 1 * H:2 * H])
        g_g = jnp.tanh(gates[:, 2 * H:3 * H])
        o_g = _sigmoid(gates[:, 3 * H:4 * H])
        c = f_g * c + i_g * g_g
        h = o_g * jnp.tanh(c)
        outs.append(h @ w_out + b_out)
    logp = jnp.stack(outs, axis=1)
    return logp, jnp.argmax(logp, axis=2)


def init_params(key, hidden, word_dim, output_size):
    ks = jax.random.split(key, 7)
    H, Wd, V = hidden, word_dim, output_size
    k = 1.0 / jnp.sqrt(jnp.float32(H))
    u = lambda kk, shape: jax.random.uniform(kk, shape, jnp.float32, -k, k)
    return {
        "embedding": jax.random.normal(ks[0], (V, Wd), jnp.float32),
        "w_ih": u(ks[1], (Wd + H, 4 * H)),
        "w_hh": u(ks[2], (H, 4 * H)),
        "b": u(ks[3], (1, 4 * H)) + u(ks[4], (1, 4 * H)),        # b_ih + b_hh
        "w_out": u(ks[5], (H, V)),
        "b_out": u(ks[6], (1, V)),
    }


if __name__ == "__main__":
    B, T, H = 8, 16, 128          # batch, encoder time steps, hidden_size
    Wd, V, S = 128, 256, 8        # word_dim, output_size (vocab), target length

    key = jax.random.PRNGKey(0)
    kp, k1, k2, k3 = jax.random.split(key, 4)
    params = init_params(kp, H, Wd, V)

    encoder_last_hidden_state = jax.random.normal(k1, (1, B, H), jnp.float32)
    encoder_output = jax.random.normal(k2, (B, T, H), jnp.float32)
    targets = jax.random.randint(k3, (B, S), 0, V, jnp.int32)

    logp_ref, preds_ref = ref_forward(params, encoder_last_hidden_state,
                                      encoder_output, targets)

    # ---- strict f32 path (exact softmax reciprocal): tight check -------------
    logp, preds = decoder_forward(params, encoder_last_hidden_state,
                                  encoder_output, targets,
                                  mxu_dtype=jnp.float32, softmax_approx=False)
    jax.block_until_ready((logp, preds))
    assert logp.shape == (B, S - 1, V) and preds.shape == (B, S - 1)
    assert jnp.allclose(logp, logp_ref, rtol=1e-3, atol=1e-3), "logits mismatch"
    assert jnp.array_equal(preds, preds_ref), "prediction mismatch"

    # ---- production path: bf16 MXU operands (recommended on v5e/v6e/v7x) +
    # ---- EUP approx softmax reciprocal; gate math/accumulation stay f32 ------
    logp_b, preds_b = decoder_forward(params, encoder_last_hidden_state,
                                      encoder_output, targets)    # defaults
    jax.block_until_ready((logp_b, preds_b))
    assert logp_b.shape == (B, S - 1, V) and preds_b.shape == (B, S - 1)
    assert bool(jnp.all(jnp.isfinite(logp_b)))
    assert jnp.allclose(logp_b, logp_ref, rtol=0.25, atol=0.25), \
        "logits mismatch (bf16 path)"

    print("KERNEL_OK")
</pallas_src>

<mosaic_0001>
module attributes {stable_mosaic.version = 11 : i64} {
  func.func @decoder_kernel(%arg0: i32, %arg1: memref<7x8x128xf32, #tpu.memory_space<vmem>>, %arg2: memref<8x16x128xf32, #tpu.memory_space<vmem>>, %arg3: memref<8x128xf32, #tpu.memory_space<vmem>>, %arg4: memref<128x512xf32, #tpu.memory_space<vmem>>, %arg5: memref<128x512xf32, #tpu.memory_space<vmem>>, %arg6: memref<128x512xf32, #tpu.memory_space<vmem>>, %arg7: memref<1x512xf32, #tpu.memory_space<vmem>>, %arg8: memref<128x256xf32, #tpu.memory_space<vmem>>, %arg9: memref<1x256xf32, #tpu.memory_space<vmem>>, %arg10: memref<7x8x256xf32, #tpu.memory_space<vmem>>, %arg11: memref<7x8x512xf32, #tpu.memory_space<vmem>>, %arg12: memref<7x8x128xf32, #tpu.memory_space<vmem>>) attributes {dimension_semantics = [#tpu.dimension_semantics<parallel>], iteration_bounds = array<i64: 1>, scalar_prefetch = 0 : i64, scratch_operands = 2 : i64, tpu.core_type = #tpu.core_type<tc>, window_params = [{transform_indices = @transform_0, window_bounds = array<i64: 7, 8, 128>}, {transform_indices = @transform_1, window_bounds = array<i64: 8, 16, 128>}, {transform_indices = @transform_2, window_bounds = array<i64: 8, 128>}, {pipeline_mode = #tpu.pipeline_mode<synchronous>, transform_indices = @transform_3, window_bounds = array<i64: 128, 512>}, {pipeline_mode = #tpu.pipeline_mode<synchronous>, transform_indices = @transform_4, window_bounds = array<i64: 128, 512>}, {pipeline_mode = #tpu.pipeline_mode<synchronous>, transform_indices = @transform_5, window_bounds = array<i64: 128, 512>}, {pipeline_mode = #tpu.pipeline_mode<synchronous>, transform_indices = @transform_6, window_bounds = array<i64: 1, 512>}, {pipeline_mode = #tpu.pipeline_mode<synchronous>, transform_indices = @transform_7, window_bounds = array<i64: 128, 256>}, {pipeline_mode = #tpu.pipeline_mode<synchronous>, transform_indices = @transform_8, window_bounds = array<i64: 1, 256>}, {transform_indices = @transform_9, window_bounds = array<i64: 7, 8, 256>}]} {
    %c0 = arith.constant 0 : index
    %c0_0 = arith.constant 0 : index
    %c0_1 = arith.constant 0 : index
    %0 = vector.load %arg1[%c0, %c0_0, %c0_1] : memref<7x8x128xf32, #tpu.memory_space<vmem>>, vector<7x8x128xf32>
    %1 = vector.shape_cast %0 : vector<7x8x128xf32> to vector<56x128xf32>
    %c0_2 = arith.constant 0 : index
    %c0_3 = arith.constant 0 : index
    %2 = vector.load %arg4[%c0_2, %c0_3] : memref<128x512xf32, #tpu.memory_space<vmem>>, vector<128x512xf32>
    %cst = arith.constant dense<0.000000e+00> : vector<56x512xf32>
    %3 = tpu.matmul %1, %2, %cst {dimension_numbers = #tpu.dot_dimension_numbers<[1], [0], [0], [1], [0, 0, 1, 1], [], []>} : vector<56x128xf32>, vector<128x512xf32>, vector<56x512xf32> -> vector<56x512xf32>
    %c0_4 = arith.constant 0 : index
    %c0_5 = arith.constant 0 : index
    %4 = vector.load %arg7[%c0_4, %c0_5] : memref<1x512xf32, #tpu.memory_space<vmem>>, vector<1x512xf32>
    %5 = vector.broadcast %4 : vector<1x512xf32> to vector<56x512xf32>
    %6 = arith.addf %3, %5 : vector<56x512xf32>
    %7 = vector.shape_cast %6 : vector<56x512xf32> to vector<7x8x512xf32>
    %c0_6 = arith.constant 0 : index
    %c0_7 = arith.constant 0 : index
    %c0_8 = arith.constant 0 : index
    %8 = vector.load %arg11[%c0_6, %c0_7, %c0_8] : memref<7x8x512xf32, #tpu.memory_space<vmem>>, vector<7x8x512xf32>
    tpu.vector_store %arg11[%c0_6, %c0_7, %c0_8], %7 {strides = array<i32>} : memref<7x8x512xf32, #tpu.memory_space<vmem>>, vector<7x8x512xf32>,
    %c0_9 = arith.constant 0 : index
    %c0_10 = arith.constant 0 : index
    %c0_11 = arith.constant 0 : index
    %9 = vector.load %arg2[%c0_9, %c0_10, %c0_11] : memref<8x16x128xf32, #tpu.memory_space<vmem>>, vector<8x16x128xf32>
    %c0_12 = arith.constant 0 : index
    %c0_13 = arith.constant 0 : index
    %10 = vector.load %arg3[%c0_12, %c0_13] : memref<8x128xf32, #tpu.memory_space<vmem>>, vector<8x128xf32>
    %cst_14 = arith.constant 0.000000e+00 : f32
    %11 = vector.broadcast %cst_14 : f32 to vector<8x128xf32>
    %12 = vector.shape_cast %10 : vector<8x128xf32> to vector<8x1x128xf32>
    %13 = vector.broadcast %12 : vector<8x1x128xf32> to vector<8x16x128xf32>
    %14 = arith.mulf %9, %13 : vector<8x16x128xf32>
    %cst_15 = arith.constant dense<0.000000e+00> : vector<8x16xf32>
    %15 = vector.multi_reduction <add>, %14, %cst_15 [2] : vector<8x16x128xf32> to vector<8x16xf32>
    %cst_16 = arith.constant dense<0xFF800000> : vector<8xf32>
    %16 = vector.multi_reduction <maximumf>, %15, %cst_16 [1] : vector<8x16xf32> to vector<8xf32>
    %17 = vector.shape_cast %16 : vector<8xf32> to vector<8x1xf32>
    %18 = vector.broadcast %17 : vector<8x1xf32> to vector<8x16xf32>
    %19 = arith.subf %15, %18 : vector<8x16xf32>
    %20 = math.exp %19 : vector<8x16xf32>
    %cst_17 = arith.constant dense<0.000000e+00> : vector<8xf32>
    %21 = vector.multi_reduction <add>, %20, %cst_17 [1] : vector<8x16xf32> to vector<8xf32>
    %22 = vector.shape_cast %21 : vector<8xf32> to vector<8x1xf32>
    %23 = tpu.reciprocal %22 : vector<8x1xf32> -> vector<8x1xf32>
    %24 = vector.broadcast %23 : vector<8x1xf32> to vector<8x16xf32>
    %25 = arith.mulf %20, %24 : vector<8x16xf32>
    %26 = vector.shape_cast %25 : vector<8x16xf32> to vector<8x16x1xf32>
    %27 = vector.broadcast %26 : vector<8x16x1xf32> to vector<8x16x128xf32>
    %28 = arith.mulf %27, %9 : vector<8x16x128xf32>
    %cst_18 = arith.constant dense<0.000000e+00> : vector<8x128xf32>
    %29 = vector.multi_reduction <add>, %28, %cst_18 [1] : vector<8x16x128xf32> to vector<8x128xf32>
    %c0_19 = arith.constant 0 : index
    %c0_20 = arith.constant 0 : index
    %c0_21 = arith.constant 0 : index
    %30 = vector.load %arg11[%c0_19, %c0_20, %c0_21] : memref<7x8x512xf32, #tpu.memory_space<vmem>>, vector<1x8x512xf32>
    %31 = vector.shape_cast %30 : vector<1x8x512xf32> to vector<8x512xf32>
    %c0_22 = arith.constant 0 : index
    %c0_23 = arith.constant 0 : index
    %32 = vector.load %arg5[%c0_22, %c0_23] : memref<128x512xf32, #tpu.memory_space<vmem>>, vector<128x512xf32>
    %cst_24 = arith.constant dense<0.000000e+00> : vector<8x512xf32>
    %33 = tpu.matmul %29, %32, %cst_24 {dimension_numbers = #tpu.dot_dimension_numbers<[1], [0], [0], [1], [0, 0, 1, 1], [], []>} : vector<8x128xf32>, vector<128x512xf32>, vector<8x512xf32> -> vector<8x512xf32>
    %34 = arith.addf %31, %33 : vector<8x512xf32>
    %c0_25 = arith.constant 0 : index
    %c0_26 = arith.constant 0 : index
    %35 = vector.load %arg6[%c0_25, %c0_26] : memref<128x512xf32, #tpu.memory_space<vmem>>, vector<128x512xf32>
    %cst_27 = arith.constant dense<0.000000e+00> : vector<8x512xf32>
    %36 = tpu.matmul %10, %35, %cst_27 {dimension_numbers = #tpu.dot_dimension_numbers<[1], [0], [0], [1], [0, 0, 1, 1], [], []>} : vector<8x128xf32>, vector<128x512xf32>, vector<8x512xf32> -> vector<8x512xf32>
    %37 = arith.addf %34, %36 : vector<8x512xf32>
    %38 = vector.extract_strided_slice %37 {offsets = [0, 0], sizes = [8, 128], strides = [1, 1]} : vector<8x512xf32> to vector<8x128xf32>
    %cst_28 = arith.constant 5.000000e-01 : f32
    %39 = vector.broadcast %cst_28 : f32 to vector<8x128xf32>
    %40 = arith.mulf %39, %38 : vector<8x128xf32>
    %41 = math.tanh %40 : vector<8x128xf32>
    %cst_29 = arith.constant 1.000000e+00 : f32
    %42 = vector.broadcast %cst_29 : f32 to vector<8x128xf32>
    %43 = arith.addf %41, %42 : vector<8x128xf32>
    %cst_30 = arith.constant 5.000000e-01 : f32
    %44 = vector.broadcast %cst_30 : f32 to vector<8x128xf32>
    %45 = arith.mulf %44, %43 : vector<8x128xf32>
    %46 = vector.extract_strided_slice %37 {offsets = [0, 128], sizes = [8, 128], strides = [1, 1]} : vector<8x512xf32> to vector<8x128xf32>
    %cst_31 = arith.constant 5.000000e-01 : f32
    %47 = vector.broadcast %cst_31 : f32 to vector<8x128xf32>
    %48 = arith.mulf %47, %46 : vector<8x128xf32>
    %49 = math.tanh %48 : vector<8x128xf32>
    %cst_32 = arith.constant 1.000000e+00 : f32
    %50 = vector.broadcast %cst_32 : f32 to vector<8x128xf32>
    %51 = arith.addf %49, %50 : vector<8x128xf32>
    %cst_33 = arith.constant 5.000000e-01 : f32
    %52 = vector.broadcast %cst_33 : f32 to vector<8x128xf32>
    %53 = arith.mulf %52, %51 : vector<8x128xf32>
    %54 = vector.extract_strided_slice %37 {offsets = [0, 256], sizes = [8, 128], strides = [1, 1]} : vector<8x512xf32> to vector<8x128xf32>
    %55 = math.tanh %54 : vector<8x128xf32>
    %56 = vector.extract_strided_slice %37 {offsets = [0, 384], sizes = [8, 128], strides = [1, 1]} : vector<8x512xf32> to vector<8x128xf32>
    %cst_34 = arith.constant 5.000000e-01 : f32
    %57 = vector.broadcast %cst_34 : f32 to vector<8x128xf32>
    %58 = arith.mulf %57, %56 : vector<8x128xf32>
    %59 = math.tanh %58 : vector<8x128xf32>
    %cst_35 = arith.constant 1.000000e+00 : f32
    %60 = vector.broadcast %cst_35 : f32 to vector<8x128xf32>
    %61 = arith.addf %59, %60 : vector<8x128xf32>
    %cst_36 = arith.constant 5.000000e-01 : f32
    %62 = vector.broadcast %cst_36 : f32 to vector<8x128xf32>
    %63 = arith.mulf %62, %61 : vector<8x128xf32>
    %64 = arith.mulf %53, %11 : vector<8x128xf32>
    %65 = arith.mulf %45, %55 : vector<8x128xf32>
    %66 = arith.addf %64, %65 : vector<8x128xf32>
    %67 = math.tanh %66 : vector<8x128xf32>
    %68 = arith.mulf %63, %67 : vector<8x128xf32>
    %c0_37 = arith.constant 0 : index
    %c0_38 = arith.constant 0 : index
    %c0_39 = arith.constant 0 : index
    %69 = vector.load %arg12[%c0_37, %c0_38, %c0_39] : memref<7x8x128xf32, #tpu.memory_space<vmem>>, vector<1x8x128xf32>
    %70 = vector.shape_cast %69 : vector<1x8x128xf32> to vector<8x128xf32>
    %71 = vector.shape_cast %68 : vector<8x128xf32> to vector<1x8x128xf32>
    tpu.vector_store %arg12[%c0_37, %c0_38, %c0_39], %71 {strides = array<i32>} : memref<7x8x128xf32, #tpu.memory_space<vmem>>, vector<1x8x128xf32>,
    %72 = vector.shape_cast %68 : vector<8x128xf32> to vector<8x1x128xf32>
    %73 = vector.broadcast %72 : vector<8x1x128xf32> to vector<8x16x128xf32>
    %74 = arith.mulf %9, %73 : vector<8x16x128xf32>
    %cst_40 = arith.constant dense<0.000000e+00> : vector<8x16xf32>
    %75 = vector.multi_reduction <add>, %74, %cst_40 [2] : vector<8x16x128xf32> to vector<8x16xf32>
    %cst_41 = arith.constant dense<0xFF800000> : vector<8xf32>
    %76 = vector.multi_reduction <maximumf>, %75, %cst_41 [1] : vector<8x16xf32> to vector<8xf32>
    %77 = vector.shape_cast %76 : vector<8xf32> to vector<8x1xf32>
    %78 = vector.broadcast %77 : vector<8x1xf32> to vector<8x16xf32>
    %79 = arith.subf %75, %78 : vector<8x16xf32>
    %80 = math.exp %79 : vector<8x16xf32>
    %cst_42 = arith.constant dense<0.000000e+00> : vector<8xf32>
    %81 = vector.multi_reduction <add>, %80, %cst_42 [1] : vector<8x16xf32> to vector<8xf32>
    %82 = vector.shape_cast %81 : vector<8xf32> to vector<8x1xf32>
    %83 = tpu.reciprocal %82 : vector<8x1xf32> -> vector<8x1xf32>
    %84 = vector.broadcast %83 : vector<8x1xf32> to vector<8x16xf32>
    %85 = arith.mulf %80, %84 : vector<8x16xf32>
    %86 = vector.shape_cast %85 : vector<8x16xf32> to vector<8x16x1xf32>
    %87 = vector.broadcast %86 : vector<8x16x1xf32> to vector<8x16x128xf32>
    %88 = arith.mulf %87, %9 : vector<8x16x128xf32>
    %cst_43 = arith.constant dense<0.000000e+00> : vector<8x128xf32>
    %89 = vector.multi_reduction <add>, %88, %cst_43 [1] : vector<8x16x128xf32> to vector<8x128xf32>
    %c1 = arith.constant 1 : index
    %c0_44 = arith.constant 0 : index
    %c0_45 = arith.constant 0 : index
    %90 = vector.load %arg11[%c1, %c0_44, %c0_45] : memref<7x8x512xf32, #tpu.memory_space<vmem>>, vector<1x8x512xf32>
    %91 = vector.shape_cast %90 : vector<1x8x512xf32> to vector<8x512xf32>
    %c0_46 = arith.constant 0 : index
    %c0_47 = arith.constant 0 : index
    %92 = vector.load %arg5[%c0_46, %c0_47] : memref<128x512xf32, #tpu.memory_space<vmem>>, vector<128x512xf32>
    %cst_48 = arith.constant dense<0.000000e+00> : vector<8x512xf32>
    %93 = tpu.matmul %89, %92, %cst_48 {dimension_numbers = #tpu.dot_dimension_numbers<[1], [0], [0], [1], [0, 0, 1, 1], [], []>} : vector<8x128xf32>, vector<128x512xf32>, vector<8x512xf32> -> vector<8x512xf32>
    %94 = arith.addf %91, %93 : vector<8x512xf32>
    %c0_49 = arith.constant 0 : index
    %c0_50 = arith.constant 0 : index
    %95 = vector.load %arg6[%c0_49, %c0_50] : memref<128x512xf32, #tpu.memory_space<vmem>>, vector<128x512xf32>
    %cst_51 = arith.constant dense<0.000000e+00> : vector<8x512xf32>
    %96 = tpu.matmul %68, %95, %cst_51 {dimension_numbers = #tpu.dot_dimension_numbers<[1], [0], [0], [1], [0, 0, 1, 1], [], []>} : vector<8x128xf32>, vector<128x512xf32>, vector<8x512xf32> -> vector<8x512xf32>
    %97 = arith.addf %94, %96 : vector<8x512xf32>
    %98 = vector.extract_strided_slice %97 {offsets = [0, 0], sizes = [8, 128], strides = [1, 1]} : vector<8x512xf32> to vector<8x128xf32>
    %cst_52 = arith.constant 5.000000e-01 : f32
    %99 = vector.broadcast %cst_52 : f32 to vector<8x128xf32>
    %100 = arith.mulf %99, %98 : vector<8x128xf32>
    %101 = math.tanh %100 : vector<8x128xf32>
    %cst_53 = arith.constant 1.000000e+00 : f32
    %102 = vector.broadcast %cst_53 : f32 to vector<8x128xf32>
    %103 = arith.addf %101, %102 : vector<8x128xf32>
    %cst_54 = arith.constant 5.000000e-01 : f32
    %104 = vector.broadcast %cst_54 : f32 to vector<8x128xf32>
    %105 = arith.mulf %104, %103 : vector<8x128xf32>
    %106 = vector.extract_strided_slice %97 {offsets = [0, 128], sizes = [8, 128], strides = [1, 1]} : vector<8x512xf32> to vector<8x128xf32>
    %cst_55 = arith.constant 5.000000e-01 : f32
    %107 = vector.broadcast %cst_55 : f32 to vector<8x128xf32>
    %108 = arith.mulf %107, %106 : vector<8x128xf32>
    %109 = math.tanh %108 : vector<8x128xf32>
    %cst_56 = arith.constant 1.000000e+00 : f32
    %110 = vector.broadcast %cst_56 : f32 to vector<8x128xf32>
    %111 = arith.addf %109, %110 : vector<8x128xf32>
    %cst_57 = arith.constant 5.000000e-01 : f32
    %112 = vector.broadcast %cst_57 : f32 to vector<8x128xf32>
    %113 = arith.mulf %112, %111 : vector<8x128xf32>
    %114 = vector.extract_strided_slice %97 {offsets = [0, 256], sizes = [8, 128], strides = [1, 1]} : vector<8x512xf32> to vector<8x128xf32>
    %115 = math.tanh %114 : vector<8x128xf32>
    %116 = vector.extract_strided_slice %97 {offsets = [0, 384], sizes = [8, 128], strides = [1, 1]} : vector<8x512xf32> to vector<8x128xf32>
    %cst_58 = arith.constant 5.000000e-01 : f32
    %117 = vector.broadcast %cst_58 : f32 to vector<8x128xf32>
    %118 = arith.mulf %117, %116 : vector<8x128xf32>
    %119 = math.tanh %118 : vector<8x128xf32>
    %cst_59 = arith.constant 1.000000e+00 : f32
    %120 = vector.broadcast %cst_59 : f32 to vector<8x128xf32>
    %121 = arith.addf %119, %120 : vector<8x128xf32>
    %cst_60 = arith.constant 5.000000e-01 : f32
    %122 = vector.broadcast %cst_60 : f32 to vector<8x128xf32>
    %123 = arith.mulf %122, %121 : vector<8x128xf32>
    %124 = arith.mulf %113, %66 : vector<8x128xf32>
    %125 = arith.mulf %105, %115 : vector<8x128xf32>
    %126 = arith.addf %124, %125 : vector<8x128xf32>
    %127 = math.tanh %126 : vector<8x128xf32>
    %128 = arith.mulf %123, %127 : vector<8x128xf32>
    %c1_61 = arith.constant 1 : index
    %c0_62 = arith.constant 0 : index
    %c0_63 = arith.constant 0 : index
    %129 = vector.load %arg12[%c1_61, %c0_62, %c0_63] : memref<7x8x128xf32, #tpu.memory_space<vmem>>, vector<1x8x128xf32>
    %130 = vector.shape_cast %129 : vector<1x8x128xf32> to vector<8x128xf32>
    %131 = vector.shape_cast %128 : vector<8x128xf32> to vector<1x8x128xf32>
    tpu.vector_store %arg12[%c1_61, %c0_62, %c0_63], %131 {strides = array<i32>} : memref<7x8x128xf32, #tpu.memory_space<vmem>>, vector<1x8x128xf32>,
    %132 = vector.shape_cast %128 : vector<8x128xf32> to vector<8x1x128xf32>
    %133 = vector.broadcast %132 : vector<8x1x128xf32> to vector<8x16x128xf32>
    %134 = arith.mulf %9, %133 : vector<8x16x128xf32>
    %cst_64 = arith.constant dense<0.000000e+00> : vector<8x16xf32>
    %135 = vector.multi_reduction <add>, %134, %cst_64 [2] : vector<8x16x128xf32> to vector<8x16xf32>
    %cst_65 = arith.constant dense<0xFF800000> : vector<8xf32>
    %136 = vector.multi_reduction <maximumf>, %135, %cst_65 [1] : vector<8x16xf32> to vector<8xf32>
    %137 = vector.shape_cast %136 : vector<8xf32> to vector<8x1xf32>
    %138 = vector.broadcast %137 : vector<8x1xf32> to vector<8x16xf32>
    %139 = arith.subf %135, %138 : vector<8x16xf32>
    %140 = math.exp %139 : vector<8x16xf32>
    %cst_66 = arith.constant dense<0.000000e+00> : vector<8xf32>
    %141 = vector.multi_reduction <add>, %140, %cst_66 [1] : vector<8x16xf32> to vector<8xf32>
    %142 = vector.shape_cast %141 : vector<8xf32> to vector<8x1xf32>
    %143 = tpu.reciprocal %142 : vector<8x1xf32> -> vector<8x1xf32>
    %144 = vector.broadcast %143 : vector<8x1xf32> to vector<8x16xf32>
    %145 = arith.mulf %140, %144 : vector<8x16xf32>
    %146 = vector.shape_cast %145 : vector<8x16xf32> to vector<8x16x1xf32>
    %147 = vector.broadcast %146 : vector<8x16x1xf32> to vector<8x16x128xf32>
    %148 = arith.mulf %147, %9 : vector<8x16x128xf32>
    %cst_67 = arith.constant dense<0.000000e+00> : vector<8x128xf32>
    %149 = vector.multi_reduction <add>, %148, %cst_67 [1] : vector<8x16x128xf32> to vector<8x128xf32>
    %c2 = arith.constant 2 : index
    %c0_68 = arith.constant 0 : index
    %c0_69 = arith.constant 0 : index
    %150 = vector.load %arg11[%c2, %c0_68, %c0_69] : memref<7x8x512xf32, #tpu.memory_space<vmem>>, vector<1x8x512xf32>
    %151 = vector.shape_cast %150 : vector<1x8x512xf32> to vector<8x512xf32>
    %c0_70 = arith.constant 0 : index
    %c0_71 = arith.constant 0 : index
    %152 = vector.load %arg5[%c0_70, %c0_71] : memref<128x512xf32, #tpu.memory_space<vmem>>, vector<128x512xf32>
    %cst_72 = arith.constant dense<0.000000e+00> : vector<8x512xf32>
    %153 = tpu.matmul %149, %152, %cst_72 {dimension_numbers = #tpu.dot_dimension_numbers<[1], [0], [0], [1], [0, 0, 1, 1], [], []>} : vector<8x128xf32>, vector<128x512xf32>, vector<8x512xf32> -> vector<8x512xf32>
    %154 = arith.addf %151, %153 : vector<8x512xf32>
    %c0_73 = arith.constant 0 : index
    %c0_74 = arith.constant 0 : index
    %155 = vector.load %arg6[%c0_73, %c0_74] : memref<128x512xf32, #tpu.memory_space<vmem>>, vector<128x512xf32>
    %cst_75 = arith.constant dense<0.000000e+00> : vector<8x512xf32>
    %156 = tpu.matmul %128, %155, %cst_75 {dimension_numbers = #tpu.dot_dimension_numbers<[1], [0], [0], [1], [0, 0, 1, 1], [], []>} : vector<8x128xf32>, vector<128x512xf32>, vector<8x512xf32> -> vector<8x512xf32>
    %157 = arith.addf %154, %156 : vector<8x512xf32>
    %158 = vector.extract_strided_slice %157 {offsets = [0, 0], sizes = [8, 128], strides = [1, 1]} : vector<8x512xf32> to vector<8x128xf32>
    %cst_76 = arith.constant 5.000000e-01 : f32
    %159 = vector.broadcast %cst_76 : f32 to vector<8x128xf32>
    %160 = arith.mulf %159, %158 : vector<8x128xf32>
    %161 = math.tanh %160 : vector<8x128xf32>
    %cst_77 = arith.constant 1.000000e+00 : f32
    %162 = vector.broadcast %cst_77 : f32 to vector<8x128xf32>
    %163 = arith.addf %161, %162 : vector<8x128xf32>
    %cst_78 = arith.constant 5.000000e-01 : f32
    %164 = vector.broadcast %cst_78 : f32 to vector<8x128xf32>
    %165 = arith.mulf %164, %163 : vector<8x128xf32>
    %166 = vector.extract_strided_slice %157 {offsets = [0, 128], sizes = [8, 128], strides = [1, 1]} : vector<8x512xf32> to vector<8x128xf32>
    %cst_79 = arith.constant 5.000000e-01 : f32
    %167 = vector.broadcast %cst_79 : f32 to vector<8x128xf32>
    %168 = arith.mulf %167, %166 : vector<8x128xf32>
    %169 = math.tanh %168 : vector<8x128xf32>
    %cst_80 = arith.constant 1.000000e+00 : f32
    %170 = vector.broadcast %cst_80 : f32 to vector<8x128xf32>
    %171 = arith.addf %169, %170 : vector<8x128xf32>
    %cst_81 = arith.constant 5.000000e-01 : f32
    %172 = vector.broadcast %cst_81 : f32 to vector<8x128xf32>
    %173 = arith.mulf %172, %171 : vector<8x128xf32>
    %174 = vector.extract_strided_slice %157 {offsets = [0, 256], sizes = [8, 128], strides = [1, 1]} : vector<8x512xf32> to vector<8x128xf32>
    %175 = math.tanh %174 : vector<8x128xf32>
    %176 = vector.extract_strided_slice %157 {offsets = [0, 384], sizes = [8, 128], strides = [1, 1]} : vector<8x512xf32> to vector<8x128xf32>
    %cst_82 = arith.constant 5.000000e-01 : f32
    %177 = vector.broadcast %cst_82 : f32 to vector<8x128xf32>
    %178 = arith.mulf %177, %176 : vector<8x128xf32>
    %179 = math.tanh %178 : vector<8x128xf32>
    %cst_83 = arith.constant 1.000000e+00 : f32
    %180 = vector.broadcast %cst_83 : f32 to vector<8x128xf32>
    %181 = arith.addf %179, %180 : vector<8x128xf32>
    %cst_84 = arith.constant 5.000000e-01 : f32
    %182 = vector.broadcast %cst_84 : f32 to vector<8x128xf32>
    %183 = arith.mulf %182, %181 : vector<8x128xf32>
    %184 = arith.mulf %173, %126 : vector<8x128xf32>
    %185 = arith.mulf %165, %175 : vector<8x128xf32>
    %186 = arith.addf %184, %185 : vector<8x128xf32>
    %187 = math.tanh %186 : vector<8x128xf32>
    %188 = arith.mulf %183, %187 : vector<8x128xf32>
    %c2_85 = arith.constant 2 : index
    %c0_86 = arith.constant 0 : index
    %c0_87 = arith.constant 0 : index
    %189 = vector.load %arg12[%c2_85, %c0_86, %c0_87] : memref<7x8x128xf32, #tpu.memory_space<vmem>>, vector<1x8x128xf32>
    %190 = vector.shape_cast %189 : vector<1x8x128xf32> to vector<8x128xf32>
    %191 = vector.shape_cast %188 : vector<8x128xf32> to vector<1x8x128xf32>
    tpu.vector_store %arg12[%c2_85, %c0_86, %c0_87], %191 {strides = array<i32>} : memref<7x8x128xf32, #tpu.memory_space<vmem>>, vector<1x8x128xf32>,
    %192 = vector.shape_cast %188 : vector<8x128xf32> to vector<8x1x128xf32>
    %193 = vector.broadcast %192 : vector<8x1x128xf32> to vector<8x16x128xf32>
    %194 = arith.mulf %9, %193 : vector<8x16x128xf32>
    %cst_88 = arith.constant dense<0.000000e+00> : vector<8x16xf32>
    %195 = vector.multi_reduction <add>, %194, %cst_88 [2] : vector<8x16x128xf32> to vector<8x16xf32>
    %cst_89 = arith.constant dense<0xFF800000> : vector<8xf32>
    %196 = vector.multi_reduction <maximumf>, %195, %cst_89 [1] : vector<8x16xf32> to vector<8xf32>
    %197 = vector.shape_cast %196 : vector<8xf32> to vector<8x1xf32>
    %198 = vector.broadcast %197 : vector<8x1xf32> to vector<8x16xf32>
    %199 = arith.subf %195, %198 : vector<8x16xf32>
    %200 = math.exp %199 : vector<8x16xf32>
    %cst_90 = arith.constant dense<0.000000e+00> : vector<8xf32>
    %201 = vector.multi_reduction <add>, %200, %cst_90 [1] : vector<8x16xf32> to vector<8xf32>
    %202 = vector.shape_cast %201 : vector<8xf32> to vector<8x1xf32>
    %203 = tpu.reciprocal %202 : vector<8x1xf32> -> vector<8x1xf32>
    %204 = vector.broadcast %203 : vector<8x1xf32> to vector<8x16xf32>
    %205 = arith.mulf %200, %204 : vector<8x16xf32>
    %206 = vector.shape_cast %205 : vector<8x16xf32> to vector<8x16x1xf32>
    %207 = vector.broadcast %206 : vector<8x16x1xf32> to vector<8x16x128xf32>
    %208 = arith.mulf %207, %9 : vector<8x16x128xf32>
    %cst_91 = arith.constant dense<0.000000e+00> : vector<8x128xf32>
    %209 = vector.multi_reduction <add>, %208, %cst_91 [1] : vector<8x16x128xf32> to vector<8x128xf32>
    %c3 = arith.constant 3 : index
    %c0_92 = arith.constant 0 : index
    %c0_93 = arith.constant 0 : index
    %210 = vector.load %arg11[%c3, %c0_92, %c0_93] : memref<7x8x512xf32, #tpu.memory_space<vmem>>, vector<1x8x512xf32>
    %211 = vector.shape_cast %210 : vector<1x8x512xf32> to vector<8x512xf32>
    %c0_94 = arith.constant 0 : index
    %c0_95 = arith.constant 0 : index
    %212 = vector.load %arg5[%c0_94, %c0_95] : memref<128x512xf32, #tpu.memory_space<vmem>>, vector<128x512xf32>
    %cst_96 = arith.constant dense<0.000000e+00> : vector<8x512xf32>
    %213 = tpu.matmul %209, %212, %cst_96 {dimension_numbers = #tpu.dot_dimension_numbers<[1], [0], [0], [1], [0, 0, 1, 1], [], []>} : vector<8x128xf32>, vector<128x512xf32>, vector<8x512xf32> -> vector<8x512xf32>
    %214 = arith.addf %211, %213 : vector<8x512xf32>
    %c0_97 = arith.constant 0 : index
    %c0_98 = arith.constant 0 : index
    %215 = vector.load %arg6[%c0_97, %c0_98] : memref<128x512xf32, #tpu.memory_space<vmem>>, vector<128x512xf32>
    %cst_99 = arith.constant dense<0.000000e+00> : vector<8x512xf32>
    %216 = tpu.matmul %188, %215, %cst_99 {dimension_numbers = #tpu.dot_dimension_numbers<[1], [0], [0], [1], [0, 0, 1, 1], [], []>} : vector<8x128xf32>, vector<128x512xf32>, vector<8x512xf32> -> vector<8x512xf32>
    %217 = arith.addf %214, %216 : vector<8x512xf32>
    %218 = vector.extract_strided_slice %217 {offsets = [0, 0], sizes = [8, 128], strides = [1, 1]} : vector<8x512xf32> to vector<8x128xf32>
    %cst_100 = arith.constant 5.000000e-01 : f32
    %219 = vector.broadcast %cst_100 : f32 to vector<8x128xf32>
    %220 = arith.mulf %219, %218 : vector<8x128xf32>
    %221 = math.tanh %220 : vector<8x128xf32>
    %cst_101 = arith.constant 1.000000e+00 : f32
    %222 = vector.broadcast %cst_101 : f32 to vector<8x128xf32>
    %223 = arith.addf %221, %222 : vector<8x128xf32>
    %cst_102 = arith.constant 5.000000e-01 : f32
    %224 = vector.broadcast %cst_102 : f32 to vector<8x128xf32>
    %225 = arith.mulf %224, %223 : vector<8x128xf32>
    %226 = vector.extract_strided_slice %217 {offsets = [0, 128], sizes = [8, 128], strides = [1, 1]} : vector<8x512xf32> to vector<8x128xf32>
    %cst_103 = arith.constant 5.000000e-01 : f32
    %227 = vector.broadcast %cst_103 : f32 to vector<8x128xf32>
    %228 = arith.mulf %227, %226 : vector<8x128xf32>
    %229 = math.tanh %228 : vector<8x128xf32>
    %cst_104 = arith.constant 1.000000e+00 : f32
    %230 = vector.broadcast %cst_104 : f32 to vector<8x128xf32>
    %231 = arith.addf %229, %230 : vector<8x128xf32>
    %cst_105 = arith.constant 5.000000e-01 : f32
    %232 = vector.broadcast %cst_105 : f32 to vector<8x128xf32>
    %233 = arith.mulf %232, %231 : vector<8x128xf32>
    %234 = vector.extract_strided_slice %217 {offsets = [0, 256], sizes = [8, 128], strides = [1, 1]} : vector<8x512xf32> to vector<8x128xf32>
    %235 = math.tanh %234 : vector<8x128xf32>
    %236 = vector.extract_strided_slice %217 {offsets = [0, 384], sizes = [8, 128], strides = [1, 1]} : vector<8x512xf32> to vector<8x128xf32>
    %cst_106 = arith.constant 5.000000e-01 : f32
    %237 = vector.broadcast %cst_106 : f32 to vector<8x128xf32>
    %238 = arith.mulf %237, %236 : vector<8x128xf32>
    %239 = math.tanh %238 : vector<8x128xf32>
    %cst_107 = arith.constant 1.000000e+00 : f32
    %240 = vector.broadcast %cst_107 : f32 to vector<8x128xf32>
    %241 = arith.addf %239, %240 : vector<8x128xf32>
    %cst_108 = arith.constant 5.000000e-01 : f32
    %242 = vector.broadcast %cst_108 : f32 to vector<8x128xf32>
    %243 = arith.mulf %242, %241 : vector<8x128xf32>
    %244 = arith.mulf %233, %186 : vector<8x128xf32>
    %245 = arith.mulf %225, %235 : vector<8x128xf32>
    %246 = arith.addf %244, %245 : vector<8x128xf32>
    %247 = math.tanh %246 : vector<8x128xf32>
    %248 = arith.mulf %243, %247 : vector<8x128xf32>
    %c3_109 = arith.constant 3 : index
    %c0_110 = arith.constant 0 : index
    %c0_111 = arith.constant 0 : index
    %249 = vector.load %arg12[%c3_109, %c0_110, %c0_111] : memref<7x8x128xf32, #tpu.memory_space<vmem>>, vector<1x8x128xf32>
    %250 = vector.shape_cast %249 : vector<1x8x128xf32> to vector<8x128xf32>
    %251 = vector.shape_cast %248 : vector<8x128xf32> to vector<1x8x128xf32>
    tpu.vector_store %arg12[%c3_109, %c0_110, %c0_111], %251 {strides = array<i32>} : memref<7x8x128xf32, #tpu.memory_space<vmem>>, vector<1x8x128xf32>,
    %252 = vector.shape_cast %248 : vector<8x128xf32> to vector<8x1x128xf32>
    %253 = vector.broadcast %252 : vector<8x1x128xf32> to vector<8x16x128xf32>
    %254 = arith.mulf %9, %253 : vector<8x16x128xf32>
    %cst_112 = arith.constant dense<0.000000e+00> : vector<8x16xf32>
    %255 = vector.multi_reduction <add>, %254, %cst_112 [2] : vector<8x16x128xf32> to vector<8x16xf32>
    %cst_113 = arith.constant dense<0xFF800000> : vector<8xf32>
    %256 = vector.multi_reduction <maximumf>, %255, %cst_113 [1] : vector<8x16xf32> to vector<8xf32>
    %257 = vector.shape_cast %256 : vector<8xf32> to vector<8x1xf32>
    %258 = vector.broadcast %257 : vector<8x1xf32> to vector<8x16xf32>
    %259 = arith.subf %255, %258 : vector<8x16xf32>
    %260 = math.exp %259 : vector<8x16xf32>
    %cst_114 = arith.constant dense<0.000000e+00> : vector<8xf32>
    %261 = vector.multi_reduction <add>, %260, %cst_114 [1] : vector<8x16xf32> to vector<8xf32>
    %262 = vector.shape_cast %261 : vector<8xf32> to vector<8x1xf32>
    %263 = tpu.reciprocal %262 : vector<8x1xf32> -> vector<8x1xf32>
    %264 = vector.broadcast %263 : vector<8x1xf32> to vector<8x16xf32>
    %265 = arith.mulf %260, %264 : vector<8x16xf32>
    %266 = vector.shape_cast %265 : vector<8x16xf32> to vector<8x16x1xf32>
    %267 = vector.broadcast %266 : vector<8x16x1xf32> to vector<8x16x128xf32>
    %268 = arith.mulf %267, %9 : vector<8x16x128xf32>
    %cst_115 = arith.constant dense<0.000000e+00> : vector<8x128xf32>
    %269 = vector.multi_reduction <add>, %268, %cst_115 [1] : vector<8x16x128xf32> to vector<8x128xf32>
    %c4 = arith.constant 4 : index
    %c0_116 = arith.constant 0 : index
    %c0_117 = arith.constant 0 : index
    %270 = vector.load %arg11[%c4, %c0_116, %c0_117] : memref<7x8x512xf32, #tpu.memory_space<vmem>>, vector<1x8x512xf32>
    %271 = vector.shape_cast %270 : vector<1x8x512xf32> to vector<8x512xf32>
    %c0_118 = arith.constant 0 : index
    %c0_119 = arith.constant 0 : index
    %272 = vector.load %arg5[%c0_118, %c0_119] : memref<128x512xf32, #tpu.memory_space<vmem>>, vector<128x512xf32>
    %cst_120 = arith.constant dense<0.000000e+00> : vector<8x512xf32>
    %273 = tpu.matmul %269, %272, %cst_120 {dimension_numbers = #tpu.dot_dimension_numbers<[1], [0], [0], [1], [0, 0, 1, 1], [], []>} : vector<8x128xf32>, vector<128x512xf32>, vector<8x512xf32> -> vector<8x512xf32>
    %274 = arith.addf %271, %273 : vector<8x512xf32>
    %c0_121 = arith.constant 0 : index
    %c0_122 = arith.constant 0 : index
    %275 = vector.load %arg6[%c0_121, %c0_122] : memref<128x512xf32, #tpu.memory_space<vmem>>, vector<128x512xf32>
    %cst_123 = arith.constant dense<0.000000e+00> : vector<8x512xf32>
    %276 = tpu.matmul %248, %275, %cst_123 {dimension_numbers = #tpu.dot_dimension_numbers<[1], [0], [0], [1], [0, 0, 1, 1], [], []>} : vector<8x128xf32>, vector<128x512xf32>, vector<8x512xf32> -> vector<8x512xf32>
    %277 = arith.addf %274, %276 : vector<8x512xf32>
    %278 = vector.extract_strided_slice %277 {offsets = [0, 0], sizes = [8, 128], strides = [1, 1]} : vector<8x512xf32> to vector<8x128xf32>
    %cst_124 = arith.constant 5.000000e-01 : f32
    %279 = vector.broadcast %cst_124 : f32 to vector<8x128xf32>
    %280 = arith.mulf %279, %278 : vector<8x128xf32>
    %281 = math.tanh %280 : vector<8x128xf32>
    %cst_125 = arith.constant 1.000000e+00 : f32
    %282 = vector.broadcast %cst_125 : f32 to vector<8x128xf32>
    %283 = arith.addf %281, %282 : vector<8x128xf32>
    %cst_126 = arith.constant 5.000000e-01 : f32
    %284 = vector.broadcast %cst_126 : f32 to vector<8x128xf32>
    %285 = arith.mulf %284, %283 : vector<8x128xf32>
    %286 = vector.extract_strided_slice %277 {offsets = [0, 128], sizes = [8, 128], strides = [1, 1]} : vector<8x512xf32> to vector<8x128xf32>
    %cst_127 = arith.constant 5.000000e-01 : f32
    %287 = vector.broadcast %cst_127 : f32 to vector<8x128xf32>
    %288 = arith.mulf %287, %286 : vector<8x128xf32>
    %289 = math.tanh %288 : vector<8x128xf32>
    %cst_128 = arith.constant 1.000000e+00 : f32
    %290 = vector.broadcast %cst_128 : f32 to vector<8x128xf32>
    %291 = arith.addf %289, %290 : vector<8x128xf32>
    %cst_129 = arith.constant 5.000000e-01 : f32
    %292 = vector.broadcast %cst_129 : f32 to vector<8x128xf32>
    %293 = arith.mulf %292, %291 : vector<8x128xf32>
    %294 = vector.extract_strided_slice %277 {offsets = [0, 256], sizes = [8, 128], strides = [1, 1]} : vector<8x512xf32> to vector<8x128xf32>
    %295 = math.tanh %294 : vector<8x128xf32>
    %296 = vector.extract_strided_slice %277 {offsets = [0, 384], sizes = [8, 128], strides = [1, 1]} : vector<8x512xf32> to vector<8x128xf32>
    %cst_130 = arith.constant 5.000000e-01 : f32
    %297 = vector.broadcast %cst_130 : f32 to vector<8x128xf32>
    %298 = arith.mulf %297, %296 : vector<8x128xf32>
    %299 = math.tanh %298 : vector<8x128xf32>
    %cst_131 = arith.constant 1.000000e+00 : f32
    %300 = vector.broadcast %cst_131 : f32 to vector<8x128xf32>
    %301 = arith.addf %299, %300 : vector<8x128xf32>
    %cst_132 = arith.constant 5.000000e-01 : f32
    %302 = vector.broadcast %cst_132 : f32 to vector<8x128xf32>
    %303 = arith.mulf %302, %301 : vector<8x128xf32>
    %304 = arith.mulf %293, %246 : vector<8x128xf32>
    %305 = arith.mulf %285, %295 : vector<8x128xf32>
    %306 = arith.addf %304, %305 : vector<8x128xf32>
    %307 = math.tanh %306 : vector<8x128xf32>
    %308 = arith.mulf %303, %307 : vector<8x128xf32>
    %c4_133 = arith.constant 4 : index
    %c0_134 = arith.constant 0 : index
    %c0_135 = arith.constant 0 : index
    %309 = vector.load %arg12[%c4_133, %c0_134, %c0_135] : memref<7x8x128xf32, #tpu.memory_space<vmem>>, vector<1x8x128xf32>
    %310 = vector.shape_cast %309 : vector<1x8x128xf32> to vector<8x128xf32>
    %311 = vector.shape_cast %308 : vector<8x128xf32> to vector<1x8x128xf32>
    tpu.vector_store %arg12[%c4_133, %c0_134, %c0_135], %311 {strides = array<i32>} : memref<7x8x128xf32, #tpu.memory_space<vmem>>, vector<1x8x128xf32>,
    %312 = vector.shape_cast %308 : vector<8x128xf32> to vector<8x1x128xf32>
    %313 = vector.broadcast %312 : vector<8x1x128xf32> to vector<8x16x128xf32>
    %314 = arith.mulf %9, %313 : vector<8x16x128xf32>
    %cst_136 = arith.constant dense<0.000000e+00> : vector<8x16xf32>
    %315 = vector.multi_reduction <add>, %314, %cst_136 [2] : vector<8x16x128xf32> to vector<8x16xf32>
    %cst_137 = arith.constant dense<0xFF800000> : vector<8xf32>
    %316 = vector.multi_reduction <maximumf>, %315, %cst_137 [1] : vector<8x16xf32> to vector<8xf32>
    %317 = vector.shape_cast %316 : vector<8xf32> to vector<8x1xf32>
    %318 = vector.broadcast %317 : vector<8x1xf32> to vector<8x16xf32>
    %319 = arith.subf %315, %318 : vector<8x16xf32>
    %320 = math.exp %319 : vector<8x16xf32>
    %cst_138 = arith.constant dense<0.000000e+00> : vector<8xf32>
    %321 = vector.multi_reduction <add>, %320, %cst_138 [1] : vector<8x16xf32> to vector<8xf32>
    %322 = vector.shape_cast %321 : vector<8xf32> to vector<8x1xf32>
    %323 = tpu.reciprocal %322 : vector<8x1xf32> -> vector<8x1xf32>
    %324 = vector.broadcast %323 : vector<8x1xf32> to vector<8x16xf32>
    %325 = arith.mulf %320, %324 : vector<8x16xf32>
    %326 = vector.shape_cast %325 : vector<8x16xf32> to vector<8x16x1xf32>
    %327 = vector.broadcast %326 : vector<8x16x1xf32> to vector<8x16x128xf32>
    %328 = arith.mulf %327, %9 : vector<8x16x128xf32>
    %cst_139 = arith.constant dense<0.000000e+00> : vector<8x128xf32>
    %329 = vector.multi_reduction <add>, %328, %cst_139 [1] : vector<8x16x128xf32> to vector<8x128xf32>
    %c5 = arith.constant 5 : index
    %c0_140 = arith.constant 0 : index
    %c0_141 = arith.constant 0 : index
    %330 = vector.load %arg11[%c5, %c0_140, %c0_141] : memref<7x8x512xf32, #tpu.memory_space<vmem>>, vector<1x8x512xf32>
    %331 = vector.shape_cast %330 : vector<1x8x512xf32> to vector<8x512xf32>
    %c0_142 = arith.constant 0 : index
    %c0_143 = arith.constant 0 : index
    %332 = vector.load %arg5[%c0_142, %c0_143] : memref<128x512xf32, #tpu.memory_space<vmem>>, vector<128x512xf32>
    %cst_144 = arith.constant dense<0.000000e+00> : vector<8x512xf32>
    %333 = tpu.matmul %329, %332, %cst_144 {dimension_numbers = #tpu.dot_dimension_numbers<[1], [0], [0], [1], [0, 0, 1, 1], [], []>} : vector<8x128xf32>, vector<128x512xf32>, vector<8x512xf32> -> vector<8x512xf32>
    %334 = arith.addf %331, %333 : vector<8x512xf32>
    %c0_145 = arith.constant 0 : index
    %c0_146 = arith.constant 0 : index
    %335 = vector.load %arg6[%c0_145, %c0_146] : memref<128x512xf32, #tpu.memory_space<vmem>>, vector<128x512xf32>
    %cst_147 = arith.constant dense<0.000000e+00> : vector<8x512xf32>
    %336 = tpu.matmul %308, %335, %cst_147 {dimension_numbers = #tpu.dot_dimension_numbers<[1], [0], [0], [1], [0, 0, 1, 1], [], []>} : vector<8x128xf32>, vector<128x512xf32>, vector<8x512xf32> -> vector<8x512xf32>
    %337 = arith.addf %334, %336 : vector<8x512xf32>
    %338 = vector.extract_strided_slice %337 {offsets = [0, 0], sizes = [8, 128], strides = [1, 1]} : vector<8x512xf32> to vector<8x128xf32>
    %cst_148 = arith.constant 5.000000e-01 : f32
    %339 = vector.broadcast %cst_148 : f32 to vector<8x128xf32>
    %340 = arith.mulf %339, %338 : vector<8x128xf32>
    %341 = math.tanh %340 : vector<8x128xf32>
    %cst_149 = arith.constant 1.000000e+00 : f32
    %342 = vector.broadcast %cst_149 : f32 to vector<8x128xf32>
    %343 = arith.addf %341, %342 : vector<8x128xf32>
    %cst_150 = arith.constant 5.000000e-01 : f32
    %344 = vector.broadcast %cst_150 : f32 to vector<8x128xf32>
    %345 = arith.mulf %344, %343 : vector<8x128xf32>
    %346 = vector.extract_strided_slice %337 {offsets = [0, 128], sizes = [8, 128], strides = [1, 1]} : vector<8x512xf32> to vector<8x128xf32>
    %cst_151 = arith.constant 5.000000e-01 : f32
    %347 = vector.broadcast %cst_151 : f32 to vector<8x128xf32>
    %348 = arith.mulf %347, %346 : vector<8x128xf32>
    %349 = math.tanh %348 : vector<8x128xf32>
    %cst_152 = arith.constant 1.000000e+00 : f32
    %350 = vector.broadcast %cst_152 : f32 to vector<8x128xf32>
    %351 = arith.addf %349, %350 : vector<8x128xf32>
    %cst_153 = arith.constant 5.000000e-01 : f32
    %352 = vector.broadcast %cst_153 : f32 to vector<8x128xf32>
    %353 = arith.mulf %352, %351 : vector<8x128xf32>
    %354 = vector.extract_strided_slice %337 {offsets = [0, 256], sizes = [8, 128], strides = [1, 1]} : vector<8x512xf32> to vector<8x128xf32>
    %355 = math.tanh %354 : vector<8x128xf32>
    %356 = vector.extract_strided_slice %337 {offsets = [0, 384], sizes = [8, 128], strides = [1, 1]} : vector<8x512xf32> to vector<8x128xf32>
    %cst_154 = arith.constant 5.000000e-01 : f32
    %357 = vector.broadcast %cst_154 : f32 to vector<8x128xf32>
    %358 = arith.mulf %357, %356 : vector<8x128xf32>
    %359 = math.tanh %358 : vector<8x128xf32>
    %cst_155 = arith.constant 1.000000e+00 : f32
    %360 = vector.broadcast %cst_155 : f32 to vector<8x128xf32>
    %361 = arith.addf %359, %360 : vector<8x128xf32>
    %cst_156 = arith.constant 5.000000e-01 : f32
    %362 = vector.broadcast %cst_156 : f32 to vector<8x128xf32>
    %363 = arith.mulf %362, %361 : vector<8x128xf32>
    %364 = arith.mulf %353, %306 : vector<8x128xf32>
    %365 = arith.mulf %345, %355 : vector<8x128xf32>
    %366 = arith.addf %364, %365 : vector<8x128xf32>
    %367 = math.tanh %366 : vector<8x128xf32>
    %368 = arith.mulf %363, %367 : vector<8x128xf32>
    %c5_157 = arith.constant 5 : index
    %c0_158 = arith.constant 0 : index
    %c0_159 = arith.constant 0 : index
    %369 = vector.load %arg12[%c5_157, %c0_158, %c0_159] : memref<7x8x128xf32, #tpu.memory_space<vmem>>, vector<1x8x128xf32>
    %370 = vector.shape_cast %369 : vector<1x8x128xf32> to vector<8x128xf32>
    %371 = vector.shape_cast %368 : vector<8x128xf32> to vector<1x8x128xf32>
    tpu.vector_store %arg12[%c5_157, %c0_158, %c0_159], %371 {strides = array<i32>} : memref<7x8x128xf32, #tpu.memory_space<vmem>>, vector<1x8x128xf32>,
    %372 = vector.shape_cast %368 : vector<8x128xf32> to vector<8x1x128xf32>
    %373 = vector.broadcast %372 : vector<8x1x128xf32> to vector<8x16x128xf32>
    %374 = arith.mulf %9, %373 : vector<8x16x128xf32>
    %cst_160 = arith.constant dense<0.000000e+00> : vector<8x16xf32>
    %375 = vector.multi_reduction <add>, %374, %cst_160 [2] : vector<8x16x128xf32> to vector<8x16xf32>
    %cst_161 = arith.constant dense<0xFF800000> : vector<8xf32>
    %376 = vector.multi_reduction <maximumf>, %375, %cst_161 [1] : vector<8x16xf32> to vector<8xf32>
    %377 = vector.shape_cast %376 : vector<8xf32> to vector<8x1xf32>
    %378 = vector.broadcast %377 : vector<8x1xf32> to vector<8x16xf32>
    %379 = arith.subf %375, %378 : vector<8x16xf32>
    %380 = math.exp %379 : vector<8x16xf32>
    %cst_162 = arith.constant dense<0.000000e+00> : vector<8xf32>
    %381 = vector.multi_reduction <add>, %380, %cst_162 [1] : vector<8x16xf32> to vector<8xf32>
    %382 = vector.shape_cast %381 : vector<8xf32> to vector<8x1xf32>
    %383 = tpu.reciprocal %382 : vector<8x1xf32> -> vector<8x1xf32>
    %384 = vector.broadcast %383 : vector<8x1xf32> to vector<8x16xf32>
    %385 = arith.mulf %380, %384 : vector<8x16xf32>
    %386 = vector.shape_cast %385 : vector<8x16xf32> to vector<8x16x1xf32>
    %387 = vector.broadcast %386 : vector<8x16x1xf32> to vector<8x16x128xf32>
    %388 = arith.mulf %387, %9 : vector<8x16x128xf32>
    %cst_163 = arith.constant dense<0.000000e+00> : vector<8x128xf32>
    %389 = vector.multi_reduction <add>, %388, %cst_163 [1] : vector<8x16x128xf32> to vector<8x128xf32>
    %c6 = arith.constant 6 : index
    %c0_164 = arith.constant 0 : index
    %c0_165 = arith.constant 0 : index
    %390 = vector.load %arg11[%c6, %c0_164, %c0_165] : memref<7x8x512xf32, #tpu.memory_space<vmem>>, vector<1x8x512xf32>
    %391 = vector.shape_cast %390 : vector<1x8x512xf32> to vector<8x512xf32>
    %c0_166 = arith.constant 0 : index
    %c0_167 = arith.constant 0 : index
    %392 = vector.load %arg5[%c0_166, %c0_167] : memref<128x512xf32, #tpu.memory_space<vmem>>, vector<128x512xf32>
    %cst_168 = arith.constant dense<0.000000e+00> : vector<8x512xf32>
    %393 = tpu.matmul %389, %392, %cst_168 {dimension_numbers = #tpu.dot_dimension_numbers<[1], [0], [0], [1], [0, 0, 1, 1], [], []>} : vector<8x128xf32>, vector<128x512xf32>, vector<8x512xf32> -> vector<8x512xf32>
    %394 = arith.addf %391, %393 : vector<8x512xf32>
    %c0_169 = arith.constant 0 : index
    %c0_170 = arith.constant 0 : index
    %395 = vector.load %arg6[%c0_169, %c0_170] : memref<128x512xf32, #tpu.memory_space<vmem>>, vector<128x512xf32>
    %cst_171 = arith.constant dense<0.000000e+00> : vector<8x512xf32>
    %396 = tpu.matmul %368, %395, %cst_171 {dimension_numbers = #tpu.dot_dimension_numbers<[1], [0], [0], [1], [0, 0, 1, 1], [], []>} : vector<8x128xf32>, vector<128x512xf32>, vector<8x512xf32> -> vector<8x512xf32>
    %397 = arith.addf %394, %396 : vector<8x512xf32>
    %398 = vector.extract_strided_slice %397 {offsets = [0, 0], sizes = [8, 128], strides = [1, 1]} : vector<8x512xf32> to vector<8x128xf32>
    %cst_172 = arith.constant 5.000000e-01 : f32
    %399 = vector.broadcast %cst_172 : f32 to vector<8x128xf32>
    %400 = arith.mulf %399, %398 : vector<8x128xf32>
    %401 = math.tanh %400 : vector<8x128xf32>
    %cst_173 = arith.constant 1.000000e+00 : f32
    %402 = vector.broadcast %cst_173 : f32 to vector<8x128xf32>
    %403 = arith.addf %401, %402 : vector<8x128xf32>
    %cst_174 = arith.constant 5.000000e-01 : f32
    %404 = vector.broadcast %cst_174 : f32 to vector<8x128xf32>
    %405 = arith.mulf %404, %403 : vector<8x128xf32>
    %406 = vector.extract_strided_slice %397 {offsets = [0, 128], sizes = [8, 128], strides = [1, 1]} : vector<8x512xf32> to vector<8x128xf32>
    %cst_175 = arith.constant 5.000000e-01 : f32
    %407 = vector.broadcast %cst_175 : f32 to vector<8x128xf32>
    %408 = arith.mulf %407, %406 : vector<8x128xf32>
    %409 = math.tanh %408 : vector<8x128xf32>
    %cst_176 = arith.constant 1.000000e+00 : f32
    %410 = vector.broadcast %cst_176 : f32 to vector<8x128xf32>
    %411 = arith.addf %409, %410 : vector<8x128xf32>
    %cst_177 = arith.constant 5.000000e-01 : f32
    %412 = vector.broadcast %cst_177 : f32 to vector<8x128xf32>
    %413 = arith.mulf %412, %411 : vector<8x128xf32>
    %414 = vector.extract_strided_slice %397 {offsets = [0, 256], sizes = [8, 128], strides = [1, 1]} : vector<8x512xf32> to vector<8x128xf32>
    %415 = math.tanh %414 : vector<8x128xf32>
    %416 = vector.extract_strided_slice %397 {offsets = [0, 384], sizes = [8, 128], strides = [1, 1]} : vector<8x512xf32> to vector<8x128xf32>
    %cst_178 = arith.constant 5.000000e-01 : f32
    %417 = vector.broadcast %cst_178 : f32 to vector<8x128xf32>
    %418 = arith.mulf %417, %416 : vector<8x128xf32>
    %419 = math.tanh %418 : vector<8x128xf32>
    %cst_179 = arith.constant 1.000000e+00 : f32
    %420 = vector.broadcast %cst_179 : f32 to vector<8x128xf32>
    %421 = arith.addf %419, %420 : vector<8x128xf32>
    %cst_180 = arith.constant 5.000000e-01 : f32
    %422 = vector.broadcast %cst_180 : f32 to vector<8x128xf32>
    %423 = arith.mulf %422, %421 : vector<8x128xf32>
    %424 = arith.mulf %413, %366 : vector<8x128xf32>
    %425 = arith.mulf %405, %415 : vector<8x128xf32>
    %426 = arith.addf %424, %425 : vector<8x128xf32>
    %427 = math.tanh %426 : vector<8x128xf32>
    %428 = arith.mulf %423, %427 : vector<8x128xf32>
    %c6_181 = arith.constant 6 : index
    %c0_182 = arith.constant 0 : index
    %c0_183 = arith.constant 0 : index
    %429 = vector.load %arg12[%c6_181, %c0_182, %c0_183] : memref<7x8x128xf32, #tpu.memory_space<vmem>>, vector<1x8x128xf32>
    %430 = vector.shape_cast %429 : vector<1x8x128xf32> to vector<8x128xf32>
    %431 = vector.shape_cast %428 : vector<8x128xf32> to vector<1x8x128xf32>
    tpu.vector_store %arg12[%c6_181, %c0_182, %c0_183], %431 {strides = array<i32>} : memref<7x8x128xf32, #tpu.memory_space<vmem>>, vector<1x8x128xf32>,
    %c0_184 = arith.constant 0 : index
    %c0_185 = arith.constant 0 : index
    %c0_186 = arith.constant 0 : index
    %432 = vector.load %arg12[%c0_184, %c0_185, %c0_186] : memref<7x8x128xf32, #tpu.memory_space<vmem>>, vector<7x8x128xf32>
    %433 = vector.shape_cast %432 : vector<7x8x128xf32> to vector<56x128xf32>
    %c0_187 = arith.constant 0 : index
    %c0_188 = arith.constant 0 : index
    %434 = vector.load %arg8[%c0_187, %c0_188] : memref<128x256xf32, #tpu.memory_space<vmem>>, vector<128x256xf32>
    %cst_189 = arith.constant dense<0.000000e+00> : vector<56x256xf32>
    %435 = tpu.matmul %433, %434, %cst_189 {dimension_numbers = #tpu.dot_dimension_numbers<[1], [0], [0], [1], [0, 0, 1, 1], [], []>} : vector<56x128xf32>, vector<128x256xf32>, vector<56x256xf32> -> vector<56x256xf32>
    %c0_190 = arith.constant 0 : index
    %c0_191 = arith.constant 0 : index
    %436 = vector.load %arg9[%c0_190, %c0_191] : memref<1x256xf32, #tpu.memory_space<vmem>>, vector<1x256xf32>
    %437 = vector.broadcast %436 : vector<1x256xf32> to vector<56x256xf32>
    %438 = arith.addf %435, %437 : vector<56x256xf32>
    %439 = vector.shape_cast %438 : vector<56x256xf32> to vector<7x8x256xf32>
    %c0_192 = arith.constant 0 : index
    %c0_193 = arith.constant 0 : index
    %c0_194 = arith.constant 0 : index
    %440 = vector.load %arg10[%c0_192, %c0_193, %c0_194] : memref<7x8x256xf32, #tpu.memory_space<vmem>>, vector<7x8x256xf32>
    tpu.vector_store %arg10[%c0_192, %c0_193, %c0_194], %439 {strides = array<i32>} : memref<7x8x256xf32, #tpu.memory_space<vmem>>, vector<7x8x256xf32>,
    return
  }
  func.func @transform_0(%arg0: i32) -> (i32, i32, i32) {
    %c0_i32 = arith.constant 0 : i32
    %c0_i32_0 = arith.constant 0 : i32
    %c0_i32_1 = arith.constant 0 : i32
    return %c0_i32, %arg0, %c0_i32_0 : i32, i32, i32
  }
  func.func @transform_1(%arg0: i32) -> (i32, i32, i32) {
    %c0_i32 = arith.constant 0 : i32
    %c0_i32_0 = arith.constant 0 : i32
    %c0_i32_1 = arith.constant 0 : i32
    return %arg0, %c0_i32, %c0_i32_0 : i32, i32, i32
  }
  func.func @transform_2(%arg0: i32) -> (i32, i32) {
    %c0_i32 = arith.constant 0 : i32
    %c0_i32_0 = arith.constant 0 : i32
    return %arg0, %c0_i32 : i32, i32
  }
  func.func @transform_3(%arg0: i32) -> (i32, i32) {
    %c0_i32 = arith.constant 0 : i32
    %c0_i32_0 = arith.constant 0 : i32
    %c0_i32_1 = arith.constant 0 : i32
    return %c0_i32, %c0_i32_0 : i32, i32
  }
  func.func @transform_4(%arg0: i32) -> (i32, i32) {
    %c0_i32 = arith.constant 0 : i32
    %c0_i32_0 = arith.constant 0 : i32
    %c0_i32_1 = arith.constant 0 : i32
    return %c0_i32, %c0_i32_0 : i32, i32
  }
  func.func @transform_5(%arg0: i32) -> (i32, i32) {
    %c0_i32 = arith.constant 0 : i32
    %c0_i32_0 = arith.constant 0 : i32
    %c0_i32_1 = arith.constant 0 : i32
    return %c0_i32, %c0_i32_0 : i32, i32
  }
  func.func @transform_6(%arg0: i32) -> (i32, i32) {
    %c0_i32 = arith.constant 0 : i32
    %c0_i32_0 = arith.constant 0 : i32
    %c0_i32_1 = arith.constant 0 : i32
    return %c0_i32, %c0_i32_0 : i32, i32
  }
  func.func @transform_7(%arg0: i32) -> (i32, i32) {
    %c0_i32 = arith.constant 0 : i32
    %c0_i32_0 = arith.constant 0 : i32
    %c0_i32_1 = arith.constant 0 : i32
    return %c0_i32, %c0_i32_0 : i32, i32
  }
  func.func @transform_8(%arg0: i32) -> (i32, i32) {
    %c0_i32 = arith.constant 0 : i32
    %c0_i32_0 = arith.constant 0 : i32
    %c0_i32_1 = arith.constant 0 : i32
    return %c0_i32, %c0_i32_0 : i32, i32
  }
  func.func @transform_9(%arg0: i32) -> (i32, i32, i32) {
    %c0_i32 = arith.constant 0 : i32
    %c0_i32_0 = arith.constant 0 : i32
    %c0_i32_1 = arith.constant 0 : i32
    return %c0_i32, %arg0, %c0_i32_0 : i32, i32, i32
  }
}

</mosaic_0001>

<bundles_post_ra>
// kernel: tpu_custom_call.1
= control target key start
LH: loop header
LB: loop body
LE: loop exit
PB: predicated region body
PF: predicated region fallthrough
CT: control target
= control target key end

     0   :  { %14 = vsyncpa [#allocation5], 0  ;;  %s11619_s0 = inlined_call_operand.hbm [shape: f32[7,8,128], index: 0, kind: input, shape index: {}]   ;;  %s11620_s1 = inlined_call_operand.hbm [shape: f32[8,16,128], index: 1, kind: input, shape index: {}]   ;;  %s11621_s2 = inlined_call_operand.hbm [shape: f32[8,128], index: 2, kind: input, shape index: {}]   ;;  %s11622_s3 = inlined_call_operand.hbm [shape: f32[128,512], index: 3, kind: input, shape index: {}]   ;;  %s11623_s4 = inlined_call_operand.hbm [shape: f32[128,512], index: 4, kind: input, shape index: {}]   ;;  %s11624_s5 = inlined_call_operand.hbm [shape: f32[128,512], index: 5, kind: input, shape index: {}]   ;;  %s11625_s6 = inlined_call_operand.vmem [shape: f32[1,512], index: 6, kind: input, shape index: {}]   ;;  %s11626_s7 = inlined_call_operand.hbm [shape: f32[128,256], index: 7, kind: input, shape index: {}]   ;;  %s11627_s8 = inlined_call_operand.vmem [shape: f32[1,256], index: 8, kind: input, shape index: {}]   ;;  %s11628_s9 = inlined_call_operand.hbm [shape: f32[7,8,256], index: 9, kind: output, shape index: {}]  }
   0x1   :  { %15 = vsyncpa [#allocation8], 0 }
   0x2   :  { %16 = vsyncpa [#allocation11], 0 }
   0x3   :  { %17 = vsyncpa [#allocation14], 0 }
   0x4   :  { %18 = vsyncpa [#allocation6], 0  ;;  %s9299_s30 = smov [#allocation7]   ;;  %s9300_s11 = smov [#allocation10]  }
   0x5   :  { %s36_s10 = sshll.u32 %s9299_s30, 4  ;;  %s58_s12 = sshll.u32 %s9300_s11, 4  ;;  %s37_s10 = int_to_ptr.vmem [resolvable:$true] %s36_s10  ;;  %s59_s12 = int_to_ptr.vmem [resolvable:$true] %s58_s12 }
   0x6   :  { %s9137_s13 = scalar_lea.vmem %s37_s10, 2048  ;;  %p9142_p1 = scmp.lt.s32.totalorder %s37_s10, %s37_s10 }
   0x7   :  { %p9138_p0 = scmp.ne.s32.totalorder %s37_s10, %s9137_s13  ;;  %p9143_p2 = scmp.lt.s32.totalorder %s9137_s13, %s9137_s13 }
   0x9   :  { %p9144_p3 = por %p9143_p2, %p9142_p1 }
   0xb   :  { %p9145_p4 = pnand %p9144_p3, %p9138_p0 }
   0xd   :  { %9148 = shalt.err (!%p9145_p4)
}
   0xe   :  { %s9301_s14 = smov 128   ;;  %s9302_s15 = smov 8  }
   0xf   :  { %42 = dma.hbm_to_vmem [thread:$0]  %s11620_s1, 2048, %s37_s10, [#allocation8], %s9301_s14, %s9301_s14, %s9302_s15  }
  0x10   :  { %s9157_s18 = scalar_lea.vmem %s59_s12, 8192  ;;  %p9162_p6 = scmp.lt.s32.totalorder %s59_s12, %s59_s12 }
  0x11   :  { %p9158_p5 = scmp.ne.s32.totalorder %s59_s12, %s9157_s18  ;;  %p9163_p7 = scmp.lt.s32.totalorder %s9157_s18, %s9157_s18 }
  0x13   :  { %p9164_p8 = por %p9163_p7, %p9162_p6 }
  0x15   :  { %p9165_p9 = pnand %p9164_p8, %p9158_p5 }
  0x17   :  { %9168 = shalt.err (!%p9165_p9)
}
  0x18   :  { %s9303_s19 = smov 512   ;;  %s9304_s20 = smov 32  }
  0x19   :  { %64 = dma.hbm_to_vmem [thread:$0]  %s11622_s3, 8192, %s59_s12, [#allocation11], %s9303_s19, %s9303_s19, %s9304_s20  }
  0x1a   :  { %s9305_s23 = smov [#allocation13]   ;;  %s9306_s25 = smov [#allocation4]  }
  0x1b   :  { %s82_s24 = sshll.u32 %s9305_s23, 4  ;;  %s24_s1 = sshll.u32 %s9306_s25, 4  ;;  %s83_s24 = int_to_ptr.vmem [resolvable:$true] %s82_s24  ;;  %s25_s1 = int_to_ptr.vmem [resolvable:$true] %s24_s1 }
  0x1c   :  { %s9177_s26 = scalar_lea.vmem %s83_s24, 8192  ;;  %p9182_p11 = scmp.lt.s32.totalorder %s83_s24, %s83_s24 }
  0x1d   :  { %p9178_p10 = scmp.ne.s32.totalorder %s83_s24, %s9177_s26  ;;  %p9183_p12 = scmp.lt.s32.totalorder %s9177_s26, %s9177_s26 }
  0x1f   :  { %p9184_p13 = por %p9183_p12, %p9182_p11 }
  0x21   :  { %p9185_p0 = pnand %p9184_p13, %p9178_p10 }
  0x23   :  { %9188 = shalt.err (!%p9185_p0)
}
  0x24   :  { %88 = dma.hbm_to_vmem [thread:$0]  %s11624_s5, 8192, %s83_s24, [#allocation14], %s9303_s19, %s9303_s19, %s9304_s20  }
  0x25   :  { %s9197_s3 = scalar_lea.vmem %s25_s1, 896  ;;  %p9202_p2 = scmp.lt.s32.totalorder %s25_s1, %s25_s1 }
  0x26   :  { %p9198_p1 = scmp.ne.s32.totalorder %s25_s1, %s9197_s3  ;;  %p9203_p3 = scmp.lt.s32.totalorder %s9197_s3, %s9197_s3 }
  0x28   :  { %p9204_p4 = por %p9203_p3, %p9202_p2 }
  0x2a   :  { %p9205_p5 = pnand %p9204_p4, %p9198_p1 }
  0x2c   :  { %9208 = shalt.err (!%p9205_p5)
}
  0x2d   :  { %30 = dma.hbm_to_vmem [thread:$0]  %s11619_s0, 896, %s25_s1, [#allocation5], %s9301_s14, %s9301_s14, %s9302_s15  }
  0x2e   :  { %s9307_s10 = smov [#allocation9]   ;;  %s9308_s12 = smov [#allocation12]  }
  0x2f   :  { %s49_s11 = sshll.u32 %s9307_s10, 4  ;;  %s70_s13 = sshll.u32 %s9308_s12, 4  ;;  %s50_s11 = int_to_ptr.vmem [resolvable:$true] %s49_s11  ;;  %s71_s13 = int_to_ptr.vmem [resolvable:$true] %s70_s13 }
  0x30   :  { %s9217_s5 = scalar_lea.vmem %s50_s11, 128  ;;  %p9222_p7 = scmp.lt.s32.totalorder %s50_s11, %s50_s11 }
  0x31   :  { %p9218_p6 = scmp.ne.s32.totalorder %s50_s11, %s9217_s5  ;;  %p9223_p8 = scmp.lt.s32.totalorder %s9217_s5, %s9217_s5 }
  0x33   :  { %p9224_p9 = por %p9223_p8, %p9222_p7 }
  0x35   :  { %p9225_p10 = pnand %p9224_p9, %p9218_p6 }
  0x37   :  { %9228 = shalt.err (!%p9225_p10)
}
  0x38   :  { %52 = dma.hbm_to_vmem [thread:$0]  %s11621_s2, 128, %s50_s11, [#allocation8]  }
  0x39   :  { %s9237_s18 = scalar_lea.vmem %s71_s13, 8192  ;;  %p9242_p12 = scmp.lt.s32.totalorder %s71_s13, %s71_s13 }
  0x3a   :  { %p9238_p11 = scmp.ne.s32.totalorder %s71_s13, %s9237_s18  ;;  %p9243_p13 = scmp.lt.s32.totalorder %s9237_s18, %s9237_s18 }
  0x3c   :  { %p9244_p0 = por %p9243_p13, %p9242_p12 }
  0x3e   :  { %p9245_p1 = pnand %p9244_p0, %p9238_p11 }
  0x40   :  { %9248 = shalt.err (!%p9245_p1)
}
  0x41   :  { %76 = dma.hbm_to_vmem [thread:$0]  %s11623_s4, 8192, %s71_s13, [#allocation11], %s9303_s19, %s9303_s19, %s9304_s20  }
  0x42   :  { %s9309_s15 = smov [#allocation15]  }
  0x43   :  { %s96_s21 = sshll.u32 %s9309_s15, 4  ;;  %s97_s21 = int_to_ptr.vmem [resolvable:$true] %s96_s21 }
  0x44   :  { %s9257_s22 = scalar_lea.vmem %s97_s21, 4096  ;;  %p9262_p3 = scmp.lt.s32.totalorder %s97_s21, %s97_s21 }
  0x45   :  { %p9258_p2 = scmp.ne.s32.totalorder %s97_s21, %s9257_s22  ;;  %p9263_p4 = scmp.lt.s32.totalorder %s9257_s22, %s9257_s22 }
  0x47   :  { %p9264_p5 = por %p9263_p4, %p9262_p3 }
  0x49   :  { %p9265_p6 = pnand %p9264_p5, %p9258_p2 }
  0x4b   :  { %9268 = shalt.err (!%p9265_p6)
}
  0x4c   :  { %s9310_s2 = smov 256   ;;  %s9311_s23 = smov 16  }
  0x4d   :  { %102 = dma.hbm_to_vmem [thread:$0]  %s11626_s7, 4096, %s97_s21, [#allocation14], %s9310_s2, %s9310_s2, %s9311_s23  }
  0x4e   :  { %9289 = dma.done.wait [#allocation5], 896  }
  0x4f   :  { %9290 = vsyncadd [#allocation5], 4294966400 }
  0x50   :  { %9291 = dma.done.wait [#allocation8], 2176  }
  0x51   :  { %9292 = vsyncadd [#allocation8], 4294965120 }
  0x52   :  { %9293 = dma.done.wait [#allocation11], 16384  }
  0x53   :  { %9294 = vsyncadd [#allocation11], 4294950912 }
  0x54   :  { %9295 = dma.done.wait [#allocation14], 12288  }
  0x55   :  { %9296 = vsyncadd [#allocation14], 4294955008  ;;  %v199_v0 = vlaneseq  ;;  %v9312_v1 = vmov 1966171168   ;;  %v477_v10 = vld [vmem:[#allocation9] sm:$0xff]  ;;  %v463_v21 = vld [vmem:[#allocation7 + $0x10] sm:$0xff] }
  0x56   :  { %v481_v2 = vunpack.c.l.s4 %v9312_v1  ;;  %v479_v13 = vcombine.high %v477_v10, %v477_v10  ;;  %v461_v16 = vld [vmem:[#allocation7] sm:$0xff]  ;;  %v462_v22 = vld [vmem:[#allocation7 + $0x8] sm:$0xff]  ;;  %v464_v25 = vld [vmem:[#allocation7 + $0x18] sm:$0xff]  ;;  %vm643_vm0 = vcmask 130112   ;;  %vm708_vm1 = vcmask 1041409  }
  0x57   :  { %v9405_v3 = vshrl.u32 %v199_v0, 7  ;;  %v633_v4 = vand.u32 127, %v199_v0  ;;  %v465_v30 = vld [vmem:[#allocation7 + $0x20] sm:$0xff]  ;;  %v466_v32 = vld [vmem:[#allocation7 + $0x28] sm:$0xff]  ;;  %v467_v43 = vld [vmem:[#allocation7 + $0x30] sm:$0xff]  ;;  %vm710_vm2 = vcmask 1042434  }
  0x58   :  { %v482_v5 = vunpack.c.0.s8 %v481_v2  ;;  %v469_v37 = vld [vmem:[#allocation7 + $0x40] sm:$0xff]  ;;  %v470_v39 = vld [vmem:[#allocation7 + $0x48] sm:$0xff]  ;;  %v468_v45 = vld [vmem:[#allocation7 + $0x38] sm:$0xff]  ;;  %vm712_vm3 = vcmask 1043459   ;;  %vm714_vm4 = vcmask 1044484   ;;  %vm716_vm5 = vcmask 1045509  }
  0x59   :  { %v9408_v6 = vsub.s32 %v633_v4, %v9405_v3  ;;  %v638_v7 = vadd.s32 4294967288, %v633_v4  ;;  %v9417_v11 = vsub.s32 0, %v9405_v3  ;;  %v471_v49 = vld [vmem:[#allocation7 + $0x50] sm:$0xff]  ;;  %v472_v51 = vld [vmem:[#allocation7 + $0x58] sm:$0xff]  ;;  %v473_v55 = vld [vmem:[#allocation7 + $0x60] sm:$0xff]  ;;  %vm718_vm6 = vcmask 1046534  }
  0x5a   :  { %v9411_v8 = vsub.s32 %v482_v5, %v9405_v3  ;;  %v474_v57 = vld [vmem:[#allocation7 + $0x68] sm:$0xff]  ;;  %v475_v60 = vld [vmem:[#allocation7 + $0x70] sm:$0xff]  ;;  %v476_v62 = vld [vmem:[#allocation7 + $0x78] sm:$0xff]  ;;  %vm720_vm7 = vcmask 1047559   ;;  %vm723_vm8 = vcmask 130048  }
  0x5b   :  { %v9414_v9 = vsub.s32 %v638_v7, %v9405_v3 }
  0x5c   :  { %v486_v12 = vrot.slane %v477_v10, %v9411_v8  ;;  %v493_v20 = vrot.slane %v479_v13, %v9411_v8 }
  0x5e   :  { %v502_v14 = vrot.slane %v486_v12, %v9411_v8  ;;  %v494_v15 = vcombine.high %v486_v12, %v486_v12  ;;  %v509_v29 = vrot.slane %v493_v20, %v9411_v8  ;;  %v495_v36 = vcombine.high %v493_v20, %v493_v20 }
  0x60   :  { %v531_v17 = vrot.slane %v502_v14, %v9417_v11  ;;  %v516_v18 = vrot.slane %v494_v15, %v9411_v8  ;;  %v524_v19 = vcombine.high %v502_v14, %v502_v14  ;;  %v547_v34 = vrot.slane %v509_v29, %v9417_v11 }
  0x61   :  { %v523_v42 = vrot.slane %v495_v36, %v9411_v8  ;;  %v525_v48 = vcombine.high %v509_v29, %v509_v29 }
  0x62   :  { %v568_v23 = vmul.f32 %v531_v17, %v461_v16  ;;  %v535_v24 = vrot.slane %v516_v18, %v9417_v11  ;;  %v569_v27 = vmul.f32 %v531_v17, %v462_v22  ;;  %v539_v28 = vrot.slane %v524_v19, %v9417_v11 }
  0x63   :  { %v526_v35 = vcombine.high %v516_v18, %v516_v18  ;;  %v576_v40 = vmul.f32 %v547_v34, %v469_v37  ;;  %v577_v44 = vmul.f32 %v547_v34, %v470_v39  ;;  %v551_v47 = vrot.slane %v523_v42, %v9417_v11 }
  0x64   :  { %584 = vadd.xlane.f32.xlu0 %v568_v23  ;;  %v570_v26 = vmul.f32 %v535_v24, %v463_v21  ;;  %v571_v31 = vmul.f32 %v535_v24, %v464_v25  ;;  %v572_v33 = vmul.f32 %v539_v28, %v465_v30  ;;  %v573_v38 = vmul.f32 %v539_v28, %v466_v32 }
  0x65   :  { %v543_v41 = vrot.slane %v526_v35, %v9417_v11  ;;  %v578_v52 = vmul.f32 %v551_v47, %v471_v49  ;;  %v555_v53 = vrot.slane %v525_v48, %v9417_v11  ;;  %v527_v54 = vcombine.high %v523_v42, %v523_v42 }
  0x66   :  { %588 = vadd.xlane.f32.xlu1 %v570_v26  ;;  %v579_v56 = vmul.f32 %v551_v47, %v472_v51 }
  0x67   :  { %v574_v46 = vmul.f32 %v543_v41, %v467_v43  ;;  %v575_v50 = vmul.f32 %v543_v41, %v468_v45  ;;  %v580_v58 = vmul.f32 %v555_v53, %v473_v55  ;;  %v559_v59 = vrot.slane %v527_v54, %v9417_v11 }
  0x68   :  { %586 = vadd.xlane.f32.xlu0 %v569_v27  ;;  %v581_v61 = vmul.f32 %v555_v53, %v474_v57  ;;  %v9313_v54 = vmov 0   ;;  %v9514_v55 = vsub.s32 1, %v9405_v3 }
  0x69   :  { %v582_v63 = vmul.f32 %v559_v59, %v475_v60  ;;  %v583_v0 = vmul.f32 %v559_v59, %v476_v62  ;;  %8706 = vset.pattern.permute.xlu0 %v9313_v54  ;;  %8705 = vset.pattern.permute.xlu1 %v9313_v54  ;;  %v9519_v59 = vsub.s32 5, %v9405_v3  ;;  %v9524_v62 = vsub.s32 2, %v9405_v3 }
  0x6a   :  { %590 = vadd.xlane.f32.xlu1 %v571_v31 }
  0x6c   :  { %592 = vadd.xlane.f32.xlu0 %v572_v33 }
  0x6e   :  { %594 = vadd.xlane.f32.xlu1 %v573_v38 }
  0x70   :  { %600 = vadd.xlane.f32.xlu0 %v576_v40 }
  0x72   :  { %602 = vadd.xlane.f32.xlu1 %v577_v44 }
  0x74   :  { %596 = vadd.xlane.f32.xlu0 %v574_v46 }
  0x76   :  { %598 = vadd.xlane.f32.xlu1 %v575_v50 }
  0x78   :  { %604 = vadd.xlane.f32.xlu0 %v578_v52 }
  0x7a   :  { %606 = vadd.xlane.f32.xlu1 %v579_v56 }
  0x7c   :  { %608 = vadd.xlane.f32.xlu0 %v580_v58 }
  0x7e   :  { %610 = vadd.xlane.f32.xlu1 %v581_v61 }
  0x80   :  { %612 = vadd.xlane.f32.xlu0 %v582_v63 }
  0x82   :  { %614 = vadd.xlane.f32.xlu1 %v583_v0  ;;  %v9528_v0 = vsub.s32 6, %v9405_v3 }
  0xed   :  { %v9433_v1 = vpop.xlane.xlu0 %584 }
  0xee   :  { %v637_v25 = vrot.slane %v9433_v1, %v9408_v6 }
  0xef   :  { %v9435_v2 = vpop.xlane.xlu1 %588 }
  0xf0   :  { %v648_v20 = vrot.slane %v9435_v2, %v9408_v6 }
  0xf1   :  { %v9437_v4 = vpop.xlane.xlu0 %586 }
  0xf2   :  { %v642_v21 = vrot.slane %v9437_v4, %v9414_v9 }
  0xf3   :  { %v9439_v5 = vpop.xlane.xlu1 %590 }
  0xf4   :  { %v652_v16 = vrot.slane %v9439_v5, %v9414_v9  ;;  %v644_v29 = vsel %vm643_vm0, %v642_v21, %v637_v25 }
  0xf5   :  { %v9441_v7 = vpop.xlane.xlu0 %592 }
  0xf6   :  { %v657_v18 = vrot.slane %v9441_v7, %v9408_v6  ;;  %v653_v26 = vsel %vm643_vm0, %v652_v16, %v648_v20 }
  0xf7   :  { %v9443_v10 = vpop.xlane.xlu1 %594  ;;  %v709_v33 = vsel %vm708_vm1, %v653_v26, %v644_v29 }
  0xf8   :  { %v661_v17 = vrot.slane %v9443_v10, %v9414_v9 }
  0xf9   :  { %v9445_v12 = vpop.xlane.xlu0 %600 }
  0xfa   :  { %v662_v27 = vsel %vm643_vm0, %v661_v17, %v657_v18  ;;  %v675_v35 = vrot.slane %v9445_v12, %v9408_v6 }
  0xfb   :  { %v9447_v13 = vpop.xlane.xlu1 %602  ;;  %v711_v38 = vsel %vm710_vm2, %v662_v27, %v709_v33 }
  0xfc   :  { %v679_v34 = vrot.slane %v9447_v13, %v9414_v9 }
  0xfd   :  { %v9449_v14 = vpop.xlane.xlu0 %596 }
  0xfe   :  { %v666_v23 = vrot.slane %v9449_v14, %v9408_v6  ;;  %v680_v44 = vsel %vm643_vm0, %v679_v34, %v675_v35  ;;  %v9551_v34 = vsub.s32 4, %v9405_v3 }
  0xff   :  { %v9451_v15 = vpop.xlane.xlu1 %598 }
 0x100   :  { %v670_v22 = vrot.slane %v9451_v15, %v9414_v9 }
 0x101   :  { %v9459_v19 = vpop.xlane.xlu0 %604 }
 0x102   :  { %v671_v30 = vsel %vm643_vm0, %v670_v22, %v666_v23  ;;  %v684_v32 = vrot.slane %v9459_v19, %v9408_v6  ;;  %v9542_v23 = vsub.s32 3, %v9405_v3 }
 0x103   :  { %v9469_v24 = vpop.xlane.xlu1 %606  ;;  %v713_v40 = vsel %vm712_vm3, %v671_v30, %v711_v38 }
 0x104   :  { %v688_v31 = vrot.slane %v9469_v24, %v9414_v9  ;;  %v715_v48 = vsel %vm714_vm4, %v680_v44, %v713_v40 }
 0x105   :  { %v9475_v28 = vpop.xlane.xlu0 %608 }
 0x106   :  { %v693_v37 = vrot.slane %v9475_v28, %v9408_v6  ;;  %v689_v42 = vsel %vm643_vm0, %v688_v31, %v684_v32 }
 0x107   :  { %v9488_v36 = vpop.xlane.xlu1 %610  ;;  %v717_v49 = vsel %vm716_vm5, %v689_v42, %v715_v48 }
 0x108   :  { %v697_v39 = vrot.slane %v9488_v36, %v9414_v9 }
 0x109   :  { %v9496_v41 = vpop.xlane.xlu0 %612 }
 0x10a   :  { %v702_v43 = vrot.slane %v9496_v41, %v9408_v6  ;;  %v698_v46 = vsel %vm643_vm0, %v697_v39, %v693_v37 }
 0x10b   :  { %v9502_v45 = vpop.xlane.xlu1 %614  ;;  %v719_v51 = vsel %vm718_vm6, %v698_v46, %v717_v49 }
 0x10c   :  { %v706_v47 = vrot.slane %v9502_v45, %v9414_v9 }
 0x10e   :  { %v707_v50 = vsel %vm643_vm0, %v706_v47, %v702_v43 }
 0x10f   :  { %v721_v52 = vsel %vm720_vm7, %v707_v50, %v719_v51 }
 0x110   :  { %v724_v53 = vsel %vm723_vm8, %v721_v52, -inf }
 0x111   :  { %725 = vmax.xlane.f32.xlu0 %v724_v53 }
 0x19a   :  { %v726_v56 = vpop.xlane.xlu0 %725 }
 0x19b   :  { %v731_v57 = vrot.slane %v726_v56, %v9417_v11  ;;  %v735_v58 = vrot.slane %v726_v56, %v9514_v55  ;;  %v9531_v16 = vrot.slane %v726_v56, %v9519_v59  ;;  %v739_v20 = vrot.slane %v726_v56, %v9524_v62 }
 0x19c   :  { %v743_v30 = vrot.slane %v726_v56, %v9542_v23 }
 0x19d   :  { %v768_v60 = vsub.f32 %v9433_v1, %v731_v57  ;;  %v769_v61 = vsub.f32 %v9437_v4, %v731_v57  ;;  %v770_v63 = vsub.f32 %v9435_v2, %v735_v58  ;;  %v771_v21 = vsub.f32 %v9439_v5, %v735_v58 }
 0x19e   :  { %v9536_v4 = vsub.s32 7, %v9405_v3  ;;  %v755_v2 = vrot.slane %v726_v56, %v9528_v0  ;;  %v778_v22 = vsub.f32 %v9459_v19, %v9531_v16  ;;  %v772_v25 = vsub.f32 %v9441_v7, %v739_v20 }
 0x19f   :  { %v784_v17 = vmul.f32 1.442695, %v768_v60  ;;  %v786_v18 = vmul.f32 1.442695, %v769_v61  ;;  %v788_v1 = vmul.f32 1.442695, %v770_v63  ;;  %v773_v31 = vsub.f32 %v9443_v10, %v739_v20 }
 0x1a0   :  { %11636 = vst [vmem:[#allocation22_spill] sm:$0xff] %v9536_v4  ;;  %v790_v26 = vmul.f32 1.442695, %v771_v21  ;;  %v759_v5 = vrot.slane %v726_v56, %v9536_v4  ;;  %v780_v27 = vsub.f32 %v9475_v28, %v755_v2  ;;  %v804_v29 = vmul.f32 1.442695, %v778_v22 }
 0x1a1   :  { %8708 = vpow2.f32 %v784_v17  ;;  %v792_v32 = vmul.f32 1.442695, %v772_v25  ;;  %v774_v7 = vsub.f32 %v9449_v14, %v743_v30  ;;  %v794_v35 = vmul.f32 1.442695, %v773_v31 }
 0x1a2   :  { %8710 = vpow2.f32 %v786_v18  ;;  %v782_v19 = vsub.f32 %v9496_v41, %v759_v5  ;;  %v808_v33 = vmul.f32 1.442695, %v780_v27  ;;  %v747_v10 = vrot.slane %v726_v56, %v9551_v34 }
 0x1a3   :  { %8712 = vpow2.f32 %v788_v1  ;;  %v775_v39 = vsub.f32 %v9451_v15, %v743_v30  ;;  %v796_v3 = vmul.f32 1.442695, %v774_v7  ;;  %v781_v50 = vsub.f32 %v9488_v36, %v755_v2 }
 0x1a4   :  { %8714 = vpow2.f32 %v790_v26  ;;  %v812_v38 = vmul.f32 1.442695, %v782_v19  ;;  %v776_v14 = vsub.f32 %v9445_v12, %v747_v10  ;;  %v777_v44 = vsub.f32 %v9447_v13, %v747_v10 }
 0x1a5   :  { %8716 = vpow2.f32 %v804_v29  ;;  %v798_v41 = vmul.f32 1.442695, %v775_v39  ;;  %v779_v12 = vsub.f32 %v9469_v24, %v9531_v16  ;;  %v783_v24 = vsub.f32 %v9502_v45, %v759_v5 }
 0x1a6   :  { %8718 = vpow2.f32 %v792_v32  ;;  %v800_v15 = vmul.f32 1.442695, %v776_v14  ;;  %v802_v48 = vmul.f32 1.442695, %v777_v44  ;;  %v810_v53 = vmul.f32 1.442695, %v781_v50 }
 0x1a7   :  { %8720 = vpow2.f32 %v808_v33  ;;  %v806_v51 = vmul.f32 1.442695, %v779_v12  ;;  %v814_v56 = vmul.f32 1.442695, %v783_v24 }
 0x1a8   :  { %8722 = vpow2.f32 %v794_v35 }
 0x1a9   :  { %8724 = vpow2.f32 %v812_v38 }
 0x1aa   :  { %8726 = vpow2.f32 %v796_v3 }
 0x1ab   :  { %8728 = vpow2.f32 %v798_v41 }
 0x1ac   :  { %8730 = vpow2.f32 %v800_v15 }
 0x1ad   :  { %8732 = vpow2.f32 %v802_v48 }
 0x1ae   :  { %v9554_v37 = vpop.eup %8708  ;;  %8734 = vpow2.f32 %v806_v51 }
 0x1af   :  { %v9556_v28 = vpop.eup %8710  ;;  %833 = vperm.xlu1 %8705, %v9554_v37   ;;  %8736 = vpow2.f32 %v810_v53 }
 0x1b0   :  { %836 = vperm.xlu0 %8706, %v9556_v28   ;;  %v9562_v40 = vpop.eup %8712  ;;  %8738 = vpow2.f32 %v814_v56 }
 0x1b1   :  { %v9566_v42 = vpop.eup %8714 }
 0x1b2   :  { %v9569_v43 = vpop.eup %8716 }
 0x1b3   :  { %839 = vperm.xlu1 %8705, %v9562_v40   ;;  %v9573_v46 = vpop.eup %8718 }
 0x1b4   :  { %863 = vperm.xlu0 %8706, %v9569_v43   ;;  %v9576_v47 = vpop.eup %8720 }
 0x1b5   :  { %v9581_v49 = vpop.eup %8722 }
 0x1b6   :  { %v9584_v13 = vpop.eup %8724 }
 0x1b7   :  { %842 = vperm.xlu1 %8705, %v9566_v42   ;;  %v9588_v52 = vpop.eup %8726 }
 0x1b8   :  { %869 = vperm.xlu0 %8706, %v9576_v47   ;;  %v9592_v54 = vpop.eup %8728 }
 0x1b9   :  { %v9595_v57 = vpop.eup %8730 }
 0x1ba   :  { %v9598_v36 = vpop.eup %8732 }
 0x1bb   :  { %845 = vperm.xlu1 %8705, %v9573_v46   ;;  %v9601_v58 = vpop.eup %8734 }
 0x1bc   :  { %875 = vperm.xlu0 %8706, %v9584_v13   ;;  %v9604_v45 = vpop.eup %8736 }
 0x1bd   :  { %v9607_v60 = vpop.eup %8738 }
 0x1bf   :  { %848 = vperm.xlu1 %8705, %v9581_v49  }
 0x1c3   :  { %851 = vperm.xlu1 %8705, %v9588_v52  }
 0x1c7   :  { %854 = vperm.xlu1 %8705, %v9592_v54  }
 0x1cb   :  { %857 = vperm.xlu1 %8705, %v9595_v57  }
 0x1cf   :  { %860 = vperm.xlu1 %8705, %v9598_v36  }
 0x1d3   :  { %866 = vperm.xlu1 %8705, %v9601_v58  }
 0x1d7   :  { %872 = vperm.xlu1 %8705, %v9604_v45  }
 0x1db   :  { %878 = vperm.xlu1 %8705, %v9607_v60  }
 0x22a   :  { %v834_v61 = vpop.permute.xlu1 %833 }
 0x22b   :  { %v837_v21 = vpop.permute.xlu0 %836  ;;  %v883_v31 = vrot.slane %v834_v61, %v9408_v6 }
 0x22c   :  { %v887_v30 = vrot.slane %v837_v21, %v9414_v9 }
 0x22e   :  { %v840_v63 = vpop.permute.xlu1 %839  ;;  %v888_v41 = vsel %vm643_vm0, %v887_v30, %v883_v31  ;;  %v186_v30 = vld [vmem:[#allocation10 + $0x1a8] sm:$0xff]  ;;  %v185_v31 = vld [vmem:[#allocation10 + $0x1a0] sm:$0xff] }
 0x22f   :  { %v864_v22 = vpop.permute.xlu0 %863  ;;  %v892_v32 = vrot.slane %v840_v63, %v9408_v6 }
 0x230   :  { %v928_v44 = vrot.slane %v864_v22, %v9408_v6 }
 0x232   :  { %v843_v16 = vpop.permute.xlu1 %842 }
 0x233   :  { %v896_v26 = vrot.slane %v843_v16, %v9414_v9  ;;  %v870_v5 = vpop.permute.xlu0 %869 }
 0x234   :  { %v937_v48 = vrot.slane %v870_v5, %v9408_v6  ;;  %v193_v5 = vld [vmem:[#allocation10 + $0x1e0] sm:$0xff] }
 0x235   :  { %v897_v35 = vsel %vm643_vm0, %v896_v26, %v892_v32  ;;  %v194_v26 = vld [vmem:[#allocation10 + $0x1e8] sm:$0xff] }
 0x236   :  { %v846_v17 = vpop.permute.xlu1 %845  ;;  %v952_v50 = vsel %vm708_vm1, %v897_v35, %v888_v41  ;;  %219 = vmatprep.subr.mxu1 %v194_v26  ;;  %v182_v32 = vld [vmem:[#allocation10 + $0x188] sm:$0xff] }
 0x237   :  { %v901_v33 = vrot.slane %v846_v17, %v9408_v6  ;;  %v876_v51 = vpop.permute.xlu0 %875  ;;  %220 = vmatpush1.msra.mxu1 %v193_v5  ;;  %v174_v35 = vld [vmem:[#allocation10 + $0x148] sm:$0xff] }
 0x238   :  { %v946_v17 = vrot.slane %v876_v51, %v9408_v6  ;;  %v162_v41 = vld [vmem:[#allocation10 + $0xe8] sm:$0xff] }
 0x239   :  { %v150_v51 = vld [vmem:[#allocation10 + $0x88] sm:$0xff] }
 0x23a   :  { %v849_v18 = vpop.permute.xlu1 %848  ;;  %v134_v26 = vld [vmem:[#allocation10 + $0x8] sm:$0xff] }
 0x23b   :  { %v905_v27 = vrot.slane %v849_v18, %v9414_v9 }
 0x23d   :  { %v906_v39 = vsel %vm643_vm0, %v905_v27, %v901_v33  ;;  %v190_v27 = vld [vmem:[#allocation10 + $0x1c8] sm:$0xff] }
 0x23e   :  { %v852_v20 = vpop.permute.xlu1 %851  ;;  %v953_v53 = vsel %vm710_vm2, %v906_v39, %v952_v50  ;;  %221 = vmatprep.subr.mxu1 %v190_v27  ;;  %v178_v33 = vld [vmem:[#allocation10 + $0x168] sm:$0xff]  ;;  %v169_v39 = vld [vmem:[#allocation10 + $0x120] sm:$0xff] }
 0x23f   :  { %v910_v38 = vrot.slane %v852_v20, %v9408_v6  ;;  %v153_v50 = vld [vmem:[#allocation10 + $0xa0] sm:$0xff] }
 0x242   :  { %v855_v1 = vpop.permute.xlu1 %854 }
 0x243   :  { %v914_v19 = vrot.slane %v855_v1, %v9414_v9 }
 0x245   :  { %v915_v15 = vsel %vm643_vm0, %v914_v19, %v910_v38  ;;  %v181_v19 = vld [vmem:[#allocation10 + $0x180] sm:$0xff] }
 0x246   :  { %v858_v2 = vpop.permute.xlu1 %857  ;;  %v954_v61 = vsel %vm712_vm3, %v915_v15, %v953_v53  ;;  %v173_v38 = vld [vmem:[#allocation10 + $0x140] sm:$0xff]  ;;  %v158_v15 = vld [vmem:[#allocation10 + $0xc8] sm:$0xff] }
 0x247   :  { %v919_v3 = vrot.slane %v858_v2, %v9408_v6  ;;  %v146_v53 = vld [vmem:[#allocation10 + $0x68] sm:$0xff] }
 0x24a   :  { %v861_v25 = vpop.permute.xlu1 %860 }
 0x24b   :  { %v923_v7 = vrot.slane %v861_v25, %v9414_v9 }
 0x24d   :  { %v924_v24 = vsel %vm643_vm0, %v923_v7, %v919_v3  ;;  %v177_v7 = vld [vmem:[#allocation10 + $0x160] sm:$0xff]  ;;  %v166_v3 = vld [vmem:[#allocation10 + $0x108] sm:$0xff] }
 0x24e   :  { %v867_v29 = vpop.permute.xlu1 %866  ;;  %v955_v20 = vsel %vm714_vm4, %v924_v24, %v954_v61  ;;  %v149_v24 = vld [vmem:[#allocation10 + $0x80] sm:$0xff]  ;;  %v142_v61 = vld [vmem:[#allocation10 + $0x48] sm:$0xff] }
 0x24f   :  { %v932_v10 = vrot.slane %v867_v29, %v9414_v9  ;;  %v189_v29 = vld [vmem:[#allocation10 + $0x1c0] sm:$0xff] }
 0x250   :  { %222 = vmatpush1.msra.mxu1 %v189_v29 }
 0x251   :  { %v933_v56 = vsel %vm643_vm0, %v932_v10, %v928_v44  ;;  %223 = vmatprep.subr.mxu1 %v186_v30  ;;  %v170_v10 = vld [vmem:[#allocation10 + $0x128] sm:$0xff]  ;;  %v161_v44 = vld [vmem:[#allocation10 + $0xe0] sm:$0xff] }
 0x252   :  { %v873_v14 = vpop.permute.xlu1 %872  ;;  %v956_v21 = vsel %vm716_vm5, %v933_v56, %v955_v20  ;;  %224 = vmatpush1.msra.mxu1 %v185_v31  ;;  %v145_v56 = vld [vmem:[#allocation10 + $0x60] sm:$0xff] }
 0x253   :  { %v941_v12 = vrot.slane %v873_v14, %v9414_v9  ;;  %225 = vmatprep.subr.mxu1 %v182_v32  ;;  %v165_v14 = vld [vmem:[#allocation10 + $0x100] sm:$0xff] }
 0x254   :  { %226 = vmatpush1.msra.mxu1 %v181_v19  ;;  %v141_v20 = vld [vmem:[#allocation10 + $0x40] sm:$0xff]  ;;  %v195_v19 = vld [vmem:[#allocation10 + $0x1f0] sm:$0xff] }
 0x255   :  { %v942_v16 = vsel %vm643_vm0, %v941_v12, %v937_v48  ;;  %227 = vmatprep.subr.mxu1 %v178_v33  ;;  %v157_v12 = vld [vmem:[#allocation10 + $0xc0] sm:$0xff]  ;;  %v154_v48 = vld [vmem:[#allocation10 + $0xa8] sm:$0xff]  ;;  %v11629_v33 = vmov 0.0  }
 0x256   :  { %v879_v63 = vpop.permute.xlu1 %878  ;;  %v957_v2 = vsel %vm718_vm6, %v942_v16, %v956_v21  ;;  %228 = vmatpush1.msra.mxu1 %v177_v7  ;;  %v138_v21 = vld [vmem:[#allocation10 + $0x28] sm:$0xff]  ;;  %v133_v31 = vld [vmem:[#allocation10] sm:$0xff]  ;;  %283 = vmatprep.mubr.f32.mxu1 %v11629_v33  ;;  %v188_v7 = vld [vmem:[#allocation10 + $0x1b8] sm:$0xff] }
 0x257   :  { %v950_v18 = vrot.slane %v879_v63, %v9414_v9  ;;  %229 = vmatprep.subr.mxu1 %v174_v35  ;;  %1321 = vmatprep.mubr.f32.mxu0 %v11629_v33 }
 0x258   :  { %230 = vmatpush1.msra.mxu1 %v173_v38  ;;  %v187_v38 = vld [vmem:[#allocation10 + $0x1b0] sm:$0xff] }
 0x259   :  { %v951_v1 = vsel %vm643_vm0, %v950_v18, %v946_v17  ;;  %231 = vmatprep.subr.mxu1 %v170_v10  ;;  %v184_v10 = vld [vmem:[#allocation10 + $0x198] sm:$0xff] }
 0x25a   :  { %v958_v22 = vsel %vm720_vm7, %v951_v1, %v957_v2  ;;  %232 = vmatpush1.msra.mxu1 %v169_v39  ;;  %v137_v1 = vld [vmem:[#allocation10 + $0x20] sm:$0xff]  ;;  %v183_v39 = vld [vmem:[#allocation10 + $0x190] sm:$0xff] }
 0x25b   :  { %v960_v25 = vsel %vm723_vm8, %v958_v22, 0.0  ;;  %233 = vmatprep.subr.mxu1 %v166_v3 }
 0x25c   :  { %961 = vadd.xlane.f32.xlu0 %v960_v25  ;;  %234 = vmatpush1.msra.mxu1 %v165_v14  ;;  %v180_v14 = vld [vmem:[#allocation10 + $0x178] sm:$0xff] }
 0x25d   :  { %235 = vmatprep.subr.mxu1 %v162_v41  ;;  %v9677_v41 = vld [vmem:[#allocation4 + $0x8] sm:$0xff] }
 0x25e   :  { %236 = vmatpush1.msra.mxu1 %v161_v44  ;;  %v176_v44 = vld [vmem:[#allocation10 + $0x158] sm:$0xff] }
 0x25f   :  { %237 = vmatprep.subr.mxu1 %v158_v15  ;;  %v175_v15 = vld [vmem:[#allocation10 + $0x150] sm:$0xff] }
 0x260   :  { %238 = vmatpush1.msra.mxu1 %v157_v12 }
 0x261   :  { %239 = vmatprep.subr.mxu1 %v154_v48  ;;  %v172_v48 = vld [vmem:[#allocation10 + $0x138] sm:$0xff] }
 0x262   :  { %240 = vmatpush1.msra.mxu1 %v153_v50  ;;  %v9682_v50 = vld [vmem:[#allocation4 + $0x10] sm:$0xff] }
 0x263   :  { %241 = vmatprep.subr.mxu1 %v150_v51  ;;  %v168_v51 = vld [vmem:[#allocation10 + $0x118] sm:$0xff] }
 0x264   :  { %242 = vmatpush1.msra.mxu1 %v149_v24  ;;  %v167_v24 = vld [vmem:[#allocation10 + $0x110] sm:$0xff] }
 0x265   :  { %243 = vmatprep.subr.mxu1 %v146_v53 }
 0x266   :  { %244 = vmatpush1.msra.mxu1 %v145_v56  ;;  %v164_v56 = vld [vmem:[#allocation10 + $0xf8] sm:$0xff] }
 0x267   :  { %245 = vmatprep.subr.mxu1 %v142_v61  ;;  %v9690_v61 = vld [vmem:[#allocation4 + $0x18] sm:$0xff] }
 0x268   :  { %246 = vmatpush1.msra.mxu1 %v141_v20  ;;  %v159_v20 = vld [vmem:[#allocation10 + $0xd0] sm:$0xff] }
 0x269   :  { %247 = vmatprep.subr.mxu1 %v138_v21  ;;  %v9695_v21 = vld [vmem:[#allocation4 + $0x20] sm:$0xff] }
 0x26a   :  { %248 = vmatpush1.msra.mxu1 %v137_v1  ;;  %v155_v1 = vld [vmem:[#allocation10 + $0xb0] sm:$0xff] }
 0x26b   :  { %249 = vmatprep.subr.mxu1 %v134_v26 }
 0x26c   :  { %250 = vmatpush1.msra.mxu1 %v133_v31  ;;  %v139_v31 = vld [vmem:[#allocation10 + $0x30] sm:$0xff] }
 0x2e5   :  { %v962_v63 = vpop.xlane.xlu0 %961 }
 0x2e6   :  { %8740 = vrcp.f32 %v962_v63  ;;  %v163_v63 = vld [vmem:[#allocation10 + $0xf0] sm:$0xff] }
 0x2f3   :  { %v9642_v16 = vpop.eup %8740 }
 0x2f4   :  { %v9646_v17 = vrot.slane %v9642_v16, %v9551_v34  ;;  %v968_v18 = vrot.slane %v9642_v16, %v9417_v11  ;;  %v9655_v25 = vrot.slane %v9642_v16, %v9536_v4  ;;  %v976_v30 = vrot.slane %v9642_v16, %v9524_v62 }
 0x2f5   :  { %v980_v35 = vrot.slane %v9642_v16, %v9542_v23 }
 0x2f6   :  { %v1013_v2 = vmul.f32 %v9595_v57, %v9646_v17  ;;  %v1005_v22 = vmul.f32 %v9554_v37, %v968_v18  ;;  %v1019_v5 = vmul.f32 %v9584_v13, %v9655_v25  ;;  %v1006_v27 = vmul.f32 %v9556_v28, %v968_v18  ;;  %v196_v13 = vld [vmem:[#allocation10 + $0x1f8] sm:$0xff]  ;;  %v9667_v28 = vld [vmem:[#allocation4] sm:$0xff] }
 0x2f7   :  { %v972_v57 = vrot.slane %v9642_v16, %v9514_v55  ;;  %v1009_v32 = vmul.f32 %v9573_v46, %v976_v30  ;;  %326 = vmatprep.subr.mxu1 %v196_v13  ;;  %284 = vmatmul.mubr.f32.vlgmr.msra.gmra.mxu1 %v9667_v28  ;;  %v1010_v46 = vmul.f32 %v9581_v49, %v976_v30  ;;  %v179_v49 = vld [vmem:[#allocation10 + $0x170] sm:$0xff]  ;;  %v160_v18 = vld [vmem:[#allocation10 + $0xd8] sm:$0xff]  ;;  %v1238_v13 = vld [vmem:[#allocation12 + $0x1e8] sm:$0xff] }
 0x2f8   :  { %1063 = vperm.xlu0 %8706, %v1013_v2   ;;  %1023 = vperm.xlu1 %8705, %v1005_v22   ;;  %v1011_v3 = vmul.f32 %v9588_v52, %v980_v35  ;;  %v1012_v12 = vmul.f32 %v9592_v54, %v980_v35  ;;  %v171_v52 = vld [vmem:[#allocation10 + $0x130] sm:$0xff]  ;;  %v1014_v53 = vmul.f32 %v9598_v36, %v9646_v17  ;;  %v156_v17 = vld [vmem:[#allocation10 + $0xb8] sm:$0xff] }
 0x2f9   :  { %v1007_v37 = vmul.f32 %v9562_v40, %v972_v57  ;;  %v1008_v29 = vmul.f32 %v9566_v42, %v972_v57  ;;  %v192_v40 = vld [vmem:[#allocation10 + $0x1d8] sm:$0xff]  ;;  %v191_v42 = vld [vmem:[#allocation10 + $0x1d0] sm:$0xff]  ;;  %327 = vmatpush1.msra.mxu1 %v195_v19  ;;  %289 = vmatprep.mubr.f32.mxu1 %v11629_v33  ;;  %v988_v54 = vrot.slane %v9642_v16, %v9519_v59 }
 0x2fa   :  { %328 = vmatprep.subr.mxu1 %v192_v40  ;;  %v152_v2 = vld [vmem:[#allocation10 + $0x98] sm:$0xff]  ;;  %v151_v22 = vld [vmem:[#allocation10 + $0x90] sm:$0xff]  ;;  %1257 = vmatprep.subr.mxu0 %v1238_v13 }
 0x2fb   :  { %329 = vmatpush1.msra.mxu1 %v191_v42  ;;  %v1015_v36 = vmul.f32 %v9569_v43, %v988_v54  ;;  %v1016_v26 = vmul.f32 %v9601_v58, %v988_v54  ;;  %v992_v43 = vrot.slane %v9642_v16, %v9528_v0  ;;  %v147_v57 = vld [vmem:[#allocation10 + $0x70] sm:$0xff]  ;;  %v140_v16 = vld [vmem:[#allocation10 + $0x38] sm:$0xff]  ;;  %v1237_v42 = vld [vmem:[#allocation12 + $0x1e0] sm:$0xff] }
 0x2fc   :  { %1093 = vperm.xlu0 %8706, %v1019_v5   ;;  %1028 = vperm.xlu1 %8705, %v1006_v27   ;;  %v148_v5 = vld [vmem:[#allocation10 + $0x78] sm:$0xff]  ;;  %v9702_v27 = vld [vmem:[#allocation4 + $0x28] sm:$0xff]  ;;  %v9707_v30 = vld [vmem:[#allocation4 + $0x30] sm:$0xff] }
 0x2fd   :  { %330 = vmatprep.subr.mxu1 %v188_v7  ;;  %290 = vmatmul.mubr.f32.gmra.mxu1 %v9677_v41  ;;  %v1017_v58 = vmul.f32 %v9576_v47, %v992_v43  ;;  %v135_v19 = vld [vmem:[#allocation10 + $0x10] sm:$0xff]  ;;  %v1018_v40 = vmul.f32 %v9604_v45, %v992_v43  ;;  %v1240_v47 = vld [vmem:[#allocation12 + $0x1f8] sm:$0xff] }
 0x2fe   :  { %331 = vmatpush1.msra.mxu1 %v187_v38  ;;  %295 = vmatprep.mubr.f32.mxu1 %v11629_v33  ;;  %v1239_v7 = vld [vmem:[#allocation12 + $0x1f0] sm:$0xff]  ;;  %v1236_v35 = vld [vmem:[#allocation12 + $0x1d8] sm:$0xff]  ;;  %v1233_v38 = vld [vmem:[#allocation12 + $0x1c0] sm:$0xff] }
 0x2ff   :  { %332 = vmatprep.subr.mxu1 %v184_v10  ;;  %v1020_v10 = vmul.f32 %v9607_v60, %v9655_v25  ;;  %1258 = vmatpush1.msra.mxu0 %v1237_v42  ;;  %v1235_v45 = vld [vmem:[#allocation12 + $0x1d0] sm:$0xff]  ;;  %v1222_v60 = vld [vmem:[#allocation12 + $0x168] sm:$0xff]  ;;  %v1224_v25 = vld [vmem:[#allocation12 + $0x178] sm:$0xff] }
 0x300   :  { %1033 = vperm.xlu1 %8705, %v1007_v37   ;;  %333 = vmatpush1.msra.mxu1 %v183_v39  ;;  %v144_v37 = vld [vmem:[#allocation10 + $0x58] sm:$0xff]  ;;  %v1230_v39 = vld [vmem:[#allocation12 + $0x1a8] sm:$0xff]  ;;  %v1219_v54 = vld [vmem:[#allocation12 + $0x150] sm:$0xff] }
 0x301   :  { %334 = vmatprep.subr.mxu1 %v180_v14  ;;  %296 = vmatmul.mubr.f32.gmra.mxu1 %v9682_v50  ;;  %v1229_v14 = vld [vmem:[#allocation12 + $0x1a0] sm:$0xff]  ;;  %v1207_v43 = vld [vmem:[#allocation12 + $0xf0] sm:$0xff]  ;;  %v1196_v13 = vld [vmem:[#allocation12 + $0x98] sm:$0xff] }
 0x302   :  { %335 = vmatpush1.msra.mxu1 %v179_v49  ;;  %301 = vmatprep.mubr.f32.mxu1 %v11629_v33  ;;  %v1231_v49 = vld [vmem:[#allocation12 + $0x1b0] sm:$0xff]  ;;  %v1189_v42 = vld [vmem:[#allocation12 + $0x60] sm:$0xff] }
 0x303   :  { %336 = vmatprep.subr.mxu1 %v176_v44  ;;  %v1226_v44 = vld [vmem:[#allocation12 + $0x188] sm:$0xff] }
 0x304   :  { %1038 = vperm.xlu1 %8705, %v1008_v29   ;;  %337 = vmatpush1.msra.mxu1 %v175_v15  ;;  %v143_v29 = vld [vmem:[#allocation10 + $0x50] sm:$0xff]  ;;  %v1228_v15 = vld [vmem:[#allocation12 + $0x198] sm:$0xff] }
 0x305   :  { %338 = vmatprep.subr.mxu1 %v172_v48  ;;  %302 = vmatmul.mubr.f32.gmra.mxu1 %v9690_v61  ;;  %v1221_v48 = vld [vmem:[#allocation12 + $0x160] sm:$0xff] }
 0x306   :  { %339 = vmatpush1.msra.mxu1 %v171_v52  ;;  %307 = vmatprep.mubr.f32.mxu1 %v11629_v33  ;;  %v1223_v52 = vld [vmem:[#allocation12 + $0x170] sm:$0xff] }
 0x307   :  { %340 = vmatprep.subr.mxu1 %v168_v51  ;;  %v1218_v51 = vld [vmem:[#allocation12 + $0x148] sm:$0xff] }
 0x308   :  { %1043 = vperm.xlu1 %8705, %v1009_v32   ;;  %341 = vmatpush1.msra.mxu1 %v167_v24  ;;  %v136_v32 = vld [vmem:[#allocation10 + $0x18] sm:$0xff] }
 0x309   :  { %342 = vmatprep.subr.mxu1 %v164_v56  ;;  %308 = vmatmul.mubr.f32.gmra.mxu1 %v9695_v21  ;;  %v1220_v24 = vld [vmem:[#allocation12 + $0x158] sm:$0xff]  ;;  %v1214_v56 = vld [vmem:[#allocation12 + $0x128] sm:$0xff] }
 0x30a   :  { %343 = vmatpush1.msra.mxu1 %v163_v63  ;;  %313 = vmatprep.mubr.f32.mxu1 %v11629_v33  ;;  %v1216_v63 = vld [vmem:[#allocation12 + $0x138] sm:$0xff] }
 0x30b   :  { %344 = vmatprep.subr.mxu1 %v160_v18  ;;  %v1213_v18 = vld [vmem:[#allocation12 + $0x120] sm:$0xff] }
 0x30c   :  { %1048 = vperm.xlu1 %8705, %v1010_v46   ;;  %345 = vmatpush1.msra.mxu1 %v159_v20  ;;  %v1234_v46 = vld [vmem:[#allocation12 + $0x1c8] sm:$0xff]  ;;  %v1215_v20 = vld [vmem:[#allocation12 + $0x130] sm:$0xff] }
 0x30d   :  { %346 = vmatprep.subr.mxu1 %v156_v17  ;;  %314 = vmatmul.mubr.f32.gmra.mxu1 %v9702_v27  ;;  %v1212_v17 = vld [vmem:[#allocation12 + $0x118] sm:$0xff] }
 0x30e   :  { %347 = vmatpush1.msra.mxu1 %v155_v1  ;;  %319 = vmatprep.mubr.f32.mxu1 %v11629_v33  ;;  %v1209_v1 = vld [vmem:[#allocation12 + $0x100] sm:$0xff] }
 0x30f   :  { %348 = vmatprep.subr.mxu1 %v152_v2  ;;  %1259 = vmatprep.subr.mxu0 %v1234_v46  ;;  %v1206_v2 = vld [vmem:[#allocation12 + $0xe8] sm:$0xff] }
 0x310   :  { %1053 = vperm.xlu1 %8705, %v1011_v3   ;;  %349 = vmatpush1.msra.mxu1 %v151_v22  ;;  %v1232_v3 = vld [vmem:[#allocation12 + $0x1b8] sm:$0xff]  ;;  %v1186_v46 = vld [vmem:[#allocation12 + $0x48] sm:$0xff] }
 0x311   :  { %350 = vmatprep.subr.mxu1 %v148_v5  ;;  %320 = vmatmul.mubr.f32.gmra.mxu1 %v9707_v30  ;;  %v1208_v22 = vld [vmem:[#allocation12 + $0xf8] sm:$0xff]  ;;  %v1202_v5 = vld [vmem:[#allocation12 + $0xc8] sm:$0xff] }
 0x312   :  { %351 = vmatpush1.msra.mxu1 %v147_v57  ;;  %390 = vmatprep.mubr.f32.mxu1 %v11629_v33  ;;  %v1204_v57 = vld [vmem:[#allocation12 + $0xd8] sm:$0xff] }
 0x313   :  { %352 = vmatprep.subr.mxu1 %v144_v37  ;;  %1260 = vmatpush1.msra.mxu0 %v1233_v38  ;;  %v1201_v37 = vld [vmem:[#allocation12 + $0xc0] sm:$0xff] }
 0x314   :  { %1058 = vperm.xlu1 %8705, %v1012_v12   ;;  %353 = vmatpush1.msra.mxu1 %v143_v29  ;;  %v1227_v12 = vld [vmem:[#allocation12 + $0x190] sm:$0xff]  ;;  %v1198_v29 = vld [vmem:[#allocation12 + $0xa8] sm:$0xff]  ;;  %v1185_v38 = vld [vmem:[#allocation12 + $0x40] sm:$0xff] }
 0x315   :  { %354 = vmatprep.subr.mxu1 %v140_v16  ;;  %1261 = vmatprep.subr.mxu0 %v1230_v39  ;;  %v1197_v16 = vld [vmem:[#allocation12 + $0xa0] sm:$0xff] }
 0x316   :  { %355 = vmatpush1.msra.mxu1 %v139_v31  ;;  %1262 = vmatpush1.msra.mxu0 %v1229_v14  ;;  %v1199_v31 = vld [vmem:[#allocation12 + $0xb0] sm:$0xff]  ;;  %v1181_v39 = vld [vmem:[#allocation12 + $0x20] sm:$0xff]  ;;  %v1178_v14 = vld [vmem:[#allocation12 + $0x8] sm:$0xff] }
 0x317   :  { %356 = vmatprep.subr.mxu1 %v136_v32  ;;  %1263 = vmatprep.subr.mxu0 %v1226_v44  ;;  %v1194_v32 = vld [vmem:[#allocation12 + $0x88] sm:$0xff]  ;;  %v1177_v44 = vld [vmem:[#allocation12] sm:$0xff] }
 0x318   :  { %1068 = vperm.xlu1 %8705, %v1014_v53   ;;  %357 = vmatpush1.msra.mxu1 %v135_v19  ;;  %v1217_v53 = vld [vmem:[#allocation12 + $0x140] sm:$0xff] }
 0x319   :  { %1328 = vmatprep.subr.mxu1 %v1240_v47  ;;  %391 = vmatmul.mubr.f32.vlgmr.msra.gmra.mxu1 %v9667_v28  ;;  %v1225_v28 = vld [vmem:[#allocation12 + $0x180] sm:$0xff]  ;;  %v1192_v47 = vld [vmem:[#allocation12 + $0x78] sm:$0xff] }
 0x31a   :  { %1329 = vmatpush1.msra.mxu1 %v1239_v7  ;;  %1264 = vmatpush1.msra.mxu0 %v1225_v28  ;;  %v1193_v19 = vld [vmem:[#allocation12 + $0x80] sm:$0xff]  ;;  %v1191_v7 = vld [vmem:[#allocation12 + $0x70] sm:$0xff]  ;;  %v1466_v28 = vld [vmem:[#allocation13 + $0x1f8] sm:$0xff] }
 0x31b   :  { %1330 = vmatprep.subr.mxu1 %v1236_v35  ;;  %396 = vmatprep.mubr.f32.mxu1 %v11629_v33  ;;  %v1188_v35 = vld [vmem:[#allocation12 + $0x58] sm:$0xff] }
 0x31c   :  { %1073 = vperm.xlu1 %8705, %v1015_v36   ;;  %1331 = vmatpush1.msra.mxu1 %v1235_v45  ;;  %v1210_v36 = vld [vmem:[#allocation12 + $0x108] sm:$0xff]  ;;  %v1184_v45 = vld [vmem:[#allocation12 + $0x38] sm:$0xff] }
 0x31d   :  { %1332 = vmatprep.subr.mxu1 %v1232_v3  ;;  %1265 = vmatprep.subr.mxu0 %v1222_v60  ;;  %v1183_v3 = vld [vmem:[#allocation12 + $0x30] sm:$0xff] }
 0x31e   :  { %1333 = vmatpush1.msra.mxu1 %v1231_v49  ;;  %1266 = vmatpush1.msra.mxu0 %v1221_v48  ;;  %v1180_v49 = vld [vmem:[#allocation12 + $0x18] sm:$0xff] }
 0x31f   :  { %1334 = vmatprep.subr.mxu1 %v1228_v15  ;;  %397 = vmatmul.mubr.f32.gmra.mxu1 %v9677_v41  ;;  %v1211_v41 = vld [vmem:[#allocation12 + $0x110] sm:$0xff]  ;;  %v1464_v15 = vld [vmem:[#allocation13 + $0x1e8] sm:$0xff] }
 0x320   :  { %1078 = vperm.xlu1 %8705, %v1016_v26   ;;  %1335 = vmatpush1.msra.mxu1 %v1227_v12  ;;  %v1205_v26 = vld [vmem:[#allocation12 + $0xe0] sm:$0xff] }
 0x321   :  { %1336 = vmatprep.subr.mxu1 %v1224_v25  ;;  %1267 = vmatprep.subr.mxu0 %v1218_v51 }
 0x322   :  { %1337 = vmatpush1.msra.mxu1 %v1223_v52  ;;  %1268 = vmatpush1.msra.mxu0 %v1217_v53  ;;  %v9728_v53 = vld [vmem:[#allocation7 + $0x18] sm:$0xff] }
 0x323   :  { %1338 = vmatprep.subr.mxu1 %v1220_v24  ;;  %402 = vmatprep.mubr.f32.mxu1 %v11629_v33 }
 0x324   :  { %1083 = vperm.xlu1 %8705, %v1017_v58   ;;  %1339 = vmatpush1.msra.mxu1 %v1219_v54  ;;  %v1200_v58 = vld [vmem:[#allocation12 + $0xb8] sm:$0xff] }
 0x325   :  { %1269 = vmatprep.subr.mxu0 %v1214_v56  ;;  %1340 = vmatprep.subr.mxu1 %v1216_v63  ;;  %v9731_v56 = vld [vmem:[#allocation7 + $0x28] sm:$0xff] }
 0x326   :  { %403 = vmatmul.mubr.f32.gmra.mxu1 %v9682_v50  ;;  %1270 = vmatpush1.msra.mxu0 %v1213_v18  ;;  %v1203_v50 = vld [vmem:[#allocation12 + $0xd0] sm:$0xff] }
 0x327   :  { %1341 = vmatpush1.msra.mxu1 %v1215_v20  ;;  %1271 = vmatprep.subr.mxu0 %v1210_v36  ;;  %v9734_v36 = vld [vmem:[#allocation7 + $0x8] sm:$0xff] }
 0x328   :  { %1088 = vperm.xlu1 %8705, %v1018_v40   ;;  %1342 = vmatprep.subr.mxu1 %v1212_v17  ;;  %v1190_v40 = vld [vmem:[#allocation12 + $0x68] sm:$0xff] }
 0x329   :  { %1272 = vmatpush1.msra.mxu0 %v1209_v1  ;;  %1343 = vmatpush1.msra.mxu1 %v1211_v41  ;;  %v9737_v1 = vld [vmem:[#allocation7 + $0x10] sm:$0xff] }
 0x32a   :  { %408 = vmatprep.mubr.f32.mxu1 %v11629_v33  ;;  %1273 = vmatprep.subr.mxu0 %v1206_v2  ;;  %v9740_v2 = vld [vmem:[#allocation7 + $0x38] sm:$0xff] }
 0x32b   :  { %1344 = vmatprep.subr.mxu1 %v1208_v22  ;;  %409 = vmatmul.mubr.f32.gmra.mxu1 %v9690_v61  ;;  %v1195_v61 = vld [vmem:[#allocation12 + $0x90] sm:$0xff] }
 0x32c   :  { %1098 = vperm.xlu1 %8705, %v1020_v10   ;;  %1274 = vmatpush1.msra.mxu0 %v1205_v26  ;;  %v1182_v10 = vld [vmem:[#allocation12 + $0x28] sm:$0xff]  ;;  %v9743_v26 = vld [vmem:[#allocation7 + $0x20] sm:$0xff] }
 0x32d   :  { %1345 = vmatpush1.msra.mxu1 %v1207_v43  ;;  %1275 = vmatprep.subr.mxu0 %v1202_v5  ;;  %v9746_v5 = vld [vmem:[#allocation7 + $0x48] sm:$0xff] }
 0x32e   :  { %1346 = vmatprep.subr.mxu1 %v1204_v57  ;;  %1276 = vmatpush1.msra.mxu0 %v1201_v37  ;;  %v9749_v37 = vld [vmem:[#allocation7] sm:$0xff] }
 0x32f   :  { %1347 = vmatpush1.msra.mxu1 %v1203_v50  ;;  %414 = vmatprep.mubr.f32.mxu1 %v11629_v33 }
 0x330   :  { %1277 = vmatprep.subr.mxu0 %v1198_v29  ;;  %1348 = vmatprep.subr.mxu1 %v1200_v58  ;;  %v9752_v58 = vld [vmem:[#allocation7 + $0x30] sm:$0xff] }
 0x331   :  { %415 = vmatmul.mubr.f32.gmra.mxu1 %v9695_v21  ;;  %1278 = vmatpush1.msra.mxu0 %v1197_v16  ;;  %v1187_v21 = vld [vmem:[#allocation12 + $0x50] sm:$0xff] }
 0x332   :  { %1349 = vmatpush1.msra.mxu1 %v1199_v31  ;;  %1279 = vmatprep.subr.mxu0 %v1194_v32  ;;  %v9755_v31 = vld [vmem:[#allocation7 + $0x40] sm:$0xff] }
 0x333   :  { %1350 = vmatprep.subr.mxu1 %v1196_v13  ;;  %1280 = vmatpush1.msra.mxu0 %v1193_v19 }
 0x334   :  { %1351 = vmatpush1.msra.mxu1 %v1195_v61  ;;  %420 = vmatprep.mubr.f32.mxu1 %v11629_v33 }
 0x335   :  { %1281 = vmatprep.subr.mxu0 %v1190_v40  ;;  %1352 = vmatprep.subr.mxu1 %v1192_v47 }
 0x336   :  { %421 = vmatmul.mubr.f32.gmra.mxu1 %v9702_v27  ;;  %1282 = vmatpush1.msra.mxu0 %v1189_v42  ;;  %v1179_v27 = vld [vmem:[#allocation12 + $0x10] sm:$0xff] }
 0x337   :  { %1353 = vmatpush1.msra.mxu1 %v1191_v7  ;;  %1283 = vmatprep.subr.mxu0 %v1186_v46 }
 0x338   :  { %1354 = vmatprep.subr.mxu1 %v1188_v35  ;;  %1284 = vmatpush1.msra.mxu0 %v1185_v38 }
 0x339   :  { %1355 = vmatpush1.msra.mxu1 %v1187_v21  ;;  %426 = vmatprep.mubr.f32.mxu1 %v11629_v33  ;;  %v9758_v21 = vld [vmem:[#allocation7 + $0x50] sm:$0xff] }
 0x33a   :  { %1285 = vmatprep.subr.mxu0 %v1182_v10  ;;  %1356 = vmatprep.subr.mxu1 %v1184_v45  ;;  %v9761_v45 = vld [vmem:[#allocation7 + $0x58] sm:$0xff] }
 0x33b   :  { %427 = vmatmul.mubr.f32.gmra.mxu1 %v9707_v30  ;;  %1286 = vmatpush1.msra.mxu0 %v1181_v39 }
 0x33c   :  { %1357 = vmatpush1.msra.mxu1 %v1183_v3  ;;  %1287 = vmatprep.subr.mxu0 %v1178_v14 }
 0x33d   :  { %1358 = vmatprep.subr.mxu1 %v1180_v49  ;;  %1288 = vmatpush1.msra.mxu0 %v1177_v44 }
 0x33e   :  { %1359 = vmatpush1.msra.mxu1 %v1179_v27  ;;  %1392 = vmatprep.mubr.f32.mxu1 %v11629_v33 }
 0x33f   :  { %1467 = vmatprep.subr.mxu0 %v1464_v15  ;;  %1538 = vmatprep.subr.mxu1 %v1466_v28 }
 0x373   :  { %v1024_v12 = vpop.permute.xlu1 %1023  ;;  %v1064_v20 = vpop.permute.xlu0 %1063 }
 0x374   :  { %v1101_v50 = vmul.f32 %v9749_v37, %v1024_v12  ;;  %v1109_v32 = vmul.f32 %v9755_v31, %v1064_v20  ;;  %v9767_v20 = vld [vmem:[#allocation7 + $0x68] sm:$0xff] }
 0x377   :  { %v1029_v60 = vpop.permute.xlu1 %1028 }
 0x378   :  { %v1102_v17 = vmul.f32 %v9734_v36, %v1029_v60 }
 0x37a   :  { %v1117_v61 = vadd.f32 %v1102_v17, %v1101_v50  ;;  %v9770_v50 = vld [vmem:[#allocation7 + $0x70] sm:$0xff] }
 0x37b   :  { %v1034_v25 = vpop.permute.xlu1 %1033 }
 0x37c   :  { %v1103_v41 = vmul.f32 %v9737_v1, %v1034_v25  ;;  %v1118_v35 = vrot.slane %v1117_v61, 4 }
 0x37e   :  { %v1119_v15 = vadd.f32 %v1118_v35, %v1117_v61 }
 0x37f   :  { %v1039_v48 = vpop.permute.xlu1 %1038 }
 0x380   :  { %v1104_v54 = vmul.f32 %v9728_v53, %v1039_v48 }
 0x382   :  { %v1124_v29 = vadd.f32 %v1104_v54, %v1103_v41 }
 0x383   :  { %v1044_v52 = vpop.permute.xlu1 %1043 }
 0x384   :  { %v1105_v43 = vmul.f32 %v9743_v26, %v1044_v52  ;;  %v1125_v42 = vrot.slane %v1124_v29, 4 }
 0x386   :  { %v1126_v14 = vadd.f32 %v1125_v42, %v1124_v29 }
 0x387   :  { %v1049_v51 = vpop.permute.xlu1 %1048 }
 0x388   :  { %v1106_v63 = vmul.f32 %v9731_v56, %v1049_v51  ;;  %v1127_v25 = vrot.slane %v1126_v14, 2 }
 0x38a   :  { %v1131_v13 = vadd.f32 %v1106_v63, %v1105_v43  ;;  %v9764_v63 = vld [vmem:[#allocation7 + $0x60] sm:$0xff] }
 0x38b   :  { %v1054_v30 = vpop.permute.xlu1 %1053 }
 0x38c   :  { %v1107_v16 = vmul.f32 %v9752_v58, %v1054_v30  ;;  %v1132_v7 = vrot.slane %v1131_v13, 4  ;;  %v1094_v30 = vpop.permute.xlu0 %1093 }
 0x38d   :  { %v1115_v29 = vmul.f32 %v9770_v50, %v1094_v30 }
 0x38e   :  { %v1133_v44 = vadd.f32 %v1132_v7, %v1131_v13 }
 0x38f   :  { %v1059_v24 = vpop.permute.xlu1 %1058 }
 0x390   :  { %v1108_v22 = vmul.f32 %v9740_v2, %v1059_v24  ;;  %v1134_v52 = vrot.slane %v1133_v44, 2  ;;  %v1120_v24 = vrot.slane %v1119_v15, 2 }
 0x392   :  { %v1138_v40 = vadd.f32 %v1108_v22, %v1107_v16  ;;  %v1128_v22 = vadd.f32 %v1127_v25, %v1126_v14  ;;  %v1135_v16 = vadd.f32 %v1134_v52, %v1133_v44  ;;  %v1121_v13 = vadd.f32 %v1120_v24, %v1119_v15 }
 0x393   :  { %v1069_v18 = vpop.permute.xlu1 %1068 }
 0x394   :  { %v1110_v57 = vmul.f32 %v9746_v5, %v1069_v18  ;;  %v1139_v38 = vrot.slane %v1138_v40, 4  ;;  %v1129_v7 = vrot.slane %v1128_v22, 1 }
 0x396   :  { %v1145_v47 = vadd.f32 %v1110_v57, %v1109_v32  ;;  %v1140_v28 = vadd.f32 %v1139_v38, %v1138_v40  ;;  %v9773_v40 = vld [vmem:[#allocation7 + $0x78] sm:$0xff]  ;;  %v1130_v44 = vadd.f32 %v1129_v7, %v1128_v22  ;;  %v1459_v7 = vld [vmem:[#allocation13 + $0x1c0] sm:$0xff] }
 0x397   :  { %v1074_v19 = vpop.permute.xlu1 %1073 }
 0x398   :  { %v1111_v10 = vmul.f32 %v9758_v21, %v1074_v19  ;;  %v1146_v3 = vrot.slane %v1145_v47, 4  ;;  %v1141_v54 = vrot.slane %v1140_v28, 2 }
 0x39a   :  { %v1147_v60 = vadd.f32 %v1146_v3, %v1145_v47  ;;  %v1142_v19 = vadd.f32 %v1141_v54, %v1140_v28 }
 0x39b   :  { %v1079_v46 = vpop.permute.xlu1 %1078 }
 0x39c   :  { %v1112_v39 = vmul.f32 %v9761_v45, %v1079_v46  ;;  %v1148_v41 = vrot.slane %v1147_v60, 2  ;;  %v1143_v3 = vrot.slane %v1142_v19, 1 }
 0x39e   :  { %v1152_v49 = vadd.f32 %v1112_v39, %v1111_v10  ;;  %v1149_v42 = vadd.f32 %v1148_v41, %v1147_v60  ;;  %v1136_v10 = vrot.slane %v1135_v16, 1  ;;  %v1122_v39 = vrot.slane %v1121_v13, 1 }
 0x39f   :  { %v1084_v27 = vpop.permute.xlu1 %1083 }
 0x3a0   :  { %v1153_v12 = vrot.slane %v1152_v49, 4  ;;  %v1113_v18 = vmul.f32 %v9764_v63, %v1084_v27  ;;  %v1150_v27 = vrot.slane %v1149_v42, 1  ;;  %v1137_v25 = vadd.f32 %v1136_v10, %v1135_v16  ;;  %v1455_v10 = vld [vmem:[#allocation13 + $0x1a0] sm:$0xff] }
 0x3a1   :  { %v1123_v52 = vadd.f32 %v1122_v39, %v1121_v13  ;;  %v1463_v13 = vld [vmem:[#allocation13 + $0x1e0] sm:$0xff]  ;;  %v1457_v39 = vld [vmem:[#allocation13 + $0x1b0] sm:$0xff] }
 0x3a2   :  { %v1154_v48 = vadd.f32 %v1153_v12, %v1152_v49  ;;  %v1151_v60 = vadd.f32 %v1150_v27, %v1149_v42  ;;  %v1462_v42 = vld [vmem:[#allocation13 + $0x1d8] sm:$0xff]  ;;  %v1453_v27 = vld [vmem:[#allocation13 + $0x190] sm:$0xff] }
 0x3a3   :  { %v1089_v51 = vpop.permute.xlu1 %1088 }
 0x3a4   :  { %v1114_v17 = vmul.f32 %v9767_v20, %v1089_v51  ;;  %v1155_v43 = vrot.slane %v1154_v48, 2  ;;  %v1144_v51 = vadd.f32 %v1143_v3, %v1142_v19  ;;  %v1465_v19 = vld [vmem:[#allocation13 + $0x1f0] sm:$0xff]  ;;  %v1452_v3 = vld [vmem:[#allocation13 + $0x188] sm:$0xff] }
 0x3a6   :  { %v1159_v57 = vadd.f32 %v1114_v17, %v1113_v18  ;;  %v1156_v46 = vadd.f32 %v1155_v43, %v1154_v48  ;;  %v1249_v48 = vsel %vm708_vm1, %v1130_v44, %v1123_v52  ;;  %v1448_v44 = vld [vmem:[#allocation13 + $0x168] sm:$0xff]  ;;  %v1446_v52 = vld [vmem:[#allocation13 + $0x158] sm:$0xff] }
 0x3a7   :  { %v1099_v32 = vpop.permute.xlu1 %1098  ;;  %v1250_v41 = vsel %vm710_vm2, %v1137_v25, %v1249_v48  ;;  %v1444_v25 = vld [vmem:[#allocation13 + $0x148] sm:$0xff]  ;;  %v1439_v48 = vld [vmem:[#allocation13 + $0x120] sm:$0xff] }
 0x3a8   :  { %v1160_v61 = vrot.slane %v1159_v57, 4  ;;  %v1116_v47 = vmul.f32 %v9773_v40, %v1099_v32  ;;  %v1157_v12 = vrot.slane %v1156_v46, 1 }
 0x3aa   :  { %v1161_v35 = vadd.f32 %v1160_v61, %v1159_v57  ;;  %v1166_v38 = vadd.f32 %v1116_v47, %v1115_v29  ;;  %v1158_v54 = vadd.f32 %v1157_v12, %v1156_v46  ;;  %v1251_v57 = vsel %vm712_vm3, %v1144_v51, %v1250_v41  ;;  %v1460_v47 = vld [vmem:[#allocation13 + $0x1c8] sm:$0xff]  ;;  %v1461_v46 = vld [vmem:[#allocation13 + $0x1d0] sm:$0xff]  ;;  %v1450_v12 = vld [vmem:[#allocation13 + $0x178] sm:$0xff] }
 0x3ab   :  { %v1252_v22 = vsel %vm714_vm4, %v1151_v60, %v1251_v57  ;;  %v1443_v51 = vld [vmem:[#allocation13 + $0x140] sm:$0xff]  ;;  %v1442_v60 = vld [vmem:[#allocation13 + $0x138] sm:$0xff]  ;;  %v1432_v57 = vld [vmem:[#allocation13 + $0xe8] sm:$0xff] }
 0x3ac   :  { %v1162_v14 = vrot.slane %v1161_v35, 2  ;;  %v1167_v49 = vrot.slane %v1166_v38, 4  ;;  %v1253_v16 = vsel %vm716_vm5, %v1158_v54, %v1252_v22  ;;  %v1441_v54 = vld [vmem:[#allocation13 + $0x130] sm:$0xff]  ;;  %v1435_v41 = vld [vmem:[#allocation13 + $0x100] sm:$0xff]  ;;  %v1434_v22 = vld [vmem:[#allocation13 + $0xf8] sm:$0xff] }
 0x3ae   :  { %v1163_v15 = vadd.f32 %v1162_v14, %v1161_v35  ;;  %v1168_v28 = vadd.f32 %v1167_v49, %v1166_v38  ;;  %v1456_v35 = vld [vmem:[#allocation13 + $0x1a8] sm:$0xff]  ;;  %v1458_v38 = vld [vmem:[#allocation13 + $0x1b8] sm:$0xff]  ;;  %v1451_v49 = vld [vmem:[#allocation13 + $0x180] sm:$0xff] }
 0x3af   :  { %v1454_v14 = vld [vmem:[#allocation13 + $0x198] sm:$0xff] }
 0x3b0   :  { %v1164_v30 = vrot.slane %v1163_v15, 1  ;;  %v1169_v24 = vrot.slane %v1168_v28, 2 }
 0x3b2   :  { %v1170_v18 = vadd.f32 %v1169_v24, %v1168_v28  ;;  %v1165_v17 = vadd.f32 %v1164_v30, %v1163_v15  ;;  %v1447_v15 = vld [vmem:[#allocation13 + $0x160] sm:$0xff]  ;;  %v1449_v28 = vld [vmem:[#allocation13 + $0x170] sm:$0xff]  ;;  %v1440_v24 = vld [vmem:[#allocation13 + $0x128] sm:$0xff] }
 0x3b3   :  { %v1445_v30 = vld [vmem:[#allocation13 + $0x150] sm:$0xff] }
 0x3b4   :  { %v1171_v43 = vrot.slane %v1170_v18, 1  ;;  %v1254_v32 = vsel %vm718_vm6, %v1165_v17, %v1253_v16  ;;  %v1438_v17 = vld [vmem:[#allocation13 + $0x118] sm:$0xff]  ;;  %v1433_v16 = vld [vmem:[#allocation13 + $0xf0] sm:$0xff] }
 0x3b6   :  { %v1172_v29 = vadd.f32 %v1171_v43, %v1170_v18  ;;  %v1436_v18 = vld [vmem:[#allocation13 + $0x108] sm:$0xff]  ;;  %v1437_v43 = vld [vmem:[#allocation13 + $0x110] sm:$0xff] }
 0x3b8   :  { %v1255_v61 = vsel %vm720_vm7, %v1172_v29, %v1254_v32  ;;  %v1431_v29 = vld [vmem:[#allocation13 + $0xe0] sm:$0xff]  ;;  %v1428_v32 = vld [vmem:[#allocation13 + $0xc8] sm:$0xff] }
 0x3b9   :  { %1322 = vmatmul.mubr.f32.vlgmr.msra.gmra.mxu0 %v1255_v61  ;;  %1393 = vmatmul.mubr.f32.vlgmr.msra.gmra.mxu1 %v1255_v61  ;;  %v1429_v61 = vld [vmem:[#allocation13 + $0xd0] sm:$0xff] }
 0x3ba   :  { %1468 = vmatpush1.msra.mxu0 %v1463_v13  ;;  %1539 = vmatpush1.msra.mxu1 %v1465_v19  ;;  %v1430_v13 = vld [vmem:[#allocation13 + $0xd8] sm:$0xff]  ;;  %v1427_v19 = vld [vmem:[#allocation13 + $0xc0] sm:$0xff] }
 0x3bb   :  { %1469 = vmatprep.subr.mxu0 %v1460_v47  ;;  %1540 = vmatprep.subr.mxu1 %v1462_v42  ;;  %v1424_v47 = vld [vmem:[#allocation13 + $0xa8] sm:$0xff]  ;;  %v1426_v42 = vld [vmem:[#allocation13 + $0xb8] sm:$0xff] }
 0x3bc   :  { %1470 = vmatpush1.msra.mxu0 %v1459_v7  ;;  %1541 = vmatpush1.msra.mxu1 %v1461_v46  ;;  %v1423_v7 = vld [vmem:[#allocation13 + $0xa0] sm:$0xff]  ;;  %v1425_v46 = vld [vmem:[#allocation13 + $0xb0] sm:$0xff] }
 0x3bd   :  { %1471 = vmatprep.subr.mxu0 %v1456_v35  ;;  %1542 = vmatprep.subr.mxu1 %v1458_v38  ;;  %v9783_v35 = vpop.f32.mrf.mxu1  ;;  %v1420_v38 = vld [vmem:[#allocation13 + $0x88] sm:$0xff] }
 0x3be   :  { %1472 = vmatpush1.msra.mxu0 %v1455_v10  ;;  %1543 = vmatpush1.msra.mxu1 %v1457_v39  ;;  %v1422_v10 = vld [vmem:[#allocation13 + $0x98] sm:$0xff]  ;;  %v1419_v39 = vld [vmem:[#allocation13 + $0x80] sm:$0xff] }
 0x3bf   :  { %1473 = vmatprep.subr.mxu0 %v1452_v3  ;;  %1544 = vmatprep.subr.mxu1 %v1454_v14  ;;  %v1421_v3 = vld [vmem:[#allocation13 + $0x90] sm:$0xff]  ;;  %v9788_v14 = vld [vmem:[%s11625_s6] sm:$0xf] }
 0x3c0   :  { %1474 = vmatpush1.msra.mxu0 %v1451_v49  ;;  %1545 = vmatpush1.msra.mxu1 %v1453_v27  ;;  %v1416_v49 = vld [vmem:[#allocation13 + $0x68] sm:$0xff]  ;;  %v1418_v27 = vld [vmem:[#allocation13 + $0x78] sm:$0xff] }
 0x3c1   :  { %1475 = vmatprep.subr.mxu0 %v1448_v44  ;;  %1546 = vmatprep.subr.mxu1 %v1450_v12  ;;  %v1415_v44 = vld [vmem:[#allocation13 + $0x60] sm:$0xff]  ;;  %v1417_v12 = vld [vmem:[#allocation13 + $0x70] sm:$0xff] }
 0x3c2   :  { %1476 = vmatpush1.msra.mxu0 %v1447_v15  ;;  %1547 = vmatpush1.msra.mxu1 %v1449_v28  ;;  %v9790_v15 = vpop.f32.mrf.mxu1  ;;  %v1412_v28 = vld [vmem:[#allocation13 + $0x48] sm:$0xff] }
 0x3c3   :  { %1477 = vmatprep.subr.mxu0 %v1444_v25  ;;  %1548 = vmatprep.subr.mxu1 %v1446_v52  ;;  %v1414_v25 = vld [vmem:[#allocation13 + $0x58] sm:$0xff]  ;;  %v9794_v52 = vrot.slane %v9788_v14, %v9417_v11 }
 0x3c4   :  { %1478 = vmatpush1.msra.mxu0 %v1443_v51  ;;  %1549 = vmatpush1.msra.mxu1 %v1445_v30  ;;  %v1411_v51 = vld [vmem:[#allocation13 + $0x40] sm:$0xff]  ;;  %v1413_v30 = vld [vmem:[#allocation13 + $0x50] sm:$0xff] }
 0x3c5   :  { %1479 = vmatprep.subr.mxu0 %v1440_v24  ;;  %1550 = vmatprep.subr.mxu1 %v1442_v60  ;;  %v291_v24 = vpop.f32.mrf.mxu1  ;;  %v1408_v60 = vld [vmem:[#allocation13 + $0x28] sm:$0xff] }
 0x3c6   :  { %1480 = vmatpush1.msra.mxu0 %v1439_v48  ;;  %1551 = vmatpush1.msra.mxu1 %v1441_v54  ;;  %v1410_v48 = vld [vmem:[#allocation13 + $0x38] sm:$0xff]  ;;  %v9798_v54 = vrot.slane %v9788_v14, %v9514_v55 }
 0x3c7   :  { %1481 = vmatprep.subr.mxu0 %v1436_v18  ;;  %1552 = vmatprep.subr.mxu1 %v1438_v17  ;;  %v9801_v18 = vadd.f32 %v291_v24, %v9794_v52  ;;  %v1407_v17 = vld [vmem:[#allocation13 + $0x20] sm:$0xff] }
 0x3c8   :  { %1482 = vmatpush1.msra.mxu0 %v1435_v41  ;;  %1553 = vmatpush1.msra.mxu1 %v1437_v43  ;;  %v1409_v41 = vld [vmem:[#allocation13 + $0x30] sm:$0xff]  ;;  %v293_v43 = vpop.f32.mrf.mxu1 }
 0x3c9   :  { %1483 = vmatprep.subr.mxu0 %v1432_v57  ;;  %1554 = vmatprep.subr.mxu1 %v1434_v22  ;;  %v1404_v57 = vld [vmem:[#allocation13 + $0x8] sm:$0xff]  ;;  %v1406_v22 = vld [vmem:[#allocation13 + $0x18] sm:$0xff] }
 0x3ca   :  { %1484 = vmatpush1.msra.mxu0 %v1431_v29  ;;  %1555 = vmatpush1.msra.mxu1 %v1433_v16  ;;  %v9804_v29 = vadd.f32 %v293_v43, %v9798_v54  ;;  %v1403_v16 = vld [vmem:[#allocation13] sm:$0xff] }
 0x3cb   :  { %1485 = vmatprep.subr.mxu0 %v1428_v32  ;;  %1556 = vmatprep.subr.mxu1 %v1430_v13  ;;  %v297_v32 = vpop.f32.mrf.mxu1  ;;  %v1405_v13 = vld [vmem:[#allocation13 + $0x10] sm:$0xff] }
 0x3cc   :  { %1486 = vmatpush1.msra.mxu0 %v1427_v19  ;;  %1557 = vmatpush1.msra.mxu1 %v1429_v61  ;;  %v9807_v19 = vadd.f32 %v297_v32, %v9794_v52 }
 0x3cd   :  { %1487 = vmatprep.subr.mxu0 %v1424_v47  ;;  %1558 = vmatprep.subr.mxu1 %v1426_v42  ;;  %v299_v61 = vpop.f32.mrf.mxu1 }
 0x3ce   :  { %1488 = vmatpush1.msra.mxu0 %v1423_v7  ;;  %1559 = vmatpush1.msra.mxu1 %v1425_v46  ;;  %11637 = vst [vmem:[#allocation23_spill] sm:$0xff] %v9807_v19  ;;  %v9811_v47 = vadd.f32 %v299_v61, %v9798_v54  ;;  %v9032_v7 = vld [vmem:[#allocation9] sm:$0xff] }
 0x3cf   :  { %1489 = vmatprep.subr.mxu0 %v1420_v38  ;;  %1560 = vmatprep.subr.mxu1 %v1422_v10  ;;  %v303_v42 = vpop.f32.mrf.mxu1 }
 0x3d0   :  { %1490 = vmatpush1.msra.mxu0 %v1419_v39  ;;  %1561 = vmatpush1.msra.mxu1 %v1421_v3  ;;  %11638 = vst [vmem:[#allocation24_spill] sm:$0xff] %v9811_v47  ;;  %v9815_v46 = vadd.f32 %v303_v42, %v9794_v52 }
 0x3d1   :  { %1491 = vmatprep.subr.mxu0 %v1416_v49  ;;  %1562 = vmatprep.subr.mxu1 %v1418_v27  ;;  %v305_v38 = vpop.f32.mrf.mxu1 }
 0x3d2   :  { %1492 = vmatpush1.msra.mxu0 %v1415_v44  ;;  %1563 = vmatpush1.msra.mxu1 %v1417_v12  ;;  %11639 = vst [vmem:[#allocation25_spill] sm:$0xff] %v9815_v46  ;;  %v9820_v10 = vadd.f32 %v305_v38, %v9798_v54 }
 0x3d3   :  { %1493 = vmatprep.subr.mxu0 %v1412_v28  ;;  %1564 = vmatprep.subr.mxu1 %v1414_v25  ;;  %v309_v39 = vpop.f32.mrf.mxu1 }
 0x3d4   :  { %1494 = vmatpush1.msra.mxu0 %v1411_v51  ;;  %1565 = vmatpush1.msra.mxu1 %v1413_v30  ;;  %11640 = vst [vmem:[#allocation26_spill] sm:$0xff] %v9820_v10  ;;  %v9823_v3 = vadd.f32 %v309_v39, %v9794_v52  ;;  %v10145_v10 = vld [vmem:[#allocation7 + $0x68] sm:$0xff] }
 0x3d5   :  { %1495 = vmatprep.subr.mxu0 %v1408_v60  ;;  %1566 = vmatprep.subr.mxu1 %v1410_v48  ;;  %v311_v49 = vpop.f32.mrf.mxu1 }
 0x3d6   :  { %1496 = vmatpush1.msra.mxu0 %v1407_v17  ;;  %1567 = vmatpush1.msra.mxu1 %v1409_v41  ;;  %11641 = vst [vmem:[#allocation27_spill] sm:$0xff] %v9823_v3  ;;  %v9826_v27 = vadd.f32 %v311_v49, %v9798_v54  ;;  %v210_v41 = vrot.slane %v9788_v14, %v9524_v62 }
 0x3d7   :  { %1497 = vmatprep.subr.mxu0 %v1404_v57  ;;  %1568 = vmatprep.subr.mxu1 %v1406_v22  ;;  %v315_v44 = vpop.f32.mrf.mxu1  ;;  %v9844_v57 = vrot.slane %v9788_v14, %v9542_v23 }
 0x3d8   :  { %1498 = vmatpush1.msra.mxu0 %v1403_v16  ;;  %1531 = vmatprep.mubr.f32.mxu0 %v11629_v33  ;;  %11642 = vst [vmem:[#allocation28_spill] sm:$0xff] %v9826_v27  ;;  %v9829_v12 = vadd.f32 %v315_v44, %v9794_v52 }
 0x3d9   :  { %1569 = vmatpush1.msra.mxu1 %v1405_v13  ;;  %1602 = vmatprep.mubr.f32.mxu1 %v11629_v33  ;;  %v317_v28 = vpop.f32.mrf.mxu1  ;;  %11647 = vst [vmem:[#allocation33_spill] sm:$0xff] %v9844_v57 }
 0x3da   :  { %1532 = vmatmul.mubr.f32.vlgmr.msra.gmra.mxu0 %v9032_v7  ;;  %1603 = vmatmul.mubr.f32.vlgmr.msra.gmra.mxu1 %v9032_v7  ;;  %11643 = vst [vmem:[#allocation29_spill] sm:$0xff] %v9829_v12  ;;  %v9832_v25 = vadd.f32 %v317_v28, %v9798_v54 }
 0x3db   :  { %2464 = vmatprep.mubr.f32.mxu0 %v11629_v33  ;;  %2535 = vmatprep.mubr.f32.mxu1 %v11629_v33  ;;  %v321_v51 = vpop.f32.mrf.mxu1 }
 0x3dc   :  { %11644 = vst [vmem:[#allocation30_spill] sm:$0xff] %v9832_v25  ;;  %v9835_v30 = vadd.f32 %v321_v51, %v9794_v52 }
 0x3dd   :  { %v323_v24 = vpop.f32.mrf.mxu1 }
 0x3de   :  { %11645 = vst [vmem:[#allocation31_spill] sm:$0xff] %v9835_v30  ;;  %v9838_v60 = vadd.f32 %v323_v24, %v9798_v54 }
 0x3df   :  { %v392_v48 = vpop.f32.mrf.mxu1 }
 0x3e0   :  { %11646 = vst [vmem:[#allocation32_spill] sm:$0xff] %v9838_v60 }
 0x3e1   :  { %v394_v17 = vpop.f32.mrf.mxu1 }
 0x3e3   :  { %v398_v43 = vpop.f32.mrf.mxu1 }
 0x3e4   :  { %v9846_v22 = vadd.f32 %v398_v43, %v210_v41 }
 0x3e5   :  { %v400_v16 = vpop.f32.mrf.mxu1 }
 0x3e6   :  { %v9849_v32 = vadd.f32 %v400_v16, %v9844_v57 }
 0x3e7   :  { %v404_v13 = vpop.f32.mrf.mxu1 }
 0x3e8   :  { %v9851_v61 = vadd.f32 %v404_v13, %v210_v41 }
 0x3e9   :  { %v406_v42 = vpop.f32.mrf.mxu1 }
 0x3ea   :  { %11648 = vst [vmem:[#allocation34_spill] sm:$0xff] %v9851_v61  ;;  %v9854_v7 = vadd.f32 %v406_v42, %v9844_v57 }
 0x3eb   :  { %v410_v38 = vpop.f32.mrf.mxu1 }
 0x3ec   :  { %11649 = vst [vmem:[#allocation35_spill] sm:$0xff] %v9854_v7  ;;  %v9856_v39 = vadd.f32 %v410_v38, %v210_v41 }
 0x3ed   :  { %v412_v49 = vpop.f32.mrf.mxu1 }
 0x3ee   :  { %11650 = vst [vmem:[#allocation36_spill] sm:$0xff] %v9856_v39  ;;  %v9859_v14 = vadd.f32 %v412_v49, %v9844_v57 }
 0x3f0   :  { %11651 = vst [vmem:[#allocation37_spill] sm:$0xff] %v9859_v14 }
 0x3f1   :  { %v416_v44 = vpop.f32.mrf.mxu1 }
 0x3f2   :  { %v9861_v28 = vadd.f32 %v416_v44, %v210_v41  ;;  %v286_v44 = vadd.f32 %v9783_v35, %v9794_v52  ;;  %v395_v35 = vadd.f32 %v394_v17, %v9844_v57 }
 0x3f3   :  { %v418_v51 = vpop.f32.mrf.mxu1 }
 0x3f4   :  { %11652 = vst [vmem:[#allocation38_spill] sm:$0xff] %v9861_v28  ;;  %v9864_v24 = vadd.f32 %v418_v51, %v9844_v57  ;;  %v288_v51 = vadd.f32 %v9790_v15, %v9798_v54  ;;  %v393_v28 = vadd.f32 %v392_v48, %v210_v41 }
 0x3f6   :  { %11653 = vst [vmem:[#allocation39_spill] sm:$0xff] %v9864_v24  ;;  %v422_v43 = vpop.f32.mrf.mxu1 }
 0x3f7   :  { %v9866_v16 = vadd.f32 %v422_v43, %v210_v41 }
 0x3f8   :  { %v424_v13 = vpop.f32.mrf.mxu1 }
 0x3f9   :  { %11654 = vst [vmem:[#allocation40_spill] sm:$0xff] %v9866_v16  ;;  %v9869_v42 = vadd.f32 %v424_v13, %v9844_v57  ;;  %v10142_v57 = vld [vmem:[#allocation7 + $0x60] sm:$0xff] }
 0x3fb   :  { %11655 = vst [vmem:[#allocation41_spill] sm:$0xff] %v9869_v42  ;;  %v428_v38 = vpop.f32.mrf.mxu1 }
 0x3fc   :  { %v9871_v33 = vadd.f32 %v428_v38, %v210_v41 }
 0x3fd   :  { %v9873_v60 = vpop.f32.mrf.mxu1 }
 0x3fe   :  { %11656 = vst [vmem:[#allocation42_spill] sm:$0xff] %v9871_v33  ;;  %11657 = vst [vmem:[#allocation43_spill] sm:$0xff] %v9873_v60 }
 0x479   :  { %v1323_v49 = vpop.f32.mrf.mxu0  ;;  %v1394_v30 = vpop.f32.mrf.mxu1 }
 0x47a   :  { %v1399_v43 = vadd.f32 %v1323_v49, %v286_v44  ;;  %v1401_v60 = vadd.f32 %v1394_v30, %v393_v28 }
 0x47b   :  { %v1325_v25 = vpop.f32.mrf.mxu0  ;;  %v1396_v13 = vpop.f32.mrf.mxu1 }
 0x47c   :  { %v1400_v12 = vadd.f32 %v1325_v25, %v288_v51  ;;  %v1402_v39 = vadd.f32 %v1396_v13, %v395_v35 }
 0x49a   :  { %v1533_v16 = vpop.f32.mrf.mxu0  ;;  %v1604_v27 = vpop.f32.mrf.mxu1 }
 0x49b   :  { %v1609_v24 = vadd.f32 %v1533_v16, %v1399_v43  ;;  %v1611_v14 = vadd.f32 %v1604_v27, %v1401_v60 }
 0x49c   :  { %v1535_v42 = vpop.f32.mrf.mxu0  ;;  %v1606_v52 = vpop.f32.mrf.mxu1 }
 0x49d   :  { %v1613_v38 = vmul.f32 0.5, %v1609_v24  ;;  %v1610_v33 = vadd.f32 %v1535_v42, %v1400_v12  ;;  %v1612_v15 = vadd.f32 %v1606_v52, %v1402_v39 }
 0x49f   :  { %8742 = vtanh.f32 %v1613_v38  ;;  %v1617_v3 = vmul.f32 0.5, %v1610_v33  ;;  %v1622_v54 = vmul.f32 0.5, %v1612_v15 }
 0x4a1   :  { %8744 = vtanh.f32 %v1617_v3 }
 0x4a2   :  { %8746 = vtanh.f32 %v1611_v14 }
 0x4a3   :  { %8748 = vtanh.f32 %v1622_v54 }
 0x4ac   :  { %v8743_v25 = vpop.eup %8742 }
 0x4ad   :  { %v1615_v16 = vadd.f32 1.0, %v8743_v25 }
 0x4ae   :  { %v8745_v49 = vpop.eup %8744 }
 0x4af   :  { %v1616_v44 = vmul.f32 0.5, %v1615_v16  ;;  %v1619_v48 = vadd.f32 1.0, %v8745_v49  ;;  %v8747_v41 = vpop.eup %8746 }
 0x4b0   :  { %v8749_v3 = vpop.eup %8748 }
 0x4b1   :  { %v1620_v12 = vmul.f32 0.5, %v1619_v48  ;;  %v1627_v28 = vmul.f32 %v8747_v41, %v1616_v44  ;;  %v1624_v27 = vadd.f32 1.0, %v8749_v3 }
 0x4b3   :  { %v1626_v30 = vmul.f32 0.0, %v1620_v12  ;;  %v1625_v60 = vmul.f32 0.5, %v1624_v27 }
 0x4b5   :  { %v9880_v33 = vadd.f32 %v1627_v28, %v1626_v30 }
 0x4b7   :  { %8750 = vtanh.f32 %v9880_v33 }
 0x4c4   :  { %v8751_v17 = vpop.eup %8750 }
 0x4c5   :  { %v9883_v39 = vmul.f32 %v8751_v17, %v1625_v60 }
 0x4c7   :  { %v1640_v14 = vrot.slane %v9883_v39, %v9411_v8  ;;  %v1633_v24 = vcombine.high %v9883_v39, %v9883_v39 }
 0x4c9   :  { %v1656_v42 = vrot.slane %v1640_v14, %v9411_v8  ;;  %v1648_v51 = vcombine.high %v1640_v14, %v1640_v14  ;;  %v1647_v43 = vrot.slane %v1633_v24, %v9411_v8 }
 0x4cb   :  { %v1685_v13 = vrot.slane %v1656_v42, %v9417_v11  ;;  %v1678_v38 = vcombine.high %v1656_v42, %v1656_v42  ;;  %v1670_v35 = vrot.slane %v1648_v51, %v9411_v8  ;;  %v1663_v52 = vrot.slane %v1647_v43, %v9411_v8 }
 0x4cc   :  { %v1649_v49 = vcombine.high %v1647_v43, %v1647_v43 }
 0x4cd   :  { %v1723_v15 = vmul.f32 %v9734_v36, %v1685_v13  ;;  %v1722_v54 = vmul.f32 %v9749_v37, %v1685_v13  ;;  %v1693_v25 = vrot.slane %v1678_v38, %v9417_v11  ;;  %v1689_v16 = vrot.slane %v1670_v35, %v9417_v11 }
 0x4ce   :  { %v1701_v12 = vrot.slane %v1663_v52, %v9417_v11  ;;  %v1680_v41 = vcombine.high %v1670_v35, %v1670_v35  ;;  %v1677_v28 = vrot.slane %v1649_v49, %v9411_v8  ;;  %v1679_v27 = vcombine.high %v1663_v52, %v1663_v52 }
 0x4cf   :  { %1740 = vadd.xlane.f32.xlu1 %v1723_v15  ;;  %1738 = vadd.xlane.f32.xlu0 %v1722_v54  ;;  %v1726_v44 = vmul.f32 %v9743_v26, %v1693_v25  ;;  %v1724_v48 = vmul.f32 %v9737_v1, %v1689_v16  ;;  %v1725_v36 = vmul.f32 %v9728_v53, %v1689_v16 }
 0x4d0   :  { %v1730_v37 = vmul.f32 %v9755_v31, %v1701_v12  ;;  %v1697_v30 = vrot.slane %v1680_v41, %v9417_v11  ;;  %v1727_v3 = vmul.f32 %v9731_v56, %v1693_v25  ;;  %v1705_v1 = vrot.slane %v1677_v28, %v9417_v11 }
 0x4d1   :  { %v1731_v60 = vmul.f32 %v9746_v5, %v1701_v12  ;;  %v1709_v31 = vrot.slane %v1679_v27, %v9417_v11  ;;  %v1681_v17 = vcombine.high %v1677_v28, %v1677_v28 }
 0x4d2   :  { %v1728_v26 = vmul.f32 %v9752_v58, %v1697_v30  ;;  %v1732_v53 = vmul.f32 %v9758_v21, %v1705_v1  ;;  %v1729_v14 = vmul.f32 %v9740_v2, %v1697_v30  ;;  %v1733_v24 = vmul.f32 %v9761_v45, %v1705_v1 }
 0x4d3   :  { %1746 = vadd.xlane.f32.xlu1 %v1726_v44  ;;  %1742 = vadd.xlane.f32.xlu0 %v1724_v48  ;;  %v1734_v56 = vmul.f32 %v9764_v63, %v1709_v31  ;;  %v1713_v58 = vrot.slane %v1681_v17, %v9417_v11  ;;  %v1735_v5 = vmul.f32 %v9767_v20, %v1709_v31 }
 0x4d5   :  { %v1736_v42 = vmul.f32 %v9770_v50, %v1713_v58  ;;  %v1737_v21 = vmul.f32 %v9773_v40, %v1713_v58 }
 0x4d7   :  { %1744 = vadd.xlane.f32.xlu0 %v1725_v36  ;;  %1754 = vadd.xlane.f32.xlu1 %v1730_v37 }
 0x4db   :  { %1748 = vadd.xlane.f32.xlu0 %v1727_v3  ;;  %1750 = vadd.xlane.f32.xlu1 %v1728_v26 }
 0x4df   :  { %1756 = vadd.xlane.f32.xlu0 %v1731_v60  ;;  %1758 = vadd.xlane.f32.xlu1 %v1732_v53 }
 0x4e3   :  { %1752 = vadd.xlane.f32.xlu0 %v1729_v14  ;;  %1762 = vadd.xlane.f32.xlu1 %v1734_v56 }
 0x4e7   :  { %1760 = vadd.xlane.f32.xlu0 %v1733_v24  ;;  %1766 = vadd.xlane.f32.xlu1 %v1736_v42 }
 0x4eb   :  { %1764 = vadd.xlane.f32.xlu0 %v1735_v5 }
 0x4ef   :  { %1768 = vadd.xlane.f32.xlu0 %v1737_v21 }
 0x558   :  { %v1741_v51 = vpop.xlane.xlu1 %1740  ;;  %v1739_v2 = vpop.xlane.xlu0 %1738 }
 0x559   :  { %v1793_v54 = vrot.slane %v1741_v51, %v9414_v9  ;;  %v1789_v25 = vrot.slane %v1739_v2, %v9408_v6 }
 0x55b   :  { %v1794_v30 = vsel %vm643_vm0, %v1793_v54, %v1789_v25 }
 0x55c   :  { %v9918_v43 = vpop.xlane.xlu1 %1746  ;;  %v1743_v63 = vpop.xlane.xlu0 %1742 }
 0x55d   :  { %v1798_v16 = vrot.slane %v1743_v63, %v9408_v6  ;;  %v1807_v44 = vrot.slane %v9918_v43, %v9408_v6 }
 0x560   :  { %v1745_v13 = vpop.xlane.xlu0 %1744  ;;  %v9920_v38 = vpop.xlane.xlu1 %1754 }
 0x561   :  { %v1802_v40 = vrot.slane %v1745_v13, %v9414_v9  ;;  %v1825_v17 = vrot.slane %v9920_v38, %v9408_v6 }
 0x563   :  { %v1803_v41 = vsel %vm643_vm0, %v1802_v40, %v1798_v16 }
 0x564   :  { %v9922_v35 = vpop.xlane.xlu0 %1748  ;;  %v9924_v45 = vpop.xlane.xlu1 %1750  ;;  %v1858_v26 = vsel %vm708_vm1, %v1803_v41, %v1794_v30 }
 0x565   :  { %v1811_v15 = vrot.slane %v9922_v35, %v9414_v9  ;;  %v1816_v36 = vrot.slane %v9924_v45, %v9408_v6 }
 0x567   :  { %v1812_v37 = vsel %vm643_vm0, %v1811_v15, %v1807_v44 }
 0x568   :  { %v9926_v50 = vpop.xlane.xlu0 %1756  ;;  %v9928_v52 = vpop.xlane.xlu1 %1758  ;;  %v1859_v60 = vsel %vm710_vm2, %v1812_v37, %v1858_v26 }
 0x569   :  { %v1829_v1 = vrot.slane %v9926_v50, %v9414_v9  ;;  %v1834_v53 = vrot.slane %v9928_v52, %v9408_v6 }
 0x56b   :  { %v1830_v42 = vsel %vm643_vm0, %v1829_v1, %v1825_v17 }
 0x56c   :  { %v9930_v20 = vpop.xlane.xlu0 %1752  ;;  %v9942_v48 = vpop.xlane.xlu1 %1762 }
 0x56d   :  { %v1820_v49 = vrot.slane %v9930_v20, %v9414_v9  ;;  %v1843_v56 = vrot.slane %v9942_v48, %v9408_v6 }
 0x56f   :  { %v1821_v28 = vsel %vm643_vm0, %v1820_v49, %v1816_v36 }
 0x570   :  { %v9944_v12 = vpop.xlane.xlu0 %1760  ;;  %v1860_v14 = vsel %vm712_vm3, %v1821_v28, %v1859_v60  ;;  %v9969_v58 = vpop.xlane.xlu1 %1766 }
 0x571   :  { %v1838_v3 = vrot.slane %v9944_v12, %v9414_v9  ;;  %v1852_v40 = vrot.slane %v9969_v58, %v9408_v6  ;;  %v1861_v54 = vsel %vm714_vm4, %v1830_v42, %v1860_v14 }
 0x573   :  { %v1839_v24 = vsel %vm643_vm0, %v1838_v3, %v1834_v53 }
 0x574   :  { %v9957_v27 = vpop.xlane.xlu0 %1764  ;;  %v1862_v25 = vsel %vm716_vm5, %v1839_v24, %v1861_v54 }
 0x575   :  { %v1847_v31 = vrot.slane %v9957_v27, %v9414_v9 }
 0x577   :  { %v1848_v21 = vsel %vm643_vm0, %v1847_v31, %v1843_v56 }
 0x578   :  { %v9973_v5 = vpop.xlane.xlu0 %1768  ;;  %v1863_v49 = vsel %vm718_vm6, %v1848_v21, %v1862_v25 }
 0x579   :  { %v1856_v15 = vrot.slane %v9973_v5, %v9414_v9 }
 0x57b   :  { %v1857_v16 = vsel %vm643_vm0, %v1856_v15, %v1852_v40 }
 0x57c   :  { %v1864_v44 = vsel %vm720_vm7, %v1857_v16, %v1863_v49 }
 0x57d   :  { %v1866_v41 = vsel %vm723_vm8, %v1864_v44, -inf }
 0x57e   :  { %1867 = vmax.xlane.f32.xlu1 %v1866_v41 }
 0x607   :  { %v1868_v36 = vpop.xlane.xlu1 %1867 }
 0x608   :  { %v1873_v37 = vrot.slane %v1868_v36, %v9417_v11  ;;  %v1877_v30 = vrot.slane %v1868_v36, %v9514_v55  ;;  %v1881_v26 = vrot.slane %v1868_v36, %v9524_v62  ;;  %v1885_v17 = vrot.slane %v1868_v36, %v9542_v23 }
 0x609   :  { %v1889_v21 = vrot.slane %v1868_v36, %v9551_v34  ;;  %v1893_v40 = vrot.slane %v1868_v36, %v9519_v59  ;;  %v1897_v25 = vrot.slane %v1868_v36, %v9528_v0 }
 0x60a   :  { %v1910_v28 = vsub.f32 %v1739_v2, %v1873_v37  ;;  %v1911_v3 = vsub.f32 %v1741_v51, %v1873_v37  ;;  %v1913_v1 = vsub.f32 %v1745_v13, %v1877_v30  ;;  %v1912_v60 = vsub.f32 %v1743_v63, %v1877_v30 }
 0x60b   :  { %v1915_v14 = vsub.f32 %v9922_v35, %v1881_v26  ;;  %v1914_v24 = vsub.f32 %v9918_v43, %v1881_v26  ;;  %v1917_v51 = vsub.f32 %v9930_v20, %v1885_v17  ;;  %v1916_v63 = vsub.f32 %v9924_v45, %v1885_v17 }
 0x60c   :  { %v1926_v53 = vmul.f32 1.442695, %v1910_v28  ;;  %v1928_v31 = vmul.f32 1.442695, %v1911_v3  ;;  %v1932_v56 = vmul.f32 1.442695, %v1913_v1  ;;  %v1919_v35 = vsub.f32 %v9926_v50, %v1889_v21 }
 0x60d   :  { %v1930_v42 = vmul.f32 1.442695, %v1912_v60  ;;  %v1936_v2 = vmul.f32 1.442695, %v1915_v14  ;;  %v1934_v13 = vmul.f32 1.442695, %v1914_v24  ;;  %v1918_v43 = vsub.f32 %v9920_v38, %v1889_v21 }
 0x60e   :  { %8752 = vpow2.f32 %v1926_v53  ;;  %v1940_v15 = vmul.f32 1.442695, %v1917_v51  ;;  %v1938_v54 = vmul.f32 1.442695, %v1916_v63  ;;  %v1921_v20 = vsub.f32 %v9944_v12, %v1893_v40 }
 0x60f   :  { %8754 = vpow2.f32 %v1928_v31  ;;  %v1944_v16 = vmul.f32 1.442695, %v1919_v35  ;;  %v1920_v45 = vsub.f32 %v9928_v52, %v1893_v40  ;;  %v1942_v44 = vmul.f32 1.442695, %v1918_v43 }
 0x610   :  { %8756 = vpow2.f32 %v1932_v56  ;;  %v1901_v38 = vrot.slane %v1868_v36, %v9536_v4  ;;  %v1923_v50 = vsub.f32 %v9957_v27, %v1897_v25  ;;  %v1948_v12 = vmul.f32 1.442695, %v1921_v20 }
 0x611   :  { %8758 = vpow2.f32 %v1930_v42  ;;  %v1922_v30 = vsub.f32 %v9942_v48, %v1897_v25  ;;  %v1946_v52 = vmul.f32 1.442695, %v1920_v45 }
 0x612   :  { %8760 = vpow2.f32 %v1936_v2  ;;  %v1925_v3 = vsub.f32 %v9973_v5, %v1901_v38  ;;  %v1952_v36 = vmul.f32 1.442695, %v1923_v50  ;;  %v1924_v27 = vsub.f32 %v9969_v58, %v1901_v38 }
 0x613   :  { %8762 = vpow2.f32 %v1934_v13  ;;  %v1950_v1 = vmul.f32 1.442695, %v1922_v30 }
 0x614   :  { %8764 = vpow2.f32 %v1940_v15  ;;  %v1956_v48 = vmul.f32 1.442695, %v1925_v3  ;;  %v1954_v5 = vmul.f32 1.442695, %v1924_v27 }
 0x615   :  { %8766 = vpow2.f32 %v1938_v54 }
 0x616   :  { %8768 = vpow2.f32 %v1944_v16 }
 0x617   :  { %8770 = vpow2.f32 %v1942_v44 }
 0x618   :  { %8772 = vpow2.f32 %v1948_v12 }
 0x619   :  { %8774 = vpow2.f32 %v1946_v52 }
 0x61a   :  { %8776 = vpow2.f32 %v1952_v36 }
 0x61b   :  { %v10000_v49 = vpop.eup %8752  ;;  %8778 = vpow2.f32 %v1950_v1 }
 0x61c   :  { %v10003_v41 = vpop.eup %8754  ;;  %1975 = vperm.xlu0 %8706, %v10000_v49   ;;  %8780 = vpow2.f32 %v1956_v48 }
 0x61d   :  { %1978 = vperm.xlu1 %8705, %v10003_v41   ;;  %v10009_v37 = vpop.eup %8756  ;;  %8782 = vpow2.f32 %v1954_v5 }
 0x61e   :  { %v10012_v28 = vpop.eup %8758 }
 0x61f   :  { %v10017_v26 = vpop.eup %8760 }
 0x620   :  { %1984 = vperm.xlu0 %8706, %v10009_v37   ;;  %v10020_v60 = vpop.eup %8762 }
 0x621   :  { %1981 = vperm.xlu1 %8705, %v10012_v28   ;;  %v10024_v53 = vpop.eup %8764 }
 0x622   :  { %v10026_v31 = vpop.eup %8766 }
 0x623   :  { %v10030_v58 = vpop.eup %8768 }
 0x624   :  { %1990 = vperm.xlu0 %8706, %v10017_v26   ;;  %v10032_v17 = vpop.eup %8770 }
 0x625   :  { %1987 = vperm.xlu1 %8705, %v10020_v60   ;;  %v10036_v14 = vpop.eup %8772 }
 0x626   :  { %v10038_v56 = vpop.eup %8774 }
 0x627   :  { %v10042_v24 = vpop.eup %8776 }
 0x628   :  { %1996 = vperm.xlu0 %8706, %v10024_v53   ;;  %v10044_v42 = vpop.eup %8778 }
 0x629   :  { %1993 = vperm.xlu1 %8705, %v10026_v31   ;;  %v10048_v21 = vpop.eup %8780 }
 0x62a   :  { %v8783_v51 = vpop.eup %8782 }
 0x62c   :  { %2002 = vperm.xlu0 %8706, %v10030_v58  }
 0x62d   :  { %1999 = vperm.xlu1 %8705, %v10032_v17  }
 0x630   :  { %2008 = vperm.xlu0 %8706, %v10036_v14  }
 0x631   :  { %2005 = vperm.xlu1 %8705, %v10038_v56  }
 0x634   :  { %2014 = vperm.xlu0 %8706, %v10042_v24  }
 0x635   :  { %2011 = vperm.xlu1 %8705, %v10044_v42  }
 0x638   :  { %2020 = vperm.xlu0 %8706, %v10048_v21  }
 0x639   :  { %2017 = vperm.xlu1 %8705, %v8783_v51  }
 0x697   :  { %v1976_v2 = vpop.permute.xlu0 %1975 }
 0x698   :  { %v1979_v63 = vpop.permute.xlu1 %1978  ;;  %v2025_v52 = vrot.slane %v1976_v2, %v9408_v6 }
 0x699   :  { %v2029_v30 = vrot.slane %v1979_v63, %v9414_v9 }
 0x69b   :  { %v1985_v13 = vpop.permute.xlu0 %1984 }
 0x69c   :  { %v1982_v40 = vpop.permute.xlu1 %1981  ;;  %v2038_v45 = vrot.slane %v1985_v13, %v9414_v9 }
 0x69d   :  { %v2034_v16 = vrot.slane %v1982_v40, %v9408_v6 }
 0x69f   :  { %v1991_v35 = vpop.permute.xlu0 %1990  ;;  %v2039_v48 = vsel %vm643_vm0, %v2038_v45, %v2034_v16 }
 0x6a0   :  { %v1988_v15 = vpop.permute.xlu1 %1987  ;;  %v2047_v50 = vrot.slane %v1991_v35, %v9414_v9 }
 0x6a1   :  { %v2043_v38 = vrot.slane %v1988_v15, %v9408_v6  ;;  %v2030_v15 = vsel %vm643_vm0, %v2029_v30, %v2025_v52 }
 0x6a3   :  { %v1997_v43 = vpop.permute.xlu0 %1996  ;;  %v2048_v35 = vsel %vm643_vm0, %v2047_v50, %v2043_v38 }
 0x6a4   :  { %v1994_v54 = vpop.permute.xlu1 %1993  ;;  %v2056_v36 = vrot.slane %v1997_v43, %v9414_v9 }
 0x6a5   :  { %v2052_v3 = vrot.slane %v1994_v54, %v9408_v6 }
 0x6a7   :  { %v2003_v25 = vpop.permute.xlu0 %2002  ;;  %v2057_v43 = vsel %vm643_vm0, %v2056_v36, %v2052_v3 }
 0x6a8   :  { %v2000_v20 = vpop.permute.xlu1 %1999  ;;  %v2065_v1 = vrot.slane %v2003_v25, %v9414_v9  ;;  %v2094_v25 = vsel %vm708_vm1, %v2039_v48, %v2030_v15 }
 0x6a9   :  { %v2061_v27 = vrot.slane %v2000_v20, %v9408_v6  ;;  %v2095_v16 = vsel %vm710_vm2, %v2048_v35, %v2094_v25 }
 0x6aa   :  { %v2096_v38 = vsel %vm712_vm3, %v2057_v43, %v2095_v16 }
 0x6ab   :  { %v2009_v44 = vpop.permute.xlu0 %2008  ;;  %v2066_v20 = vsel %vm643_vm0, %v2065_v1, %v2061_v27 }
 0x6ac   :  { %v2006_v12 = vpop.permute.xlu1 %2005  ;;  %v2074_v13 = vrot.slane %v2009_v44, %v9414_v9  ;;  %v2097_v52 = vsel %vm714_vm4, %v2066_v20, %v2096_v38 }
 0x6ad   :  { %v2070_v5 = vrot.slane %v2006_v12, %v9408_v6 }
 0x6af   :  { %v2015_v40 = vpop.permute.xlu0 %2014  ;;  %v2075_v45 = vsel %vm643_vm0, %v2074_v13, %v2070_v5 }
 0x6b0   :  { %v2012_v63 = vpop.permute.xlu1 %2011  ;;  %v2083_v2 = vrot.slane %v2015_v40, %v9414_v9  ;;  %v2098_v36 = vsel %vm716_vm5, %v2075_v45, %v2097_v52  ;;  %v2380_v52 = vld [vmem:[#allocation12 + $0x1e0] sm:$0xff] }
 0x6b1   :  { %v2079_v54 = vrot.slane %v2012_v63, %v9408_v6 }
 0x6b3   :  { %v2021_v44 = vpop.permute.xlu0 %2020  ;;  %v2084_v50 = vsel %vm643_vm0, %v2083_v2, %v2079_v54 }
 0x6b4   :  { %v2018_v12 = vpop.permute.xlu1 %2017  ;;  %v2092_v30 = vrot.slane %v2021_v44, %v9414_v9  ;;  %v2099_v1 = vsel %vm718_vm6, %v2084_v50, %v2098_v36  ;;  %v2376_v36 = vld [vmem:[#allocation12 + $0x1c0] sm:$0xff] }
 0x6b5   :  { %v2088_v3 = vrot.slane %v2018_v12, %v9408_v6 }
 0x6b7   :  { %v2093_v27 = vsel %vm643_vm0, %v2092_v30, %v2088_v3  ;;  %v2383_v30 = vld [vmem:[#allocation12 + $0x1f8] sm:$0xff] }
 0x6b8   :  { %v2100_v48 = vsel %vm720_vm7, %v2093_v27, %v2099_v1  ;;  %2471 = vmatprep.subr.mxu1 %v2383_v30  ;;  %v2379_v3 = vld [vmem:[#allocation12 + $0x1d8] sm:$0xff]  ;;  %v2346_v30 = vld [vmem:[#allocation12 + $0xd0] sm:$0xff] }
 0x6b9   :  { %v2102_v5 = vsel %vm723_vm8, %v2100_v48, 0.0  ;;  %v2375_v27 = vld [vmem:[#allocation12 + $0x1b8] sm:$0xff]  ;;  %v2372_v48 = vld [vmem:[#allocation12 + $0x1a0] sm:$0xff] }
 0x6ba   :  { %2103 = vadd.xlane.f32.xlu1 %v2102_v5  ;;  %v2374_v5 = vld [vmem:[#allocation12 + $0x1b0] sm:$0xff] }
 0x743   :  { %v2104_v13 = vpop.xlane.xlu1 %2103 }
 0x744   :  { %8784 = vrcp.f32 %v2104_v13  ;;  %v2369_v13 = vld [vmem:[#allocation12 + $0x188] sm:$0xff] }
 0x751   :  { %v8785_v40 = vpop.eup %8784 }
 0x752   :  { %v2126_v35 = vrot.slane %v8785_v40, %v9551_v34  ;;  %v2110_v63 = vrot.slane %v8785_v40, %v9417_v11  ;;  %v2138_v43 = vrot.slane %v8785_v40, %v9536_v4  ;;  %v2114_v20 = vrot.slane %v8785_v40, %v9514_v55 }
 0x754   :  { %v2156_v2 = vmul.f32 %v10030_v58, %v2126_v35  ;;  %v2147_v15 = vmul.f32 %v10000_v49, %v2110_v63  ;;  %v2161_v54 = vmul.f32 %v8783_v51, %v2138_v43  ;;  %v2148_v25 = vmul.f32 %v10003_v41, %v2110_v63  ;;  %v2370_v63 = vld [vmem:[#allocation12 + $0x190] sm:$0xff] }
 0x755   :  { %v2149_v16 = vmul.f32 %v10012_v28, %v2114_v20  ;;  %v2150_v45 = vmul.f32 %v10009_v37, %v2114_v20  ;;  %v2118_v58 = vrot.slane %v8785_v40, %v9524_v62  ;;  %v2122_v51 = vrot.slane %v8785_v40, %v9542_v23  ;;  %v2362_v20 = vld [vmem:[#allocation12 + $0x150] sm:$0xff] }
 0x756   :  { %2210 = vperm.xlu1 %8705, %v2156_v2   ;;  %2165 = vperm.xlu0 %8706, %v2147_v15   ;;  %v2155_v28 = vmul.f32 %v10032_v17, %v2126_v35  ;;  %v2130_v37 = vrot.slane %v8785_v40, %v9519_v59  ;;  %v2377_v17 = vld [vmem:[#allocation12 + $0x1c8] sm:$0xff]  ;;  %v2162_v1 = vmul.f32 %v10048_v21, %v2138_v43  ;;  %v2368_v35 = vld [vmem:[#allocation12 + $0x180] sm:$0xff]  ;;  %v2367_v2 = vld [vmem:[#allocation12 + $0x178] sm:$0xff] }
 0x757   :  { %v2151_v49 = vmul.f32 %v10020_v60, %v2118_v58  ;;  %v2152_v44 = vmul.f32 %v10017_v26, %v2118_v58  ;;  %v2153_v41 = vmul.f32 %v10026_v31, %v2122_v51  ;;  %v2154_v38 = vmul.f32 %v10024_v53, %v2122_v51  ;;  %v2381_v31 = vld [vmem:[#allocation12 + $0x1e8] sm:$0xff]  ;;  %v2382_v53 = vld [vmem:[#allocation12 + $0x1f0] sm:$0xff]  ;;  %v2364_v15 = vld [vmem:[#allocation12 + $0x160] sm:$0xff] }
 0x758   :  { %v2157_v50 = vmul.f32 %v10038_v56, %v2130_v37  ;;  %v2158_v60 = vmul.f32 %v10036_v14, %v2130_v37  ;;  %v2134_v26 = vrot.slane %v8785_v40, %v9528_v0  ;;  %2400 = vmatprep.subr.mxu0 %v2381_v31  ;;  %v2378_v56 = vld [vmem:[#allocation12 + $0x1d0] sm:$0xff]  ;;  %2472 = vmatpush1.msra.mxu1 %v2382_v53  ;;  %v2371_v40 = vld [vmem:[#allocation12 + $0x198] sm:$0xff]  ;;  %v2360_v43 = vld [vmem:[#allocation12 + $0x140] sm:$0xff] }
 0x759   :  { %2401 = vmatpush1.msra.mxu0 %v2380_v52  ;;  %2473 = vmatprep.subr.mxu1 %v2379_v3  ;;  %v2363_v21 = vld [vmem:[#allocation12 + $0x158] sm:$0xff]  ;;  %v2356_v58 = vld [vmem:[#allocation12 + $0x120] sm:$0xff]  ;;  %v2341_v52 = vld [vmem:[#allocation12 + $0xa8] sm:$0xff] }
 0x75a   :  { %2235 = vperm.xlu1 %8705, %v2161_v54   ;;  %2170 = vperm.xlu0 %8706, %v2148_v25   ;;  %v2159_v12 = vmul.f32 %v10044_v42, %v2134_v26  ;;  %v2160_v14 = vmul.f32 %v10042_v24, %v2134_v26  ;;  %v2373_v42 = vld [vmem:[#allocation12 + $0x1a8] sm:$0xff]  ;;  %v2366_v54 = vld [vmem:[#allocation12 + $0x170] sm:$0xff]  ;;  %v2355_v51 = vld [vmem:[#allocation12 + $0x118] sm:$0xff] }
 0x75b   :  { %2402 = vmatprep.subr.mxu0 %v2377_v17  ;;  %2474 = vmatpush1.msra.mxu1 %v2378_v56  ;;  %v2365_v24 = vld [vmem:[#allocation12 + $0x168] sm:$0xff]  ;;  %v2351_v37 = vld [vmem:[#allocation12 + $0xf8] sm:$0xff]  ;;  %v2344_v31 = vld [vmem:[#allocation12 + $0xc0] sm:$0xff] }
 0x75c   :  { %2403 = vmatpush1.msra.mxu0 %v2376_v36  ;;  %2475 = vmatprep.subr.mxu1 %v2375_v27  ;;  %v2361_v25 = vld [vmem:[#allocation12 + $0x148] sm:$0xff]  ;;  %v2343_v53 = vld [vmem:[#allocation12 + $0xb8] sm:$0xff]  ;;  %v2340_v17 = vld [vmem:[#allocation12 + $0xa0] sm:$0xff] }
 0x75d   :  { %2404 = vmatprep.subr.mxu0 %v2373_v42  ;;  %2476 = vmatpush1.msra.mxu1 %v2374_v5  ;;  %v2345_v26 = vld [vmem:[#allocation12 + $0xc8] sm:$0xff]  ;;  %v2342_v3 = vld [vmem:[#allocation12 + $0xb0] sm:$0xff]  ;;  %v2339_v56 = vld [vmem:[#allocation12 + $0x98] sm:$0xff] }
 0x75e   :  { %2175 = vperm.xlu0 %8706, %v2149_v16   ;;  %2405 = vmatpush1.msra.mxu0 %v2372_v48  ;;  %v2357_v16 = vld [vmem:[#allocation12 + $0x128] sm:$0xff]  ;;  %v2338_v42 = vld [vmem:[#allocation12 + $0x90] sm:$0xff]  ;;  %v2332_v48 = vld [vmem:[#allocation12 + $0x60] sm:$0xff] }
 0x75f   :  { %2406 = vmatprep.subr.mxu0 %v2369_v13  ;;  %2477 = vmatprep.subr.mxu1 %v2371_v40  ;;  %v2337_v36 = vld [vmem:[#allocation12 + $0x88] sm:$0xff]  ;;  %v2334_v5 = vld [vmem:[#allocation12 + $0x70] sm:$0xff]  ;;  %v2331_v40 = vld [vmem:[#allocation12 + $0x58] sm:$0xff] }
 0x760   :  { %2407 = vmatpush1.msra.mxu0 %v2368_v35  ;;  %2478 = vmatpush1.msra.mxu1 %v2370_v63  ;;  %v2333_v27 = vld [vmem:[#allocation12 + $0x68] sm:$0xff]  ;;  %v2328_v35 = vld [vmem:[#allocation12 + $0x40] sm:$0xff]  ;;  %v2330_v63 = vld [vmem:[#allocation12 + $0x50] sm:$0xff] }
 0x761   :  { %2408 = vmatprep.subr.mxu0 %v2365_v24  ;;  %2479 = vmatprep.subr.mxu1 %v2367_v2  ;;  %v2329_v13 = vld [vmem:[#allocation12 + $0x48] sm:$0xff]  ;;  %v2327_v2 = vld [vmem:[#allocation12 + $0x38] sm:$0xff] }
 0x762   :  { %2180 = vperm.xlu0 %8706, %v2150_v45   ;;  %2409 = vmatpush1.msra.mxu0 %v2364_v15  ;;  %v2359_v45 = vld [vmem:[#allocation12 + $0x138] sm:$0xff]  ;;  %v2325_v24 = vld [vmem:[#allocation12 + $0x28] sm:$0xff]  ;;  %v2324_v15 = vld [vmem:[#allocation12 + $0x20] sm:$0xff] }
 0x763   :  { %2480 = vmatpush1.msra.mxu1 %v2366_v54  ;;  %2410 = vmatprep.subr.mxu0 %v2361_v25  ;;  %v2326_v54 = vld [vmem:[#allocation12 + $0x30] sm:$0xff]  ;;  %v2321_v25 = vld [vmem:[#allocation12 + $0x8] sm:$0xff] }
 0x764   :  { %2481 = vmatprep.subr.mxu1 %v2363_v21  ;;  %2411 = vmatpush1.msra.mxu0 %v2360_v43  ;;  %v2323_v21 = vld [vmem:[#allocation12 + $0x18] sm:$0xff]  ;;  %v2320_v43 = vld [vmem:[#allocation12] sm:$0xff] }
 0x765   :  { %2482 = vmatpush1.msra.mxu1 %v2362_v20  ;;  %2412 = vmatprep.subr.mxu0 %v2357_v16  ;;  %v2322_v20 = vld [vmem:[#allocation12 + $0x10] sm:$0xff]  ;;  %v2607_v16 = vld [vmem:[#allocation13 + $0x1e8] sm:$0xff] }
 0x766   :  { %2185 = vperm.xlu0 %8706, %v2151_v49   ;;  %v2358_v49 = vld [vmem:[#allocation12 + $0x130] sm:$0xff]  ;;  %2483 = vmatprep.subr.mxu1 %v2359_v45  ;;  %v2609_v45 = vld [vmem:[#allocation13 + $0x1f8] sm:$0xff] }
 0x767   :  { %2413 = vmatpush1.msra.mxu0 %v2356_v58  ;;  %2484 = vmatpush1.msra.mxu1 %v2358_v49 }
 0x768   :  { %2485 = vmatprep.subr.mxu1 %v2355_v51 }
 0x76a   :  { %2190 = vperm.xlu0 %8706, %v2152_v44   ;;  %v2353_v44 = vld [vmem:[#allocation12 + $0x108] sm:$0xff] }
 0x76b   :  { %2414 = vmatprep.subr.mxu0 %v2353_v44 }
 0x76e   :  { %2195 = vperm.xlu0 %8706, %v2153_v41   ;;  %v2352_v41 = vld [vmem:[#allocation12 + $0x100] sm:$0xff] }
 0x76f   :  { %2415 = vmatpush1.msra.mxu0 %v2352_v41 }
 0x772   :  { %2200 = vperm.xlu0 %8706, %v2154_v38   ;;  %v2354_v38 = vld [vmem:[#allocation12 + $0x110] sm:$0xff] }
 0x773   :  { %2486 = vmatpush1.msra.mxu1 %v2354_v38 }
 0x774   :  { %2487 = vmatprep.subr.mxu1 %v2351_v37 }
 0x776   :  { %2205 = vperm.xlu0 %8706, %v2155_v28   ;;  %v2349_v28 = vld [vmem:[#allocation12 + $0xe8] sm:$0xff] }
 0x777   :  { %2416 = vmatprep.subr.mxu0 %v2349_v28 }
 0x77a   :  { %2215 = vperm.xlu0 %8706, %v2157_v50   ;;  %v2348_v50 = vld [vmem:[#allocation12 + $0xe0] sm:$0xff] }
 0x77b   :  { %2417 = vmatpush1.msra.mxu0 %v2348_v50  ;;  %v10106_v50 = vld [vmem:[#allocation7 + $0x18] sm:$0xff] }
 0x77c   :  { %2418 = vmatprep.subr.mxu0 %v2345_v26  ;;  %v10109_v26 = vld [vmem:[#allocation7 + $0x28] sm:$0xff] }
 0x77d   :  { %2419 = vmatpush1.msra.mxu0 %v2344_v31 }
 0x77e   :  { %2220 = vperm.xlu0 %8706, %v2158_v60   ;;  %v2350_v60 = vld [vmem:[#allocation12 + $0xf0] sm:$0xff]  ;;  %2420 = vmatprep.subr.mxu0 %v2341_v52  ;;  %v10112_v52 = vld [vmem:[#allocation7 + $0x8] sm:$0xff] }
 0x77f   :  { %2488 = vmatpush1.msra.mxu1 %v2350_v60  ;;  %2421 = vmatpush1.msra.mxu0 %v2340_v17  ;;  %v10115_v17 = vld [vmem:[#allocation7 + $0x10] sm:$0xff] }
 0x780   :  { %2422 = vmatprep.subr.mxu0 %v2337_v36  ;;  %v10118_v36 = vld [vmem:[#allocation7 + $0x38] sm:$0xff] }
 0x782   :  { %2225 = vperm.xlu0 %8706, %v2159_v12   ;;  %v2347_v12 = vld [vmem:[#allocation12 + $0xd8] sm:$0xff] }
 0x783   :  { %2489 = vmatprep.subr.mxu1 %v2347_v12 }
 0x784   :  { %2490 = vmatpush1.msra.mxu1 %v2346_v30 }
 0x785   :  { %2491 = vmatprep.subr.mxu1 %v2343_v53 }
 0x786   :  { %2230 = vperm.xlu0 %8706, %v2160_v14   ;;  %v2336_v14 = vld [vmem:[#allocation12 + $0x80] sm:$0xff]  ;;  %2492 = vmatpush1.msra.mxu1 %v2342_v3 }
 0x787   :  { %2493 = vmatprep.subr.mxu1 %v2339_v56  ;;  %2423 = vmatpush1.msra.mxu0 %v2336_v14  ;;  %v10121_v14 = vld [vmem:[#allocation7 + $0x20] sm:$0xff] }
 0x788   :  { %2494 = vmatpush1.msra.mxu1 %v2338_v42  ;;  %2424 = vmatprep.subr.mxu0 %v2333_v27  ;;  %v10124_v27 = vld [vmem:[#allocation7 + $0x40] sm:$0xff] }
 0x789   :  { %2425 = vmatpush1.msra.mxu0 %v2332_v48  ;;  %v10127_v48 = vld [vmem:[#allocation7] sm:$0xff] }
 0x78a   :  { %2240 = vperm.xlu0 %8706, %v2162_v1   ;;  %v2335_v1 = vld [vmem:[#allocation12 + $0x78] sm:$0xff]  ;;  %2426 = vmatprep.subr.mxu0 %v2329_v13 }
 0x78b   :  { %2495 = vmatprep.subr.mxu1 %v2335_v1  ;;  %2427 = vmatpush1.msra.mxu0 %v2328_v35 }
 0x78c   :  { %2496 = vmatpush1.msra.mxu1 %v2334_v5  ;;  %2428 = vmatprep.subr.mxu0 %v2325_v24 }
 0x78d   :  { %2497 = vmatprep.subr.mxu1 %v2331_v40  ;;  %2429 = vmatpush1.msra.mxu0 %v2324_v15  ;;  %v10130_v40 = vld [vmem:[#allocation7 + $0x30] sm:$0xff] }
 0x78e   :  { %2498 = vmatpush1.msra.mxu1 %v2330_v63  ;;  %2430 = vmatprep.subr.mxu0 %v2321_v25  ;;  %v10133_v63 = vld [vmem:[#allocation7 + $0x48] sm:$0xff] }
 0x78f   :  { %2499 = vmatprep.subr.mxu1 %v2327_v2  ;;  %2431 = vmatpush1.msra.mxu0 %v2320_v43 }
 0x790   :  { %2500 = vmatpush1.msra.mxu1 %v2326_v54  ;;  %2610 = vmatprep.subr.mxu0 %v2607_v16 }
 0x791   :  { %2501 = vmatprep.subr.mxu1 %v2323_v21 }
 0x792   :  { %2502 = vmatpush1.msra.mxu1 %v2322_v20 }
 0x793   :  { %2681 = vmatprep.subr.mxu1 %v2609_v45 }
 0x7d1   :  { %v2166_v58 = vpop.permute.xlu0 %2165  ;;  %v2211_v30 = vpop.permute.xlu1 %2210 }
 0x7d2   :  { %v2243_v5 = vmul.f32 %v10127_v48, %v2166_v58  ;;  %v2252_v24 = vmul.f32 %v10133_v63, %v2211_v30  ;;  %v10136_v58 = vld [vmem:[#allocation7 + $0x50] sm:$0xff] }
 0x7d5   :  { %v2171_v49 = vpop.permute.xlu0 %2170 }
 0x7d6   :  { %v2244_v53 = vmul.f32 %v10112_v52, %v2171_v49 }
 0x7d8   :  { %v2259_v54 = vadd.f32 %v2244_v53, %v2243_v5 }
 0x7d9   :  { %v2176_v44 = vpop.permute.xlu0 %2175 }
 0x7da   :  { %v2245_v3 = vmul.f32 %v10115_v17, %v2176_v44  ;;  %v2260_v45 = vrot.slane %v2259_v54, 4 }
 0x7dd   :  { %v2181_v51 = vpop.permute.xlu0 %2180 }
 0x7de   :  { %v2246_v60 = vmul.f32 %v10106_v50, %v2181_v51  ;;  %v10139_v51 = vld [vmem:[#allocation7 + $0x58] sm:$0xff] }
 0x7e0   :  { %v2266_v13 = vadd.f32 %v2246_v60, %v2245_v3 }
 0x7e1   :  { %v2186_v41 = vpop.permute.xlu0 %2185 }
 0x7e2   :  { %v2247_v42 = vmul.f32 %v10121_v14, %v2186_v41  ;;  %v2267_v43 = vrot.slane %v2266_v13, 4 }
 0x7e5   :  { %v2191_v38 = vpop.permute.xlu0 %2190 }
 0x7e6   :  { %v2248_v12 = vmul.f32 %v10109_v26, %v2191_v38 }
 0x7e8   :  { %v2273_v2 = vadd.f32 %v2248_v12, %v2247_v42 }
 0x7e9   :  { %v2196_v28 = vpop.permute.xlu0 %2195 }
 0x7ea   :  { %v2249_v35 = vmul.f32 %v10130_v40, %v2196_v28  ;;  %v2274_v20 = vrot.slane %v2273_v2, 4  ;;  %v2268_v28 = vadd.f32 %v2267_v43, %v2266_v13 }
 0x7ec   :  { %v2275_v60 = vadd.f32 %v2274_v20, %v2273_v2 }
 0x7ed   :  { %v2201_v37 = vpop.permute.xlu0 %2200 }
 0x7ee   :  { %v2250_v56 = vmul.f32 %v10118_v36, %v2201_v37 }
 0x7f0   :  { %v2280_v25 = vadd.f32 %v2250_v56, %v2249_v35  ;;  %v2269_v56 = vrot.slane %v2268_v28, 2  ;;  %v2236_v35 = vpop.permute.xlu1 %2235 }
 0x7f1   :  { %v2206_v31 = vpop.permute.xlu0 %2205 }
 0x7f2   :  { %v2251_v1 = vmul.f32 %v10124_v27, %v2206_v31  ;;  %v2281_v49 = vrot.slane %v2280_v25, 4  ;;  %v2261_v31 = vadd.f32 %v2260_v45, %v2259_v54  ;;  %v2270_v54 = vadd.f32 %v2269_v56, %v2268_v28 }
 0x7f4   :  { %v2287_v21 = vadd.f32 %v2252_v24, %v2251_v1  ;;  %v2282_v30 = vadd.f32 %v2281_v49, %v2280_v25  ;;  %v2276_v1 = vrot.slane %v2275_v60, 2  ;;  %v2262_v24 = vrot.slane %v2261_v31, 2 }
 0x7f5   :  { %v2216_v15 = vpop.permute.xlu0 %2215  ;;  %v2271_v46 = vrot.slane %v2270_v54, 1 }
 0x7f6   :  { %v2253_v44 = vmul.f32 %v10136_v58, %v2216_v15  ;;  %v2288_v38 = vrot.slane %v2287_v21, 4  ;;  %v2283_v15 = vrot.slane %v2282_v30, 2  ;;  %v2277_v45 = vadd.f32 %v2276_v1, %v2275_v60 }
 0x7f7   :  { %v2272_v60 = vadd.f32 %v2271_v46, %v2270_v54  ;;  %v2606_v54 = vld [vmem:[#allocation13 + $0x1e0] sm:$0xff] }
 0x7f8   :  { %v2289_v3 = vadd.f32 %v2288_v38, %v2287_v21  ;;  %v10148_v21 = vld [vmem:[#allocation7 + $0x70] sm:$0xff]  ;;  %v2278_v56 = vrot.slane %v2277_v45, 1 }
 0x7f9   :  { %v2221_v16 = vpop.permute.xlu0 %2220  ;;  %v2257_v20 = vmul.f32 %v10148_v21, %v2236_v35 }
 0x7fa   :  { %v2254_v41 = vmul.f32 %v10139_v51, %v2221_v16  ;;  %v2290_v2 = vrot.slane %v2289_v3, 2 }
 0x7fc   :  { %v2294_v37 = vadd.f32 %v2254_v41, %v2253_v44  ;;  %v2263_v44 = vadd.f32 %v2262_v24, %v2261_v31  ;;  %v2284_v41 = vadd.f32 %v2283_v15, %v2282_v30  ;;  %v2279_v24 = vadd.f32 %v2278_v56, %v2277_v45  ;;  %v2608_v45 = vld [vmem:[#allocation13 + $0x1f0] sm:$0xff]  ;;  %v2598_v56 = vld [vmem:[#allocation13 + $0x1a0] sm:$0xff] }
 0x7fd   :  { %v2226_v12 = vpop.permute.xlu0 %2225 }
 0x7fe   :  { %v2295_v53 = vrot.slane %v2294_v37, 4  ;;  %v2255_v16 = vmul.f32 %v10142_v57, %v2226_v12 }
 0x800   :  { %v2296_v42 = vadd.f32 %v2295_v53, %v2294_v37  ;;  %v10151_v37 = vld [vmem:[#allocation7 + $0x78] sm:$0xff]  ;;  %v2291_v53 = vadd.f32 %v2290_v2, %v2289_v3 }
 0x801   :  { %v2231_v5 = vpop.permute.xlu0 %2230 }
 0x802   :  { %v2256_v13 = vmul.f32 %v10145_v10, %v2231_v5  ;;  %v2297_v25 = vrot.slane %v2296_v42, 2  ;;  %v2292_v35 = vrot.slane %v2291_v53, 1 }
 0x804   :  { %v2301_v43 = vadd.f32 %v2256_v13, %v2255_v16  ;;  %v2298_v5 = vadd.f32 %v2297_v25, %v2296_v42  ;;  %v2264_v16 = vrot.slane %v2263_v44, 1  ;;  %v2285_v13 = vrot.slane %v2284_v41, 1 }
 0x805   :  { %v2241_v49 = vpop.permute.xlu0 %2240  ;;  %v2293_v3 = vadd.f32 %v2292_v35, %v2291_v53  ;;  %v2605_v53 = vld [vmem:[#allocation13 + $0x1d8] sm:$0xff] }
 0x806   :  { %v2302_v38 = vrot.slane %v2301_v43, 4  ;;  %v2258_v12 = vmul.f32 %v10151_v37, %v2241_v49  ;;  %v2299_v1 = vrot.slane %v2298_v5, 1  ;;  %v2265_v15 = vadd.f32 %v2264_v16, %v2263_v44  ;;  %v2600_v16 = vld [vmem:[#allocation13 + $0x1b0] sm:$0xff]  ;;  %v2597_v35 = vld [vmem:[#allocation13 + $0x198] sm:$0xff] }
 0x807   :  { %v2286_v19 = vadd.f32 %v2285_v13, %v2284_v41  ;;  %v2603_v41 = vld [vmem:[#allocation13 + $0x1c8] sm:$0xff] }
 0x808   :  { %v2303_v7 = vadd.f32 %v2302_v38, %v2301_v43  ;;  %v2308_v28 = vadd.f32 %v2258_v12, %v2257_v20  ;;  %v2392_v42 = vsel %vm708_vm1, %v2272_v60, %v2265_v15  ;;  %v2300_v2 = vadd.f32 %v2299_v1, %v2298_v5  ;;  %v2602_v5 = vld [vmem:[#allocation13 + $0x1c0] sm:$0xff]  ;;  %v2595_v13 = vld [vmem:[#allocation13 + $0x188] sm:$0xff]  ;;  %v2596_v1 = vld [vmem:[#allocation13 + $0x190] sm:$0xff] }
 0x809   :  { %v2393_v43 = vsel %vm710_vm2, %v2279_v24, %v2392_v42  ;;  %v2594_v60 = vld [vmem:[#allocation13 + $0x180] sm:$0xff]  ;;  %v2592_v15 = vld [vmem:[#allocation13 + $0x170] sm:$0xff] }
 0x80a   :  { %v2304_v61 = vrot.slane %v2303_v7, 2  ;;  %v2309_v47 = vrot.slane %v2308_v28, 4  ;;  %v2394_v12 = vsel %vm712_vm3, %v2286_v19, %v2393_v43  ;;  %v2599_v19 = vld [vmem:[#allocation13 + $0x1a8] sm:$0xff]  ;;  %v2590_v24 = vld [vmem:[#allocation13 + $0x160] sm:$0xff]  ;;  %v2585_v43 = vld [vmem:[#allocation13 + $0x138] sm:$0xff] }
 0x80b   :  { %v2395_v46 = vsel %vm714_vm4, %v2293_v3, %v2394_v12  ;;  %v2589_v3 = vld [vmem:[#allocation13 + $0x158] sm:$0xff]  ;;  %v2586_v42 = vld [vmem:[#allocation13 + $0x140] sm:$0xff]  ;;  %v2579_v12 = vld [vmem:[#allocation13 + $0x108] sm:$0xff] }
 0x80c   :  { %v2305_v31 = vadd.f32 %v2304_v61, %v2303_v7  ;;  %v2310_v30 = vadd.f32 %v2309_v47, %v2308_v28  ;;  %v2396_v47 = vsel %vm716_vm5, %v2300_v2, %v2395_v46  ;;  %v2601_v28 = vld [vmem:[#allocation13 + $0x1b8] sm:$0xff]  ;;  %v2588_v2 = vld [vmem:[#allocation13 + $0x150] sm:$0xff] }
 0x80d   :  { %v2581_v46 = vld [vmem:[#allocation13 + $0x118] sm:$0xff] }
 0x80e   :  { %v2306_v4 = vrot.slane %v2305_v31, 1  ;;  %v2311_v49 = vrot.slane %v2310_v30, 2 }
 0x810   :  { %v2312_v25 = vadd.f32 %v2311_v49, %v2310_v30  ;;  %v2307_v20 = vadd.f32 %v2306_v4, %v2305_v31  ;;  %v2604_v4 = vld [vmem:[#allocation13 + $0x1d0] sm:$0xff]  ;;  %v2591_v31 = vld [vmem:[#allocation13 + $0x168] sm:$0xff]  ;;  %v2593_v30 = vld [vmem:[#allocation13 + $0x178] sm:$0xff] }
 0x811   :  { %v2587_v49 = vld [vmem:[#allocation13 + $0x148] sm:$0xff] }
 0x812   :  { %v2313_v38 = vrot.slane %v2312_v25, 1  ;;  %v2397_v7 = vsel %vm718_vm6, %v2307_v20, %v2396_v47  ;;  %v2582_v20 = vld [vmem:[#allocation13 + $0x120] sm:$0xff]  ;;  %v2580_v47 = vld [vmem:[#allocation13 + $0x110] sm:$0xff] }
 0x814   :  { %v2314_v61 = vadd.f32 %v2313_v38, %v2312_v25  ;;  %v2583_v25 = vld [vmem:[#allocation13 + $0x128] sm:$0xff]  ;;  %v2584_v38 = vld [vmem:[#allocation13 + $0x130] sm:$0xff] }
 0x816   :  { %v2398_v44 = vsel %vm720_vm7, %v2314_v61, %v2397_v7  ;;  %v2578_v61 = vld [vmem:[#allocation13 + $0x100] sm:$0xff]  ;;  %v2575_v7 = vld [vmem:[#allocation13 + $0xe8] sm:$0xff] }
 0x817   :  { %2465 = vmatmul.mubr.f32.vlgmr.msra.gmra.mxu0 %v2398_v44  ;;  %2536 = vmatmul.mubr.f32.vlgmr.msra.gmra.mxu1 %v2398_v44  ;;  %v2576_v44 = vld [vmem:[#allocation13 + $0xf0] sm:$0xff] }
 0x818   :  { %2611 = vmatpush1.msra.mxu0 %v2606_v54  ;;  %2682 = vmatpush1.msra.mxu1 %v2608_v45  ;;  %v2577_v54 = vld [vmem:[#allocation13 + $0xf8] sm:$0xff]  ;;  %v2574_v45 = vld [vmem:[#allocation13 + $0xe0] sm:$0xff] }
 0x819   :  { %2612 = vmatprep.subr.mxu0 %v2603_v41  ;;  %2683 = vmatprep.subr.mxu1 %v2605_v53  ;;  %v2571_v41 = vld [vmem:[#allocation13 + $0xc8] sm:$0xff]  ;;  %v2573_v53 = vld [vmem:[#allocation13 + $0xd8] sm:$0xff] }
 0x81a   :  { %2613 = vmatpush1.msra.mxu0 %v2602_v5  ;;  %2684 = vmatpush1.msra.mxu1 %v2604_v4  ;;  %v2570_v5 = vld [vmem:[#allocation13 + $0xc0] sm:$0xff]  ;;  %v2572_v4 = vld [vmem:[#allocation13 + $0xd0] sm:$0xff] }
 0x81b   :  { %2614 = vmatprep.subr.mxu0 %v2599_v19  ;;  %2685 = vmatprep.subr.mxu1 %v2601_v28  ;;  %v2567_v19 = vld [vmem:[#allocation13 + $0xa8] sm:$0xff]  ;;  %v2569_v28 = vld [vmem:[#allocation13 + $0xb8] sm:$0xff] }
 0x81c   :  { %2615 = vmatpush1.msra.mxu0 %v2598_v56  ;;  %2686 = vmatpush1.msra.mxu1 %v2600_v16  ;;  %v2566_v56 = vld [vmem:[#allocation13 + $0xa0] sm:$0xff]  ;;  %v2568_v16 = vld [vmem:[#allocation13 + $0xb0] sm:$0xff] }
 0x81d   :  { %2616 = vmatprep.subr.mxu0 %v2595_v13  ;;  %2687 = vmatprep.subr.mxu1 %v2597_v35  ;;  %v2563_v13 = vld [vmem:[#allocation13 + $0x88] sm:$0xff]  ;;  %v2565_v35 = vld [vmem:[#allocation13 + $0x98] sm:$0xff] }
 0x81e   :  { %2617 = vmatpush1.msra.mxu0 %v2594_v60  ;;  %2688 = vmatpush1.msra.mxu1 %v2596_v1  ;;  %v2562_v60 = vld [vmem:[#allocation13 + $0x80] sm:$0xff]  ;;  %v2564_v1 = vld [vmem:[#allocation13 + $0x90] sm:$0xff] }
 0x81f   :  { %2618 = vmatprep.subr.mxu0 %v2591_v31  ;;  %2689 = vmatprep.subr.mxu1 %v2593_v30  ;;  %v2559_v31 = vld [vmem:[#allocation13 + $0x68] sm:$0xff]  ;;  %v2561_v30 = vld [vmem:[#allocation13 + $0x78] sm:$0xff] }
 0x820   :  { %2619 = vmatpush1.msra.mxu0 %v2590_v24  ;;  %2690 = vmatpush1.msra.mxu1 %v2592_v15  ;;  %v2558_v24 = vld [vmem:[#allocation13 + $0x60] sm:$0xff]  ;;  %v2560_v15 = vld [vmem:[#allocation13 + $0x70] sm:$0xff] }
 0x821   :  { %2620 = vmatprep.subr.mxu0 %v2587_v49  ;;  %2691 = vmatprep.subr.mxu1 %v2589_v3  ;;  %v2555_v49 = vld [vmem:[#allocation13 + $0x48] sm:$0xff]  ;;  %v2557_v3 = vld [vmem:[#allocation13 + $0x58] sm:$0xff] }
 0x822   :  { %2621 = vmatpush1.msra.mxu0 %v2586_v42  ;;  %2692 = vmatpush1.msra.mxu1 %v2588_v2  ;;  %v2554_v42 = vld [vmem:[#allocation13 + $0x40] sm:$0xff]  ;;  %v2556_v2 = vld [vmem:[#allocation13 + $0x50] sm:$0xff] }
 0x823   :  { %2622 = vmatprep.subr.mxu0 %v2583_v25  ;;  %2693 = vmatprep.subr.mxu1 %v2585_v43  ;;  %v2551_v25 = vld [vmem:[#allocation13 + $0x28] sm:$0xff]  ;;  %v2553_v43 = vld [vmem:[#allocation13 + $0x38] sm:$0xff] }
 0x824   :  { %2623 = vmatpush1.msra.mxu0 %v2582_v20  ;;  %2694 = vmatpush1.msra.mxu1 %v2584_v38  ;;  %v2550_v20 = vld [vmem:[#allocation13 + $0x20] sm:$0xff]  ;;  %v2552_v38 = vld [vmem:[#allocation13 + $0x30] sm:$0xff] }
 0x825   :  { %2624 = vmatprep.subr.mxu0 %v2579_v12  ;;  %2695 = vmatprep.subr.mxu1 %v2581_v46  ;;  %v2547_v12 = vld [vmem:[#allocation13 + $0x8] sm:$0xff]  ;;  %v2549_v46 = vld [vmem:[#allocation13 + $0x18] sm:$0xff] }
 0x826   :  { %2625 = vmatpush1.msra.mxu0 %v2578_v61  ;;  %2696 = vmatpush1.msra.mxu1 %v2580_v47  ;;  %v2546_v61 = vld [vmem:[#allocation13] sm:$0xff]  ;;  %v2548_v47 = vld [vmem:[#allocation13 + $0x10] sm:$0xff] }
 0x827   :  { %2626 = vmatprep.subr.mxu0 %v2575_v7  ;;  %2697 = vmatprep.subr.mxu1 %v2577_v54  ;;  %v11658_v7 = vmov 0.0  }
 0x828   :  { %2627 = vmatpush1.msra.mxu0 %v2574_v45  ;;  %2698 = vmatpush1.msra.mxu1 %v2576_v44 }
 0x829   :  { %2628 = vmatprep.subr.mxu0 %v2571_v41  ;;  %2699 = vmatprep.subr.mxu1 %v2573_v53 }
 0x82a   :  { %2629 = vmatpush1.msra.mxu0 %v2570_v5  ;;  %2700 = vmatpush1.msra.mxu1 %v2572_v4 }
 0x82b   :  { %2630 = vmatprep.subr.mxu0 %v2567_v19  ;;  %2701 = vmatprep.subr.mxu1 %v2569_v28 }
 0x82c   :  { %2631 = vmatpush1.msra.mxu0 %v2566_v56  ;;  %2702 = vmatpush1.msra.mxu1 %v2568_v16 }
 0x82d   :  { %2632 = vmatprep.subr.mxu0 %v2563_v13  ;;  %2703 = vmatprep.subr.mxu1 %v2565_v35 }
 0x82e   :  { %2633 = vmatpush1.msra.mxu0 %v2562_v60  ;;  %2704 = vmatpush1.msra.mxu1 %v2564_v1 }
 0x82f   :  { %2634 = vmatprep.subr.mxu0 %v2559_v31  ;;  %2705 = vmatprep.subr.mxu1 %v2561_v30 }
 0x830   :  { %2635 = vmatpush1.msra.mxu0 %v2558_v24  ;;  %2706 = vmatpush1.msra.mxu1 %v2560_v15 }
 0x831   :  { %2636 = vmatprep.subr.mxu0 %v2555_v49  ;;  %2707 = vmatprep.subr.mxu1 %v2557_v3 }
 0x832   :  { %2637 = vmatpush1.msra.mxu0 %v2554_v42  ;;  %2708 = vmatpush1.msra.mxu1 %v2556_v2 }
 0x833   :  { %2638 = vmatprep.subr.mxu0 %v2551_v25  ;;  %2709 = vmatprep.subr.mxu1 %v2553_v43 }
 0x834   :  { %2639 = vmatpush1.msra.mxu0 %v2550_v20  ;;  %2710 = vmatpush1.msra.mxu1 %v2552_v38 }
 0x835   :  { %2640 = vmatprep.subr.mxu0 %v2547_v12  ;;  %2711 = vmatprep.subr.mxu1 %v2549_v46 }
 0x836   :  { %2641 = vmatpush1.msra.mxu0 %v2546_v61  ;;  %2674 = vmatprep.mubr.f32.mxu0 %v11658_v7 }
 0x837   :  { %2712 = vmatpush1.msra.mxu1 %v2548_v47  ;;  %2745 = vmatprep.mubr.f32.mxu1 %v11658_v7 }
 0x838   :  { %2675 = vmatmul.mubr.f32.vlgmr.msra.gmra.mxu0 %v9883_v39  ;;  %2746 = vmatmul.mubr.f32.vlgmr.msra.gmra.mxu1 %v9883_v39 }
 0x839   :  { %3608 = vmatprep.mubr.f32.mxu0 %v11658_v7  ;;  %3679 = vmatprep.mubr.f32.mxu1 %v11658_v7 }
 0x8d7   :  { %v2466_v54 = vpop.f32.mrf.mxu0  ;;  %v2537_v45 = vpop.f32.mrf.mxu1 }
 0x8d8   :  { %v2542_v41 = vadd.f32 %v2466_v54, %v9801_v18  ;;  %v2544_v16 = vadd.f32 %v2537_v45, %v9846_v22 }
 0x8d9   :  { %v2468_v44 = vpop.f32.mrf.mxu0  ;;  %v2539_v53 = vpop.f32.mrf.mxu1 }
 0x8da   :  { %v2543_v4 = vadd.f32 %v2468_v44, %v9804_v29  ;;  %v2545_v30 = vadd.f32 %v2539_v53, %v9849_v32 }
 0x8f8   :  { %v2676_v5 = vpop.f32.mrf.mxu0  ;;  %v2747_v28 = vpop.f32.mrf.mxu1 }
 0x8f9   :  { %v2752_v19 = vadd.f32 %v2676_v5, %v2542_v41  ;;  %v2754_v60 = vadd.f32 %v2747_v28, %v2544_v16 }
 0x8fa   :  { %v2678_v56 = vpop.f32.mrf.mxu0  ;;  %v2749_v31 = vpop.f32.mrf.mxu1 }
 0x8fb   :  { %v2756_v13 = vmul.f32 0.5, %v2752_v19  ;;  %v2753_v35 = vadd.f32 %v2678_v56, %v2543_v4  ;;  %v2755_v18 = vadd.f32 %v2749_v31, %v2545_v30 }
 0x8fd   :  { %8786 = vtanh.f32 %v2756_v13  ;;  %v2760_v1 = vmul.f32 0.5, %v2753_v35  ;;  %v2765_v24 = vmul.f32 0.5, %v2755_v18 }
 0x8ff   :  { %8788 = vtanh.f32 %v2760_v1 }
 0x900   :  { %8790 = vtanh.f32 %v2754_v60 }
 0x901   :  { %8792 = vtanh.f32 %v2765_v24 }
 0x90a   :  { %v8787_v15 = vpop.eup %8786 }
 0x90b   :  { %v2758_v49 = vadd.f32 1.0, %v8787_v15 }
 0x90c   :  { %v8789_v29 = vpop.eup %8788 }
 0x90d   :  { %v2759_v3 = vmul.f32 0.5, %v2758_v49  ;;  %v2762_v42 = vadd.f32 1.0, %v8789_v29  ;;  %v8791_v2 = vpop.eup %8790 }
 0x90e   :  { %v8793_v38 = vpop.eup %8792 }
 0x90f   :  { %v2763_v22 = vmul.f32 0.5, %v2762_v42  ;;  %v2770_v25 = vmul.f32 %v8791_v2, %v2759_v3  ;;  %v2767_v12 = vadd.f32 1.0, %v8793_v38 }
 0x911   :  { %v2769_v43 = vmul.f32 %v2763_v22, %v9880_v33  ;;  %v2768_v32 = vmul.f32 0.5, %v2767_v12 }
 0x913   :  { %v10172_v20 = vadd.f32 %v2770_v25, %v2769_v43 }
 0x915   :  { %8794 = vtanh.f32 %v10172_v20 }
 0x922   :  { %v8795_v46 = vpop.eup %8794 }
 0x923   :  { %v10175_v61 = vmul.f32 %v8795_v46, %v2768_v32 }
 0x925   :  { %v2784_v47 = vrot.slane %v10175_v61, %v9411_v8  ;;  %v2777_v54 = vcombine.high %v10175_v61, %v10175_v61 }
 0x927   :  { %v2800_v45 = vrot.slane %v2784_v47, %v9411_v8  ;;  %v2792_v44 = vcombine.high %v2784_v47, %v2784_v47  ;;  %v2791_v53 = vrot.slane %v2777_v54, %v9411_v8 }
 0x929   :  { %v2829_v33 = vrot.slane %v2800_v45, %v9417_v11  ;;  %v2814_v41 = vrot.slane %v2792_v44, %v9411_v8  ;;  %v2822_v4 = vcombine.high %v2800_v45, %v2800_v45  ;;  %v2807_v35 = vrot.slane %v2791_v53, %v9411_v8 }
 0x92a   :  { %v2793_v60 = vcombine.high %v2791_v53, %v2791_v53 }
 0x92b   :  { %v2867_v5 = vmul.f32 %v10112_v52, %v2829_v33  ;;  %v2866_v19 = vmul.f32 %v10127_v48, %v2829_v33  ;;  %v2833_v28 = vrot.slane %v2814_v41, %v9417_v11  ;;  %v2837_v13 = vrot.slane %v2822_v4, %v9417_v11 }
 0x92c   :  { %v2845_v48 = vrot.slane %v2807_v35, %v9417_v11  ;;  %v2824_v31 = vcombine.high %v2814_v41, %v2814_v41  ;;  %v2821_v18 = vrot.slane %v2793_v60, %v9411_v8  ;;  %v2823_v15 = vcombine.high %v2807_v35, %v2807_v35 }
 0x92d   :  { %2884 = vadd.xlane.f32.xlu0 %v2867_v5  ;;  %2882 = vadd.xlane.f32.xlu1 %v2866_v19  ;;  %v2869_v56 = vmul.f32 %v10106_v50, %v2833_v28  ;;  %v2868_v16 = vmul.f32 %v10115_v17, %v2833_v28  ;;  %v2871_v52 = vmul.f32 %v10109_v26, %v2837_v13 }
 0x92e   :  { %v2870_v1 = vmul.f32 %v10121_v14, %v2837_v13  ;;  %v2875_v50 = vmul.f32 %v10133_v63, %v2845_v48  ;;  %v2874_v17 = vmul.f32 %v10124_v27, %v2845_v48  ;;  %v2841_v30 = vrot.slane %v2824_v31, %v9417_v11 }
 0x92f   :  { %v2849_v14 = vrot.slane %v2821_v18, %v9417_v11  ;;  %v2853_v27 = vrot.slane %v2823_v15, %v9417_v11  ;;  %v2825_v29 = vcombine.high %v2821_v18, %v2821_v18 }
 0x930   :  { %v2873_v24 = vmul.f32 %v10118_v36, %v2841_v30  ;;  %v2872_v26 = vmul.f32 %v10130_v40, %v2841_v30 }
 0x931   :  { %2888 = vadd.xlane.f32.xlu1 %v2869_v56  ;;  %2886 = vadd.xlane.f32.xlu0 %v2868_v16  ;;  %v2877_v49 = vmul.f32 %v10139_v51, %v2849_v14  ;;  %v2876_v63 = vmul.f32 %v10136_v58, %v2849_v14  ;;  %v2879_v3 = vmul.f32 %v10145_v10, %v2853_v27 }
 0x932   :  { %v2878_v36 = vmul.f32 %v10142_v57, %v2853_v27  ;;  %v2857_v40 = vrot.slane %v2825_v29, %v9417_v11 }
 0x934   :  { %v2881_v42 = vmul.f32 %v10151_v37, %v2857_v40  ;;  %v2880_v2 = vmul.f32 %v10148_v21, %v2857_v40 }
 0x935   :  { %2892 = vadd.xlane.f32.xlu1 %v2871_v52  ;;  %2890 = vadd.xlane.f32.xlu0 %v2870_v1 }
 0x939   :  { %2900 = vadd.xlane.f32.xlu1 %v2875_v50  ;;  %2898 = vadd.xlane.f32.xlu0 %v2874_v17 }
 0x93d   :  { %2896 = vadd.xlane.f32.xlu1 %v2873_v24  ;;  %2894 = vadd.xlane.f32.xlu0 %v2872_v26 }
 0x941   :  { %2904 = vadd.xlane.f32.xlu1 %v2877_v49  ;;  %2902 = vadd.xlane.f32.xlu0 %v2876_v63 }
 0x945   :  { %2908 = vadd.xlane.f32.xlu1 %v2879_v3  ;;  %2906 = vadd.xlane.f32.xlu0 %v2878_v36 }
 0x949   :  { %2912 = vadd.xlane.f32.xlu1 %v2881_v42  ;;  %2910 = vadd.xlane.f32.xlu0 %v2880_v2 }
 0x9b6   :  { %v2885_v58 = vpop.xlane.xlu0 %2884  ;;  %v2883_v51 = vpop.xlane.xlu1 %2882 }
 0x9b7   :  { %v2937_v54 = vrot.slane %v2885_v58, %v9414_v9  ;;  %v2933_v45 = vrot.slane %v2883_v51, %v9408_v6 }
 0x9b9   :  { %v2938_v19 = vsel %vm643_vm0, %v2937_v54, %v2933_v45 }
 0x9ba   :  { %v10210_v22 = vpop.xlane.xlu1 %2888  ;;  %v2887_v25 = vpop.xlane.xlu0 %2886 }
 0x9bb   :  { %v2946_v21 = vrot.slane %v10210_v22, %v9414_v9  ;;  %v2942_v37 = vrot.slane %v2887_v25, %v9408_v6 }
 0x9bd   :  { %v2947_v5 = vsel %vm643_vm0, %v2946_v21, %v2942_v37 }
 0x9be   :  { %v10212_v43 = vpop.xlane.xlu1 %2892  ;;  %v2891_v10 = vpop.xlane.xlu0 %2890  ;;  %v3002_v13 = vsel %vm708_vm1, %v2947_v5, %v2938_v19 }
 0x9bf   :  { %v2955_v46 = vrot.slane %v10212_v43, %v9414_v9  ;;  %v2951_v47 = vrot.slane %v2891_v10, %v9408_v6 }
 0x9c1   :  { %v2956_v4 = vsel %vm643_vm0, %v2955_v46, %v2951_v47 }
 0x9c2   :  { %v10214_v38 = vpop.xlane.xlu1 %2900  ;;  %v10216_v57 = vpop.xlane.xlu0 %2898  ;;  %v3003_v48 = vsel %vm710_vm2, %v2956_v4, %v3002_v13 }
 0x9c3   :  { %v2973_v35 = vrot.slane %v10214_v38, %v9414_v9  ;;  %v2969_v60 = vrot.slane %v10216_v57, %v9408_v6 }
 0x9c5   :  { %v2974_v18 = vsel %vm643_vm0, %v2973_v35, %v2969_v60 }
 0x9c6   :  { %v10218_v12 = vpop.xlane.xlu1 %2896  ;;  %v10220_v32 = vpop.xlane.xlu0 %2894 }
 0x9c7   :  { %v2964_v44 = vrot.slane %v10218_v12, %v9414_v9  ;;  %v2960_v33 = vrot.slane %v10220_v32, %v9408_v6 }
 0x9c9   :  { %v2965_v28 = vsel %vm643_vm0, %v2964_v44, %v2960_v33 }
 0x9ca   :  { %v10234_v41 = vpop.xlane.xlu1 %2904  ;;  %v10236_v53 = vpop.xlane.xlu0 %2902  ;;  %v3004_v17 = vsel %vm712_vm3, %v2965_v28, %v3003_v48 }
 0x9cb   :  { %v2982_v56 = vrot.slane %v10234_v41, %v9414_v9  ;;  %v2978_v16 = vrot.slane %v10236_v53, %v9408_v6  ;;  %v3005_v63 = vsel %vm714_vm4, %v2974_v18, %v3004_v17  ;;  %v11659_v17 = vld [vmem:[#allocation22_spill] sm:$0xff] }
 0x9cd   :  { %v2983_v30 = vsel %vm643_vm0, %v2982_v56, %v2978_v16 }
 0x9ce   :  { %v10251_v52 = vpop.xlane.xlu1 %2908  ;;  %v10253_v1 = vpop.xlane.xlu0 %2906  ;;  %v3006_v27 = vsel %vm716_vm5, %v2983_v30, %v3005_v63 }
 0x9cf   :  { %v2991_v31 = vrot.slane %v10251_v52, %v9414_v9  ;;  %v2987_v50 = vrot.slane %v10253_v1, %v9408_v6 }
 0x9d1   :  { %v2992_v14 = vsel %vm643_vm0, %v2991_v31, %v2987_v50 }
 0x9d2   :  { %v10263_v24 = vpop.xlane.xlu1 %2912  ;;  %v10265_v26 = vpop.xlane.xlu0 %2910  ;;  %v3007_v3 = vsel %vm718_vm6, %v2992_v14, %v3006_v27 }
 0x9d3   :  { %v3000_v15 = vrot.slane %v10263_v24, %v9414_v9  ;;  %v2996_v49 = vrot.slane %v10265_v26, %v9408_v6 }
 0x9d5   :  { %v3001_v29 = vsel %vm643_vm0, %v3000_v15, %v2996_v49 }
 0x9d6   :  { %v3008_v36 = vsel %vm720_vm7, %v3001_v29, %v3007_v3 }
 0x9d7   :  { %v3010_v40 = vsel %vm723_vm8, %v3008_v36, -inf }
 0x9d8   :  { %3011 = vmax.xlane.f32.xlu0 %v3010_v40 }
 0xa61   :  { %v3012_v42 = vpop.xlane.xlu0 %3011 }
 0xa62   :  { %v3017_v2 = vrot.slane %v3012_v42, %v9417_v11  ;;  %v3021_v21 = vrot.slane %v3012_v42, %v9514_v55  ;;  %v3025_v37 = vrot.slane %v3012_v42, %v9524_v62  ;;  %v3029_v45 = vrot.slane %v3012_v42, %v9542_v23 }
 0xa63   :  { %v3033_v28 = vrot.slane %v3012_v42, %v9551_v34  ;;  %v3041_v60 = vrot.slane %v3012_v42, %v9528_v0 }
 0xa64   :  { %v3054_v46 = vsub.f32 %v2883_v51, %v3017_v2  ;;  %v3055_v47 = vsub.f32 %v2885_v58, %v3017_v2  ;;  %v3056_v54 = vsub.f32 %v2887_v25, %v3021_v21  ;;  %v3058_v44 = vsub.f32 %v2891_v10, %v3025_v37 }
 0xa65   :  { %v3057_v4 = vsub.f32 %v10210_v22, %v3021_v21  ;;  %v3060_v56 = vsub.f32 %v10220_v32, %v3029_v45  ;;  %v3059_v13 = vsub.f32 %v10212_v43, %v3025_v37  ;;  %v3037_v51 = vrot.slane %v3012_v42, %v9519_v59 }
 0xa66   :  { %v3070_v33 = vmul.f32 1.442695, %v3054_v46  ;;  %v3072_v5 = vmul.f32 1.442695, %v3055_v47  ;;  %v3074_v19 = vmul.f32 1.442695, %v3056_v54  ;;  %v3062_v25 = vsub.f32 %v10216_v57, %v3033_v28 }
 0xa67   :  { %v3078_v16 = vmul.f32 1.442695, %v3058_v44  ;;  %v3076_v58 = vmul.f32 1.442695, %v3057_v4  ;;  %v3082_v10 = vmul.f32 1.442695, %v3060_v56  ;;  %v3061_v22 = vsub.f32 %v10218_v12, %v3029_v45 }
 0xa68   :  { %8796 = vpow2.f32 %v3070_v33  ;;  %v3080_v35 = vmul.f32 1.442695, %v3059_v13  ;;  %v3064_v32 = vsub.f32 %v10236_v53, %v3037_v51  ;;  %v3086_v48 = vmul.f32 1.442695, %v3062_v25 }
 0xa69   :  { %8798 = vpow2.f32 %v3072_v5  ;;  %v3063_v43 = vsub.f32 %v10214_v38, %v3033_v28  ;;  %v3084_v31 = vmul.f32 1.442695, %v3061_v22  ;;  %v3045_v57 = vrot.slane %v3012_v42, %v11659_v17 }
 0xa6a   :  { %8800 = vpow2.f32 %v3074_v19  ;;  %v3066_v30 = vsub.f32 %v10253_v1, %v3041_v60  ;;  %v3090_v12 = vmul.f32 1.442695, %v3064_v32  ;;  %v3065_v53 = vsub.f32 %v10234_v41, %v3037_v51 }
 0xa6b   :  { %8802 = vpow2.f32 %v3078_v16  ;;  %v3088_v38 = vmul.f32 1.442695, %v3063_v43  ;;  %v3068_v15 = vsub.f32 %v10265_v26, %v3045_v57  ;;  %v3067_v1 = vsub.f32 %v10251_v52, %v3041_v60 }
 0xa6c   :  { %8804 = vpow2.f32 %v3076_v58  ;;  %v3094_v49 = vmul.f32 1.442695, %v3066_v30  ;;  %v3092_v27 = vmul.f32 1.442695, %v3065_v53  ;;  %v3069_v26 = vsub.f32 %v10263_v24, %v3045_v57 }
 0xa6d   :  { %8806 = vpow2.f32 %v3082_v10  ;;  %v3098_v41 = vmul.f32 1.442695, %v3068_v15  ;;  %v3096_v36 = vmul.f32 1.442695, %v3067_v1 }
 0xa6e   :  { %8808 = vpow2.f32 %v3080_v35  ;;  %v3100_v42 = vmul.f32 1.442695, %v3069_v26 }
 0xa6f   :  { %8810 = vpow2.f32 %v3086_v48 }
 0xa70   :  { %8812 = vpow2.f32 %v3084_v31 }
 0xa71   :  { %8814 = vpow2.f32 %v3090_v12 }
 0xa72   :  { %8816 = vpow2.f32 %v3088_v38 }
 0xa73   :  { %8818 = vpow2.f32 %v3094_v49 }
 0xa74   :  { %8820 = vpow2.f32 %v3092_v27 }
 0xa75   :  { %v10292_v50 = vpop.eup %8796  ;;  %8822 = vpow2.f32 %v3098_v41 }
 0xa76   :  { %v10296_v18 = vpop.eup %8798  ;;  %3119 = vperm.xlu1 %8705, %v10292_v50   ;;  %8824 = vpow2.f32 %v3096_v36 }
 0xa77   :  { %3122 = vperm.xlu0 %8706, %v10296_v18   ;;  %v10301_v14 = vpop.eup %8800  ;;  %8826 = vpow2.f32 %v3100_v42 }
 0xa78   :  { %v10304_v63 = vpop.eup %8802 }
 0xa79   :  { %v10309_v29 = vpop.eup %8804 }
 0xa7a   :  { %3125 = vperm.xlu1 %8705, %v10301_v14   ;;  %v10311_v3 = vpop.eup %8806 }
 0xa7b   :  { %3131 = vperm.xlu0 %8706, %v10304_v63   ;;  %v10316_v40 = vpop.eup %8808 }
 0xa7c   :  { %v10318_v52 = vpop.eup %8810 }
 0xa7d   :  { %v10322_v2 = vpop.eup %8812 }
 0xa7e   :  { %3128 = vperm.xlu1 %8705, %v10309_v29   ;;  %v10324_v21 = vpop.eup %8814 }
 0xa7f   :  { %3137 = vperm.xlu0 %8706, %v10311_v3   ;;  %v10328_v24 = vpop.eup %8816 }
 0xa80   :  { %v10330_v37 = vpop.eup %8818 }
 0xa81   :  { %v10334_v46 = vpop.eup %8820 }
 0xa82   :  { %3134 = vperm.xlu1 %8705, %v10316_v40   ;;  %v10336_v47 = vpop.eup %8822 }
 0xa83   :  { %3143 = vperm.xlu0 %8706, %v10318_v52   ;;  %v10340_v54 = vpop.eup %8824 }
 0xa84   :  { %v10343_v45 = vpop.eup %8826 }
 0xa86   :  { %3140 = vperm.xlu1 %8705, %v10322_v2  }
 0xa87   :  { %3149 = vperm.xlu0 %8706, %v10324_v21  }
 0xa8a   :  { %3146 = vperm.xlu1 %8705, %v10328_v24  }
 0xa8b   :  { %3155 = vperm.xlu0 %8706, %v10330_v37  }
 0xa8e   :  { %3152 = vperm.xlu1 %8705, %v10334_v46  }
 0xa8f   :  { %3161 = vperm.xlu0 %8706, %v10336_v47  }
 0xa92   :  { %3158 = vperm.xlu1 %8705, %v10340_v54  }
 0xa96   :  { %3164 = vperm.xlu1 %8705, %v10343_v45  }
 0xaf1   :  { %v3120_v44 = vpop.permute.xlu1 %3119 }
 0xaf2   :  { %v3123_v33 = vpop.permute.xlu0 %3122  ;;  %v3169_v32 = vrot.slane %v3120_v44, %v9408_v6 }
 0xaf3   :  { %v3173_v60 = vrot.slane %v3123_v33, %v9414_v9 }
 0xaf5   :  { %v3126_v5 = vpop.permute.xlu1 %3125  ;;  %v3174_v1 = vsel %vm643_vm0, %v3173_v60, %v3169_v32 }
 0xaf6   :  { %v3132_v4 = vpop.permute.xlu0 %3131  ;;  %v3178_v48 = vrot.slane %v3126_v5, %v9408_v6 }
 0xaf7   :  { %v3187_v31 = vrot.slane %v3132_v4, %v9408_v6 }
 0xaf9   :  { %v3129_v19 = vpop.permute.xlu1 %3128 }
 0xafa   :  { %v3138_v28 = vpop.permute.xlu0 %3137  ;;  %v3182_v25 = vrot.slane %v3129_v19, %v9414_v9 }
 0xafb   :  { %v3196_v30 = vrot.slane %v3138_v28, %v9408_v6 }
 0xafc   :  { %v3183_v12 = vsel %vm643_vm0, %v3182_v25, %v3178_v48 }
 0xafd   :  { %v3135_v56 = vpop.permute.xlu1 %3134  ;;  %v3238_v36 = vsel %vm708_vm1, %v3183_v12, %v3174_v1 }
 0xafe   :  { %v3144_v16 = vpop.permute.xlu0 %3143  ;;  %v3191_v10 = vrot.slane %v3135_v56, %v9414_v9 }
 0xaff   :  { %v3205_v38 = vrot.slane %v3144_v16, %v9408_v6 }
 0xb00   :  { %v3192_v15 = vsel %vm643_vm0, %v3191_v10, %v3187_v31 }
 0xb01   :  { %v3141_v13 = vpop.permute.xlu1 %3140  ;;  %v3239_v5 = vsel %vm710_vm2, %v3192_v15, %v3238_v36  ;;  %v3527_v36 = vld [vmem:[#allocation12 + $0x1f8] sm:$0xff] }
 0xb02   :  { %v3150_v58 = vpop.permute.xlu0 %3149  ;;  %v3200_v43 = vrot.slane %v3141_v13, %v9414_v9  ;;  %3615 = vmatprep.subr.mxu1 %v3527_v36  ;;  %v3477_v36 = vld [vmem:[#allocation12 + $0x68] sm:$0xff] }
 0xb03   :  { %v3214_v27 = vrot.slane %v3150_v58, %v9408_v6 }
 0xb04   :  { %v3201_v41 = vsel %vm643_vm0, %v3200_v43, %v3196_v30 }
 0xb05   :  { %v3147_v51 = vpop.permute.xlu1 %3146  ;;  %v3240_v19 = vsel %vm712_vm3, %v3201_v41, %v3239_v5  ;;  %v3517_v5 = vld [vmem:[#allocation12 + $0x1a8] sm:$0xff] }
 0xb06   :  { %v3156_v22 = vpop.permute.xlu0 %3155  ;;  %v3209_v57 = vrot.slane %v3147_v51, %v9414_v9 }
 0xb07   :  { %v3223_v42 = vrot.slane %v3156_v22, %v9408_v6 }
 0xb08   :  { %v3210_v44 = vsel %vm643_vm0, %v3209_v57, %v3205_v38 }
 0xb09   :  { %v3153_v35 = vpop.permute.xlu1 %3152  ;;  %v3241_v16 = vsel %vm714_vm4, %v3210_v44, %v3240_v19  ;;  %v3523_v44 = vld [vmem:[#allocation12 + $0x1d8] sm:$0xff]  ;;  %v3516_v19 = vld [vmem:[#allocation12 + $0x1a0] sm:$0xff] }
 0xb0a   :  { %v3218_v53 = vrot.slane %v3153_v35, %v9414_v9  ;;  %v3162_v33 = vpop.permute.xlu0 %3161 }
 0xb0b   :  { %v3232_v13 = vrot.slane %v3162_v33, %v9408_v6  ;;  %v3520_v33 = vld [vmem:[#allocation12 + $0x1c0] sm:$0xff] }
 0xb0c   :  { %v3219_v4 = vsel %vm643_vm0, %v3218_v53, %v3214_v27 }
 0xb0d   :  { %v3159_v49 = vpop.permute.xlu1 %3158  ;;  %v3242_v51 = vsel %vm716_vm5, %v3219_v4, %v3241_v16  ;;  %v3519_v4 = vld [vmem:[#allocation12 + $0x1b8] sm:$0xff] }
 0xb0e   :  { %v3227_v26 = vrot.slane %v3159_v49, %v9414_v9  ;;  %v3515_v16 = vld [vmem:[#allocation12 + $0x198] sm:$0xff] }
 0xb10   :  { %v3228_v28 = vsel %vm643_vm0, %v3227_v26, %v3223_v42  ;;  %v3524_v42 = vld [vmem:[#allocation12 + $0x1e0] sm:$0xff] }
 0xb11   :  { %v3165_v56 = vpop.permute.xlu1 %3164  ;;  %v3243_v10 = vsel %vm718_vm6, %v3228_v28, %v3242_v51  ;;  %v3518_v28 = vld [vmem:[#allocation12 + $0x1b0] sm:$0xff]  ;;  %v3509_v51 = vld [vmem:[#allocation12 + $0x168] sm:$0xff] }
 0xb12   :  { %v3236_v58 = vrot.slane %v3165_v56, %v9414_v9  ;;  %v3513_v56 = vld [vmem:[#allocation12 + $0x188] sm:$0xff] }
 0xb14   :  { %v3237_v25 = vsel %vm643_vm0, %v3236_v58, %v3232_v13  ;;  %v3512_v13 = vld [vmem:[#allocation12 + $0x180] sm:$0xff]  ;;  %v3514_v58 = vld [vmem:[#allocation12 + $0x190] sm:$0xff] }
 0xb15   :  { %v3244_v22 = vsel %vm720_vm7, %v3237_v25, %v3243_v10  ;;  %v3508_v25 = vld [vmem:[#allocation12 + $0x160] sm:$0xff]  ;;  %v3505_v10 = vld [vmem:[#allocation12 + $0x148] sm:$0xff] }
 0xb16   :  { %v3246_v35 = vsel %vm723_vm8, %v3244_v22, 0.0  ;;  %v3507_v22 = vld [vmem:[#allocation12 + $0x158] sm:$0xff] }
 0xb17   :  { %3247 = vadd.xlane.f32.xlu0 %v3246_v35  ;;  %v3504_v35 = vld [vmem:[#allocation12 + $0x140] sm:$0xff] }
 0xba0   :  { %v3248_v60 = vpop.xlane.xlu0 %3247 }
 0xba1   :  { %8828 = vrcp.f32 %v3248_v60  ;;  %v3506_v60 = vld [vmem:[#allocation12 + $0x150] sm:$0xff] }
 0xbae   :  { %v8829_v32 = vpop.eup %8828 }
 0xbaf   :  { %v3270_v48 = vrot.slane %v8829_v32, %v9551_v34  ;;  %v3254_v43 = vrot.slane %v8829_v32, %v9417_v11  ;;  %v3282_v30 = vrot.slane %v8829_v32, %v11659_v17  ;;  %v3258_v38 = vrot.slane %v8829_v32, %v9514_v55 }
 0xbb1   :  { %v3299_v31 = vmul.f32 %v10318_v52, %v3270_v48  ;;  %v3291_v57 = vmul.f32 %v10292_v50, %v3254_v43  ;;  %v3305_v12 = vmul.f32 %v10336_v47, %v3282_v30  ;;  %v3292_v53 = vmul.f32 %v10296_v18, %v3254_v43  ;;  %v3500_v43 = vld [vmem:[#allocation12 + $0x120] sm:$0xff] }
 0xbb2   :  { %v3293_v15 = vmul.f32 %v10301_v14, %v3258_v38  ;;  %v3294_v49 = vmul.f32 %v10309_v29, %v3258_v38  ;;  %v3262_v52 = vrot.slane %v8829_v32, %v9524_v62  ;;  %v3266_v47 = vrot.slane %v8829_v32, %v9542_v23  ;;  %v3493_v38 = vld [vmem:[#allocation12 + $0xe8] sm:$0xff] }
 0xbb3   :  { %3349 = vperm.xlu0 %8706, %v3299_v31   ;;  %3309 = vperm.xlu1 %8705, %v3291_v57   ;;  %v3300_v14 = vmul.f32 %v10328_v24, %v3270_v48  ;;  %v3274_v29 = vrot.slane %v8829_v32, %v9519_v59  ;;  %v3521_v24 = vld [vmem:[#allocation12 + $0x1c8] sm:$0xff]  ;;  %v3503_v48 = vld [vmem:[#allocation12 + $0x138] sm:$0xff]  ;;  %v3502_v31 = vld [vmem:[#allocation12 + $0x130] sm:$0xff] }
 0xbb4   :  { %v3295_v50 = vmul.f32 %v10304_v63, %v3262_v52  ;;  %v3296_v1 = vmul.f32 %v10316_v40, %v3262_v52  ;;  %v3297_v18 = vmul.f32 %v10311_v3, %v3266_v47  ;;  %v3298_v27 = vmul.f32 %v10322_v2, %v3266_v47  ;;  %v3525_v3 = vld [vmem:[#allocation12 + $0x1e8] sm:$0xff]  ;;  %v3526_v2 = vld [vmem:[#allocation12 + $0x1f0] sm:$0xff]  ;;  %v3488_v47 = vld [vmem:[#allocation12 + $0xc0] sm:$0xff] }
 0xbb5   :  { %v3301_v41 = vmul.f32 %v10324_v21, %v3274_v29  ;;  %v3302_v63 = vmul.f32 %v10334_v46, %v3274_v29  ;;  %v3278_v40 = vrot.slane %v8829_v32, %v9528_v0  ;;  %3544 = vmatprep.subr.mxu0 %v3525_v3  ;;  %v3522_v21 = vld [vmem:[#allocation12 + $0x1d0] sm:$0xff]  ;;  %3616 = vmatpush1.msra.mxu1 %v3526_v2  ;;  %v3501_v32 = vld [vmem:[#allocation12 + $0x128] sm:$0xff]  ;;  %v3484_v29 = vld [vmem:[#allocation12 + $0xa0] sm:$0xff] }
 0xbb6   :  { %3545 = vmatpush1.msra.mxu0 %v3524_v42  ;;  %3617 = vmatprep.subr.mxu1 %v3523_v44  ;;  %v3497_v57 = vld [vmem:[#allocation12 + $0x108] sm:$0xff]  ;;  %v3494_v52 = vld [vmem:[#allocation12 + $0xf0] sm:$0xff]  ;;  %v3479_v42 = vld [vmem:[#allocation12 + $0x78] sm:$0xff] }
 0xbb7   :  { %3379 = vperm.xlu0 %8706, %v3305_v12   ;;  %3314 = vperm.xlu1 %8705, %v3292_v53   ;;  %v3303_v26 = vmul.f32 %v10330_v37, %v3278_v40  ;;  %v3304_v46 = vmul.f32 %v10340_v54, %v3278_v40  ;;  %v3306_v37 = vmul.f32 %v10343_v45, %v3282_v30  ;;  %v3511_v54 = vld [vmem:[#allocation12 + $0x178] sm:$0xff]  ;;  %v3510_v45 = vld [vmem:[#allocation12 + $0x170] sm:$0xff]  ;;  %v3496_v12 = vld [vmem:[#allocation12 + $0x100] sm:$0xff] }
 0xbb8   :  { %3546 = vmatprep.subr.mxu0 %v3521_v24  ;;  %3618 = vmatpush1.msra.mxu1 %v3522_v21  ;;  %v3499_v30 = vld [vmem:[#allocation12 + $0x118] sm:$0xff]  ;;  %v3498_v53 = vld [vmem:[#allocation12 + $0x110] sm:$0xff]  ;;  %v3476_v2 = vld [vmem:[#allocation12 + $0x60] sm:$0xff] }
 0xbb9   :  { %3547 = vmatpush1.msra.mxu0 %v3520_v33  ;;  %3619 = vmatprep.subr.mxu1 %v3519_v4  ;;  %v3483_v40 = vld [vmem:[#allocation12 + $0x98] sm:$0xff]  ;;  %v3482_v3 = vld [vmem:[#allocation12 + $0x90] sm:$0xff]  ;;  %v3473_v44 = vld [vmem:[#allocation12 + $0x48] sm:$0xff] }
 0xbba   :  { %3548 = vmatprep.subr.mxu0 %v3517_v5  ;;  %3620 = vmatpush1.msra.mxu1 %v3518_v28  ;;  %v3478_v24 = vld [vmem:[#allocation12 + $0x70] sm:$0xff]  ;;  %v3475_v33 = vld [vmem:[#allocation12 + $0x58] sm:$0xff]  ;;  %v3472_v21 = vld [vmem:[#allocation12 + $0x40] sm:$0xff] }
 0xbbb   :  { %3319 = vperm.xlu1 %8705, %v3293_v15   ;;  %3549 = vmatpush1.msra.mxu0 %v3516_v19  ;;  %v3495_v15 = vld [vmem:[#allocation12 + $0xf8] sm:$0xff]  ;;  %v3468_v4 = vld [vmem:[#allocation12 + $0x20] sm:$0xff]  ;;  %v3470_v19 = vld [vmem:[#allocation12 + $0x30] sm:$0xff] }
 0xbbc   :  { %3550 = vmatprep.subr.mxu0 %v3513_v56  ;;  %3621 = vmatprep.subr.mxu1 %v3515_v16  ;;  %v3471_v5 = vld [vmem:[#allocation12 + $0x38] sm:$0xff]  ;;  %v3465_v28 = vld [vmem:[#allocation12 + $0x8] sm:$0xff]  ;;  %v3464_v16 = vld [vmem:[#allocation12] sm:$0xff] }
 0xbbd   :  { %3551 = vmatpush1.msra.mxu0 %v3512_v13  ;;  %3622 = vmatpush1.msra.mxu1 %v3514_v58  ;;  %v3467_v56 = vld [vmem:[#allocation12 + $0x18] sm:$0xff]  ;;  %v3466_v13 = vld [vmem:[#allocation12 + $0x10] sm:$0xff]  ;;  %v3751_v58 = vld [vmem:[#allocation13 + $0x1e8] sm:$0xff] }
 0xbbe   :  { %3552 = vmatprep.subr.mxu0 %v3509_v51  ;;  %3623 = vmatprep.subr.mxu1 %v3511_v54  ;;  %v3753_v51 = vld [vmem:[#allocation13 + $0x1f8] sm:$0xff] }
 0xbbf   :  { %3324 = vperm.xlu1 %8705, %v3294_v49   ;;  %3553 = vmatpush1.msra.mxu0 %v3508_v25  ;;  %v3492_v49 = vld [vmem:[#allocation12 + $0xe0] sm:$0xff] }
 0xbc0   :  { %3624 = vmatpush1.msra.mxu1 %v3510_v45  ;;  %3554 = vmatprep.subr.mxu0 %v3505_v10 }
 0xbc1   :  { %3625 = vmatprep.subr.mxu1 %v3507_v22  ;;  %3555 = vmatpush1.msra.mxu0 %v3504_v35 }
 0xbc2   :  { %3626 = vmatpush1.msra.mxu1 %v3506_v60  ;;  %3556 = vmatprep.subr.mxu0 %v3501_v32 }
 0xbc3   :  { %3329 = vperm.xlu1 %8705, %v3295_v50   ;;  %3627 = vmatprep.subr.mxu1 %v3503_v48  ;;  %v3489_v50 = vld [vmem:[#allocation12 + $0xc8] sm:$0xff]  ;;  %v10402_v48 = vld [vmem:[#allocation7 + $0x18] sm:$0xff] }
 0xbc4   :  { %3557 = vmatpush1.msra.mxu0 %v3500_v43  ;;  %3628 = vmatpush1.msra.mxu1 %v3502_v31  ;;  %v10405_v31 = vld [vmem:[#allocation7 + $0x28] sm:$0xff] }
 0xbc5   :  { %3558 = vmatprep.subr.mxu0 %v3497_v57  ;;  %3629 = vmatprep.subr.mxu1 %v3499_v30 }
 0xbc6   :  { %3559 = vmatpush1.msra.mxu0 %v3496_v12  ;;  %3630 = vmatpush1.msra.mxu1 %v3498_v53  ;;  %v10408_v53 = vld [vmem:[#allocation7 + $0x8] sm:$0xff] }
 0xbc7   :  { %3334 = vperm.xlu1 %8705, %v3296_v1   ;;  %3560 = vmatprep.subr.mxu0 %v3493_v38  ;;  %v3491_v1 = vld [vmem:[#allocation12 + $0xd8] sm:$0xff] }
 0xbc8   :  { %3631 = vmatprep.subr.mxu1 %v3495_v15  ;;  %3561 = vmatpush1.msra.mxu0 %v3492_v49  ;;  %v10411_v15 = vld [vmem:[#allocation7 + $0x10] sm:$0xff] }
 0xbc9   :  { %3632 = vmatpush1.msra.mxu1 %v3494_v52  ;;  %3562 = vmatprep.subr.mxu0 %v3489_v50  ;;  %v10414_v52 = vld [vmem:[#allocation7 + $0x38] sm:$0xff] }
 0xbca   :  { %3633 = vmatprep.subr.mxu1 %v3491_v1  ;;  %3563 = vmatpush1.msra.mxu0 %v3488_v47  ;;  %v10417_v1 = vld [vmem:[#allocation7 + $0x20] sm:$0xff] }
 0xbcb   :  { %3339 = vperm.xlu1 %8705, %v3297_v18   ;;  %v3490_v18 = vld [vmem:[#allocation12 + $0xd0] sm:$0xff] }
 0xbcc   :  { %3634 = vmatpush1.msra.mxu1 %v3490_v18  ;;  %v10420_v18 = vld [vmem:[#allocation7 + $0x48] sm:$0xff] }
 0xbcf   :  { %3344 = vperm.xlu1 %8705, %v3298_v27   ;;  %v3485_v27 = vld [vmem:[#allocation12 + $0xa8] sm:$0xff] }
 0xbd0   :  { %3564 = vmatprep.subr.mxu0 %v3485_v27 }
 0xbd1   :  { %3565 = vmatpush1.msra.mxu0 %v3484_v29 }
 0xbd3   :  { %3354 = vperm.xlu1 %8705, %v3300_v14   ;;  %v3487_v14 = vld [vmem:[#allocation12 + $0xb8] sm:$0xff] }
 0xbd4   :  { %3635 = vmatprep.subr.mxu1 %v3487_v14  ;;  %v10423_v14 = vld [vmem:[#allocation7] sm:$0xff] }
 0xbd7   :  { %3359 = vperm.xlu1 %8705, %v3301_v41   ;;  %v3486_v41 = vld [vmem:[#allocation12 + $0xb0] sm:$0xff] }
 0xbd8   :  { %3636 = vmatpush1.msra.mxu1 %v3486_v41 }
 0xbd9   :  { %3637 = vmatprep.subr.mxu1 %v3483_v40 }
 0xbda   :  { %3638 = vmatpush1.msra.mxu1 %v3482_v3 }
 0xbdb   :  { %3364 = vperm.xlu1 %8705, %v3302_v63   ;;  %v3481_v63 = vld [vmem:[#allocation12 + $0x88] sm:$0xff]  ;;  %3639 = vmatprep.subr.mxu1 %v3479_v42 }
 0xbdc   :  { %3566 = vmatprep.subr.mxu0 %v3481_v63  ;;  %3640 = vmatpush1.msra.mxu1 %v3478_v24  ;;  %v10426_v63 = vld [vmem:[#allocation7 + $0x30] sm:$0xff] }
 0xbdd   :  { %3641 = vmatprep.subr.mxu1 %v3475_v33 }
 0xbdf   :  { %3369 = vperm.xlu1 %8705, %v3303_v26   ;;  %v3480_v26 = vld [vmem:[#allocation12 + $0x80] sm:$0xff] }
 0xbe0   :  { %3567 = vmatpush1.msra.mxu0 %v3480_v26  ;;  %v10429_v26 = vld [vmem:[#allocation7 + $0x40] sm:$0xff] }
 0xbe1   :  { %3568 = vmatprep.subr.mxu0 %v3477_v36 }
 0xbe2   :  { %3569 = vmatpush1.msra.mxu0 %v3476_v2 }
 0xbe3   :  { %3374 = vperm.xlu1 %8705, %v3304_v46   ;;  %v3474_v46 = vld [vmem:[#allocation12 + $0x50] sm:$0xff]  ;;  %3570 = vmatprep.subr.mxu0 %v3473_v44 }
 0xbe4   :  { %3571 = vmatpush1.msra.mxu0 %v3472_v21  ;;  %3642 = vmatpush1.msra.mxu1 %v3474_v46 }
 0xbe5   :  { %3643 = vmatprep.subr.mxu1 %v3471_v5 }
 0xbe6   :  { %3644 = vmatpush1.msra.mxu1 %v3470_v19 }
 0xbe7   :  { %3384 = vperm.xlu1 %8705, %v3306_v37   ;;  %v3469_v37 = vld [vmem:[#allocation12 + $0x28] sm:$0xff]  ;;  %3645 = vmatprep.subr.mxu1 %v3467_v56 }
 0xbe8   :  { %3572 = vmatprep.subr.mxu0 %v3469_v37  ;;  %3646 = vmatpush1.msra.mxu1 %v3466_v13 }
 0xbe9   :  { %3573 = vmatpush1.msra.mxu0 %v3468_v4  ;;  %3825 = vmatprep.subr.mxu1 %v3753_v51  ;;  %v10432_v4 = vld [vmem:[#allocation7 + $0x50] sm:$0xff] }
 0xbea   :  { %3574 = vmatprep.subr.mxu0 %v3465_v28  ;;  %v10435_v28 = vld [vmem:[#allocation7 + $0x58] sm:$0xff] }
 0xbeb   :  { %3575 = vmatpush1.msra.mxu0 %v3464_v16 }
 0xbec   :  { %3754 = vmatprep.subr.mxu0 %v3751_v58 }
 0xc2e   :  { %v3310_v54 = vpop.permute.xlu1 %3309  ;;  %v3350_v12 = vpop.permute.xlu0 %3349 }
 0xc2f   :  { %v3387_v29 = vmul.f32 %v10423_v14, %v3310_v54  ;;  %v3395_v3 = vmul.f32 %v10429_v26, %v3350_v12 }
 0xc32   :  { %v3315_v25 = vpop.permute.xlu1 %3314 }
 0xc33   :  { %v3388_v38 = vmul.f32 %v10408_v53, %v3315_v25 }
 0xc35   :  { %v3403_v2 = vadd.f32 %v3388_v38, %v3387_v29  ;;  %v10438_v38 = vld [vmem:[#allocation7 + $0x60] sm:$0xff] }
 0xc36   :  { %v3320_v45 = vpop.permute.xlu1 %3319 }
 0xc37   :  { %v3389_v49 = vmul.f32 %v10411_v15, %v3320_v45  ;;  %v3404_v37 = vrot.slane %v3403_v2, 4 }
 0xc39   :  { %v3405_v25 = vadd.f32 %v3404_v37, %v3403_v2 }
 0xc3a   :  { %v3325_v10 = vpop.permute.xlu1 %3324 }
 0xc3b   :  { %v3390_v43 = vmul.f32 %v10402_v48, %v3325_v10 }
 0xc3d   :  { %v3410_v41 = vadd.f32 %v3390_v43, %v3389_v49 }
 0xc3e   :  { %v3330_v22 = vpop.permute.xlu1 %3329 }
 0xc3f   :  { %v3391_v47 = vmul.f32 %v10417_v1, %v3330_v22  ;;  %v3411_v33 = vrot.slane %v3410_v41, 4 }
 0xc41   :  { %v3412_v13 = vadd.f32 %v3411_v33, %v3410_v41 }
 0xc42   :  { %v3335_v35 = vpop.permute.xlu1 %3334 }
 0xc43   :  { %v3392_v57 = vmul.f32 %v10405_v31, %v3335_v35  ;;  %v3413_v35 = vrot.slane %v3412_v13, 2 }
 0xc45   :  { %v3417_v36 = vadd.f32 %v3392_v57, %v3391_v47  ;;  %v3380_v57 = vpop.permute.xlu0 %3379  ;;  %v3414_v29 = vadd.f32 %v3413_v35, %v3412_v13 }
 0xc46   :  { %v3340_v60 = vpop.permute.xlu1 %3339 }
 0xc47   :  { %v3393_v40 = vmul.f32 %v10426_v63, %v3340_v60  ;;  %v3418_v21 = vrot.slane %v3417_v36, 4 }
 0xc49   :  { %v3419_v51 = vadd.f32 %v3418_v21, %v3417_v36  ;;  %v10447_v21 = vld [vmem:[#allocation7 + $0x78] sm:$0xff] }
 0xc4a   :  { %v3345_v32 = vpop.permute.xlu1 %3344 }
 0xc4b   :  { %v3394_v50 = vmul.f32 %v10414_v52, %v3345_v32  ;;  %v3420_v32 = vrot.slane %v3419_v51, 2 }
 0xc4d   :  { %v3424_v24 = vadd.f32 %v3394_v50, %v3393_v40  ;;  %v10441_v50 = vld [vmem:[#allocation7 + $0x68] sm:$0xff] }
 0xc4e   :  { %v3355_v30 = vpop.permute.xlu1 %3354 }
 0xc4f   :  { %v3396_v27 = vmul.f32 %v10420_v18, %v3355_v30  ;;  %v3425_v5 = vrot.slane %v3424_v24, 4  ;;  %v3406_v30 = vrot.slane %v3405_v25, 2 }
 0xc51   :  { %v3431_v44 = vadd.f32 %v3396_v27, %v3395_v3  ;;  %v3426_v45 = vadd.f32 %v3425_v5, %v3424_v24  ;;  %v10444_v3 = vld [vmem:[#allocation7 + $0x70] sm:$0xff]  ;;  %v3407_v24 = vadd.f32 %v3406_v30, %v3405_v25  ;;  %v3415_v5 = vrot.slane %v3414_v29, 1 }
 0xc52   :  { %v3360_v42 = vpop.permute.xlu1 %3359  ;;  %v3401_v36 = vmul.f32 %v10444_v3, %v3380_v57 }
 0xc53   :  { %v3397_v19 = vmul.f32 %v10432_v4, %v3360_v42  ;;  %v3432_v16 = vrot.slane %v3431_v44, 4  ;;  %v3427_v12 = vrot.slane %v3426_v45, 2  ;;  %v3421_v42 = vadd.f32 %v3420_v32, %v3419_v51 }
 0xc54   :  { %v3416_v51 = vadd.f32 %v3415_v5, %v3414_v29  ;;  %v3752_v5 = vld [vmem:[#allocation13 + $0x1f0] sm:$0xff] }
 0xc55   :  { %v3433_v22 = vadd.f32 %v3432_v16, %v3431_v44  ;;  %v3428_v44 = vadd.f32 %v3427_v12, %v3426_v45  ;;  %v3422_v13 = vrot.slane %v3421_v42, 1 }
 0xc56   :  { %v3365_v46 = vpop.permute.xlu1 %3364 }
 0xc57   :  { %v3398_v56 = vmul.f32 %v10435_v28, %v3365_v46  ;;  %v3434_v27 = vrot.slane %v3433_v22, 2  ;;  %v3423_v57 = vadd.f32 %v3422_v13, %v3421_v42  ;;  %v3748_v13 = vld [vmem:[#allocation13 + $0x1d0] sm:$0xff] }
 0xc59   :  { %v3438_v58 = vadd.f32 %v3398_v56, %v3397_v19  ;;  %v3435_v37 = vadd.f32 %v3434_v27, %v3433_v22 }
 0xc5a   :  { %v3370_v54 = vpop.permute.xlu1 %3369 }
 0xc5b   :  { %v3439_v10 = vrot.slane %v3438_v58, 4  ;;  %v3399_v49 = vmul.f32 %v10438_v38, %v3370_v54  ;;  %v3429_v54 = vrot.slane %v3428_v44, 1 }
 0xc5d   :  { %v3440_v60 = vadd.f32 %v3439_v10, %v3438_v58  ;;  %v3408_v58 = vrot.slane %v3407_v24, 1  ;;  %v3430_v12 = vadd.f32 %v3429_v54, %v3428_v44  ;;  %v3750_v44 = vld [vmem:[#allocation13 + $0x1e0] sm:$0xff]  ;;  %v3745_v54 = vld [vmem:[#allocation13 + $0x1b8] sm:$0xff] }
 0xc5e   :  { %v3375_v43 = vpop.permute.xlu1 %3374 }
 0xc5f   :  { %v3400_v47 = vmul.f32 %v10441_v50, %v3375_v43  ;;  %v3441_v41 = vrot.slane %v3440_v60, 2  ;;  %v3436_v43 = vrot.slane %v3435_v37, 1  ;;  %v3409_v30 = vadd.f32 %v3408_v58, %v3407_v24  ;;  %v3743_v58 = vld [vmem:[#allocation13 + $0x1a8] sm:$0xff] }
 0xc61   :  { %v3445_v40 = vadd.f32 %v3400_v47, %v3399_v49  ;;  %v3442_v19 = vadd.f32 %v3441_v41, %v3440_v60  ;;  %v3437_v22 = vadd.f32 %v3436_v43, %v3435_v37  ;;  %v3536_v60 = vsel %vm708_vm1, %v3416_v51, %v3409_v30  ;;  %v3739_v43 = vld [vmem:[#allocation13 + $0x188] sm:$0xff]  ;;  %v3741_v51 = vld [vmem:[#allocation13 + $0x198] sm:$0xff]  ;;  %v3734_v30 = vld [vmem:[#allocation13 + $0x160] sm:$0xff] }
 0xc62   :  { %v3385_v2 = vpop.permute.xlu1 %3384 }
 0xc63   :  { %v3446_v33 = vrot.slane %v3445_v40, 4  ;;  %v3402_v46 = vmul.f32 %v10447_v21, %v3385_v2  ;;  %v3443_v32 = vrot.slane %v3442_v19, 1 }
 0xc65   :  { %v3447_v56 = vadd.f32 %v3446_v33, %v3445_v40  ;;  %v3452_v16 = vadd.f32 %v3402_v46, %v3401_v36  ;;  %v3444_v27 = vadd.f32 %v3443_v32, %v3442_v19  ;;  %v3537_v40 = vsel %vm710_vm2, %v3423_v57, %v3536_v60  ;;  %v3749_v19 = vld [vmem:[#allocation13 + $0x1d8] sm:$0xff]  ;;  %v3738_v32 = vld [vmem:[#allocation13 + $0x180] sm:$0xff]  ;;  %v3732_v60 = vld [vmem:[#allocation13 + $0x150] sm:$0xff] }
 0xc66   :  { %v3538_v33 = vsel %vm712_vm3, %v3430_v12, %v3537_v40  ;;  %v3737_v57 = vld [vmem:[#allocation13 + $0x178] sm:$0xff]  ;;  %v3736_v12 = vld [vmem:[#allocation13 + $0x170] sm:$0xff]  ;;  %v3726_v40 = vld [vmem:[#allocation13 + $0x120] sm:$0xff] }
 0xc67   :  { %v3448_v10 = vrot.slane %v3447_v56, 2  ;;  %v3453_v35 = vrot.slane %v3452_v16, 4  ;;  %v3539_v29 = vsel %vm714_vm4, %v3437_v22, %v3538_v33  ;;  %v3730_v22 = vld [vmem:[#allocation13 + $0x140] sm:$0xff]  ;;  %v3725_v33 = vld [vmem:[#allocation13 + $0x118] sm:$0xff] }
 0xc68   :  { %v3540_v42 = vsel %vm716_vm5, %v3444_v27, %v3539_v29  ;;  %v3727_v27 = vld [vmem:[#allocation13 + $0x128] sm:$0xff]  ;;  %v3722_v29 = vld [vmem:[#allocation13 + $0x100] sm:$0xff] }
 0xc69   :  { %v3449_v25 = vadd.f32 %v3448_v10, %v3447_v56  ;;  %v3454_v45 = vadd.f32 %v3453_v35, %v3452_v16  ;;  %v3747_v56 = vld [vmem:[#allocation13 + $0x1c8] sm:$0xff]  ;;  %v3746_v16 = vld [vmem:[#allocation13 + $0x1c0] sm:$0xff]  ;;  %v3744_v35 = vld [vmem:[#allocation13 + $0x1b0] sm:$0xff] }
 0xc6a   :  { %v3742_v10 = vld [vmem:[#allocation13 + $0x1a0] sm:$0xff] }
 0xc6b   :  { %v3450_v49 = vrot.slane %v3449_v25, 1  ;;  %v3455_v47 = vrot.slane %v3454_v45, 2 }
 0xc6d   :  { %v3456_v41 = vadd.f32 %v3455_v47, %v3454_v45  ;;  %v3451_v36 = vadd.f32 %v3450_v49, %v3449_v25  ;;  %v3740_v25 = vld [vmem:[#allocation13 + $0x190] sm:$0xff]  ;;  %v3735_v45 = vld [vmem:[#allocation13 + $0x168] sm:$0xff]  ;;  %v3733_v47 = vld [vmem:[#allocation13 + $0x158] sm:$0xff] }
 0xc6e   :  { %v3731_v49 = vld [vmem:[#allocation13 + $0x148] sm:$0xff] }
 0xc6f   :  { %v3457_v2 = vrot.slane %v3456_v41, 1  ;;  %v3541_v24 = vsel %vm718_vm6, %v3451_v36, %v3540_v42  ;;  %v3728_v36 = vld [vmem:[#allocation13 + $0x130] sm:$0xff]  ;;  %v3719_v42 = vld [vmem:[#allocation13 + $0xe8] sm:$0xff] }
 0xc71   :  { %v3458_v46 = vadd.f32 %v3457_v2, %v3456_v41  ;;  %v3729_v41 = vld [vmem:[#allocation13 + $0x138] sm:$0xff]  ;;  %v3723_v2 = vld [vmem:[#allocation13 + $0x108] sm:$0xff] }
 0xc73   :  { %v3542_v37 = vsel %vm720_vm7, %v3458_v46, %v3541_v24  ;;  %v3724_v46 = vld [vmem:[#allocation13 + $0x110] sm:$0xff]  ;;  %v3721_v24 = vld [vmem:[#allocation13 + $0xf8] sm:$0xff] }
 0xc74   :  { %3609 = vmatmul.mubr.f32.vlgmr.msra.gmra.mxu0 %v3542_v37  ;;  %3680 = vmatmul.mubr.f32.vlgmr.msra.gmra.mxu1 %v3542_v37  ;;  %v3715_v37 = vld [vmem:[#allocation13 + $0xc8] sm:$0xff] }
 0xc75   :  { %3755 = vmatpush1.msra.mxu0 %v3750_v44  ;;  %3826 = vmatpush1.msra.mxu1 %v3752_v5  ;;  %v3718_v44 = vld [vmem:[#allocation13 + $0xe0] sm:$0xff]  ;;  %v3720_v5 = vld [vmem:[#allocation13 + $0xf0] sm:$0xff] }
 0xc76   :  { %3756 = vmatprep.subr.mxu0 %v3747_v56  ;;  %3827 = vmatprep.subr.mxu1 %v3749_v19  ;;  %v3717_v56 = vld [vmem:[#allocation13 + $0xd8] sm:$0xff]  ;;  %v3714_v19 = vld [vmem:[#allocation13 + $0xc0] sm:$0xff] }
 0xc77   :  { %3757 = vmatpush1.msra.mxu0 %v3746_v16  ;;  %3828 = vmatpush1.msra.mxu1 %v3748_v13  ;;  %v3716_v16 = vld [vmem:[#allocation13 + $0xd0] sm:$0xff]  ;;  %v3711_v13 = vld [vmem:[#allocation13 + $0xa8] sm:$0xff] }
 0xc78   :  { %3758 = vmatprep.subr.mxu0 %v3743_v58  ;;  %3829 = vmatprep.subr.mxu1 %v3745_v54  ;;  %v3713_v58 = vld [vmem:[#allocation13 + $0xb8] sm:$0xff]  ;;  %v3710_v54 = vld [vmem:[#allocation13 + $0xa0] sm:$0xff] }
 0xc79   :  { %3759 = vmatpush1.msra.mxu0 %v3742_v10  ;;  %3830 = vmatpush1.msra.mxu1 %v3744_v35  ;;  %v3712_v10 = vld [vmem:[#allocation13 + $0xb0] sm:$0xff]  ;;  %v3707_v35 = vld [vmem:[#allocation13 + $0x88] sm:$0xff] }
 0xc7a   :  { %3760 = vmatprep.subr.mxu0 %v3739_v43  ;;  %3831 = vmatprep.subr.mxu1 %v3741_v51  ;;  %v3709_v43 = vld [vmem:[#allocation13 + $0x98] sm:$0xff]  ;;  %v3706_v51 = vld [vmem:[#allocation13 + $0x80] sm:$0xff] }
 0xc7b   :  { %3761 = vmatpush1.msra.mxu0 %v3738_v32  ;;  %3832 = vmatpush1.msra.mxu1 %v3740_v25  ;;  %v3708_v32 = vld [vmem:[#allocation13 + $0x90] sm:$0xff]  ;;  %v3703_v25 = vld [vmem:[#allocation13 + $0x68] sm:$0xff] }
 0xc7c   :  { %3762 = vmatprep.subr.mxu0 %v3735_v45  ;;  %3833 = vmatprep.subr.mxu1 %v3737_v57  ;;  %v3705_v45 = vld [vmem:[#allocation13 + $0x78] sm:$0xff]  ;;  %v3702_v57 = vld [vmem:[#allocation13 + $0x60] sm:$0xff] }
 0xc7d   :  { %3763 = vmatpush1.msra.mxu0 %v3734_v30  ;;  %3834 = vmatpush1.msra.mxu1 %v3736_v12  ;;  %v3704_v30 = vld [vmem:[#allocation13 + $0x70] sm:$0xff]  ;;  %v3699_v12 = vld [vmem:[#allocation13 + $0x48] sm:$0xff] }
 0xc7e   :  { %3764 = vmatprep.subr.mxu0 %v3731_v49  ;;  %3835 = vmatprep.subr.mxu1 %v3733_v47  ;;  %v3701_v49 = vld [vmem:[#allocation13 + $0x58] sm:$0xff]  ;;  %v3698_v47 = vld [vmem:[#allocation13 + $0x40] sm:$0xff] }
 0xc7f   :  { %3765 = vmatpush1.msra.mxu0 %v3730_v22  ;;  %3836 = vmatpush1.msra.mxu1 %v3732_v60  ;;  %v3700_v22 = vld [vmem:[#allocation13 + $0x50] sm:$0xff]  ;;  %v3695_v60 = vld [vmem:[#allocation13 + $0x28] sm:$0xff] }
 0xc80   :  { %3766 = vmatprep.subr.mxu0 %v3727_v27  ;;  %3837 = vmatprep.subr.mxu1 %v3729_v41  ;;  %v3697_v27 = vld [vmem:[#allocation13 + $0x38] sm:$0xff]  ;;  %v3694_v41 = vld [vmem:[#allocation13 + $0x20] sm:$0xff] }
 0xc81   :  { %3767 = vmatpush1.msra.mxu0 %v3726_v40  ;;  %3838 = vmatpush1.msra.mxu1 %v3728_v36  ;;  %v3696_v40 = vld [vmem:[#allocation13 + $0x30] sm:$0xff]  ;;  %v3691_v36 = vld [vmem:[#allocation13 + $0x8] sm:$0xff] }
 0xc82   :  { %3768 = vmatprep.subr.mxu0 %v3723_v2  ;;  %3839 = vmatprep.subr.mxu1 %v3725_v33  ;;  %v3693_v2 = vld [vmem:[#allocation13 + $0x18] sm:$0xff]  ;;  %v3690_v33 = vld [vmem:[#allocation13] sm:$0xff] }
 0xc83   :  { %3769 = vmatpush1.msra.mxu0 %v3722_v29  ;;  %3840 = vmatpush1.msra.mxu1 %v3724_v46  ;;  %v3692_v29 = vld [vmem:[#allocation13 + $0x10] sm:$0xff] }
 0xc84   :  { %3770 = vmatprep.subr.mxu0 %v3719_v42  ;;  %3841 = vmatprep.subr.mxu1 %v3721_v24 }
 0xc85   :  { %3771 = vmatpush1.msra.mxu0 %v3718_v44  ;;  %3842 = vmatpush1.msra.mxu1 %v3720_v5  ;;  %v11660_v44 = vld [vmem:[#allocation23_spill] sm:$0xff] }
 0xc86   :  { %3772 = vmatprep.subr.mxu0 %v3715_v37  ;;  %3843 = vmatprep.subr.mxu1 %v3717_v56 }
 0xc87   :  { %3773 = vmatpush1.msra.mxu0 %v3714_v19  ;;  %3844 = vmatpush1.msra.mxu1 %v3716_v16  ;;  %v11661_v19 = vld [vmem:[#allocation24_spill] sm:$0xff] }
 0xc88   :  { %3774 = vmatprep.subr.mxu0 %v3711_v13  ;;  %3845 = vmatprep.subr.mxu1 %v3713_v58 }
 0xc89   :  { %3775 = vmatpush1.msra.mxu0 %v3710_v54  ;;  %3846 = vmatpush1.msra.mxu1 %v3712_v10  ;;  %v11662_v10 = vld [vmem:[#allocation34_spill] sm:$0xff] }
 0xc8a   :  { %3776 = vmatprep.subr.mxu0 %v3707_v35  ;;  %3847 = vmatprep.subr.mxu1 %v3709_v43 }
 0xc8b   :  { %3777 = vmatpush1.msra.mxu0 %v3706_v51  ;;  %3848 = vmatpush1.msra.mxu1 %v3708_v32 }
 0xc8c   :  { %3778 = vmatprep.subr.mxu0 %v3703_v25  ;;  %3849 = vmatprep.subr.mxu1 %v3705_v45 }
 0xc8d   :  { %3779 = vmatpush1.msra.mxu0 %v3702_v57  ;;  %3850 = vmatpush1.msra.mxu1 %v3704_v30  ;;  %v11663_v57 = vld [vmem:[#allocation35_spill] sm:$0xff] }
 0xc8e   :  { %3780 = vmatprep.subr.mxu0 %v3699_v12  ;;  %3851 = vmatprep.subr.mxu1 %v3701_v49 }
 0xc8f   :  { %3781 = vmatpush1.msra.mxu0 %v3698_v47  ;;  %3852 = vmatpush1.msra.mxu1 %v3700_v22 }
 0xc90   :  { %3782 = vmatprep.subr.mxu0 %v3695_v60  ;;  %3853 = vmatprep.subr.mxu1 %v3697_v27 }
 0xc91   :  { %3783 = vmatpush1.msra.mxu0 %v3694_v41  ;;  %3854 = vmatpush1.msra.mxu1 %v3696_v40 }
 0xc92   :  { %3784 = vmatprep.subr.mxu0 %v3691_v36  ;;  %3855 = vmatprep.subr.mxu1 %v3693_v2 }
 0xc93   :  { %3785 = vmatpush1.msra.mxu0 %v3690_v33  ;;  %3818 = vmatprep.mubr.f32.mxu0 %v11658_v7 }
 0xc94   :  { %3856 = vmatpush1.msra.mxu1 %v3692_v29  ;;  %3889 = vmatprep.mubr.f32.mxu1 %v11658_v7 }
 0xc95   :  { %3819 = vmatmul.mubr.f32.vlgmr.msra.gmra.mxu0 %v10175_v61  ;;  %3890 = vmatmul.mubr.f32.vlgmr.msra.gmra.mxu1 %v10175_v61 }
 0xc96   :  { %4752 = vmatprep.mubr.f32.mxu0 %v11658_v7  ;;  %4823 = vmatprep.mubr.f32.mxu1 %v11658_v7 }
 0xd34   :  { %v3610_v46 = vpop.f32.mrf.mxu0  ;;  %v3681_v42 = vpop.f32.mrf.mxu1 }
 0xd35   :  { %v3686_v5 = vadd.f32 %v3610_v46, %v11660_v44  ;;  %v3688_v35 = vadd.f32 %v3681_v42, %v11662_v10 }
 0xd36   :  { %v3612_v24 = vpop.f32.mrf.mxu0  ;;  %v3683_v37 = vpop.f32.mrf.mxu1 }
 0xd37   :  { %v3687_v16 = vadd.f32 %v3612_v24, %v11661_v19  ;;  %v3689_v30 = vadd.f32 %v3683_v37, %v11663_v57 }
 0xd55   :  { %v3820_v56 = vpop.f32.mrf.mxu0  ;;  %v3891_v58 = vpop.f32.mrf.mxu1 }
 0xd56   :  { %v3896_v13 = vadd.f32 %v3820_v56, %v3686_v5  ;;  %v3898_v32 = vadd.f32 %v3891_v58, %v3688_v35 }
 0xd57   :  { %v3822_v54 = vpop.f32.mrf.mxu0  ;;  %v3893_v45 = vpop.f32.mrf.mxu1 }
 0xd58   :  { %v3900_v43 = vmul.f32 0.5, %v3896_v13  ;;  %v3897_v51 = vadd.f32 %v3822_v54, %v3687_v16  ;;  %v3899_v12 = vadd.f32 %v3893_v45, %v3689_v30 }
 0xd5a   :  { %8830 = vtanh.f32 %v3900_v43  ;;  %v3904_v25 = vmul.f32 0.5, %v3897_v51  ;;  %v3909_v49 = vmul.f32 0.5, %v3899_v12 }
 0xd5c   :  { %8832 = vtanh.f32 %v3904_v25 }
 0xd5d   :  { %8834 = vtanh.f32 %v3898_v32 }
 0xd5e   :  { %8836 = vtanh.f32 %v3909_v49 }
 0xd67   :  { %v8831_v47 = vpop.eup %8830 }
 0xd68   :  { %v3902_v22 = vadd.f32 1.0, %v8831_v47 }
 0xd69   :  { %v8833_v60 = vpop.eup %8832 }
 0xd6a   :  { %v3903_v27 = vmul.f32 0.5, %v3902_v22  ;;  %v3906_v41 = vadd.f32 1.0, %v8833_v60  ;;  %v8835_v40 = vpop.eup %8834 }
 0xd6b   :  { %v8837_v46 = vpop.eup %8836 }
 0xd6c   :  { %v3907_v36 = vmul.f32 0.5, %v3906_v41  ;;  %v3914_v2 = vmul.f32 %v8835_v40, %v3903_v27  ;;  %v3911_v42 = vadd.f32 1.0, %v8837_v46 }
 0xd6e   :  { %v3913_v33 = vmul.f32 %v3907_v36, %v10172_v20  ;;  %v3912_v24 = vmul.f32 0.5, %v3911_v42 }
 0xd70   :  { %v10468_v29 = vadd.f32 %v3914_v2, %v3913_v33 }
 0xd72   :  { %8838 = vtanh.f32 %v10468_v29 }
 0xd7f   :  { %v8839_v44 = vpop.eup %8838 }
 0xd80   :  { %v10471_v5 = vmul.f32 %v8839_v44, %v3912_v24 }
 0xd82   :  { %11664 = vst [vmem:[#allocation22_spill] sm:$0xff] %v10471_v5  ;;  %v3928_v37 = vrot.slane %v10471_v5, %v9411_v8  ;;  %v3921_v56 = vcombine.high %v10471_v5, %v10471_v5 }
 0xd84   :  { %v3944_v19 = vrot.slane %v3928_v37, %v9411_v8  ;;  %v3936_v16 = vcombine.high %v3928_v37, %v3928_v37  ;;  %v3935_v20 = vrot.slane %v3921_v56, %v9411_v8 }
 0xd86   :  { %v3973_v13 = vrot.slane %v3944_v19, %v9417_v11  ;;  %v3966_v58 = vcombine.high %v3944_v19, %v3944_v19  ;;  %v3958_v54 = vrot.slane %v3936_v16, %v9411_v8  ;;  %v3951_v10 = vrot.slane %v3935_v20, %v9411_v8 }
 0xd87   :  { %v3937_v25 = vcombine.high %v3935_v20, %v3935_v20 }
 0xd88   :  { %v4011_v35 = vmul.f32 %v10408_v53, %v3973_v13  ;;  %v4010_v43 = vmul.f32 %v10423_v14, %v3973_v13  ;;  %v3981_v51 = vrot.slane %v3966_v58, %v9417_v11  ;;  %v3977_v32 = vrot.slane %v3958_v54, %v9417_v11 }
 0xd89   :  { %v3989_v30 = vrot.slane %v3951_v10, %v9417_v11  ;;  %v3968_v12 = vcombine.high %v3958_v54, %v3958_v54  ;;  %v3965_v47 = vrot.slane %v3937_v25, %v9411_v8  ;;  %v3967_v60 = vcombine.high %v3951_v10, %v3951_v10 }
 0xd8a   :  { %4028 = vadd.xlane.f32.xlu1 %v4011_v35  ;;  %4026 = vadd.xlane.f32.xlu0 %v4010_v43  ;;  %v4014_v45 = vmul.f32 %v10417_v1, %v3981_v51  ;;  %v4012_v57 = vmul.f32 %v10411_v15, %v3977_v32  ;;  %v4013_v53 = vmul.f32 %v10402_v48, %v3977_v32 }
 0xd8b   :  { %v4018_v14 = vmul.f32 %v10429_v26, %v3989_v30  ;;  %v3985_v49 = vrot.slane %v3968_v12, %v9417_v11  ;;  %v4015_v22 = vmul.f32 %v10405_v31, %v3981_v51  ;;  %v3993_v15 = vrot.slane %v3965_v47, %v9417_v11 }
 0xd8c   :  { %v4019_v27 = vmul.f32 %v10420_v18, %v3989_v30  ;;  %v3997_v26 = vrot.slane %v3967_v60, %v9417_v11  ;;  %v3969_v41 = vcombine.high %v3965_v47, %v3965_v47 }
 0xd8d   :  { %v4016_v1 = vmul.f32 %v10426_v63, %v3985_v49  ;;  %v4020_v48 = vmul.f32 %v10432_v4, %v3993_v15  ;;  %v4017_v40 = vmul.f32 %v10414_v52, %v3985_v49  ;;  %v4021_v36 = vmul.f32 %v10435_v28, %v3993_v15 }
 0xd8e   :  { %4034 = vadd.xlane.f32.xlu1 %v4014_v45  ;;  %4030 = vadd.xlane.f32.xlu0 %v4012_v57  ;;  %v4022_v31 = vmul.f32 %v10438_v38, %v3997_v26  ;;  %v4001_v63 = vrot.slane %v3969_v41, %v9417_v11  ;;  %v4023_v18 = vmul.f32 %v10441_v50, %v3997_v26 }
 0xd90   :  { %v4024_v2 = vmul.f32 %v10444_v3, %v4001_v63  ;;  %v4025_v4 = vmul.f32 %v10447_v21, %v4001_v63 }
 0xd92   :  { %4032 = vadd.xlane.f32.xlu0 %v4013_v53  ;;  %4042 = vadd.xlane.f32.xlu1 %v4018_v14 }
 0xd96   :  { %4036 = vadd.xlane.f32.xlu0 %v4015_v22  ;;  %4038 = vadd.xlane.f32.xlu1 %v4016_v1 }
 0xd9a   :  { %4044 = vadd.xlane.f32.xlu0 %v4019_v27  ;;  %4046 = vadd.xlane.f32.xlu1 %v4020_v48 }
 0xd9e   :  { %4040 = vadd.xlane.f32.xlu0 %v4017_v40  ;;  %4050 = vadd.xlane.f32.xlu1 %v4022_v31 }
 0xda2   :  { %4048 = vadd.xlane.f32.xlu0 %v4021_v36  ;;  %4054 = vadd.xlane.f32.xlu1 %v4024_v2 }
 0xda6   :  { %4052 = vadd.xlane.f32.xlu0 %v4023_v18 }
 0xdaa   :  { %4056 = vadd.xlane.f32.xlu0 %v4025_v4 }
 0xe13   :  { %v4029_v33 = vpop.xlane.xlu1 %4028  ;;  %v4027_v52 = vpop.xlane.xlu0 %4026 }
 0xe14   :  { %v4081_v19 = vrot.slane %v4029_v33, %v9414_v9  ;;  %v4077_v16 = vrot.slane %v4027_v52, %v9408_v6 }
 0xe16   :  { %v4082_v32 = vsel %vm643_vm0, %v4081_v19, %v4077_v16 }
 0xe17   :  { %v10506_v46 = vpop.xlane.xlu1 %4034  ;;  %v4031_v38 = vpop.xlane.xlu0 %4030 }
 0xe18   :  { %v4086_v20 = vrot.slane %v4031_v38, %v9408_v6  ;;  %v4095_v58 = vrot.slane %v10506_v46, %v9408_v6 }
 0xe1b   :  { %v4033_v42 = vpop.xlane.xlu0 %4032  ;;  %v10508_v24 = vpop.xlane.xlu1 %4042 }
 0xe1c   :  { %v4090_v21 = vrot.slane %v4033_v42, %v9414_v9  ;;  %v4113_v47 = vrot.slane %v10508_v24, %v9408_v6 }
 0xe1e   :  { %v4091_v35 = vsel %vm643_vm0, %v4090_v21, %v4086_v20 }
 0xe1f   :  { %v10510_v44 = vpop.xlane.xlu0 %4036  ;;  %v10512_v28 = vpop.xlane.xlu1 %4038  ;;  %v4146_v57 = vsel %vm708_vm1, %v4091_v35, %v4082_v32 }
 0xe20   :  { %v4099_v56 = vrot.slane %v10510_v44, %v9414_v9  ;;  %v4104_v43 = vrot.slane %v10512_v28, %v9408_v6 }
 0xe22   :  { %v4100_v51 = vsel %vm643_vm0, %v4099_v56, %v4095_v58 }
 0xe23   :  { %v10514_v3 = vpop.xlane.xlu0 %4044  ;;  %v10516_v37 = vpop.xlane.xlu1 %4046  ;;  %v4147_v53 = vsel %vm710_vm2, %v4100_v51, %v4146_v57 }
 0xe24   :  { %v4117_v30 = vrot.slane %v10514_v3, %v9414_v9  ;;  %v4122_v14 = vrot.slane %v10516_v37, %v9408_v6 }
 0xe26   :  { %v4118_v27 = vsel %vm643_vm0, %v4117_v30, %v4113_v47 }
 0xe27   :  { %v10518_v50 = vpop.xlane.xlu0 %4040  ;;  %v10530_v54 = vpop.xlane.xlu1 %4050 }
 0xe28   :  { %v4108_v13 = vrot.slane %v10518_v50, %v9414_v9  ;;  %v4131_v1 = vrot.slane %v10530_v54, %v9408_v6 }
 0xe2a   :  { %v4109_v25 = vsel %vm643_vm0, %v4108_v13, %v4104_v43 }
 0xe2b   :  { %v10532_v10 = vpop.xlane.xlu0 %4048  ;;  %v4148_v22 = vsel %vm712_vm3, %v4109_v25, %v4147_v53  ;;  %v10557_v15 = vpop.xlane.xlu1 %4054 }
 0xe2c   :  { %v4126_v45 = vrot.slane %v10532_v10, %v9414_v9  ;;  %v4140_v41 = vrot.slane %v10557_v15, %v9408_v6  ;;  %v4149_v31 = vsel %vm714_vm4, %v4118_v27, %v4148_v22 }
 0xe2e   :  { %v4127_v60 = vsel %vm643_vm0, %v4126_v45, %v4122_v14 }
 0xe2f   :  { %v10545_v12 = vpop.xlane.xlu0 %4052  ;;  %v4150_v63 = vsel %vm716_vm5, %v4127_v60, %v4149_v31 }
 0xe30   :  { %v4135_v49 = vrot.slane %v10545_v12, %v9414_v9 }
 0xe32   :  { %v4136_v26 = vsel %vm643_vm0, %v4135_v49, %v4131_v1 }
 0xe33   :  { %v10561_v48 = vpop.xlane.xlu0 %4056  ;;  %v4151_v2 = vsel %vm718_vm6, %v4136_v26, %v4150_v63 }
 0xe34   :  { %v4144_v40 = vrot.slane %v10561_v48, %v9414_v9 }
 0xe36   :  { %v4145_v36 = vsel %vm643_vm0, %v4144_v40, %v4140_v41 }
 0xe37   :  { %v4152_v18 = vsel %vm720_vm7, %v4145_v36, %v4151_v2 }
 0xe38   :  { %v4154_v4 = vsel %vm723_vm8, %v4152_v18, -inf }
 0xe39   :  { %4155 = vmax.xlane.f32.xlu1 %v4154_v4 }
 0xec2   :  { %v4156_v21 = vpop.xlane.xlu1 %4155 }
 0xec3   :  { %v4161_v56 = vrot.slane %v4156_v21, %v9417_v11  ;;  %v4165_v19 = vrot.slane %v4156_v21, %v9514_v55  ;;  %v4169_v13 = vrot.slane %v4156_v21, %v9524_v62  ;;  %v4173_v32 = vrot.slane %v4156_v21, %v9542_v23 }
 0xec4   :  { %v4177_v53 = vrot.slane %v4156_v21, %v9551_v34  ;;  %v4181_v14 = vrot.slane %v4156_v21, %v9519_v59  ;;  %v4185_v22 = vrot.slane %v4156_v21, %v9528_v0 }
 0xec5   :  { %v4198_v16 = vsub.f32 %v4027_v52, %v4161_v56  ;;  %v4199_v20 = vsub.f32 %v4029_v33, %v4161_v56  ;;  %v4201_v58 = vsub.f32 %v4033_v42, %v4165_v19  ;;  %v4200_v35 = vsub.f32 %v4031_v38, %v4165_v19 }
 0xec6   :  { %v4203_v25 = vsub.f32 %v10510_v44, %v4169_v13  ;;  %v4202_v57 = vsub.f32 %v10506_v46, %v4169_v13  ;;  %v4205_v33 = vsub.f32 %v10518_v50, %v4173_v32  ;;  %v4204_v38 = vsub.f32 %v10512_v28, %v4173_v32 }
 0xec7   :  { %v4214_v43 = vmul.f32 1.442695, %v4198_v16  ;;  %v4216_v51 = vmul.f32 1.442695, %v4199_v20  ;;  %v4220_v45 = vmul.f32 1.442695, %v4201_v58  ;;  %v4207_v44 = vsub.f32 %v10514_v3, %v4177_v53 }
 0xec8   :  { %v4218_v30 = vmul.f32 1.442695, %v4200_v35  ;;  %v4224_v52 = vmul.f32 1.442695, %v4203_v25  ;;  %v4222_v42 = vmul.f32 1.442695, %v4202_v57  ;;  %v4206_v46 = vsub.f32 %v10508_v24, %v4177_v53 }
 0xec9   :  { %8840 = vpow2.f32 %v4214_v43  ;;  %v4228_v49 = vmul.f32 1.442695, %v4205_v33  ;;  %v4226_v47 = vmul.f32 1.442695, %v4204_v38  ;;  %v4209_v50 = vsub.f32 %v10532_v10, %v4181_v14 }
 0xeca   :  { %8842 = vpow2.f32 %v4216_v51  ;;  %v4232_v1 = vmul.f32 1.442695, %v4207_v44  ;;  %v4208_v28 = vsub.f32 %v10516_v37, %v4181_v14  ;;  %v4230_v27 = vmul.f32 1.442695, %v4206_v46 }
 0xecb   :  { %8844 = vpow2.f32 %v4220_v45  ;;  %v4189_v24 = vrot.slane %v4156_v21, %v11659_v17  ;;  %v4211_v3 = vsub.f32 %v10545_v12, %v4185_v22  ;;  %v4236_v10 = vmul.f32 1.442695, %v4209_v50 }
 0xecc   :  { %8846 = vpow2.f32 %v4218_v30  ;;  %v4210_v40 = vsub.f32 %v10530_v54, %v4185_v22  ;;  %v4234_v37 = vmul.f32 1.442695, %v4208_v28 }
 0xecd   :  { %8848 = vpow2.f32 %v4224_v52  ;;  %v4213_v63 = vsub.f32 %v10561_v48, %v4189_v24  ;;  %v4240_v36 = vmul.f32 1.442695, %v4211_v3  ;;  %v4212_v12 = vsub.f32 %v10557_v15, %v4189_v24 }
 0xece   :  { %8850 = vpow2.f32 %v4222_v42  ;;  %v4238_v18 = vmul.f32 1.442695, %v4210_v40 }
 0xecf   :  { %8852 = vpow2.f32 %v4228_v49  ;;  %v4244_v54 = vmul.f32 1.442695, %v4213_v63  ;;  %v4242_v48 = vmul.f32 1.442695, %v4212_v12 }
 0xed0   :  { %8854 = vpow2.f32 %v4226_v47 }
 0xed1   :  { %8856 = vpow2.f32 %v4232_v1 }
 0xed2   :  { %8858 = vpow2.f32 %v4230_v27 }
 0xed3   :  { %8860 = vpow2.f32 %v4236_v10 }
 0xed4   :  { %8862 = vpow2.f32 %v4234_v37 }
 0xed5   :  { %8864 = vpow2.f32 %v4240_v36 }
 0xed6   :  { %v10588_v60 = vpop.eup %8840  ;;  %8866 = vpow2.f32 %v4238_v18 }
 0xed7   :  { %v10591_v26 = vpop.eup %8842  ;;  %4263 = vperm.xlu0 %8706, %v10588_v60   ;;  %8868 = vpow2.f32 %v4244_v54 }
 0xed8   :  { %4266 = vperm.xlu1 %8705, %v10591_v26   ;;  %v10597_v41 = vpop.eup %8844  ;;  %8870 = vpow2.f32 %v4242_v48 }
 0xed9   :  { %v10600_v31 = vpop.eup %8846 }
 0xeda   :  { %v10605_v2 = vpop.eup %8848 }
 0xedb   :  { %4272 = vperm.xlu0 %8706, %v10597_v41   ;;  %v10608_v4 = vpop.eup %8850 }
 0xedc   :  { %4269 = vperm.xlu1 %8705, %v10600_v31   ;;  %v10612_v21 = vpop.eup %8852 }
 0xedd   :  { %v10614_v56 = vpop.eup %8854 }
 0xede   :  { %v10618_v15 = vpop.eup %8856 }
 0xedf   :  { %4278 = vperm.xlu0 %8706, %v10605_v2   ;;  %v10620_v19 = vpop.eup %8858 }
 0xee0   :  { %4275 = vperm.xlu1 %8705, %v10608_v4   ;;  %v10624_v16 = vpop.eup %8860 }
 0xee1   :  { %v10626_v20 = vpop.eup %8862 }
 0xee2   :  { %v10630_v13 = vpop.eup %8864 }
 0xee3   :  { %4284 = vperm.xlu0 %8706, %v10612_v21   ;;  %v10632_v58 = vpop.eup %8866 }
 0xee4   :  { %4281 = vperm.xlu1 %8705, %v10614_v56   ;;  %v10636_v35 = vpop.eup %8868 }
 0xee5   :  { %v8871_v43 = vpop.eup %8870 }
 0xee7   :  { %4290 = vperm.xlu0 %8706, %v10618_v15  }
 0xee8   :  { %4287 = vperm.xlu1 %8705, %v10620_v19  }
 0xeeb   :  { %4296 = vperm.xlu0 %8706, %v10624_v16  }
 0xeec   :  { %4293 = vperm.xlu1 %8705, %v10626_v20  }
 0xeef   :  { %4302 = vperm.xlu0 %8706, %v10630_v13  }
 0xef0   :  { %4299 = vperm.xlu1 %8705, %v10632_v58  }
 0xef3   :  { %4308 = vperm.xlu0 %8706, %v10636_v35  }
 0xef4   :  { %4305 = vperm.xlu1 %8705, %v8871_v43  }
 0xf52   :  { %v4264_v51 = vpop.permute.xlu0 %4263 }
 0xf53   :  { %v4267_v32 = vpop.permute.xlu1 %4266  ;;  %v4313_v50 = vrot.slane %v4264_v51, %v9408_v6 }
 0xf54   :  { %v4317_v22 = vrot.slane %v4267_v32, %v9414_v9 }
 0xf56   :  { %v4273_v25 = vpop.permute.xlu0 %4272  ;;  %v4318_v18 = vsel %vm643_vm0, %v4317_v22, %v4313_v50 }
 0xf57   :  { %v4270_v45 = vpop.permute.xlu1 %4269  ;;  %v4326_v14 = vrot.slane %v4273_v25, %v9414_v9 }
 0xf58   :  { %v4322_v42 = vrot.slane %v4270_v45, %v9408_v6 }
 0xf5a   :  { %v4279_v57 = vpop.permute.xlu0 %4278  ;;  %v4327_v3 = vsel %vm643_vm0, %v4326_v14, %v4322_v42 }
 0xf5b   :  { %v4276_v30 = vpop.permute.xlu1 %4275  ;;  %v4335_v46 = vrot.slane %v4279_v57, %v9414_v9  ;;  %v4382_v51 = vsel %vm708_vm1, %v4327_v3, %v4318_v18 }
 0xf5c   :  { %v4331_v49 = vrot.slane %v4276_v30, %v9408_v6 }
 0xf5e   :  { %v4285_v53 = vpop.permute.xlu0 %4284  ;;  %v4336_v63 = vsel %vm643_vm0, %v4335_v46, %v4331_v49 }
 0xf5f   :  { %v4282_v33 = vpop.permute.xlu1 %4281  ;;  %v4344_v28 = vrot.slane %v4285_v53, %v9414_v9  ;;  %v4383_v25 = vsel %vm710_vm2, %v4336_v63, %v4382_v51  ;;  %v4671_v51 = vld [vmem:[#allocation12 + $0x1f8] sm:$0xff] }
 0xf60   :  { %v4340_v1 = vrot.slane %v4282_v33, %v9408_v6  ;;  %4759 = vmatprep.subr.mxu1 %v4671_v51  ;;  %v4626_v51 = vld [vmem:[#allocation12 + $0x90] sm:$0xff] }
 0xf62   :  { %v4291_v52 = vpop.permute.xlu0 %4290  ;;  %v4345_v54 = vsel %vm643_vm0, %v4344_v28, %v4340_v1 }
 0xf63   :  { %v4288_v38 = vpop.permute.xlu1 %4287  ;;  %v4353_v24 = vrot.slane %v4291_v52, %v9414_v9  ;;  %v4384_v30 = vsel %vm712_vm3, %v4345_v54, %v4383_v25  ;;  %v4667_v25 = vld [vmem:[#allocation12 + $0x1d8] sm:$0xff] }
 0xf64   :  { %v4349_v27 = vrot.slane %v4288_v38, %v9408_v6 }
 0xf66   :  { %v4297_v44 = vpop.permute.xlu0 %4296  ;;  %v4354_v32 = vsel %vm643_vm0, %v4353_v24, %v4349_v27 }
 0xf67   :  { %v4294_v47 = vpop.permute.xlu1 %4293  ;;  %v4362_v40 = vrot.slane %v4297_v44, %v9414_v9  ;;  %v4385_v38 = vsel %vm714_vm4, %v4354_v32, %v4384_v30  ;;  %v4668_v32 = vld [vmem:[#allocation12 + $0x1e0] sm:$0xff] }
 0xf68   :  { %v4358_v10 = vrot.slane %v4294_v47, %v9408_v6 }
 0xf6a   :  { %v4303_v37 = vpop.permute.xlu0 %4302  ;;  %v4363_v45 = vsel %vm643_vm0, %v4362_v40, %v4358_v10 }
 0xf6b   :  { %v4300_v36 = vpop.permute.xlu1 %4299  ;;  %v4371_v12 = vrot.slane %v4303_v37, %v9414_v9  ;;  %v4386_v14 = vsel %vm716_vm5, %v4363_v45, %v4385_v38  ;;  %v4664_v45 = vld [vmem:[#allocation12 + $0x1c0] sm:$0xff]  ;;  %v4659_v38 = vld [vmem:[#allocation12 + $0x198] sm:$0xff] }
 0xf6c   :  { %v4367_v48 = vrot.slane %v4300_v36, %v9408_v6 }
 0xf6e   :  { %v4309_v57 = vpop.permute.xlu0 %4308  ;;  %v4372_v53 = vsel %vm643_vm0, %v4371_v12, %v4367_v48 }
 0xf6f   :  { %v4306_v33 = vpop.permute.xlu1 %4305  ;;  %v4380_v52 = vrot.slane %v4309_v57, %v9414_v9  ;;  %v4387_v49 = vsel %vm718_vm6, %v4372_v53, %v4386_v14  ;;  %v4663_v57 = vld [vmem:[#allocation12 + $0x1b8] sm:$0xff]  ;;  %v4660_v53 = vld [vmem:[#allocation12 + $0x1a0] sm:$0xff]  ;;  %v4658_v14 = vld [vmem:[#allocation12 + $0x190] sm:$0xff] }
 0xf70   :  { %v4376_v42 = vrot.slane %v4306_v33, %v9408_v6  ;;  %v4662_v33 = vld [vmem:[#allocation12 + $0x1b0] sm:$0xff] }
 0xf72   :  { %v4381_v44 = vsel %vm643_vm0, %v4380_v52, %v4376_v42  ;;  %v4657_v52 = vld [vmem:[#allocation12 + $0x188] sm:$0xff]  ;;  %v4656_v42 = vld [vmem:[#allocation12 + $0x180] sm:$0xff] }
 0xf73   :  { %v4388_v46 = vsel %vm720_vm7, %v4381_v44, %v4387_v49  ;;  %v4655_v44 = vld [vmem:[#allocation12 + $0x178] sm:$0xff]  ;;  %v4652_v49 = vld [vmem:[#allocation12 + $0x160] sm:$0xff] }
 0xf74   :  { %v4390_v47 = vsel %vm723_vm8, %v4388_v46, 0.0  ;;  %v4654_v46 = vld [vmem:[#allocation12 + $0x170] sm:$0xff] }
 0xf75   :  { %4391 = vadd.xlane.f32.xlu1 %v4390_v47  ;;  %v4649_v47 = vld [vmem:[#allocation12 + $0x148] sm:$0xff] }
 0xffe   :  { %v4392_v22 = vpop.xlane.xlu1 %4391 }
 0xfff   :  { %8872 = vrcp.f32 %v4392_v22  ;;  %v4648_v22 = vld [vmem:[#allocation12 + $0x140] sm:$0xff] }
0x100c   :  { %v8873_v50 = vpop.eup %8872 }
0x100d   :  { %v4414_v1 = vrot.slane %v8873_v50, %v9551_v34  ;;  %v4398_v28 = vrot.slane %v8873_v50, %v9417_v11  ;;  %v4426_v3 = vrot.slane %v8873_v50, %v11659_v17  ;;  %v4402_v37 = vrot.slane %v8873_v50, %v9514_v55 }
0x100f   :  { %v4444_v27 = vmul.f32 %v10618_v15, %v4414_v1  ;;  %v4435_v24 = vmul.f32 %v10588_v60, %v4398_v28  ;;  %v4449_v10 = vmul.f32 %v8871_v43, %v4426_v3  ;;  %v4436_v40 = vmul.f32 %v10591_v26, %v4398_v28  ;;  %v4647_v28 = vld [vmem:[#allocation12 + $0x138] sm:$0xff] }
0x1010   :  { %v4437_v63 = vmul.f32 %v10600_v31, %v4402_v37  ;;  %v4438_v36 = vmul.f32 %v10597_v41, %v4402_v37  ;;  %v4406_v15 = vrot.slane %v8873_v50, %v9524_v62  ;;  %v4410_v43 = vrot.slane %v8873_v50, %v9542_v23  ;;  %v4642_v37 = vld [vmem:[#allocation12 + $0x110] sm:$0xff] }
0x1011   :  { %4498 = vperm.xlu1 %8705, %v4444_v27   ;;  %4453 = vperm.xlu0 %8706, %v4435_v24   ;;  %v4443_v31 = vmul.f32 %v10620_v19, %v4414_v1  ;;  %v4418_v41 = vrot.slane %v8873_v50, %v9519_v59  ;;  %v4665_v19 = vld [vmem:[#allocation12 + $0x1c8] sm:$0xff]  ;;  %v4450_v30 = vmul.f32 %v10636_v35, %v4426_v3  ;;  %v4651_v35 = vld [vmem:[#allocation12 + $0x158] sm:$0xff]  ;;  %v4644_v27 = vld [vmem:[#allocation12 + $0x120] sm:$0xff] }
0x1012   :  { %v4439_v60 = vmul.f32 %v10608_v4, %v4406_v15  ;;  %v4440_v12 = vmul.f32 %v10605_v2, %v4406_v15  ;;  %v4441_v26 = vmul.f32 %v10614_v56, %v4410_v43  ;;  %v4442_v18 = vmul.f32 %v10612_v21, %v4410_v43  ;;  %v4669_v56 = vld [vmem:[#allocation12 + $0x1e8] sm:$0xff]  ;;  %v4670_v21 = vld [vmem:[#allocation12 + $0x1f0] sm:$0xff]  ;;  %v4636_v15 = vld [vmem:[#allocation12 + $0xe0] sm:$0xff] }
0x1013   :  { %v4445_v54 = vmul.f32 %v10626_v20, %v4418_v41  ;;  %v4446_v4 = vmul.f32 %v10624_v16, %v4418_v41  ;;  %v4422_v2 = vrot.slane %v8873_v50, %v9528_v0  ;;  %4688 = vmatprep.subr.mxu0 %v4669_v56  ;;  %v4666_v20 = vld [vmem:[#allocation12 + $0x1d0] sm:$0xff]  ;;  %4760 = vmatpush1.msra.mxu1 %v4670_v21  ;;  %v4645_v1 = vld [vmem:[#allocation12 + $0x128] sm:$0xff]  ;;  %v4635_v43 = vld [vmem:[#allocation12 + $0xd8] sm:$0xff] }
0x1014   :  { %4689 = vmatpush1.msra.mxu0 %v4668_v32  ;;  %4761 = vmatprep.subr.mxu1 %v4667_v25  ;;  %v4650_v50 = vld [vmem:[#allocation12 + $0x150] sm:$0xff]  ;;  %v4641_v3 = vld [vmem:[#allocation12 + $0x108] sm:$0xff]  ;;  %v4631_v41 = vld [vmem:[#allocation12 + $0xb8] sm:$0xff] }
0x1015   :  { %4523 = vperm.xlu1 %8705, %v4449_v10   ;;  %4458 = vperm.xlu0 %8706, %v4436_v40   ;;  %v4447_v48 = vmul.f32 %v10632_v58, %v4422_v2  ;;  %v4448_v16 = vmul.f32 %v10630_v13, %v4422_v2  ;;  %v4661_v58 = vld [vmem:[#allocation12 + $0x1a8] sm:$0xff]  ;;  %v4646_v24 = vld [vmem:[#allocation12 + $0x130] sm:$0xff]  ;;  %v4643_v10 = vld [vmem:[#allocation12 + $0x118] sm:$0xff] }
0x1016   :  { %4690 = vmatprep.subr.mxu0 %v4665_v19  ;;  %4762 = vmatpush1.msra.mxu1 %v4666_v20  ;;  %v4653_v13 = vld [vmem:[#allocation12 + $0x168] sm:$0xff]  ;;  %v4640_v40 = vld [vmem:[#allocation12 + $0x100] sm:$0xff]  ;;  %v4623_v21 = vld [vmem:[#allocation12 + $0x78] sm:$0xff] }
0x1017   :  { %4691 = vmatpush1.msra.mxu0 %v4664_v45  ;;  %4763 = vmatprep.subr.mxu1 %v4663_v57  ;;  %v4625_v2 = vld [vmem:[#allocation12 + $0x88] sm:$0xff]  ;;  %v4624_v56 = vld [vmem:[#allocation12 + $0x80] sm:$0xff]  ;;  %v4622_v25 = vld [vmem:[#allocation12 + $0x70] sm:$0xff] }
0x1018   :  { %4692 = vmatprep.subr.mxu0 %v4661_v58  ;;  %4764 = vmatpush1.msra.mxu1 %v4662_v33  ;;  %v4621_v32 = vld [vmem:[#allocation12 + $0x68] sm:$0xff]  ;;  %v4620_v19 = vld [vmem:[#allocation12 + $0x60] sm:$0xff]  ;;  %v4619_v20 = vld [vmem:[#allocation12 + $0x58] sm:$0xff] }
0x1019   :  { %4463 = vperm.xlu0 %8706, %v4437_v63   ;;  %4693 = vmatpush1.msra.mxu0 %v4660_v53  ;;  %v4637_v63 = vld [vmem:[#allocation12 + $0xe8] sm:$0xff]  ;;  %v4618_v58 = vld [vmem:[#allocation12 + $0x50] sm:$0xff]  ;;  %v4612_v53 = vld [vmem:[#allocation12 + $0x20] sm:$0xff] }
0x101a   :  { %4694 = vmatprep.subr.mxu0 %v4657_v52  ;;  %4765 = vmatprep.subr.mxu1 %v4659_v38  ;;  %v4617_v45 = vld [vmem:[#allocation12 + $0x48] sm:$0xff]  ;;  %v4614_v33 = vld [vmem:[#allocation12 + $0x30] sm:$0xff]  ;;  %v4611_v38 = vld [vmem:[#allocation12 + $0x18] sm:$0xff] }
0x101b   :  { %4695 = vmatpush1.msra.mxu0 %v4656_v42  ;;  %4766 = vmatpush1.msra.mxu1 %v4658_v14  ;;  %v4613_v57 = vld [vmem:[#allocation12 + $0x28] sm:$0xff]  ;;  %v4608_v42 = vld [vmem:[#allocation12] sm:$0xff]  ;;  %v4610_v14 = vld [vmem:[#allocation12 + $0x10] sm:$0xff] }
0x101c   :  { %4696 = vmatprep.subr.mxu0 %v4653_v13  ;;  %4767 = vmatprep.subr.mxu1 %v4655_v44  ;;  %v4609_v52 = vld [vmem:[#allocation12 + $0x8] sm:$0xff]  ;;  %v4897_v44 = vld [vmem:[#allocation13 + $0x1f8] sm:$0xff] }
0x101d   :  { %4468 = vperm.xlu0 %8706, %v4438_v36   ;;  %4697 = vmatpush1.msra.mxu0 %v4652_v49  ;;  %v4639_v36 = vld [vmem:[#allocation12 + $0xf8] sm:$0xff]  ;;  %v4895_v13 = vld [vmem:[#allocation13 + $0x1e8] sm:$0xff] }
0x101e   :  { %4768 = vmatpush1.msra.mxu1 %v4654_v46  ;;  %4698 = vmatprep.subr.mxu0 %v4649_v47 }
0x101f   :  { %4769 = vmatprep.subr.mxu1 %v4651_v35  ;;  %4699 = vmatpush1.msra.mxu0 %v4648_v22 }
0x1020   :  { %4770 = vmatpush1.msra.mxu1 %v4650_v50  ;;  %4700 = vmatprep.subr.mxu0 %v4645_v1 }
0x1021   :  { %4473 = vperm.xlu0 %8706, %v4439_v60   ;;  %4771 = vmatprep.subr.mxu1 %v4647_v28  ;;  %v4638_v60 = vld [vmem:[#allocation12 + $0xf0] sm:$0xff] }
0x1022   :  { %4701 = vmatpush1.msra.mxu0 %v4644_v27  ;;  %4772 = vmatpush1.msra.mxu1 %v4646_v24  ;;  %v10694_v27 = vld [vmem:[#allocation7 + $0x18] sm:$0xff] }
0x1023   :  { %4702 = vmatprep.subr.mxu0 %v4641_v3  ;;  %4773 = vmatprep.subr.mxu1 %v4643_v10  ;;  %v10697_v3 = vld [vmem:[#allocation7 + $0x28] sm:$0xff] }
0x1024   :  { %4703 = vmatpush1.msra.mxu0 %v4640_v40  ;;  %4774 = vmatpush1.msra.mxu1 %v4642_v37 }
0x1025   :  { %4478 = vperm.xlu0 %8706, %v4440_v12   ;;  %v4633_v12 = vld [vmem:[#allocation12 + $0xc8] sm:$0xff]  ;;  %4704 = vmatprep.subr.mxu0 %v4637_v63  ;;  %v10700_v63 = vld [vmem:[#allocation7 + $0x8] sm:$0xff] }
0x1026   :  { %4775 = vmatprep.subr.mxu1 %v4639_v36  ;;  %4705 = vmatpush1.msra.mxu0 %v4636_v15  ;;  %v10703_v15 = vld [vmem:[#allocation7 + $0x10] sm:$0xff] }
0x1027   :  { %4776 = vmatpush1.msra.mxu1 %v4638_v60  ;;  %4706 = vmatprep.subr.mxu0 %v4633_v12  ;;  %v10706_v12 = vld [vmem:[#allocation7 + $0x38] sm:$0xff] }
0x1028   :  { %4777 = vmatprep.subr.mxu1 %v4635_v43 }
0x1029   :  { %4483 = vperm.xlu0 %8706, %v4441_v26   ;;  %v4632_v26 = vld [vmem:[#allocation12 + $0xc0] sm:$0xff] }
0x102a   :  { %4707 = vmatpush1.msra.mxu0 %v4632_v26  ;;  %v10709_v26 = vld [vmem:[#allocation7 + $0x20] sm:$0xff] }
0x102d   :  { %4488 = vperm.xlu0 %8706, %v4442_v18   ;;  %v4634_v18 = vld [vmem:[#allocation12 + $0xd0] sm:$0xff] }
0x102e   :  { %4778 = vmatpush1.msra.mxu1 %v4634_v18 }
0x102f   :  { %4779 = vmatprep.subr.mxu1 %v4631_v41 }
0x1031   :  { %4493 = vperm.xlu0 %8706, %v4443_v31   ;;  %v4629_v31 = vld [vmem:[#allocation12 + $0xa8] sm:$0xff] }
0x1032   :  { %4708 = vmatprep.subr.mxu0 %v4629_v31  ;;  %v10712_v31 = vld [vmem:[#allocation7 + $0x40] sm:$0xff] }
0x1035   :  { %4503 = vperm.xlu0 %8706, %v4445_v54   ;;  %v4628_v54 = vld [vmem:[#allocation12 + $0xa0] sm:$0xff] }
0x1036   :  { %4709 = vmatpush1.msra.mxu0 %v4628_v54  ;;  %v10715_v54 = vld [vmem:[#allocation7] sm:$0xff] }
0x1037   :  { %4710 = vmatprep.subr.mxu0 %v4625_v2 }
0x1038   :  { %4711 = vmatpush1.msra.mxu0 %v4624_v56 }
0x1039   :  { %4508 = vperm.xlu0 %8706, %v4446_v4   ;;  %v4630_v4 = vld [vmem:[#allocation12 + $0xb0] sm:$0xff]  ;;  %4712 = vmatprep.subr.mxu0 %v4621_v32 }
0x103a   :  { %4780 = vmatpush1.msra.mxu1 %v4630_v4  ;;  %4713 = vmatpush1.msra.mxu0 %v4620_v19 }
0x103b   :  { %4714 = vmatprep.subr.mxu0 %v4617_v45 }
0x103d   :  { %4513 = vperm.xlu0 %8706, %v4447_v48   ;;  %v4627_v48 = vld [vmem:[#allocation12 + $0x98] sm:$0xff] }
0x103e   :  { %4781 = vmatprep.subr.mxu1 %v4627_v48  ;;  %v10718_v48 = vld [vmem:[#allocation7 + $0x30] sm:$0xff] }
0x103f   :  { %4782 = vmatpush1.msra.mxu1 %v4626_v51  ;;  %v10721_v51 = vld [vmem:[#allocation7 + $0x48] sm:$0xff] }
0x1040   :  { %4783 = vmatprep.subr.mxu1 %v4623_v21 }
0x1041   :  { %4518 = vperm.xlu0 %8706, %v4448_v16   ;;  %v4616_v16 = vld [vmem:[#allocation12 + $0x40] sm:$0xff]  ;;  %4784 = vmatpush1.msra.mxu1 %v4622_v25 }
0x1042   :  { %4785 = vmatprep.subr.mxu1 %v4619_v20  ;;  %4715 = vmatpush1.msra.mxu0 %v4616_v16 }
0x1043   :  { %4786 = vmatpush1.msra.mxu1 %v4618_v58  ;;  %4716 = vmatprep.subr.mxu0 %v4613_v57 }
0x1044   :  { %4717 = vmatpush1.msra.mxu0 %v4612_v53 }
0x1045   :  { %4528 = vperm.xlu0 %8706, %v4450_v30   ;;  %v4615_v30 = vld [vmem:[#allocation12 + $0x38] sm:$0xff]  ;;  %4718 = vmatprep.subr.mxu0 %v4609_v52 }
0x1046   :  { %4787 = vmatprep.subr.mxu1 %v4615_v30  ;;  %4719 = vmatpush1.msra.mxu0 %v4608_v42 }
0x1047   :  { %4788 = vmatpush1.msra.mxu1 %v4614_v33  ;;  %4898 = vmatprep.subr.mxu0 %v4895_v13  ;;  %v10724_v33 = vld [vmem:[#allocation7 + $0x50] sm:$0xff] }
0x1048   :  { %4789 = vmatprep.subr.mxu1 %v4611_v38  ;;  %v10727_v38 = vld [vmem:[#allocation7 + $0x58] sm:$0xff] }
0x1049   :  { %4790 = vmatpush1.msra.mxu1 %v4610_v14 }
0x104a   :  { %4969 = vmatprep.subr.mxu1 %v4897_v44 }
0x108c   :  { %v4454_v49 = vpop.permute.xlu0 %4453  ;;  %v4499_v37 = vpop.permute.xlu1 %4498 }
0x108d   :  { %v4531_v4 = vmul.f32 %v10715_v54, %v4454_v49  ;;  %v4540_v32 = vmul.f32 %v10721_v51, %v4499_v37 }
0x1090   :  { %v4459_v46 = vpop.permute.xlu0 %4458 }
0x1091   :  { %v4532_v36 = vmul.f32 %v10700_v63, %v4459_v46 }
0x1093   :  { %v4547_v25 = vadd.f32 %v4532_v36, %v4531_v4 }
0x1094   :  { %v4464_v47 = vpop.permute.xlu0 %4463 }
0x1095   :  { %v4533_v60 = vmul.f32 %v10703_v15, %v4464_v47  ;;  %v4548_v30 = vrot.slane %v4547_v25, 4 }
0x1097   :  { %v4549_v47 = vadd.f32 %v4548_v30, %v4547_v25 }
0x1098   :  { %v4469_v35 = vpop.permute.xlu0 %4468 }
0x1099   :  { %v4534_v24 = vmul.f32 %v10694_v27, %v4469_v35  ;;  %v4550_v37 = vrot.slane %v4549_v47, 2 }
0x109b   :  { %v4554_v2 = vadd.f32 %v4534_v24, %v4533_v60  ;;  %v10730_v60 = vld [vmem:[#allocation7 + $0x60] sm:$0xff] }
0x109c   :  { %v4474_v22 = vpop.permute.xlu0 %4473 }
0x109d   :  { %v4535_v18 = vmul.f32 %v10709_v26, %v4474_v22  ;;  %v4555_v16 = vrot.slane %v4554_v2, 4 }
0x109f   :  { %v4556_v13 = vadd.f32 %v4555_v16, %v4554_v2 }
0x10a0   :  { %v4479_v50 = vpop.permute.xlu0 %4478 }
0x10a1   :  { %v4536_v10 = vmul.f32 %v10697_v3, %v4479_v50 }
0x10a3   :  { %v4561_v21 = vadd.f32 %v4536_v10, %v4535_v18  ;;  %v10733_v18 = vld [vmem:[#allocation7 + $0x68] sm:$0xff] }
0x10a4   :  { %v4484_v1 = vpop.permute.xlu0 %4483 }
0x10a5   :  { %v4537_v56 = vmul.f32 %v10718_v48, %v4484_v1  ;;  %v4562_v58 = vrot.slane %v4561_v21, 4  ;;  %v4557_v1 = vrot.slane %v4556_v13, 2 }
0x10a7   :  { %v4563_v49 = vadd.f32 %v4562_v58, %v4561_v21  ;;  %v4558_v2 = vadd.f32 %v4557_v1, %v4556_v13  ;;  %v10736_v21 = vld [vmem:[#allocation7 + $0x70] sm:$0xff] }
0x10a8   :  { %v4489_v28 = vpop.permute.xlu0 %4488 }
0x10a9   :  { %v4538_v43 = vmul.f32 %v10706_v12, %v4489_v28  ;;  %v4564_v24 = vrot.slane %v4563_v49, 2 }
0x10ab   :  { %v4568_v45 = vadd.f32 %v4538_v43, %v4537_v56  ;;  %v4565_v25 = vadd.f32 %v4564_v24, %v4563_v49 }
0x10ac   :  { %v4494_v40 = vpop.permute.xlu0 %4493 }
0x10ad   :  { %v4539_v41 = vmul.f32 %v10712_v31, %v4494_v40  ;;  %v4569_v53 = vrot.slane %v4568_v45, 4  ;;  %v4524_v40 = vpop.permute.xlu1 %4523 }
0x10af   :  { %v4575_v20 = vadd.f32 %v4540_v32, %v4539_v41  ;;  %v4570_v35 = vadd.f32 %v4569_v53, %v4568_v45 }
0x10b0   :  { %v4504_v19 = vpop.permute.xlu0 %4503 }
0x10b1   :  { %v4541_v52 = vmul.f32 %v10724_v33, %v4504_v19  ;;  %v4576_v14 = vrot.slane %v4575_v20, 4  ;;  %v4571_v36 = vrot.slane %v4570_v35, 2  ;;  %v4545_v19 = vmul.f32 %v10736_v21, %v4524_v40 }
0x10b3   :  { %v4577_v50 = vadd.f32 %v4576_v14, %v4575_v20  ;;  %v4551_v20 = vadd.f32 %v4550_v37, %v4549_v47  ;;  %v4572_v16 = vadd.f32 %v4571_v36, %v4570_v35 }
0x10b4   :  { %v4509_v57 = vpop.permute.xlu0 %4508 }
0x10b5   :  { %v4542_v42 = vmul.f32 %v10727_v38, %v4509_v57  ;;  %v4578_v4 = vrot.slane %v4577_v50, 2  ;;  %v10739_v57 = vld [vmem:[#allocation7 + $0x78] sm:$0xff] }
0x10b7   :  { %v4582_v44 = vadd.f32 %v4542_v42, %v4541_v52  ;;  %v4579_v53 = vadd.f32 %v4578_v4, %v4577_v50  ;;  %v4559_v52 = vrot.slane %v4558_v2, 1 }
0x10b8   :  { %v4514_v46 = vpop.permute.xlu0 %4513 }
0x10b9   :  { %v4583_v22 = vrot.slane %v4582_v44, 4  ;;  %v4543_v43 = vmul.f32 %v10730_v60, %v4514_v46  ;;  %v4552_v46 = vrot.slane %v4551_v20, 1  ;;  %v4580_v40 = vrot.slane %v4579_v53, 1 }
0x10ba   :  { %v4560_v49 = vadd.f32 %v4559_v52, %v4558_v2 }
0x10bb   :  { %v4584_v28 = vadd.f32 %v4583_v22, %v4582_v44  ;;  %v4566_v44 = vrot.slane %v4565_v25, 1  ;;  %v4573_v22 = vrot.slane %v4572_v16, 1  ;;  %v4553_v36 = vadd.f32 %v4552_v46, %v4551_v20  ;;  %v4892_v46 = vld [vmem:[#allocation13 + $0x1d0] sm:$0xff] }
0x10bc   :  { %v4519_v10 = vpop.permute.xlu0 %4518  ;;  %v4581_v50 = vadd.f32 %v4580_v40, %v4579_v53  ;;  %v4888_v40 = vld [vmem:[#allocation13 + $0x1b0] sm:$0xff] }
0x10bd   :  { %v4544_v41 = vmul.f32 %v10733_v18, %v4519_v10  ;;  %v4585_v56 = vrot.slane %v4584_v28, 2  ;;  %v4567_v37 = vadd.f32 %v4566_v44, %v4565_v25  ;;  %v4890_v44 = vld [vmem:[#allocation13 + $0x1c0] sm:$0xff] }
0x10bf   :  { %v4589_v32 = vadd.f32 %v4544_v41, %v4543_v43  ;;  %v4586_v42 = vadd.f32 %v4585_v56, %v4584_v28  ;;  %v4574_v43 = vadd.f32 %v4573_v22, %v4572_v16  ;;  %v4680_v28 = vsel %vm708_vm1, %v4560_v49, %v4553_v36  ;;  %v4894_v16 = vld [vmem:[#allocation13 + $0x1e0] sm:$0xff]  ;;  %v4887_v22 = vld [vmem:[#allocation13 + $0x1a8] sm:$0xff]  ;;  %v4881_v36 = vld [vmem:[#allocation13 + $0x178] sm:$0xff] }
0x10c0   :  { %v4529_v45 = vpop.permute.xlu0 %4528  ;;  %v4883_v49 = vld [vmem:[#allocation13 + $0x188] sm:$0xff] }
0x10c1   :  { %v4590_v58 = vrot.slane %v4589_v32, 4  ;;  %v4546_v30 = vmul.f32 %v10739_v57, %v4529_v45  ;;  %v4587_v24 = vrot.slane %v4586_v42, 1 }
0x10c3   :  { %v4591_v14 = vadd.f32 %v4590_v58, %v4589_v32  ;;  %v4596_v13 = vadd.f32 %v4546_v30, %v4545_v19  ;;  %v4588_v4 = vadd.f32 %v4587_v24, %v4586_v42  ;;  %v4681_v32 = vsel %vm710_vm2, %v4567_v37, %v4680_v28  ;;  %v4893_v42 = vld [vmem:[#allocation13 + $0x1d8] sm:$0xff]  ;;  %v4879_v37 = vld [vmem:[#allocation13 + $0x168] sm:$0xff]  ;;  %v4874_v28 = vld [vmem:[#allocation13 + $0x140] sm:$0xff] }
0x10c4   :  { %v4682_v30 = vsel %vm712_vm3, %v4574_v43, %v4681_v32  ;;  %v4885_v24 = vld [vmem:[#allocation13 + $0x198] sm:$0xff]  ;;  %v4878_v43 = vld [vmem:[#allocation13 + $0x160] sm:$0xff] }
0x10c5   :  { %v4592_v1 = vrot.slane %v4591_v14, 2  ;;  %v4597_v10 = vrot.slane %v4596_v13, 4  ;;  %v4683_v2 = vsel %vm714_vm4, %v4581_v50, %v4682_v30  ;;  %v4877_v50 = vld [vmem:[#allocation13 + $0x158] sm:$0xff]  ;;  %v4867_v30 = vld [vmem:[#allocation13 + $0x108] sm:$0xff] }
0x10c6   :  { %v4684_v25 = vsel %vm716_vm5, %v4588_v4, %v4683_v2  ;;  %v4876_v4 = vld [vmem:[#allocation13 + $0x150] sm:$0xff]  ;;  %v4873_v32 = vld [vmem:[#allocation13 + $0x138] sm:$0xff] }
0x10c7   :  { %v4593_v47 = vadd.f32 %v4592_v1, %v4591_v14  ;;  %v4598_v35 = vadd.f32 %v4597_v10, %v4596_v13  ;;  %v4896_v14 = vld [vmem:[#allocation13 + $0x1f0] sm:$0xff]  ;;  %v4891_v13 = vld [vmem:[#allocation13 + $0x1c8] sm:$0xff]  ;;  %v4889_v1 = vld [vmem:[#allocation13 + $0x1b8] sm:$0xff] }
0x10c8   :  { %v4886_v10 = vld [vmem:[#allocation13 + $0x1a0] sm:$0xff]  ;;  %v4869_v2 = vld [vmem:[#allocation13 + $0x118] sm:$0xff] }
0x10c9   :  { %v4594_v41 = vrot.slane %v4593_v47, 1  ;;  %v4599_v45 = vrot.slane %v4598_v35, 2 }
0x10cb   :  { %v4600_v56 = vadd.f32 %v4599_v45, %v4598_v35  ;;  %v4595_v19 = vadd.f32 %v4594_v41, %v4593_v47  ;;  %v4882_v47 = vld [vmem:[#allocation13 + $0x180] sm:$0xff]  ;;  %v4884_v35 = vld [vmem:[#allocation13 + $0x190] sm:$0xff]  ;;  %v4875_v45 = vld [vmem:[#allocation13 + $0x148] sm:$0xff] }
0x10cc   :  { %v4880_v41 = vld [vmem:[#allocation13 + $0x170] sm:$0xff] }
0x10cd   :  { %v4601_v58 = vrot.slane %v4600_v56, 1  ;;  %v4685_v20 = vsel %vm718_vm6, %v4595_v19, %v4684_v25  ;;  %v4870_v19 = vld [vmem:[#allocation13 + $0x120] sm:$0xff]  ;;  %v4868_v25 = vld [vmem:[#allocation13 + $0x110] sm:$0xff] }
0x10cf   :  { %v4602_v52 = vadd.f32 %v4601_v58, %v4600_v56  ;;  %v4871_v56 = vld [vmem:[#allocation13 + $0x128] sm:$0xff]  ;;  %v4872_v58 = vld [vmem:[#allocation13 + $0x130] sm:$0xff] }
0x10d1   :  { %v4686_v53 = vsel %vm720_vm7, %v4602_v52, %v4685_v20  ;;  %v4866_v52 = vld [vmem:[#allocation13 + $0x100] sm:$0xff]  ;;  %v4863_v20 = vld [vmem:[#allocation13 + $0xe8] sm:$0xff] }
0x10d2   :  { %4753 = vmatmul.mubr.f32.vlgmr.msra.gmra.mxu0 %v4686_v53  ;;  %4824 = vmatmul.mubr.f32.vlgmr.msra.gmra.mxu1 %v4686_v53  ;;  %v4864_v53 = vld [vmem:[#allocation13 + $0xf0] sm:$0xff] }
0x10d3   :  { %4899 = vmatpush1.msra.mxu0 %v4894_v16  ;;  %4970 = vmatpush1.msra.mxu1 %v4896_v14  ;;  %v4865_v16 = vld [vmem:[#allocation13 + $0xf8] sm:$0xff]  ;;  %v4862_v14 = vld [vmem:[#allocation13 + $0xe0] sm:$0xff] }
0x10d4   :  { %4900 = vmatprep.subr.mxu0 %v4891_v13  ;;  %4971 = vmatprep.subr.mxu1 %v4893_v42  ;;  %v4859_v13 = vld [vmem:[#allocation13 + $0xc8] sm:$0xff]  ;;  %v4861_v42 = vld [vmem:[#allocation13 + $0xd8] sm:$0xff] }
0x10d5   :  { %4901 = vmatpush1.msra.mxu0 %v4890_v44  ;;  %4972 = vmatpush1.msra.mxu1 %v4892_v46  ;;  %v4858_v44 = vld [vmem:[#allocation13 + $0xc0] sm:$0xff]  ;;  %v4860_v46 = vld [vmem:[#allocation13 + $0xd0] sm:$0xff] }
0x10d6   :  { %4902 = vmatprep.subr.mxu0 %v4887_v22  ;;  %4973 = vmatprep.subr.mxu1 %v4889_v1  ;;  %v4855_v22 = vld [vmem:[#allocation13 + $0xa8] sm:$0xff]  ;;  %v4857_v1 = vld [vmem:[#allocation13 + $0xb8] sm:$0xff] }
0x10d7   :  { %4903 = vmatpush1.msra.mxu0 %v4886_v10  ;;  %4974 = vmatpush1.msra.mxu1 %v4888_v40  ;;  %v4854_v10 = vld [vmem:[#allocation13 + $0xa0] sm:$0xff]  ;;  %v4856_v40 = vld [vmem:[#allocation13 + $0xb0] sm:$0xff] }
0x10d8   :  { %4904 = vmatprep.subr.mxu0 %v4883_v49  ;;  %4975 = vmatprep.subr.mxu1 %v4885_v24  ;;  %v4851_v49 = vld [vmem:[#allocation13 + $0x88] sm:$0xff]  ;;  %v4853_v24 = vld [vmem:[#allocation13 + $0x98] sm:$0xff] }
0x10d9   :  { %4905 = vmatpush1.msra.mxu0 %v4882_v47  ;;  %4976 = vmatpush1.msra.mxu1 %v4884_v35  ;;  %v4850_v47 = vld [vmem:[#allocation13 + $0x80] sm:$0xff]  ;;  %v4852_v35 = vld [vmem:[#allocation13 + $0x90] sm:$0xff] }
0x10da   :  { %4906 = vmatprep.subr.mxu0 %v4879_v37  ;;  %4977 = vmatprep.subr.mxu1 %v4881_v36  ;;  %v4847_v37 = vld [vmem:[#allocation13 + $0x68] sm:$0xff]  ;;  %v4849_v36 = vld [vmem:[#allocation13 + $0x78] sm:$0xff] }
0x10db   :  { %4907 = vmatpush1.msra.mxu0 %v4878_v43  ;;  %4978 = vmatpush1.msra.mxu1 %v4880_v41  ;;  %v4846_v43 = vld [vmem:[#allocation13 + $0x60] sm:$0xff]  ;;  %v4848_v41 = vld [vmem:[#allocation13 + $0x70] sm:$0xff] }
0x10dc   :  { %4908 = vmatprep.subr.mxu0 %v4875_v45  ;;  %4979 = vmatprep.subr.mxu1 %v4877_v50  ;;  %v4843_v45 = vld [vmem:[#allocation13 + $0x48] sm:$0xff]  ;;  %v4845_v50 = vld [vmem:[#allocation13 + $0x58] sm:$0xff] }
0x10dd   :  { %4909 = vmatpush1.msra.mxu0 %v4874_v28  ;;  %4980 = vmatpush1.msra.mxu1 %v4876_v4  ;;  %v4842_v28 = vld [vmem:[#allocation13 + $0x40] sm:$0xff]  ;;  %v4844_v4 = vld [vmem:[#allocation13 + $0x50] sm:$0xff] }
0x10de   :  { %4910 = vmatprep.subr.mxu0 %v4871_v56  ;;  %4981 = vmatprep.subr.mxu1 %v4873_v32  ;;  %v4839_v56 = vld [vmem:[#allocation13 + $0x28] sm:$0xff]  ;;  %v4841_v32 = vld [vmem:[#allocation13 + $0x38] sm:$0xff] }
0x10df   :  { %4911 = vmatpush1.msra.mxu0 %v4870_v19  ;;  %4982 = vmatpush1.msra.mxu1 %v4872_v58  ;;  %v4838_v19 = vld [vmem:[#allocation13 + $0x20] sm:$0xff]  ;;  %v4840_v58 = vld [vmem:[#allocation13 + $0x30] sm:$0xff] }
0x10e0   :  { %4912 = vmatprep.subr.mxu0 %v4867_v30  ;;  %4983 = vmatprep.subr.mxu1 %v4869_v2  ;;  %v4835_v30 = vld [vmem:[#allocation13 + $0x8] sm:$0xff]  ;;  %v4837_v2 = vld [vmem:[#allocation13 + $0x18] sm:$0xff] }
0x10e1   :  { %4913 = vmatpush1.msra.mxu0 %v4866_v52  ;;  %4984 = vmatpush1.msra.mxu1 %v4868_v25  ;;  %v4834_v52 = vld [vmem:[#allocation13] sm:$0xff]  ;;  %v4836_v25 = vld [vmem:[#allocation13 + $0x10] sm:$0xff] }
0x10e2   :  { %4914 = vmatprep.subr.mxu0 %v4863_v20  ;;  %4985 = vmatprep.subr.mxu1 %v4865_v16 }
0x10e3   :  { %4915 = vmatpush1.msra.mxu0 %v4862_v14  ;;  %4986 = vmatpush1.msra.mxu1 %v4864_v53  ;;  %v11665_v53 = vld [vmem:[#allocation25_spill] sm:$0xff] }
0x10e4   :  { %4916 = vmatprep.subr.mxu0 %v4859_v13  ;;  %4987 = vmatprep.subr.mxu1 %v4861_v42 }
0x10e5   :  { %4917 = vmatpush1.msra.mxu0 %v4858_v44  ;;  %4988 = vmatpush1.msra.mxu1 %v4860_v46  ;;  %v11666_v46 = vld [vmem:[#allocation26_spill] sm:$0xff] }
0x10e6   :  { %4918 = vmatprep.subr.mxu0 %v4855_v22  ;;  %4989 = vmatprep.subr.mxu1 %v4857_v1 }
0x10e7   :  { %4919 = vmatpush1.msra.mxu0 %v4854_v10  ;;  %4990 = vmatpush1.msra.mxu1 %v4856_v40 }
0x10e8   :  { %4920 = vmatprep.subr.mxu0 %v4851_v49  ;;  %4991 = vmatprep.subr.mxu1 %v4853_v24  ;;  %v11667_v49 = vld [vmem:[#allocation36_spill] sm:$0xff] }
0x10e9   :  { %4921 = vmatpush1.msra.mxu0 %v4850_v47  ;;  %4992 = vmatpush1.msra.mxu1 %v4852_v35 }
0x10ea   :  { %4922 = vmatprep.subr.mxu0 %v4847_v37  ;;  %4993 = vmatprep.subr.mxu1 %v4849_v36 }
0x10eb   :  { %4923 = vmatpush1.msra.mxu0 %v4846_v43  ;;  %4994 = vmatpush1.msra.mxu1 %v4848_v41  ;;  %v11668_v41 = vld [vmem:[#allocation37_spill] sm:$0xff] }
0x10ec   :  { %4924 = vmatprep.subr.mxu0 %v4843_v45  ;;  %4995 = vmatprep.subr.mxu1 %v4845_v50 }
0x10ed   :  { %4925 = vmatpush1.msra.mxu0 %v4842_v28  ;;  %4996 = vmatpush1.msra.mxu1 %v4844_v4 }
0x10ee   :  { %4926 = vmatprep.subr.mxu0 %v4839_v56  ;;  %4997 = vmatprep.subr.mxu1 %v4841_v32 }
0x10ef   :  { %4927 = vmatpush1.msra.mxu0 %v4838_v19  ;;  %4998 = vmatpush1.msra.mxu1 %v4840_v58 }
0x10f0   :  { %4928 = vmatprep.subr.mxu0 %v4835_v30  ;;  %4999 = vmatprep.subr.mxu1 %v4837_v2 }
0x10f1   :  { %4929 = vmatpush1.msra.mxu0 %v4834_v52  ;;  %4962 = vmatprep.mubr.f32.mxu0 %v11658_v7 }
0x10f2   :  { %5000 = vmatpush1.msra.mxu1 %v4836_v25  ;;  %5033 = vmatprep.mubr.f32.mxu1 %v11658_v7 }
0x10f3   :  { %4963 = vmatmul.mubr.f32.vlgmr.msra.gmra.mxu0 %v10471_v5  ;;  %5034 = vmatmul.mubr.f32.vlgmr.msra.gmra.mxu1 %v10471_v5 }
0x10f4   :  { %5896 = vmatprep.mubr.f32.mxu0 %v11658_v7  ;;  %5967 = vmatprep.mubr.f32.mxu1 %v11658_v7 }
0x1192   :  { %v4754_v20 = vpop.f32.mrf.mxu0  ;;  %v4825_v16 = vpop.f32.mrf.mxu1 }
0x1193   :  { %v4830_v13 = vadd.f32 %v4754_v20, %v11665_v53  ;;  %v4832_v24 = vadd.f32 %v4825_v16, %v11667_v49 }
0x1194   :  { %v4756_v14 = vpop.f32.mrf.mxu0  ;;  %v4827_v42 = vpop.f32.mrf.mxu1 }
0x1195   :  { %v4831_v22 = vadd.f32 %v4756_v14, %v11666_v46  ;;  %v4833_v45 = vadd.f32 %v4827_v42, %v11668_v41 }
0x11b3   :  { %v4964_v44 = vpop.f32.mrf.mxu0  ;;  %v5035_v10 = vpop.f32.mrf.mxu1 }
0x11b4   :  { %v5040_v1 = vadd.f32 %v4964_v44, %v4830_v13  ;;  %v5042_v37 = vadd.f32 %v5035_v10, %v4832_v24 }
0x11b5   :  { %v4966_v40 = vpop.f32.mrf.mxu0  ;;  %v5037_v43 = vpop.f32.mrf.mxu1 }
0x11b6   :  { %v5044_v47 = vmul.f32 0.5, %v5040_v1  ;;  %v5041_v35 = vadd.f32 %v4966_v40, %v4831_v22  ;;  %v5043_v50 = vadd.f32 %v5037_v43, %v4833_v45 }
0x11b8   :  { %8874 = vtanh.f32 %v5044_v47  ;;  %v5048_v36 = vmul.f32 0.5, %v5041_v35  ;;  %v5053_v28 = vmul.f32 0.5, %v5043_v50 }
0x11ba   :  { %8876 = vtanh.f32 %v5048_v36 }
0x11bb   :  { %8878 = vtanh.f32 %v5042_v37 }
0x11bc   :  { %8880 = vtanh.f32 %v5053_v28 }
0x11c5   :  { %v8875_v4 = vpop.eup %8874 }
0x11c6   :  { %v5046_v56 = vadd.f32 1.0, %v8875_v4 }
0x11c7   :  { %v8877_v32 = vpop.eup %8876 }
0x11c8   :  { %v5047_v19 = vmul.f32 0.5, %v5046_v56  ;;  %v5050_v58 = vadd.f32 1.0, %v8877_v32  ;;  %v8879_v30 = vpop.eup %8878 }
0x11c9   :  { %v8881_v16 = vpop.eup %8880 }
0x11ca   :  { %v5051_v2 = vmul.f32 0.5, %v5050_v58  ;;  %v5058_v52 = vmul.f32 %v8879_v30, %v5047_v19  ;;  %v5055_v14 = vadd.f32 1.0, %v8881_v16 }
0x11cc   :  { %v5057_v25 = vmul.f32 %v5051_v2, %v10468_v29  ;;  %v5056_v53 = vmul.f32 0.5, %v5055_v14 }
0x11ce   :  { %v10760_v20 = vadd.f32 %v5058_v52, %v5057_v25 }
0x11d0   :  { %8882 = vtanh.f32 %v10760_v20 }
0x11dd   :  { %v8883_v13 = vpop.eup %8882 }
0x11de   :  { %v10763_v42 = vmul.f32 %v8883_v13, %v5056_v53 }
0x11e0   :  { %11669 = vst [vmem:[#allocation23_spill] sm:$0xff] %v10763_v42  ;;  %v5072_v44 = vrot.slane %v10763_v42, %v9411_v8  ;;  %v5065_v46 = vcombine.high %v10763_v42, %v10763_v42 }
0x11e2   :  { %v5088_v22 = vrot.slane %v5072_v44, %v9411_v8  ;;  %v5080_v1 = vcombine.high %v5072_v44, %v5072_v44  ;;  %v5079_v40 = vrot.slane %v5065_v46, %v9411_v8 }
0x11e4   :  { %v5117_v29 = vrot.slane %v5088_v22, %v9417_v11  ;;  %v5102_v10 = vrot.slane %v5080_v1, %v9411_v8  ;;  %v5110_v35 = vcombine.high %v5088_v22, %v5088_v22  ;;  %v5095_v41 = vrot.slane %v5079_v40, %v9411_v8 }
0x11e5   :  { %v5081_v45 = vcombine.high %v5079_v40, %v5079_v40 }
0x11e6   :  { %v5155_v49 = vmul.f32 %v10700_v63, %v5117_v29  ;;  %v5154_v24 = vmul.f32 %v10715_v54, %v5117_v29  ;;  %v5121_v47 = vrot.slane %v5102_v10, %v9417_v11  ;;  %v5125_v43 = vrot.slane %v5110_v35, %v9417_v11 }
0x11e7   :  { %v5133_v50 = vrot.slane %v5095_v41, %v9417_v11  ;;  %v5112_v28 = vcombine.high %v5102_v10, %v5102_v10  ;;  %v5109_v56 = vrot.slane %v5081_v45, %v9411_v8  ;;  %v5111_v19 = vcombine.high %v5095_v41, %v5095_v41 }
0x11e8   :  { %5172 = vadd.xlane.f32.xlu0 %v5155_v49  ;;  %5170 = vadd.xlane.f32.xlu1 %v5154_v24  ;;  %v5157_v37 = vmul.f32 %v10694_v27, %v5121_v47  ;;  %v5156_v36 = vmul.f32 %v10703_v15, %v5121_v47  ;;  %v5159_v63 = vmul.f32 %v10697_v3, %v5125_v43 }
0x11e9   :  { %v5158_v54 = vmul.f32 %v10709_v26, %v5125_v43  ;;  %v5163_v27 = vmul.f32 %v10721_v51, %v5133_v50  ;;  %v5162_v15 = vmul.f32 %v10712_v31, %v5133_v50  ;;  %v5129_v4 = vrot.slane %v5112_v28, %v9417_v11 }
0x11ea   :  { %v5137_v26 = vrot.slane %v5109_v56, %v9417_v11  ;;  %v5141_v31 = vrot.slane %v5111_v19, %v9417_v11  ;;  %v5113_v30 = vcombine.high %v5109_v56, %v5109_v56 }
0x11eb   :  { %v5161_v32 = vmul.f32 %v10706_v12, %v5129_v4  ;;  %v5160_v3 = vmul.f32 %v10718_v48, %v5129_v4 }
0x11ec   :  { %5176 = vadd.xlane.f32.xlu1 %v5157_v37  ;;  %5174 = vadd.xlane.f32.xlu0 %v5156_v36  ;;  %v5165_v58 = vmul.f32 %v10727_v38, %v5137_v26  ;;  %v5164_v51 = vmul.f32 %v10724_v33, %v5137_v26  ;;  %v5167_v2 = vmul.f32 %v10733_v18, %v5141_v31 }
0x11ed   :  { %v5166_v12 = vmul.f32 %v10730_v60, %v5141_v31  ;;  %v5145_v48 = vrot.slane %v5113_v30, %v9417_v11 }
0x11ef   :  { %v5169_v52 = vmul.f32 %v10739_v57, %v5145_v48  ;;  %v5168_v25 = vmul.f32 %v10736_v21, %v5145_v48 }
0x11f0   :  { %5180 = vadd.xlane.f32.xlu1 %v5159_v63  ;;  %5178 = vadd.xlane.f32.xlu0 %v5158_v54 }
0x11f4   :  { %5188 = vadd.xlane.f32.xlu1 %v5163_v27  ;;  %5186 = vadd.xlane.f32.xlu0 %v5162_v15 }
0x11f8   :  { %5184 = vadd.xlane.f32.xlu1 %v5161_v32  ;;  %5182 = vadd.xlane.f32.xlu0 %v5160_v3 }
0x11fc   :  { %5192 = vadd.xlane.f32.xlu1 %v5165_v58  ;;  %5190 = vadd.xlane.f32.xlu0 %v5164_v51 }
0x1200   :  { %5196 = vadd.xlane.f32.xlu1 %v5167_v2  ;;  %5194 = vadd.xlane.f32.xlu0 %v5166_v12 }
0x1204   :  { %5200 = vadd.xlane.f32.xlu1 %v5169_v52  ;;  %5198 = vadd.xlane.f32.xlu0 %v5168_v25 }
0x1271   :  { %v5173_v33 = vpop.xlane.xlu0 %5172  ;;  %v5171_v38 = vpop.xlane.xlu1 %5170 }
0x1272   :  { %v5225_v29 = vrot.slane %v5173_v33, %v9414_v9  ;;  %v5221_v10 = vrot.slane %v5171_v38, %v9408_v6 }
0x1274   :  { %v5226_v36 = vsel %vm643_vm0, %v5225_v29, %v5221_v10 }
0x1275   :  { %v10798_v16 = vpop.xlane.xlu1 %5176  ;;  %v5175_v14 = vpop.xlane.xlu0 %5174 }
0x1276   :  { %v5234_v21 = vrot.slane %v10798_v16, %v9414_v9  ;;  %v5230_v57 = vrot.slane %v5175_v14, %v9408_v6 }
0x1278   :  { %v5235_v35 = vsel %vm643_vm0, %v5234_v21, %v5230_v57 }
0x1279   :  { %v10800_v53 = vpop.xlane.xlu1 %5180  ;;  %v5179_v18 = vpop.xlane.xlu0 %5178  ;;  %v5290_v63 = vsel %vm708_vm1, %v5235_v35, %v5226_v36 }
0x127a   :  { %v5243_v22 = vrot.slane %v10800_v53, %v9414_v9  ;;  %v5239_v1 = vrot.slane %v5179_v18, %v9408_v6 }
0x127c   :  { %v5244_v37 = vsel %vm643_vm0, %v5243_v22, %v5239_v1 }
0x127d   :  { %v10802_v13 = vpop.xlane.xlu1 %5188  ;;  %v10804_v60 = vpop.xlane.xlu0 %5186  ;;  %v5291_v15 = vsel %vm710_vm2, %v5244_v37, %v5290_v63 }
0x127e   :  { %v5261_v54 = vrot.slane %v10802_v13, %v9414_v9  ;;  %v5257_v50 = vrot.slane %v10804_v60, %v9408_v6 }
0x1280   :  { %v5262_v26 = vsel %vm643_vm0, %v5261_v54, %v5257_v50 }
0x1281   :  { %v10806_v44 = vpop.xlane.xlu1 %5184  ;;  %v10808_v46 = vpop.xlane.xlu0 %5182 }
0x1282   :  { %v5252_v40 = vrot.slane %v10806_v44, %v9414_v9  ;;  %v5248_v49 = vrot.slane %v10808_v46, %v9408_v6 }
0x1284   :  { %v5253_v43 = vsel %vm643_vm0, %v5252_v40, %v5248_v49 }
0x1285   :  { %v10822_v24 = vpop.xlane.xlu1 %5192  ;;  %v10824_v47 = vpop.xlane.xlu0 %5190  ;;  %v5292_v32 = vsel %vm712_vm3, %v5253_v43, %v5291_v15 }
0x1286   :  { %v5270_v41 = vrot.slane %v10822_v24, %v9414_v9  ;;  %v5266_v45 = vrot.slane %v10824_v47, %v9408_v6  ;;  %v5293_v2 = vsel %vm714_vm4, %v5262_v26, %v5292_v32 }
0x1288   :  { %v5271_v3 = vsel %vm643_vm0, %v5270_v41, %v5266_v45 }
0x1289   :  { %v10839_v28 = vpop.xlane.xlu1 %5196  ;;  %v10841_v27 = vpop.xlane.xlu0 %5194  ;;  %v5294_v12 = vsel %vm716_vm5, %v5271_v3, %v5293_v2 }
0x128a   :  { %v5279_v4 = vrot.slane %v10839_v28, %v9414_v9  ;;  %v5275_v56 = vrot.slane %v10841_v27, %v9408_v6 }
0x128c   :  { %v5280_v51 = vsel %vm643_vm0, %v5279_v4, %v5275_v56 }
0x128d   :  { %v10851_v19 = vpop.xlane.xlu1 %5200  ;;  %v10853_v58 = vpop.xlane.xlu0 %5198  ;;  %v5295_v52 = vsel %vm718_vm6, %v5280_v51, %v5294_v12 }
0x128e   :  { %v5288_v31 = vrot.slane %v10851_v19, %v9414_v9  ;;  %v5284_v30 = vrot.slane %v10853_v58, %v9408_v6 }
0x1290   :  { %v5289_v48 = vsel %vm643_vm0, %v5288_v31, %v5284_v30 }
0x1291   :  { %v5296_v25 = vsel %vm720_vm7, %v5289_v48, %v5295_v52 }
0x1292   :  { %v5298_v21 = vsel %vm723_vm8, %v5296_v25, -inf }
0x1293   :  { %5299 = vmax.xlane.f32.xlu0 %v5298_v21 }
0x131c   :  { %v5300_v57 = vpop.xlane.xlu0 %5299 }
0x131d   :  { %v5305_v22 = vrot.slane %v5300_v57, %v9417_v11  ;;  %v5309_v1 = vrot.slane %v5300_v57, %v9514_v55  ;;  %v5313_v29 = vrot.slane %v5300_v57, %v9524_v62  ;;  %v5317_v35 = vrot.slane %v5300_v57, %v9542_v23 }
0x131e   :  { %v5321_v63 = vrot.slane %v5300_v57, %v9551_v34  ;;  %v5329_v56 = vrot.slane %v5300_v57, %v9528_v0 }
0x131f   :  { %v5342_v10 = vsub.f32 %v5171_v38, %v5305_v22  ;;  %v5343_v40 = vsub.f32 %v5173_v33, %v5305_v22  ;;  %v5344_v49 = vsub.f32 %v5175_v14, %v5309_v1  ;;  %v5346_v37 = vsub.f32 %v5179_v18, %v5313_v29 }
0x1320   :  { %v5345_v41 = vsub.f32 %v10798_v16, %v5309_v1  ;;  %v5348_v54 = vsub.f32 %v10808_v46, %v5317_v35  ;;  %v5347_v15 = vsub.f32 %v10800_v53, %v5313_v29  ;;  %v5325_v38 = vrot.slane %v5300_v57, %v9519_v59 }
0x1321   :  { %v5358_v36 = vmul.f32 1.442695, %v5342_v10  ;;  %v5360_v43 = vmul.f32 1.442695, %v5343_v40  ;;  %v5362_v45 = vmul.f32 1.442695, %v5344_v49  ;;  %v5350_v14 = vsub.f32 %v10804_v60, %v5321_v63 }
0x1322   :  { %v5366_v50 = vmul.f32 1.442695, %v5346_v37  ;;  %v5364_v33 = vmul.f32 1.442695, %v5345_v41  ;;  %v5370_v18 = vmul.f32 1.442695, %v5348_v54  ;;  %v5349_v16 = vsub.f32 %v10806_v44, %v5317_v35 }
0x1323   :  { %8884 = vpow2.f32 %v5358_v36  ;;  %v5368_v4 = vmul.f32 1.442695, %v5347_v15  ;;  %v5352_v46 = vsub.f32 %v10824_v47, %v5325_v38  ;;  %v5374_v32 = vmul.f32 1.442695, %v5350_v14 }
0x1324   :  { %8886 = vpow2.f32 %v5360_v43  ;;  %v5351_v53 = vsub.f32 %v10802_v13, %v5321_v63  ;;  %v5372_v3 = vmul.f32 1.442695, %v5349_v16  ;;  %v5333_v60 = vrot.slane %v5300_v57, %v11659_v17 }
0x1325   :  { %8888 = vpow2.f32 %v5362_v45  ;;  %v5354_v51 = vsub.f32 %v10841_v27, %v5329_v56  ;;  %v5378_v44 = vmul.f32 1.442695, %v5352_v46  ;;  %v5353_v47 = vsub.f32 %v10822_v24, %v5325_v38 }
0x1326   :  { %8890 = vpow2.f32 %v5366_v50  ;;  %v5376_v13 = vmul.f32 1.442695, %v5351_v53  ;;  %v5356_v2 = vsub.f32 %v10853_v58, %v5333_v60  ;;  %v5355_v27 = vsub.f32 %v10839_v28, %v5329_v56 }
0x1327   :  { %8892 = vpow2.f32 %v5364_v33  ;;  %v5382_v12 = vmul.f32 1.442695, %v5354_v51  ;;  %v5380_v52 = vmul.f32 1.442695, %v5353_v47  ;;  %v5357_v58 = vsub.f32 %v10851_v19, %v5333_v60 }
0x1328   :  { %8894 = vpow2.f32 %v5370_v18  ;;  %v5386_v24 = vmul.f32 1.442695, %v5356_v2  ;;  %v5384_v57 = vmul.f32 1.442695, %v5355_v27 }
0x1329   :  { %8896 = vpow2.f32 %v5368_v4  ;;  %v5388_v1 = vmul.f32 1.442695, %v5357_v58 }
0x132a   :  { %8898 = vpow2.f32 %v5374_v32 }
0x132b   :  { %8900 = vpow2.f32 %v5372_v3 }
0x132c   :  { %8902 = vpow2.f32 %v5378_v44 }
0x132d   :  { %8904 = vpow2.f32 %v5376_v13 }
0x132e   :  { %8906 = vpow2.f32 %v5382_v12 }
0x132f   :  { %8908 = vpow2.f32 %v5380_v52 }
0x1330   :  { %v10880_v26 = vpop.eup %8884  ;;  %8910 = vpow2.f32 %v5386_v24 }
0x1331   :  { %v10884_v31 = vpop.eup %8886  ;;  %5407 = vperm.xlu1 %8705, %v10880_v26   ;;  %8912 = vpow2.f32 %v5384_v57 }
0x1332   :  { %5410 = vperm.xlu0 %8706, %v10884_v31   ;;  %v10889_v30 = vpop.eup %8888  ;;  %8914 = vpow2.f32 %v5388_v1 }
0x1333   :  { %v10892_v48 = vpop.eup %8890 }
0x1334   :  { %v10897_v25 = vpop.eup %8892 }
0x1335   :  { %5413 = vperm.xlu1 %8705, %v10889_v30   ;;  %v10899_v21 = vpop.eup %8894 }
0x1336   :  { %5419 = vperm.xlu0 %8706, %v10892_v48   ;;  %v10904_v22 = vpop.eup %8896 }
0x1337   :  { %v10906_v28 = vpop.eup %8898 }
0x1338   :  { %v10910_v29 = vpop.eup %8900 }
0x1339   :  { %5416 = vperm.xlu1 %8705, %v10897_v25   ;;  %v10912_v10 = vpop.eup %8902 }
0x133a   :  { %5425 = vperm.xlu0 %8706, %v10899_v21   ;;  %v10916_v19 = vpop.eup %8904 }
0x133b   :  { %v10918_v40 = vpop.eup %8906 }
0x133c   :  { %v10922_v49 = vpop.eup %8908 }
0x133d   :  { %5422 = vperm.xlu1 %8705, %v10904_v22   ;;  %v10924_v35 = vpop.eup %8910 }
0x133e   :  { %5431 = vperm.xlu0 %8706, %v10906_v28   ;;  %v10928_v37 = vpop.eup %8912 }
0x133f   :  { %v10931_v36 = vpop.eup %8914 }
0x1341   :  { %5428 = vperm.xlu1 %8705, %v10910_v29  }
0x1342   :  { %5437 = vperm.xlu0 %8706, %v10912_v10  }
0x1345   :  { %5434 = vperm.xlu1 %8705, %v10916_v19  }
0x1346   :  { %5443 = vperm.xlu0 %8706, %v10918_v40  }
0x1349   :  { %5440 = vperm.xlu1 %8705, %v10922_v49  }
0x134a   :  { %5449 = vperm.xlu0 %8706, %v10924_v35  }
0x134d   :  { %5446 = vperm.xlu1 %8705, %v10928_v37  }
0x1351   :  { %5452 = vperm.xlu1 %8705, %v10931_v36  }
0x13ac   :  { %v5408_v43 = vpop.permute.xlu1 %5407 }
0x13ad   :  { %v5411_v41 = vpop.permute.xlu0 %5410  ;;  %v5457_v53 = vrot.slane %v5408_v43, %v9408_v6 }
0x13ae   :  { %v5461_v32 = vrot.slane %v5411_v41, %v9414_v9 }
0x13b0   :  { %v5414_v45 = vpop.permute.xlu1 %5413  ;;  %v5462_v24 = vsel %vm643_vm0, %v5461_v32, %v5457_v53 }
0x13b1   :  { %v5420_v63 = vpop.permute.xlu0 %5419  ;;  %v5466_v3 = vrot.slane %v5414_v45, %v9408_v6 }
0x13b2   :  { %v5475_v51 = vrot.slane %v5420_v63, %v9408_v6 }
0x13b4   :  { %v5417_v54 = vpop.permute.xlu1 %5416 }
0x13b5   :  { %v5426_v50 = vpop.permute.xlu0 %5425  ;;  %v5470_v16 = vrot.slane %v5417_v54, %v9414_v9 }
0x13b6   :  { %v5484_v47 = vrot.slane %v5426_v50, %v9408_v6 }
0x13b7   :  { %v5471_v13 = vsel %vm643_vm0, %v5470_v16, %v5466_v3 }
0x13b8   :  { %v5423_v15 = vpop.permute.xlu1 %5422  ;;  %v5526_v43 = vsel %vm708_vm1, %v5471_v13, %v5462_v24 }
0x13b9   :  { %v5432_v33 = vpop.permute.xlu0 %5431  ;;  %v5479_v4 = vrot.slane %v5423_v15, %v9414_v9 }
0x13ba   :  { %v5493_v12 = vrot.slane %v5432_v33, %v9408_v6 }
0x13bb   :  { %v5480_v27 = vsel %vm643_vm0, %v5479_v4, %v5475_v51 }
0x13bc   :  { %v5429_v38 = vpop.permute.xlu1 %5428  ;;  %v5527_v54 = vsel %vm710_vm2, %v5480_v27, %v5526_v43 }
0x13bd   :  { %v5438_v14 = vpop.permute.xlu0 %5437  ;;  %v5488_v60 = vrot.slane %v5429_v38, %v9414_v9 }
0x13be   :  { %v5502_v58 = vrot.slane %v5438_v14, %v9408_v6 }
0x13bf   :  { %v5489_v57 = vsel %vm643_vm0, %v5488_v60, %v5484_v47 }
0x13c0   :  { %v5435_v18 = vpop.permute.xlu1 %5434  ;;  %v5528_v15 = vsel %vm712_vm3, %v5489_v57, %v5527_v54  ;;  %v5811_v54 = vld [vmem:[#allocation12 + $0x1d8] sm:$0xff] }
0x13c1   :  { %v5444_v56 = vpop.permute.xlu0 %5443  ;;  %v5497_v44 = vrot.slane %v5435_v18, %v9414_v9 }
0x13c2   :  { %v5511_v41 = vrot.slane %v5444_v56, %v9408_v6 }
0x13c3   :  { %v5498_v45 = vsel %vm643_vm0, %v5497_v44, %v5493_v12 }
0x13c4   :  { %v5441_v46 = vpop.permute.xlu1 %5440  ;;  %v5529_v14 = vsel %vm714_vm4, %v5498_v45, %v5528_v15  ;;  %v5815_v45 = vld [vmem:[#allocation12 + $0x1f8] sm:$0xff]  ;;  %v5805_v15 = vld [vmem:[#allocation12 + $0x1a8] sm:$0xff] }
0x13c5   :  { %v5506_v2 = vrot.slane %v5441_v46, %v9414_v9  ;;  %v5450_v63 = vpop.permute.xlu0 %5449  ;;  %5903 = vmatprep.subr.mxu1 %v5815_v45  ;;  %v5768_v45 = vld [vmem:[#allocation12 + $0x80] sm:$0xff] }
0x13c6   :  { %v5520_v18 = vrot.slane %v5450_v63, %v9408_v6  ;;  %v5812_v63 = vld [vmem:[#allocation12 + $0x1e0] sm:$0xff] }
0x13c7   :  { %v5507_v50 = vsel %vm643_vm0, %v5506_v2, %v5502_v58 }
0x13c8   :  { %v5447_v52 = vpop.permute.xlu1 %5446  ;;  %v5530_v4 = vsel %vm716_vm5, %v5507_v50, %v5529_v14  ;;  %v5808_v50 = vld [vmem:[#allocation12 + $0x1c0] sm:$0xff]  ;;  %v5806_v14 = vld [vmem:[#allocation12 + $0x1b0] sm:$0xff] }
0x13c9   :  { %v5515_v1 = vrot.slane %v5447_v52, %v9414_v9 }
0x13cb   :  { %v5516_v33 = vsel %vm643_vm0, %v5515_v1, %v5511_v41 }
0x13cc   :  { %v5453_v38 = vpop.permute.xlu1 %5452  ;;  %v5531_v46 = vsel %vm718_vm6, %v5516_v33, %v5530_v4  ;;  %v5807_v33 = vld [vmem:[#allocation12 + $0x1b8] sm:$0xff]  ;;  %v5800_v4 = vld [vmem:[#allocation12 + $0x180] sm:$0xff] }
0x13cd   :  { %v5524_v16 = vrot.slane %v5453_v38, %v9414_v9  ;;  %v5804_v38 = vld [vmem:[#allocation12 + $0x1a0] sm:$0xff] }
0x13cf   :  { %v5525_v56 = vsel %vm643_vm0, %v5524_v16, %v5520_v18  ;;  %v5801_v18 = vld [vmem:[#allocation12 + $0x188] sm:$0xff]  ;;  %v5803_v16 = vld [vmem:[#allocation12 + $0x198] sm:$0xff] }
0x13d0   :  { %v5532_v32 = vsel %vm720_vm7, %v5525_v56, %v5531_v46  ;;  %v5802_v56 = vld [vmem:[#allocation12 + $0x190] sm:$0xff]  ;;  %v5797_v46 = vld [vmem:[#allocation12 + $0x168] sm:$0xff] }
0x13d1   :  { %v5534_v53 = vsel %vm723_vm8, %v5532_v32, 0.0  ;;  %v5796_v32 = vld [vmem:[#allocation12 + $0x160] sm:$0xff] }
0x13d2   :  { %5535 = vadd.xlane.f32.xlu0 %v5534_v53  ;;  %v5793_v53 = vld [vmem:[#allocation12 + $0x148] sm:$0xff] }
0x145b   :  { %v5536_v3 = vpop.xlane.xlu0 %5535 }
0x145c   :  { %8916 = vrcp.f32 %v5536_v3  ;;  %v5795_v3 = vld [vmem:[#allocation12 + $0x158] sm:$0xff] }
0x1469   :  { %v8917_v60 = vpop.eup %8916 }
0x146a   :  { %v5558_v51 = vrot.slane %v8917_v60, %v9551_v34  ;;  %v5542_v44 = vrot.slane %v8917_v60, %v9417_v11  ;;  %v5570_v2 = vrot.slane %v8917_v60, %v11659_v17  ;;  %v5546_v52 = vrot.slane %v8917_v60, %v9514_v55 }
0x146c   :  { %v5587_v47 = vmul.f32 %v10906_v28, %v5558_v51  ;;  %v5579_v13 = vmul.f32 %v10880_v26, %v5542_v44  ;;  %v5593_v12 = vmul.f32 %v10924_v35, %v5570_v2  ;;  %v5580_v27 = vmul.f32 %v10884_v31, %v5542_v44  ;;  %v5789_v44 = vld [vmem:[#allocation12 + $0x128] sm:$0xff] }
0x146d   :  { %v5581_v24 = vmul.f32 %v10889_v30, %v5546_v52  ;;  %v5582_v58 = vmul.f32 %v10897_v25, %v5546_v52  ;;  %v5550_v28 = vrot.slane %v8917_v60, %v9524_v62  ;;  %v5554_v35 = vrot.slane %v8917_v60, %v9542_v23  ;;  %v5784_v52 = vld [vmem:[#allocation12 + $0x100] sm:$0xff] }
0x146e   :  { %5637 = vperm.xlu0 %8706, %v5587_v47   ;;  %5597 = vperm.xlu1 %8705, %v5579_v13   ;;  %v5588_v30 = vmul.f32 %v10916_v19, %v5558_v51  ;;  %v5562_v25 = vrot.slane %v8917_v60, %v9519_v59  ;;  %v5809_v19 = vld [vmem:[#allocation12 + $0x1c8] sm:$0xff]  ;;  %v5794_v51 = vld [vmem:[#allocation12 + $0x150] sm:$0xff]  ;;  %v5791_v47 = vld [vmem:[#allocation12 + $0x138] sm:$0xff] }
0x146f   :  { %v5583_v26 = vmul.f32 %v10892_v48, %v5550_v28  ;;  %v5584_v57 = vmul.f32 %v10904_v22, %v5550_v28  ;;  %v5585_v31 = vmul.f32 %v10899_v21, %v5554_v35  ;;  %v5586_v1 = vmul.f32 %v10910_v29, %v5554_v35  ;;  %v5813_v21 = vld [vmem:[#allocation12 + $0x1e8] sm:$0xff]  ;;  %v5814_v29 = vld [vmem:[#allocation12 + $0x1f0] sm:$0xff]  ;;  %v5788_v13 = vld [vmem:[#allocation12 + $0x120] sm:$0xff] }
0x1470   :  { %v5589_v43 = vmul.f32 %v10912_v10, %v5562_v25  ;;  %v5590_v48 = vmul.f32 %v10922_v49, %v5562_v25  ;;  %v5566_v22 = vrot.slane %v8917_v60, %v9528_v0  ;;  %5832 = vmatprep.subr.mxu0 %v5813_v21  ;;  %v5810_v10 = vld [vmem:[#allocation12 + $0x1d0] sm:$0xff]  ;;  %5904 = vmatpush1.msra.mxu1 %v5814_v29  ;;  %v5792_v60 = vld [vmem:[#allocation12 + $0x140] sm:$0xff]  ;;  %v5783_v28 = vld [vmem:[#allocation12 + $0xf8] sm:$0xff] }
0x1471   :  { %5833 = vmatpush1.msra.mxu0 %v5812_v63  ;;  %5905 = vmatprep.subr.mxu1 %v5811_v54  ;;  %v5777_v35 = vld [vmem:[#allocation12 + $0xc8] sm:$0xff]  ;;  %v5771_v21 = vld [vmem:[#allocation12 + $0x98] sm:$0xff]  ;;  %v5770_v63 = vld [vmem:[#allocation12 + $0x90] sm:$0xff] }
0x1472   :  { %5667 = vperm.xlu0 %8706, %v5593_v12   ;;  %5602 = vperm.xlu1 %8705, %v5580_v27   ;;  %v5591_v41 = vmul.f32 %v10918_v40, %v5566_v22  ;;  %v5592_v49 = vmul.f32 %v10928_v37, %v5566_v22  ;;  %v5594_v40 = vmul.f32 %v10931_v36, %v5570_v2  ;;  %v5799_v37 = vld [vmem:[#allocation12 + $0x178] sm:$0xff]  ;;  %v5798_v36 = vld [vmem:[#allocation12 + $0x170] sm:$0xff]  ;;  %v5785_v12 = vld [vmem:[#allocation12 + $0x108] sm:$0xff] }
0x1473   :  { %5834 = vmatprep.subr.mxu0 %v5809_v19  ;;  %5906 = vmatpush1.msra.mxu1 %v5810_v10  ;;  %v5790_v2 = vld [vmem:[#allocation12 + $0x130] sm:$0xff]  ;;  %v5787_v27 = vld [vmem:[#allocation12 + $0x118] sm:$0xff]  ;;  %v5773_v25 = vld [vmem:[#allocation12 + $0xa8] sm:$0xff] }
0x1474   :  { %5835 = vmatpush1.msra.mxu0 %v5808_v50  ;;  %5907 = vmatprep.subr.mxu1 %v5807_v33  ;;  %v5774_v22 = vld [vmem:[#allocation12 + $0xb0] sm:$0xff]  ;;  %v5765_v29 = vld [vmem:[#allocation12 + $0x68] sm:$0xff]  ;;  %v5767_v19 = vld [vmem:[#allocation12 + $0x78] sm:$0xff] }
0x1475   :  { %5836 = vmatprep.subr.mxu0 %v5805_v15  ;;  %5908 = vmatpush1.msra.mxu1 %v5806_v14  ;;  %v5764_v54 = vld [vmem:[#allocation12 + $0x60] sm:$0xff]  ;;  %v5766_v50 = vld [vmem:[#allocation12 + $0x70] sm:$0xff]  ;;  %v5761_v10 = vld [vmem:[#allocation12 + $0x48] sm:$0xff] }
0x1476   :  { %5607 = vperm.xlu1 %8705, %v5581_v24   ;;  %5837 = vmatpush1.msra.mxu0 %v5804_v38  ;;  %v5786_v24 = vld [vmem:[#allocation12 + $0x110] sm:$0xff]  ;;  %v5757_v33 = vld [vmem:[#allocation12 + $0x28] sm:$0xff]  ;;  %v5759_v38 = vld [vmem:[#allocation12 + $0x38] sm:$0xff] }
0x1477   :  { %5838 = vmatprep.subr.mxu0 %v5801_v18  ;;  %5909 = vmatprep.subr.mxu1 %v5803_v16  ;;  %v5762_v15 = vld [vmem:[#allocation12 + $0x50] sm:$0xff]  ;;  %v5756_v14 = vld [vmem:[#allocation12 + $0x20] sm:$0xff]  ;;  %v5753_v16 = vld [vmem:[#allocation12 + $0x8] sm:$0xff] }
0x1478   :  { %5839 = vmatpush1.msra.mxu0 %v5800_v4  ;;  %5910 = vmatpush1.msra.mxu1 %v5802_v56  ;;  %v5758_v18 = vld [vmem:[#allocation12 + $0x30] sm:$0xff]  ;;  %v5755_v4 = vld [vmem:[#allocation12 + $0x18] sm:$0xff]  ;;  %v5752_v56 = vld [vmem:[#allocation12] sm:$0xff] }
0x1479   :  { %5840 = vmatprep.subr.mxu0 %v5797_v46  ;;  %5911 = vmatprep.subr.mxu1 %v5799_v37  ;;  %v5754_v46 = vld [vmem:[#allocation12 + $0x10] sm:$0xff]  ;;  %v6039_v37 = vld [vmem:[#allocation13 + $0x1e8] sm:$0xff] }
0x147a   :  { %5612 = vperm.xlu1 %8705, %v5582_v58   ;;  %5841 = vmatpush1.msra.mxu0 %v5796_v32  ;;  %v5781_v58 = vld [vmem:[#allocation12 + $0xe8] sm:$0xff]  ;;  %v6041_v32 = vld [vmem:[#allocation13 + $0x1f8] sm:$0xff] }
0x147b   :  { %5912 = vmatpush1.msra.mxu1 %v5798_v36  ;;  %5842 = vmatprep.subr.mxu0 %v5793_v53 }
0x147c   :  { %5913 = vmatprep.subr.mxu1 %v5795_v3  ;;  %5843 = vmatpush1.msra.mxu0 %v5792_v60 }
0x147d   :  { %5914 = vmatpush1.msra.mxu1 %v5794_v51  ;;  %5844 = vmatprep.subr.mxu0 %v5789_v44 }
0x147e   :  { %5617 = vperm.xlu1 %8705, %v5583_v26   ;;  %5915 = vmatprep.subr.mxu1 %v5791_v47  ;;  %v5780_v26 = vld [vmem:[#allocation12 + $0xe0] sm:$0xff] }
0x147f   :  { %5845 = vmatpush1.msra.mxu0 %v5788_v13  ;;  %5916 = vmatpush1.msra.mxu1 %v5790_v2  ;;  %v10990_v2 = vld [vmem:[#allocation7 + $0x18] sm:$0xff] }
0x1480   :  { %5846 = vmatprep.subr.mxu0 %v5785_v12  ;;  %5917 = vmatprep.subr.mxu1 %v5787_v27  ;;  %v10993_v27 = vld [vmem:[#allocation7 + $0x28] sm:$0xff] }
0x1481   :  { %5847 = vmatpush1.msra.mxu0 %v5784_v52  ;;  %5918 = vmatpush1.msra.mxu1 %v5786_v24 }
0x1482   :  { %5622 = vperm.xlu1 %8705, %v5584_v57   ;;  %v5782_v57 = vld [vmem:[#allocation12 + $0xf0] sm:$0xff]  ;;  %5848 = vmatprep.subr.mxu0 %v5781_v58 }
0x1483   :  { %5919 = vmatprep.subr.mxu1 %v5783_v28  ;;  %5849 = vmatpush1.msra.mxu0 %v5780_v26  ;;  %v10996_v28 = vld [vmem:[#allocation7 + $0x8] sm:$0xff] }
0x1484   :  { %5920 = vmatpush1.msra.mxu1 %v5782_v57  ;;  %5850 = vmatprep.subr.mxu0 %v5777_v35  ;;  %v10999_v57 = vld [vmem:[#allocation7 + $0x10] sm:$0xff] }
0x1486   :  { %5627 = vperm.xlu1 %8705, %v5585_v31   ;;  %v5779_v31 = vld [vmem:[#allocation12 + $0xd8] sm:$0xff] }
0x1487   :  { %5921 = vmatprep.subr.mxu1 %v5779_v31  ;;  %v11002_v31 = vld [vmem:[#allocation7 + $0x38] sm:$0xff] }
0x148a   :  { %5632 = vperm.xlu1 %8705, %v5586_v1   ;;  %v5776_v1 = vld [vmem:[#allocation12 + $0xc0] sm:$0xff] }
0x148b   :  { %5851 = vmatpush1.msra.mxu0 %v5776_v1 }
0x148c   :  { %5852 = vmatprep.subr.mxu0 %v5773_v25 }
0x148e   :  { %5642 = vperm.xlu1 %8705, %v5588_v30   ;;  %v5778_v30 = vld [vmem:[#allocation12 + $0xd0] sm:$0xff] }
0x148f   :  { %5922 = vmatpush1.msra.mxu1 %v5778_v30  ;;  %v11005_v30 = vld [vmem:[#allocation7 + $0x20] sm:$0xff] }
0x1492   :  { %5647 = vperm.xlu1 %8705, %v5589_v43   ;;  %v5775_v43 = vld [vmem:[#allocation12 + $0xb8] sm:$0xff] }
0x1493   :  { %5923 = vmatprep.subr.mxu1 %v5775_v43  ;;  %v11008_v43 = vld [vmem:[#allocation7 + $0x48] sm:$0xff] }
0x1494   :  { %5924 = vmatpush1.msra.mxu1 %v5774_v22  ;;  %v11011_v22 = vld [vmem:[#allocation7] sm:$0xff] }
0x1495   :  { %5925 = vmatprep.subr.mxu1 %v5771_v21 }
0x1496   :  { %5652 = vperm.xlu1 %8705, %v5590_v48   ;;  %v5772_v48 = vld [vmem:[#allocation12 + $0xa0] sm:$0xff]  ;;  %5926 = vmatpush1.msra.mxu1 %v5770_v63 }
0x1497   :  { %5853 = vmatpush1.msra.mxu0 %v5772_v48  ;;  %5927 = vmatprep.subr.mxu1 %v5767_v19 }
0x1498   :  { %5928 = vmatpush1.msra.mxu1 %v5766_v50 }
0x149a   :  { %5657 = vperm.xlu1 %8705, %v5591_v41   ;;  %v5769_v41 = vld [vmem:[#allocation12 + $0x88] sm:$0xff] }
0x149b   :  { %5854 = vmatprep.subr.mxu0 %v5769_v41 }
0x149c   :  { %5855 = vmatpush1.msra.mxu0 %v5768_v45  ;;  %v11014_v45 = vld [vmem:[#allocation7 + $0x30] sm:$0xff] }
0x149d   :  { %5856 = vmatprep.subr.mxu0 %v5765_v29  ;;  %v11017_v29 = vld [vmem:[#allocation7 + $0x40] sm:$0xff] }
0x149e   :  { %5662 = vperm.xlu1 %8705, %v5592_v49   ;;  %v5763_v49 = vld [vmem:[#allocation12 + $0x58] sm:$0xff]  ;;  %5857 = vmatpush1.msra.mxu0 %v5764_v54 }
0x149f   :  { %5858 = vmatprep.subr.mxu0 %v5761_v10  ;;  %5929 = vmatprep.subr.mxu1 %v5763_v49 }
0x14a0   :  { %5930 = vmatpush1.msra.mxu1 %v5762_v15 }
0x14a1   :  { %5931 = vmatprep.subr.mxu1 %v5759_v38 }
0x14a2   :  { %5672 = vperm.xlu1 %8705, %v5594_v40   ;;  %v5760_v40 = vld [vmem:[#allocation12 + $0x40] sm:$0xff]  ;;  %5932 = vmatpush1.msra.mxu1 %v5758_v18 }
0x14a3   :  { %5859 = vmatpush1.msra.mxu0 %v5760_v40  ;;  %5933 = vmatprep.subr.mxu1 %v5755_v4 }
0x14a4   :  { %5860 = vmatprep.subr.mxu0 %v5757_v33  ;;  %5934 = vmatpush1.msra.mxu1 %v5754_v46 }
0x14a5   :  { %5861 = vmatpush1.msra.mxu0 %v5756_v14  ;;  %6113 = vmatprep.subr.mxu1 %v6041_v32 }
0x14a6   :  { %5862 = vmatprep.subr.mxu0 %v5753_v16  ;;  %v11020_v16 = vld [vmem:[#allocation7 + $0x50] sm:$0xff] }
0x14a7   :  { %5863 = vmatpush1.msra.mxu0 %v5752_v56  ;;  %v11023_v56 = vld [vmem:[#allocation7 + $0x58] sm:$0xff] }
0x14a8   :  { %6042 = vmatprep.subr.mxu0 %v6039_v37 }
0x14e9   :  { %v5598_v36 = vpop.permute.xlu1 %5597  ;;  %v5638_v58 = vpop.permute.xlu0 %5637 }
0x14ea   :  { %v5675_v41 = vmul.f32 %v11011_v22, %v5598_v36  ;;  %v5683_v19 = vmul.f32 %v11017_v29, %v5638_v58 }
0x14ed   :  { %v5603_v53 = vpop.permute.xlu1 %5602  ;;  %v5668_v58 = vpop.permute.xlu0 %5667 }
0x14ee   :  { %v5676_v26 = vmul.f32 %v10996_v28, %v5603_v53 }
0x14f0   :  { %v5691_v10 = vadd.f32 %v5676_v26, %v5675_v41 }
0x14f1   :  { %v5608_v3 = vpop.permute.xlu1 %5607 }
0x14f2   :  { %v5677_v35 = vmul.f32 %v10999_v57, %v5608_v3  ;;  %v5692_v14 = vrot.slane %v5691_v10, 4 }
0x14f5   :  { %v5613_v60 = vpop.permute.xlu1 %5612 }
0x14f6   :  { %v5678_v12 = vmul.f32 %v10990_v2, %v5613_v60  ;;  %v5693_v60 = vadd.f32 %v5692_v14, %v5691_v10  ;;  %v11035_v14 = vld [vmem:[#allocation7 + $0x78] sm:$0xff] }
0x14f8   :  { %v5698_v21 = vadd.f32 %v5678_v12, %v5677_v35  ;;  %v5694_v26 = vrot.slane %v5693_v60, 2 }
0x14f9   :  { %v5618_v51 = vpop.permute.xlu1 %5617 }
0x14fa   :  { %v5679_v25 = vmul.f32 %v11005_v30, %v5618_v51  ;;  %v5699_v15 = vrot.slane %v5698_v21, 4 }
0x14fc   :  { %v5700_v32 = vadd.f32 %v5699_v15, %v5698_v21  ;;  %v5695_v15 = vadd.f32 %v5694_v26, %v5693_v60 }
0x14fd   :  { %v5623_v44 = vpop.permute.xlu1 %5622 }
0x14fe   :  { %v5680_v52 = vmul.f32 %v10993_v27, %v5623_v44 }
0x1500   :  { %v5705_v54 = vadd.f32 %v5680_v52, %v5679_v25 }
0x1501   :  { %v5628_v47 = vpop.permute.xlu1 %5627 }
0x1502   :  { %v5681_v63 = vmul.f32 %v11014_v45, %v5628_v47  ;;  %v5706_v33 = vrot.slane %v5705_v54, 4 }
0x1504   :  { %v5707_v53 = vadd.f32 %v5706_v33, %v5705_v54 }
0x1505   :  { %v5633_v13 = vpop.permute.xlu1 %5632 }
0x1506   :  { %v5682_v1 = vmul.f32 %v11002_v31, %v5633_v13  ;;  %v5701_v13 = vrot.slane %v5700_v32, 2  ;;  %v5708_v52 = vrot.slane %v5707_v53, 2 }
0x1508   :  { %v5712_v49 = vadd.f32 %v5682_v1, %v5681_v63  ;;  %v11026_v1 = vld [vmem:[#allocation7 + $0x60] sm:$0xff]  ;;  %v5702_v63 = vadd.f32 %v5701_v13, %v5700_v32 }
0x1509   :  { %v5643_v24 = vpop.permute.xlu1 %5642 }
0x150a   :  { %v5684_v48 = vmul.f32 %v11008_v43, %v5643_v24  ;;  %v5713_v18 = vrot.slane %v5712_v49, 4 }
0x150c   :  { %v5719_v40 = vadd.f32 %v5684_v48, %v5683_v19  ;;  %v5714_v51 = vadd.f32 %v5713_v18, %v5712_v49  ;;  %v11029_v48 = vld [vmem:[#allocation7 + $0x68] sm:$0xff]  ;;  %v5709_v49 = vadd.f32 %v5708_v52, %v5707_v53 }
0x150d   :  { %v5648_v50 = vpop.permute.xlu1 %5647 }
0x150e   :  { %v5685_v4 = vmul.f32 %v11020_v16, %v5648_v50  ;;  %v5720_v37 = vrot.slane %v5719_v40, 4  ;;  %v5715_v35 = vrot.slane %v5714_v51, 2  ;;  %v11032_v50 = vld [vmem:[#allocation7 + $0x70] sm:$0xff] }
0x150f   :  { %v5689_v10 = vmul.f32 %v11032_v50, %v5668_v58 }
0x1510   :  { %v5721_v47 = vadd.f32 %v5720_v37, %v5719_v40  ;;  %v5716_v33 = vadd.f32 %v5715_v35, %v5714_v51 }
0x1511   :  { %v5653_v38 = vpop.permute.xlu1 %5652 }
0x1512   :  { %v5686_v46 = vmul.f32 %v11023_v56, %v5653_v38  ;;  %v5722_v21 = vrot.slane %v5721_v47, 2  ;;  %v5717_v13 = vrot.slane %v5716_v33, 1 }
0x1514   :  { %v5726_v36 = vadd.f32 %v5686_v46, %v5685_v4  ;;  %v5723_v4 = vadd.f32 %v5722_v21, %v5721_v47  ;;  %v5703_v46 = vrot.slane %v5702_v63, 1 }
0x1515   :  { %v5658_v3 = vpop.permute.xlu1 %5657 }
0x1516   :  { %v5727_v44 = vrot.slane %v5726_v36, 4  ;;  %v5687_v25 = vmul.f32 %v11026_v1, %v5658_v3  ;;  %v5710_v3 = vrot.slane %v5709_v49, 1  ;;  %v5724_v58 = vrot.slane %v5723_v4, 1 }
0x1517   :  { %v5704_v53 = vadd.f32 %v5703_v46, %v5702_v63 }
0x1518   :  { %v5728_v12 = vadd.f32 %v5727_v44, %v5726_v36  ;;  %v5696_v44 = vrot.slane %v5695_v15, 1  ;;  %v5711_v26 = vadd.f32 %v5710_v3, %v5709_v49  ;;  %v5725_v47 = vadd.f32 %v5724_v58, %v5723_v4  ;;  %v6034_v3 = vld [vmem:[#allocation13 + $0x1c0] sm:$0xff]  ;;  %v6027_v58 = vld [vmem:[#allocation13 + $0x188] sm:$0xff] }
0x1519   :  { %v5663_v24 = vpop.permute.xlu1 %5662 }
0x151a   :  { %v5688_v41 = vmul.f32 %v11029_v48, %v5663_v24  ;;  %v5729_v19 = vrot.slane %v5728_v12, 2  ;;  %v5697_v35 = vadd.f32 %v5696_v44, %v5695_v15  ;;  %v6031_v44 = vld [vmem:[#allocation13 + $0x1a8] sm:$0xff] }
0x151c   :  { %v5733_v54 = vadd.f32 %v5688_v41, %v5687_v25  ;;  %v5730_v37 = vadd.f32 %v5729_v19, %v5728_v12  ;;  %v5718_v41 = vadd.f32 %v5717_v13, %v5716_v33  ;;  %v5824_v12 = vsel %vm708_vm1, %v5704_v53, %v5697_v35  ;;  %v6038_v33 = vld [vmem:[#allocation13 + $0x1e0] sm:$0xff]  ;;  %v6033_v13 = vld [vmem:[#allocation13 + $0x1b8] sm:$0xff] }
0x151d   :  { %v5673_v40 = vpop.permute.xlu1 %5672  ;;  %v6029_v53 = vld [vmem:[#allocation13 + $0x198] sm:$0xff]  ;;  %v6022_v35 = vld [vmem:[#allocation13 + $0x160] sm:$0xff] }
0x151e   :  { %v5734_v38 = vrot.slane %v5733_v54, 4  ;;  %v5690_v18 = vmul.f32 %v11035_v14, %v5673_v40  ;;  %v5731_v52 = vrot.slane %v5730_v37, 1 }
0x1520   :  { %v5735_v36 = vadd.f32 %v5734_v38, %v5733_v54  ;;  %v5740_v32 = vadd.f32 %v5690_v18, %v5689_v10  ;;  %v5732_v21 = vadd.f32 %v5731_v52, %v5730_v37  ;;  %v5825_v54 = vsel %vm710_vm2, %v5711_v26, %v5824_v12  ;;  %v6037_v37 = vld [vmem:[#allocation13 + $0x1d8] sm:$0xff]  ;;  %v6026_v52 = vld [vmem:[#allocation13 + $0x180] sm:$0xff] }
0x1521   :  { %v5826_v18 = vsel %vm712_vm3, %v5718_v41, %v5825_v54  ;;  %v6025_v26 = vld [vmem:[#allocation13 + $0x178] sm:$0xff]  ;;  %v6024_v41 = vld [vmem:[#allocation13 + $0x170] sm:$0xff]  ;;  %v6018_v12 = vld [vmem:[#allocation13 + $0x140] sm:$0xff] }
0x1522   :  { %v5736_v24 = vrot.slane %v5735_v36, 2  ;;  %v5741_v25 = vrot.slane %v5740_v32, 4  ;;  %v5827_v63 = vsel %vm714_vm4, %v5725_v47, %v5826_v18  ;;  %v6021_v47 = vld [vmem:[#allocation13 + $0x158] sm:$0xff]  ;;  %v6011_v18 = vld [vmem:[#allocation13 + $0x108] sm:$0xff] }
0x1523   :  { %v5828_v49 = vsel %vm716_vm5, %v5732_v21, %v5827_v63  ;;  %v6020_v21 = vld [vmem:[#allocation13 + $0x150] sm:$0xff]  ;;  %v6017_v54 = vld [vmem:[#allocation13 + $0x138] sm:$0xff] }
0x1524   :  { %v5737_v60 = vadd.f32 %v5736_v24, %v5735_v36  ;;  %v5742_v51 = vadd.f32 %v5741_v25, %v5740_v32  ;;  %v6040_v36 = vld [vmem:[#allocation13 + $0x1f0] sm:$0xff]  ;;  %v6035_v32 = vld [vmem:[#allocation13 + $0x1c8] sm:$0xff]  ;;  %v6030_v24 = vld [vmem:[#allocation13 + $0x1a0] sm:$0xff] }
0x1525   :  { %v6032_v25 = vld [vmem:[#allocation13 + $0x1b0] sm:$0xff]  ;;  %v6013_v63 = vld [vmem:[#allocation13 + $0x118] sm:$0xff] }
0x1526   :  { %v5738_v5 = vrot.slane %v5737_v60, 1  ;;  %v5743_v40 = vrot.slane %v5742_v51, 2 }
0x1528   :  { %v5744_v19 = vadd.f32 %v5743_v40, %v5742_v51  ;;  %v5739_v10 = vadd.f32 %v5738_v5, %v5737_v60  ;;  %v6036_v5 = vld [vmem:[#allocation13 + $0x1d0] sm:$0xff]  ;;  %v6023_v51 = vld [vmem:[#allocation13 + $0x168] sm:$0xff] }
0x1529   :  { %v6028_v60 = vld [vmem:[#allocation13 + $0x190] sm:$0xff]  ;;  %v6019_v40 = vld [vmem:[#allocation13 + $0x148] sm:$0xff] }
0x152a   :  { %v5745_v38 = vrot.slane %v5744_v19, 1  ;;  %v5829_v15 = vsel %vm718_vm6, %v5739_v10, %v5828_v49  ;;  %v6014_v10 = vld [vmem:[#allocation13 + $0x120] sm:$0xff]  ;;  %v6012_v49 = vld [vmem:[#allocation13 + $0x110] sm:$0xff] }
0x152c   :  { %v5746_v46 = vadd.f32 %v5745_v38, %v5744_v19  ;;  %v6015_v19 = vld [vmem:[#allocation13 + $0x128] sm:$0xff]  ;;  %v6016_v38 = vld [vmem:[#allocation13 + $0x130] sm:$0xff] }
0x152e   :  { %v5830_v4 = vsel %vm720_vm7, %v5746_v46, %v5829_v15  ;;  %v6010_v46 = vld [vmem:[#allocation13 + $0x100] sm:$0xff]  ;;  %v6007_v15 = vld [vmem:[#allocation13 + $0xe8] sm:$0xff] }
0x152f   :  { %5897 = vmatmul.mubr.f32.vlgmr.msra.gmra.mxu0 %v5830_v4  ;;  %5968 = vmatmul.mubr.f32.vlgmr.msra.gmra.mxu1 %v5830_v4  ;;  %v6008_v4 = vld [vmem:[#allocation13 + $0xf0] sm:$0xff] }
0x1530   :  { %6043 = vmatpush1.msra.mxu0 %v6038_v33  ;;  %6114 = vmatpush1.msra.mxu1 %v6040_v36  ;;  %v6009_v33 = vld [vmem:[#allocation13 + $0xf8] sm:$0xff]  ;;  %v6006_v36 = vld [vmem:[#allocation13 + $0xe0] sm:$0xff] }
0x1531   :  { %6044 = vmatprep.subr.mxu0 %v6035_v32  ;;  %6115 = vmatprep.subr.mxu1 %v6037_v37  ;;  %v6003_v32 = vld [vmem:[#allocation13 + $0xc8] sm:$0xff]  ;;  %v6005_v37 = vld [vmem:[#allocation13 + $0xd8] sm:$0xff] }
0x1532   :  { %6045 = vmatpush1.msra.mxu0 %v6034_v3  ;;  %6116 = vmatpush1.msra.mxu1 %v6036_v5  ;;  %v6002_v3 = vld [vmem:[#allocation13 + $0xc0] sm:$0xff]  ;;  %v6004_v5 = vld [vmem:[#allocation13 + $0xd0] sm:$0xff] }
0x1533   :  { %6046 = vmatprep.subr.mxu0 %v6031_v44  ;;  %6117 = vmatprep.subr.mxu1 %v6033_v13  ;;  %v5999_v44 = vld [vmem:[#allocation13 + $0xa8] sm:$0xff]  ;;  %v6001_v13 = vld [vmem:[#allocation13 + $0xb8] sm:$0xff] }
0x1534   :  { %6047 = vmatpush1.msra.mxu0 %v6030_v24  ;;  %6118 = vmatpush1.msra.mxu1 %v6032_v25  ;;  %v5998_v24 = vld [vmem:[#allocation13 + $0xa0] sm:$0xff]  ;;  %v6000_v25 = vld [vmem:[#allocation13 + $0xb0] sm:$0xff] }
0x1535   :  { %6048 = vmatprep.subr.mxu0 %v6027_v58  ;;  %6119 = vmatprep.subr.mxu1 %v6029_v53  ;;  %v5995_v58 = vld [vmem:[#allocation13 + $0x88] sm:$0xff]  ;;  %v5997_v53 = vld [vmem:[#allocation13 + $0x98] sm:$0xff] }
0x1536   :  { %6049 = vmatpush1.msra.mxu0 %v6026_v52  ;;  %6120 = vmatpush1.msra.mxu1 %v6028_v60  ;;  %v5994_v52 = vld [vmem:[#allocation13 + $0x80] sm:$0xff]  ;;  %v5996_v60 = vld [vmem:[#allocation13 + $0x90] sm:$0xff] }
0x1537   :  { %6050 = vmatprep.subr.mxu0 %v6023_v51  ;;  %6121 = vmatprep.subr.mxu1 %v6025_v26  ;;  %v5991_v51 = vld [vmem:[#allocation13 + $0x68] sm:$0xff]  ;;  %v5993_v26 = vld [vmem:[#allocation13 + $0x78] sm:$0xff] }
0x1538   :  { %6051 = vmatpush1.msra.mxu0 %v6022_v35  ;;  %6122 = vmatpush1.msra.mxu1 %v6024_v41  ;;  %v5990_v35 = vld [vmem:[#allocation13 + $0x60] sm:$0xff]  ;;  %v5992_v41 = vld [vmem:[#allocation13 + $0x70] sm:$0xff] }
0x1539   :  { %6052 = vmatprep.subr.mxu0 %v6019_v40  ;;  %6123 = vmatprep.subr.mxu1 %v6021_v47  ;;  %v5987_v40 = vld [vmem:[#allocation13 + $0x48] sm:$0xff]  ;;  %v5989_v47 = vld [vmem:[#allocation13 + $0x58] sm:$0xff] }
0x153a   :  { %6053 = vmatpush1.msra.mxu0 %v6018_v12  ;;  %6124 = vmatpush1.msra.mxu1 %v6020_v21  ;;  %v5986_v12 = vld [vmem:[#allocation13 + $0x40] sm:$0xff]  ;;  %v5988_v21 = vld [vmem:[#allocation13 + $0x50] sm:$0xff] }
0x153b   :  { %6054 = vmatprep.subr.mxu0 %v6015_v19  ;;  %6125 = vmatprep.subr.mxu1 %v6017_v54  ;;  %v5983_v19 = vld [vmem:[#allocation13 + $0x28] sm:$0xff]  ;;  %v5985_v54 = vld [vmem:[#allocation13 + $0x38] sm:$0xff] }
0x153c   :  { %6055 = vmatpush1.msra.mxu0 %v6014_v10  ;;  %6126 = vmatpush1.msra.mxu1 %v6016_v38  ;;  %v5982_v10 = vld [vmem:[#allocation13 + $0x20] sm:$0xff]  ;;  %v5984_v38 = vld [vmem:[#allocation13 + $0x30] sm:$0xff] }
0x153d   :  { %6056 = vmatprep.subr.mxu0 %v6011_v18  ;;  %6127 = vmatprep.subr.mxu1 %v6013_v63  ;;  %v5979_v18 = vld [vmem:[#allocation13 + $0x8] sm:$0xff]  ;;  %v5981_v63 = vld [vmem:[#allocation13 + $0x18] sm:$0xff] }
0x153e   :  { %6057 = vmatpush1.msra.mxu0 %v6010_v46  ;;  %6128 = vmatpush1.msra.mxu1 %v6012_v49  ;;  %v5978_v46 = vld [vmem:[#allocation13] sm:$0xff]  ;;  %v5980_v49 = vld [vmem:[#allocation13 + $0x10] sm:$0xff] }
0x153f   :  { %6058 = vmatprep.subr.mxu0 %v6007_v15  ;;  %6129 = vmatprep.subr.mxu1 %v6009_v33 }
0x1540   :  { %6059 = vmatpush1.msra.mxu0 %v6006_v36  ;;  %6130 = vmatpush1.msra.mxu1 %v6008_v4  ;;  %v11670_v4 = vld [vmem:[#allocation27_spill] sm:$0xff] }
0x1541   :  { %6060 = vmatprep.subr.mxu0 %v6003_v32  ;;  %6131 = vmatprep.subr.mxu1 %v6005_v37 }
0x1542   :  { %6061 = vmatpush1.msra.mxu0 %v6002_v3  ;;  %6132 = vmatpush1.msra.mxu1 %v6004_v5  ;;  %v11671_v5 = vld [vmem:[#allocation28_spill] sm:$0xff] }
0x1543   :  { %6062 = vmatprep.subr.mxu0 %v5999_v44  ;;  %6133 = vmatprep.subr.mxu1 %v6001_v13 }
0x1544   :  { %6063 = vmatpush1.msra.mxu0 %v5998_v24  ;;  %6134 = vmatpush1.msra.mxu1 %v6000_v25 }
0x1545   :  { %6064 = vmatprep.subr.mxu0 %v5995_v58  ;;  %6135 = vmatprep.subr.mxu1 %v5997_v53  ;;  %v11672_v58 = vld [vmem:[#allocation38_spill] sm:$0xff] }
0x1546   :  { %6065 = vmatpush1.msra.mxu0 %v5994_v52  ;;  %6136 = vmatpush1.msra.mxu1 %v5996_v60 }
0x1547   :  { %6066 = vmatprep.subr.mxu0 %v5991_v51  ;;  %6137 = vmatprep.subr.mxu1 %v5993_v26 }
0x1548   :  { %6067 = vmatpush1.msra.mxu0 %v5990_v35  ;;  %6138 = vmatpush1.msra.mxu1 %v5992_v41  ;;  %v11673_v41 = vld [vmem:[#allocation39_spill] sm:$0xff] }
0x1549   :  { %6068 = vmatprep.subr.mxu0 %v5987_v40  ;;  %6139 = vmatprep.subr.mxu1 %v5989_v47 }
0x154a   :  { %6069 = vmatpush1.msra.mxu0 %v5986_v12  ;;  %6140 = vmatpush1.msra.mxu1 %v5988_v21 }
0x154b   :  { %6070 = vmatprep.subr.mxu0 %v5983_v19  ;;  %6141 = vmatprep.subr.mxu1 %v5985_v54 }
0x154c   :  { %6071 = vmatpush1.msra.mxu0 %v5982_v10  ;;  %6142 = vmatpush1.msra.mxu1 %v5984_v38 }
0x154d   :  { %6072 = vmatprep.subr.mxu0 %v5979_v18  ;;  %6143 = vmatprep.subr.mxu1 %v5981_v63 }
0x154e   :  { %6073 = vmatpush1.msra.mxu0 %v5978_v46  ;;  %6106 = vmatprep.mubr.f32.mxu0 %v11658_v7 }
0x154f   :  { %6144 = vmatpush1.msra.mxu1 %v5980_v49  ;;  %6177 = vmatprep.mubr.f32.mxu1 %v11658_v7 }
0x1550   :  { %6107 = vmatmul.mubr.f32.vlgmr.msra.gmra.mxu0 %v10763_v42  ;;  %6178 = vmatmul.mubr.f32.vlgmr.msra.gmra.mxu1 %v10763_v42 }
0x1551   :  { %7040 = vmatprep.mubr.f32.mxu0 %v11658_v7  ;;  %7111 = vmatprep.mubr.f32.mxu1 %v11658_v7 }
0x15ef   :  { %v5898_v15 = vpop.f32.mrf.mxu0  ;;  %v5969_v33 = vpop.f32.mrf.mxu1 }
0x15f0   :  { %v5974_v32 = vadd.f32 %v5898_v15, %v11670_v4  ;;  %v5976_v53 = vadd.f32 %v5969_v33, %v11672_v58 }
0x15f1   :  { %v5900_v36 = vpop.f32.mrf.mxu0  ;;  %v5971_v37 = vpop.f32.mrf.mxu1 }
0x15f2   :  { %v5975_v44 = vadd.f32 %v5900_v36, %v11671_v5  ;;  %v5977_v40 = vadd.f32 %v5971_v37, %v11673_v41 }
0x1610   :  { %v6108_v3 = vpop.f32.mrf.mxu0  ;;  %v6179_v24 = vpop.f32.mrf.mxu1 }
0x1611   :  { %v6184_v13 = vadd.f32 %v6108_v3, %v5974_v32  ;;  %v6186_v51 = vadd.f32 %v6179_v24, %v5976_v53 }
0x1612   :  { %v6110_v25 = vpop.f32.mrf.mxu0  ;;  %v6181_v35 = vpop.f32.mrf.mxu1 }
0x1613   :  { %v6188_v52 = vmul.f32 0.5, %v6184_v13  ;;  %v6185_v60 = vadd.f32 %v6110_v25, %v5975_v44  ;;  %v6187_v47 = vadd.f32 %v6181_v35, %v5977_v40 }
0x1615   :  { %8918 = vtanh.f32 %v6188_v52  ;;  %v6192_v26 = vmul.f32 0.5, %v6185_v60  ;;  %v6197_v12 = vmul.f32 0.5, %v6187_v47 }
0x1617   :  { %8920 = vtanh.f32 %v6192_v26 }
0x1618   :  { %8922 = vtanh.f32 %v6186_v51 }
0x1619   :  { %8924 = vtanh.f32 %v6197_v12 }
0x1622   :  { %v8919_v21 = vpop.eup %8918 }
0x1623   :  { %v6190_v19 = vadd.f32 1.0, %v8919_v21 }
0x1624   :  { %v8921_v54 = vpop.eup %8920 }
0x1625   :  { %v6191_v10 = vmul.f32 0.5, %v6190_v19  ;;  %v6194_v38 = vadd.f32 1.0, %v8921_v54  ;;  %v8923_v18 = vpop.eup %8922 }
0x1626   :  { %v8925_v33 = vpop.eup %8924 }
0x1627   :  { %v6195_v63 = vmul.f32 0.5, %v6194_v38  ;;  %v6202_v46 = vmul.f32 %v8923_v18, %v6191_v10  ;;  %v6199_v36 = vadd.f32 1.0, %v8925_v33 }
0x1629   :  { %v6201_v49 = vmul.f32 %v6195_v63, %v10760_v20  ;;  %v6200_v4 = vmul.f32 0.5, %v6199_v36 }
0x162b   :  { %v11056_v15 = vadd.f32 %v6202_v46, %v6201_v49 }
0x162d   :  { %8926 = vtanh.f32 %v11056_v15 }
0x163a   :  { %v8927_v32 = vpop.eup %8926 }
0x163b   :  { %v11059_v37 = vmul.f32 %v8927_v32, %v6200_v4 }
0x163d   :  { %v6216_v3 = vrot.slane %v11059_v37, %v9411_v8  ;;  %v6209_v5 = vcombine.high %v11059_v37, %v11059_v37 }
0x163f   :  { %v6232_v44 = vrot.slane %v6216_v3, %v9411_v8  ;;  %v6224_v13 = vcombine.high %v6216_v3, %v6216_v3  ;;  %v6223_v20 = vrot.slane %v6209_v5, %v9411_v8 }
0x1641   :  { %v6261_v24 = vrot.slane %v6232_v44, %v9417_v11  ;;  %v6254_v25 = vcombine.high %v6232_v44, %v6232_v44  ;;  %v6246_v58 = vrot.slane %v6224_v13, %v9411_v8  ;;  %v6239_v53 = vrot.slane %v6223_v20, %v9411_v8 }
0x1642   :  { %v6225_v35 = vcombine.high %v6223_v20, %v6223_v20 }
0x1643   :  { %v6299_v52 = vmul.f32 %v10996_v28, %v6261_v24  ;;  %v6298_v60 = vmul.f32 %v11011_v22, %v6261_v24  ;;  %v6269_v51 = vrot.slane %v6254_v25, %v9417_v11  ;;  %v6265_v26 = vrot.slane %v6246_v58, %v9417_v11 }
0x1644   :  { %v6277_v47 = vrot.slane %v6239_v53, %v9417_v11  ;;  %v6256_v12 = vcombine.high %v6246_v58, %v6246_v58  ;;  %v6253_v19 = vrot.slane %v6225_v35, %v9411_v8  ;;  %v6255_v10 = vcombine.high %v6239_v53, %v6239_v53 }
0x1645   :  { %6316 = vadd.xlane.f32.xlu1 %v6299_v52  ;;  %6314 = vadd.xlane.f32.xlu0 %v6298_v60  ;;  %v6302_v41 = vmul.f32 %v11005_v30, %v6269_v51  ;;  %v6300_v40 = vmul.f32 %v10999_v57, %v6265_v26  ;;  %v6301_v28 = vmul.f32 %v10990_v2, %v6265_v26 }
0x1646   :  { %v6306_v22 = vmul.f32 %v11017_v29, %v6277_v47  ;;  %v6273_v21 = vrot.slane %v6256_v12, %v9417_v11  ;;  %v6303_v54 = vmul.f32 %v10993_v27, %v6269_v51  ;;  %v6281_v57 = vrot.slane %v6253_v19, %v9417_v11 }
0x1647   :  { %v6307_v38 = vmul.f32 %v11008_v43, %v6277_v47  ;;  %v6285_v29 = vrot.slane %v6255_v10, %v9417_v11  ;;  %v6257_v18 = vcombine.high %v6253_v19, %v6253_v19 }
0x1648   :  { %v6304_v30 = vmul.f32 %v11014_v45, %v6273_v21  ;;  %v6308_v2 = vmul.f32 %v11020_v16, %v6281_v57  ;;  %v6305_v63 = vmul.f32 %v11002_v31, %v6273_v21  ;;  %v6309_v46 = vmul.f32 %v11023_v56, %v6281_v57 }
0x1649   :  { %6322 = vadd.xlane.f32.xlu1 %v6302_v41  ;;  %6318 = vadd.xlane.f32.xlu0 %v6300_v40  ;;  %v6310_v27 = vmul.f32 %v11026_v1, %v6285_v29  ;;  %v6289_v45 = vrot.slane %v6257_v18, %v9417_v11  ;;  %v6311_v43 = vmul.f32 %v11029_v48, %v6285_v29 }
0x164b   :  { %v6312_v49 = vmul.f32 %v11032_v50, %v6289_v45  ;;  %v6313_v16 = vmul.f32 %v11035_v14, %v6289_v45 }
0x164d   :  { %6320 = vadd.xlane.f32.xlu0 %v6301_v28  ;;  %6330 = vadd.xlane.f32.xlu1 %v6306_v22 }
0x1651   :  { %6324 = vadd.xlane.f32.xlu0 %v6303_v54  ;;  %6326 = vadd.xlane.f32.xlu1 %v6304_v30 }
0x1655   :  { %6332 = vadd.xlane.f32.xlu0 %v6307_v38  ;;  %6334 = vadd.xlane.f32.xlu1 %v6308_v2 }
0x1659   :  { %6328 = vadd.xlane.f32.xlu0 %v6305_v63  ;;  %6338 = vadd.xlane.f32.xlu1 %v6310_v27 }
0x165d   :  { %6336 = vadd.xlane.f32.xlu0 %v6309_v46  ;;  %6342 = vadd.xlane.f32.xlu1 %v6312_v49 }
0x1661   :  { %6340 = vadd.xlane.f32.xlu0 %v6311_v43 }
0x1665   :  { %6344 = vadd.xlane.f32.xlu0 %v6313_v16 }
0x16ce   :  { %v6317_v33 = vpop.xlane.xlu1 %6316  ;;  %v6315_v31 = vpop.xlane.xlu0 %6314 }
0x16cf   :  { %v6369_v13 = vrot.slane %v6317_v33, %v9414_v9  ;;  %v6365_v20 = vrot.slane %v6315_v31, %v9408_v6 }
0x16d1   :  { %v6370_v35 = vsel %vm643_vm0, %v6369_v13, %v6365_v20 }
0x16d2   :  { %v11094_v36 = vpop.xlane.xlu1 %6322  ;;  %v6319_v1 = vpop.xlane.xlu0 %6318 }
0x16d3   :  { %v6374_v24 = vrot.slane %v6319_v1, %v9408_v6  ;;  %v6383_v58 = vrot.slane %v11094_v36, %v9408_v6 }
0x16d6   :  { %v6321_v4 = vpop.xlane.xlu0 %6320  ;;  %v11096_v32 = vpop.xlane.xlu1 %6330 }
0x16d7   :  { %v6378_v14 = vrot.slane %v6321_v4, %v9414_v9  ;;  %v6401_v54 = vrot.slane %v11096_v32, %v9408_v6 }
0x16d9   :  { %v6379_v60 = vsel %vm643_vm0, %v6378_v14, %v6374_v24 }
0x16da   :  { %v11098_v3 = vpop.xlane.xlu0 %6324  ;;  %v11100_v56 = vpop.xlane.xlu1 %6326  ;;  %v6434_v47 = vsel %vm708_vm1, %v6379_v60, %v6370_v35 }
0x16db   :  { %v6387_v44 = vrot.slane %v11098_v3, %v9414_v9  ;;  %v6392_v51 = vrot.slane %v11100_v56, %v9408_v6 }
0x16dd   :  { %v6388_v26 = vsel %vm643_vm0, %v6387_v44, %v6383_v58 }
0x16de   :  { %v11102_v50 = vpop.xlane.xlu0 %6332  ;;  %v11104_v5 = vpop.xlane.xlu1 %6334  ;;  %v6435_v22 = vsel %vm710_vm2, %v6388_v26, %v6434_v47 }
0x16df   :  { %v6405_v12 = vrot.slane %v11102_v50, %v9414_v9  ;;  %v6410_v21 = vrot.slane %v11104_v5, %v9408_v6 }
0x16e1   :  { %v6406_v2 = vsel %vm643_vm0, %v6405_v12, %v6401_v54 }
0x16e2   :  { %v11106_v48 = vpop.xlane.xlu0 %6328  ;;  %v11118_v53 = vpop.xlane.xlu1 %6338 }
0x16e3   :  { %v6396_v25 = vrot.slane %v11106_v48, %v9414_v9  ;;  %v6419_v57 = vrot.slane %v11118_v53, %v9408_v6 }
0x16e5   :  { %v6397_v41 = vsel %vm643_vm0, %v6396_v25, %v6392_v51 }
0x16e6   :  { %v11120_v52 = vpop.xlane.xlu0 %6336  ;;  %v6436_v30 = vsel %vm712_vm3, %v6397_v41, %v6435_v22  ;;  %v11145_v10 = vpop.xlane.xlu1 %6342 }
0x16e7   :  { %v6414_v40 = vrot.slane %v11120_v52, %v9414_v9  ;;  %v6428_v63 = vrot.slane %v11145_v10, %v9408_v6  ;;  %v6437_v45 = vsel %vm714_vm4, %v6406_v2, %v6436_v30 }
0x16e9   :  { %v6415_v38 = vsel %vm643_vm0, %v6414_v40, %v6410_v21 }
0x16ea   :  { %v11133_v28 = vpop.xlane.xlu0 %6340  ;;  %v6438_v46 = vsel %vm716_vm5, %v6415_v38, %v6437_v45 }
0x16eb   :  { %v6423_v19 = vrot.slane %v11133_v28, %v9414_v9 }
0x16ed   :  { %v6424_v29 = vsel %vm643_vm0, %v6423_v19, %v6419_v57 }
0x16ee   :  { %v11150_v18 = vpop.xlane.xlu0 %6344  ;;  %v6439_v43 = vsel %vm718_vm6, %v6424_v29, %v6438_v46 }
0x16ef   :  { %v6432_v27 = vrot.slane %v11150_v18, %v9414_v9 }
0x16f1   :  { %v6433_v49 = vsel %vm643_vm0, %v6432_v27, %v6428_v63 }
0x16f2   :  { %v6440_v16 = vsel %vm720_vm7, %v6433_v49, %v6439_v43 }
0x16f3   :  { %v6442_v14 = vsel %vm723_vm8, %v6440_v16, -inf }
0x16f4   :  { %6443 = vmax.xlane.f32.xlu1 %v6442_v14 }
0x177d   :  { %v6444_v44 = vpop.xlane.xlu1 %6443 }
0x177e   :  { %v6449_v13 = vrot.slane %v6444_v44, %v9417_v11  ;;  %v6453_v20 = vrot.slane %v6444_v44, %v9514_v55  ;;  %v6457_v58 = vrot.slane %v6444_v44, %v9524_v62  ;;  %v6461_v41 = vrot.slane %v6444_v44, %v9542_v23 }
0x177f   :  { %v6465_v21 = vrot.slane %v6444_v44, %v9551_v34  ;;  %v6469_v19 = vrot.slane %v6444_v44, %v9519_v59  ;;  %v6473_v57 = vrot.slane %v6444_v44, %v9528_v0 }
0x1780   :  { %v6486_v24 = vsub.f32 %v6315_v31, %v6449_v13  ;;  %v6487_v25 = vsub.f32 %v6317_v33, %v6449_v13  ;;  %v6489_v60 = vsub.f32 %v6321_v4, %v6453_v20  ;;  %v6488_v51 = vsub.f32 %v6319_v1, %v6453_v20 }
0x1781   :  { %v6491_v40 = vsub.f32 %v11098_v3, %v6457_v58  ;;  %v6490_v12 = vsub.f32 %v11094_v36, %v6457_v58  ;;  %v6493_v33 = vsub.f32 %v11106_v48, %v6461_v41  ;;  %v6492_v1 = vsub.f32 %v11100_v56, %v6461_v41 }
0x1782   :  { %v6502_v26 = vmul.f32 1.442695, %v6486_v24  ;;  %v6504_v35 = vmul.f32 1.442695, %v6487_v25  ;;  %v6508_v47 = vmul.f32 1.442695, %v6489_v60  ;;  %v6495_v3 = vsub.f32 %v11102_v50, %v6465_v21 }
0x1783   :  { %v6506_v22 = vmul.f32 1.442695, %v6488_v51  ;;  %v6512_v31 = vmul.f32 1.442695, %v6491_v40  ;;  %v6510_v4 = vmul.f32 1.442695, %v6490_v12  ;;  %v6494_v36 = vsub.f32 %v11096_v32, %v6465_v21 }
0x1784   :  { %8928 = vpow2.f32 %v6502_v26  ;;  %v6516_v54 = vmul.f32 1.442695, %v6493_v33  ;;  %v6514_v30 = vmul.f32 1.442695, %v6492_v1  ;;  %v6497_v48 = vsub.f32 %v11120_v52, %v6469_v19 }
0x1785   :  { %8930 = vpow2.f32 %v6504_v35  ;;  %v6520_v38 = vmul.f32 1.442695, %v6495_v3  ;;  %v6496_v56 = vsub.f32 %v11104_v5, %v6469_v19  ;;  %v6518_v29 = vmul.f32 1.442695, %v6494_v36 }
0x1786   :  { %8932 = vpow2.f32 %v6508_v47  ;;  %v6477_v32 = vrot.slane %v6444_v44, %v11659_v17  ;;  %v6499_v50 = vsub.f32 %v11133_v28, %v6473_v57  ;;  %v6524_v52 = vmul.f32 1.442695, %v6497_v48 }
0x1787   :  { %8934 = vpow2.f32 %v6506_v22  ;;  %v6498_v45 = vsub.f32 %v11118_v53, %v6473_v57  ;;  %v6522_v5 = vmul.f32 1.442695, %v6496_v56 }
0x1788   :  { %8936 = vpow2.f32 %v6512_v31  ;;  %v6501_v49 = vsub.f32 %v11150_v18, %v6477_v32  ;;  %v6528_v43 = vmul.f32 1.442695, %v6499_v50  ;;  %v6500_v28 = vsub.f32 %v11145_v10, %v6477_v32 }
0x1789   :  { %8938 = vpow2.f32 %v6510_v4  ;;  %v6526_v14 = vmul.f32 1.442695, %v6498_v45 }
0x178a   :  { %8940 = vpow2.f32 %v6516_v54  ;;  %v6532_v53 = vmul.f32 1.442695, %v6501_v49  ;;  %v6530_v18 = vmul.f32 1.442695, %v6500_v28 }
0x178b   :  { %8942 = vpow2.f32 %v6514_v30 }
0x178c   :  { %8944 = vpow2.f32 %v6520_v38 }
0x178d   :  { %8946 = vpow2.f32 %v6518_v29 }
0x178e   :  { %8948 = vpow2.f32 %v6524_v52 }
0x178f   :  { %8950 = vpow2.f32 %v6522_v5 }
0x1790   :  { %8952 = vpow2.f32 %v6528_v43 }
0x1791   :  { %v11176_v2 = vpop.eup %8928  ;;  %8954 = vpow2.f32 %v6526_v14 }
0x1792   :  { %v11179_v63 = vpop.eup %8930  ;;  %6551 = vperm.xlu0 %8706, %v11176_v2   ;;  %8956 = vpow2.f32 %v6532_v53 }
0x1793   :  { %6554 = vperm.xlu1 %8705, %v11179_v63   ;;  %v11185_v27 = vpop.eup %8932  ;;  %8958 = vpow2.f32 %v6530_v18 }
0x1794   :  { %v11188_v46 = vpop.eup %8934 }
0x1795   :  { %v11193_v16 = vpop.eup %8936 }
0x1796   :  { %6560 = vperm.xlu0 %8706, %v11185_v27   ;;  %v11196_v44 = vpop.eup %8938 }
0x1797   :  { %6557 = vperm.xlu1 %8705, %v11188_v46   ;;  %v11200_v13 = vpop.eup %8940 }
0x1798   :  { %v11202_v20 = vpop.eup %8942 }
0x1799   :  { %v11206_v10 = vpop.eup %8944 }
0x179a   :  { %6566 = vperm.xlu0 %8706, %v11193_v16   ;;  %v11208_v24 = vpop.eup %8946 }
0x179b   :  { %6563 = vperm.xlu1 %8705, %v11196_v44   ;;  %v11212_v25 = vpop.eup %8948 }
0x179c   :  { %v11214_v58 = vpop.eup %8950 }
0x179d   :  { %v11218_v60 = vpop.eup %8952 }
0x179e   :  { %6572 = vperm.xlu0 %8706, %v11200_v13   ;;  %v11220_v51 = vpop.eup %8954 }
0x179f   :  { %6569 = vperm.xlu1 %8705, %v11202_v20   ;;  %v11224_v26 = vpop.eup %8956 }
0x17a0   :  { %v8959_v35 = vpop.eup %8958 }
0x17a2   :  { %6578 = vperm.xlu0 %8706, %v11206_v10  }
0x17a3   :  { %6575 = vperm.xlu1 %8705, %v11208_v24  }
0x17a6   :  { %6584 = vperm.xlu0 %8706, %v11212_v25  }
0x17a7   :  { %6581 = vperm.xlu1 %8705, %v11214_v58  }
0x17aa   :  { %6590 = vperm.xlu0 %8706, %v11218_v60  }
0x17ab   :  { %6587 = vperm.xlu1 %8705, %v11220_v51  }
0x17ae   :  { %6596 = vperm.xlu0 %8706, %v11224_v26  }
0x17af   :  { %6593 = vperm.xlu1 %8705, %v8959_v35  }
0x180d   :  { %v6552_v41 = vpop.permute.xlu0 %6551 }
0x180e   :  { %v6555_v40 = vpop.permute.xlu1 %6554  ;;  %v6601_v38 = vrot.slane %v6552_v41, %v9408_v6 }
0x180f   :  { %v6605_v48 = vrot.slane %v6555_v40, %v9414_v9 }
0x1811   :  { %v6561_v47 = vpop.permute.xlu0 %6560  ;;  %v6606_v53 = vsel %vm643_vm0, %v6605_v48, %v6601_v38 }
0x1812   :  { %v6558_v12 = vpop.permute.xlu1 %6557  ;;  %v6614_v3 = vrot.slane %v6561_v47, %v9414_v9 }
0x1813   :  { %v6610_v19 = vrot.slane %v6558_v12, %v9408_v6 }
0x1815   :  { %v6567_v22 = vpop.permute.xlu0 %6566  ;;  %v6615_v52 = vsel %vm643_vm0, %v6614_v3, %v6610_v19 }
0x1816   :  { %v6564_v21 = vpop.permute.xlu1 %6563  ;;  %v6623_v30 = vrot.slane %v6567_v22, %v9414_v9  ;;  %v6670_v40 = vsel %vm708_vm1, %v6615_v52, %v6606_v53 }
0x1817   :  { %v6619_v36 = vrot.slane %v6564_v21, %v9408_v6 }
0x1819   :  { %v6573_v33 = vpop.permute.xlu0 %6572  ;;  %v6624_v43 = vsel %vm643_vm0, %v6623_v30, %v6619_v36 }
0x181a   :  { %v6570_v31 = vpop.permute.xlu1 %6569  ;;  %v6632_v29 = vrot.slane %v6573_v33, %v9414_v9  ;;  %v6671_v12 = vsel %vm710_vm2, %v6624_v43, %v6670_v40 }
0x181b   :  { %v6628_v56 = vrot.slane %v6570_v31, %v9408_v6 }
0x181d   :  { %v6579_v1 = vpop.permute.xlu0 %6578  ;;  %v6633_v18 = vsel %vm643_vm0, %v6632_v29, %v6628_v56 }
0x181e   :  { %v6576_v4 = vpop.permute.xlu1 %6575  ;;  %v6641_v50 = vrot.slane %v6579_v1, %v9414_v9  ;;  %v6672_v33 = vsel %vm712_vm3, %v6633_v18, %v6671_v12  ;;  %v6956_v12 = vld [vmem:[#allocation12 + $0x1e0] sm:$0xff] }
0x181f   :  { %v6637_v32 = vrot.slane %v6576_v4, %v9408_v6 }
0x1821   :  { %v6585_v54 = vpop.permute.xlu0 %6584  ;;  %v6642_v47 = vsel %vm643_vm0, %v6641_v50, %v6637_v32 }
0x1822   :  { %v6582_v57 = vpop.permute.xlu1 %6581  ;;  %v6650_v5 = vrot.slane %v6585_v54, %v9414_v9  ;;  %v6673_v19 = vsel %vm714_vm4, %v6642_v47, %v6672_v33  ;;  %v6959_v47 = vld [vmem:[#allocation12 + $0x1f8] sm:$0xff] }
0x1823   :  { %v6646_v45 = vrot.slane %v6582_v57, %v9408_v6  ;;  %7047 = vmatprep.subr.mxu1 %v6959_v47  ;;  %v6951_v33 = vld [vmem:[#allocation12 + $0x1b8] sm:$0xff]  ;;  %v6912_v47 = vld [vmem:[#allocation12 + $0x80] sm:$0xff] }
0x1825   :  { %v6591_v49 = vpop.permute.xlu0 %6590  ;;  %v6651_v22 = vsel %vm643_vm0, %v6650_v5, %v6646_v45 }
0x1826   :  { %v6588_v28 = vpop.permute.xlu1 %6587  ;;  %v6659_v14 = vrot.slane %v6591_v49, %v9414_v9  ;;  %v6674_v54 = vsel %vm716_vm5, %v6651_v22, %v6673_v19  ;;  %v6955_v22 = vld [vmem:[#allocation12 + $0x1d8] sm:$0xff]  ;;  %v6945_v19 = vld [vmem:[#allocation12 + $0x188] sm:$0xff] }
0x1827   :  { %v6655_v41 = vrot.slane %v6588_v28, %v9408_v6 }
0x1829   :  { %v6597_v21 = vpop.permute.xlu0 %6596  ;;  %v6660_v31 = vsel %vm643_vm0, %v6659_v14, %v6655_v41 }
0x182a   :  { %v6594_v1 = vpop.permute.xlu1 %6593  ;;  %v6668_v4 = vrot.slane %v6597_v21, %v9414_v9  ;;  %v6675_v30 = vsel %vm718_vm6, %v6660_v31, %v6674_v54  ;;  %v6952_v21 = vld [vmem:[#allocation12 + $0x1c0] sm:$0xff] }
0x182b   :  { %v6664_v3 = vrot.slane %v6594_v1, %v9408_v6  ;;  %v6948_v1 = vld [vmem:[#allocation12 + $0x1a0] sm:$0xff] }
0x182c   :  { %v6944_v54 = vld [vmem:[#allocation12 + $0x180] sm:$0xff] }
0x182d   :  { %v6669_v36 = vsel %vm643_vm0, %v6668_v4, %v6664_v3  ;;  %v6950_v4 = vld [vmem:[#allocation12 + $0x1b0] sm:$0xff]  ;;  %v6947_v3 = vld [vmem:[#allocation12 + $0x198] sm:$0xff] }
0x182e   :  { %v6676_v57 = vsel %vm720_vm7, %v6669_v36, %v6675_v30  ;;  %v6946_v36 = vld [vmem:[#allocation12 + $0x190] sm:$0xff]  ;;  %v6943_v30 = vld [vmem:[#allocation12 + $0x178] sm:$0xff] }
0x182f   :  { %v6678_v48 = vsel %vm723_vm8, %v6676_v57, 0.0  ;;  %v6940_v57 = vld [vmem:[#allocation12 + $0x160] sm:$0xff] }
0x1830   :  { %6679 = vadd.xlane.f32.xlu1 %v6678_v48  ;;  %v6942_v48 = vld [vmem:[#allocation12 + $0x170] sm:$0xff] }
0x18b9   :  { %v6680_v38 = vpop.xlane.xlu1 %6679 }
0x18ba   :  { %8960 = vrcp.f32 %v6680_v38  ;;  %v6937_v38 = vld [vmem:[#allocation12 + $0x148] sm:$0xff] }
0x18c7   :  { %v8961_v56 = vpop.eup %8960 }
0x18c8   :  { %v6702_v29 = vrot.slane %v8961_v56, %v9551_v34  ;;  %v6686_v32 = vrot.slane %v8961_v56, %v9417_v11  ;;  %v6714_v45 = vrot.slane %v8961_v56, %v11659_v17  ;;  %v6690_v43 = vrot.slane %v8961_v56, %v9514_v55 }
0x18ca   :  { %v6732_v50 = vmul.f32 %v11206_v10, %v6702_v29  ;;  %v6723_v52 = vmul.f32 %v11176_v2, %v6686_v32  ;;  %v6737_v5 = vmul.f32 %v8959_v35, %v6714_v45  ;;  %v6724_v49 = vmul.f32 %v11179_v63, %v6686_v32  ;;  %v6933_v32 = vld [vmem:[#allocation12 + $0x128] sm:$0xff] }
0x18cb   :  { %v6725_v28 = vmul.f32 %v11188_v46, %v6690_v43  ;;  %v6726_v14 = vmul.f32 %v11185_v27, %v6690_v43  ;;  %v6694_v10 = vrot.slane %v8961_v56, %v9524_v62  ;;  %v6698_v35 = vrot.slane %v8961_v56, %v9542_v23  ;;  %v6928_v43 = vld [vmem:[#allocation12 + $0x100] sm:$0xff] }
0x18cc   :  { %6786 = vperm.xlu1 %8705, %v6732_v50   ;;  %6741 = vperm.xlu0 %8706, %v6723_v52   ;;  %v6731_v46 = vmul.f32 %v11208_v24, %v6702_v29  ;;  %v6706_v27 = vrot.slane %v8961_v56, %v9519_v59  ;;  %v6953_v24 = vld [vmem:[#allocation12 + $0x1c8] sm:$0xff]  ;;  %v6738_v31 = vmul.f32 %v11224_v26, %v6714_v45  ;;  %v6939_v26 = vld [vmem:[#allocation12 + $0x158] sm:$0xff]  ;;  %v6938_v29 = vld [vmem:[#allocation12 + $0x150] sm:$0xff] }
0x18cd   :  { %v6727_v2 = vmul.f32 %v11196_v44, %v6694_v10  ;;  %v6728_v53 = vmul.f32 %v11193_v16, %v6694_v10  ;;  %v6729_v63 = vmul.f32 %v11202_v20, %v6698_v35  ;;  %v6730_v18 = vmul.f32 %v11200_v13, %v6698_v35  ;;  %v6957_v20 = vld [vmem:[#allocation12 + $0x1e8] sm:$0xff]  ;;  %v6958_v13 = vld [vmem:[#allocation12 + $0x1f0] sm:$0xff]  ;;  %v6935_v50 = vld [vmem:[#allocation12 + $0x138] sm:$0xff] }
0x18ce   :  { %v6733_v41 = vmul.f32 %v11214_v58, %v6706_v27  ;;  %v6734_v44 = vmul.f32 %v11212_v25, %v6706_v27  ;;  %v6710_v16 = vrot.slane %v8961_v56, %v9528_v0  ;;  %6976 = vmatprep.subr.mxu0 %v6957_v20  ;;  %v6954_v58 = vld [vmem:[#allocation12 + $0x1d0] sm:$0xff]  ;;  %7048 = vmatpush1.msra.mxu1 %v6958_v13  ;;  %v6936_v56 = vld [vmem:[#allocation12 + $0x140] sm:$0xff]  ;;  %v6927_v10 = vld [vmem:[#allocation12 + $0xf8] sm:$0xff] }
0x18cf   :  { %6977 = vmatpush1.msra.mxu0 %v6956_v12  ;;  %7049 = vmatprep.subr.mxu1 %v6955_v22  ;;  %v6932_v52 = vld [vmem:[#allocation12 + $0x120] sm:$0xff]  ;;  %v6934_v45 = vld [vmem:[#allocation12 + $0x130] sm:$0xff]  ;;  %v6921_v35 = vld [vmem:[#allocation12 + $0xc8] sm:$0xff] }
0x18d0   :  { %6811 = vperm.xlu1 %8705, %v6737_v5   ;;  %6746 = vperm.xlu0 %8706, %v6724_v49   ;;  %v6735_v40 = vmul.f32 %v11220_v51, %v6710_v16  ;;  %v6736_v25 = vmul.f32 %v11218_v60, %v6710_v16  ;;  %v6949_v51 = vld [vmem:[#allocation12 + $0x1a8] sm:$0xff]  ;;  %v6931_v49 = vld [vmem:[#allocation12 + $0x118] sm:$0xff]  ;;  %v6918_v16 = vld [vmem:[#allocation12 + $0xb0] sm:$0xff] }
0x18d1   :  { %6978 = vmatprep.subr.mxu0 %v6953_v24  ;;  %7050 = vmatpush1.msra.mxu1 %v6954_v58  ;;  %v6941_v60 = vld [vmem:[#allocation12 + $0x168] sm:$0xff]  ;;  %v6915_v20 = vld [vmem:[#allocation12 + $0x98] sm:$0xff]  ;;  %v6914_v12 = vld [vmem:[#allocation12 + $0x90] sm:$0xff] }
0x18d2   :  { %6979 = vmatpush1.msra.mxu0 %v6952_v21  ;;  %7051 = vmatprep.subr.mxu1 %v6951_v33  ;;  %v6929_v5 = vld [vmem:[#allocation12 + $0x108] sm:$0xff]  ;;  %v6911_v24 = vld [vmem:[#allocation12 + $0x78] sm:$0xff]  ;;  %v6908_v22 = vld [vmem:[#allocation12 + $0x60] sm:$0xff] }
0x18d3   :  { %6980 = vmatprep.subr.mxu0 %v6949_v51  ;;  %7052 = vmatpush1.msra.mxu1 %v6950_v4  ;;  %v6917_v27 = vld [vmem:[#allocation12 + $0xa8] sm:$0xff]  ;;  %v6910_v21 = vld [vmem:[#allocation12 + $0x70] sm:$0xff]  ;;  %v6904_v51 = vld [vmem:[#allocation12 + $0x40] sm:$0xff] }
0x18d4   :  { %6751 = vperm.xlu0 %8706, %v6725_v28   ;;  %6981 = vmatpush1.msra.mxu0 %v6948_v1  ;;  %v6930_v28 = vld [vmem:[#allocation12 + $0x110] sm:$0xff]  ;;  %v6909_v13 = vld [vmem:[#allocation12 + $0x68] sm:$0xff]  ;;  %v6903_v1 = vld [vmem:[#allocation12 + $0x38] sm:$0xff] }
0x18d5   :  { %6982 = vmatprep.subr.mxu0 %v6945_v19  ;;  %7053 = vmatprep.subr.mxu1 %v6947_v3  ;;  %v6905_v58 = vld [vmem:[#allocation12 + $0x48] sm:$0xff]  ;;  %v6906_v33 = vld [vmem:[#allocation12 + $0x50] sm:$0xff]  ;;  %v6900_v4 = vld [vmem:[#allocation12 + $0x20] sm:$0xff] }
0x18d6   :  { %6983 = vmatpush1.msra.mxu0 %v6944_v54  ;;  %7054 = vmatpush1.msra.mxu1 %v6946_v36  ;;  %v6902_v19 = vld [vmem:[#allocation12 + $0x30] sm:$0xff]  ;;  %v6897_v3 = vld [vmem:[#allocation12 + $0x8] sm:$0xff]  ;;  %v6899_v54 = vld [vmem:[#allocation12 + $0x18] sm:$0xff] }
0x18d7   :  { %6984 = vmatprep.subr.mxu0 %v6941_v60  ;;  %7055 = vmatprep.subr.mxu1 %v6943_v30  ;;  %v6896_v36 = vld [vmem:[#allocation12] sm:$0xff]  ;;  %v6898_v60 = vld [vmem:[#allocation12 + $0x10] sm:$0xff]  ;;  %v7183_v30 = vld [vmem:[#allocation13 + $0x1e8] sm:$0xff] }
0x18d8   :  { %6756 = vperm.xlu0 %8706, %v6726_v14   ;;  %6985 = vmatpush1.msra.mxu0 %v6940_v57  ;;  %v6925_v14 = vld [vmem:[#allocation12 + $0xe8] sm:$0xff]  ;;  %v7185_v57 = vld [vmem:[#allocation13 + $0x1f8] sm:$0xff] }
0x18d9   :  { %7056 = vmatpush1.msra.mxu1 %v6942_v48  ;;  %6986 = vmatprep.subr.mxu0 %v6937_v38 }
0x18da   :  { %7057 = vmatprep.subr.mxu1 %v6939_v26  ;;  %6987 = vmatpush1.msra.mxu0 %v6936_v56 }
0x18db   :  { %7058 = vmatpush1.msra.mxu1 %v6938_v29  ;;  %6988 = vmatprep.subr.mxu0 %v6933_v32 }
0x18dc   :  { %6761 = vperm.xlu0 %8706, %v6727_v2   ;;  %7059 = vmatprep.subr.mxu1 %v6935_v50  ;;  %v6924_v2 = vld [vmem:[#allocation12 + $0xe0] sm:$0xff] }
0x18dd   :  { %6989 = vmatpush1.msra.mxu0 %v6932_v52  ;;  %7060 = vmatpush1.msra.mxu1 %v6934_v45  ;;  %v11282_v45 = vld [vmem:[#allocation7 + $0x18] sm:$0xff] }
0x18de   :  { %6990 = vmatprep.subr.mxu0 %v6929_v5  ;;  %7061 = vmatprep.subr.mxu1 %v6931_v49  ;;  %v11285_v49 = vld [vmem:[#allocation7 + $0x28] sm:$0xff] }
0x18df   :  { %6991 = vmatpush1.msra.mxu0 %v6928_v43  ;;  %7062 = vmatpush1.msra.mxu1 %v6930_v28 }
0x18e0   :  { %6766 = vperm.xlu0 %8706, %v6728_v53   ;;  %v6926_v53 = vld [vmem:[#allocation12 + $0xf0] sm:$0xff]  ;;  %6992 = vmatprep.subr.mxu0 %v6925_v14 }
0x18e1   :  { %7063 = vmatprep.subr.mxu1 %v6927_v10  ;;  %6993 = vmatpush1.msra.mxu0 %v6924_v2  ;;  %v11288_v10 = vld [vmem:[#allocation7 + $0x8] sm:$0xff] }
0x18e2   :  { %7064 = vmatpush1.msra.mxu1 %v6926_v53  ;;  %6994 = vmatprep.subr.mxu0 %v6921_v35  ;;  %v11291_v53 = vld [vmem:[#allocation7 + $0x10] sm:$0xff] }
0x18e4   :  { %6771 = vperm.xlu0 %8706, %v6729_v63   ;;  %v6923_v63 = vld [vmem:[#allocation12 + $0xd8] sm:$0xff] }
0x18e5   :  { %7065 = vmatprep.subr.mxu1 %v6923_v63  ;;  %v11294_v63 = vld [vmem:[#allocation7 + $0x38] sm:$0xff] }
0x18e8   :  { %6776 = vperm.xlu0 %8706, %v6730_v18   ;;  %v6920_v18 = vld [vmem:[#allocation12 + $0xc0] sm:$0xff] }
0x18e9   :  { %6995 = vmatpush1.msra.mxu0 %v6920_v18 }
0x18ea   :  { %6996 = vmatprep.subr.mxu0 %v6917_v27 }
0x18ec   :  { %6781 = vperm.xlu0 %8706, %v6731_v46   ;;  %v6922_v46 = vld [vmem:[#allocation12 + $0xd0] sm:$0xff] }
0x18ed   :  { %7066 = vmatpush1.msra.mxu1 %v6922_v46  ;;  %v11297_v46 = vld [vmem:[#allocation7 + $0x20] sm:$0xff] }
0x18f0   :  { %6791 = vperm.xlu0 %8706, %v6733_v41   ;;  %v6919_v41 = vld [vmem:[#allocation12 + $0xb8] sm:$0xff] }
0x18f1   :  { %7067 = vmatprep.subr.mxu1 %v6919_v41  ;;  %v11300_v41 = vld [vmem:[#allocation7 + $0x40] sm:$0xff] }
0x18f2   :  { %7068 = vmatpush1.msra.mxu1 %v6918_v16  ;;  %v11303_v16 = vld [vmem:[#allocation7] sm:$0xff] }
0x18f3   :  { %7069 = vmatprep.subr.mxu1 %v6915_v20 }
0x18f4   :  { %6796 = vperm.xlu0 %8706, %v6734_v44   ;;  %v6916_v44 = vld [vmem:[#allocation12 + $0xa0] sm:$0xff]  ;;  %7070 = vmatpush1.msra.mxu1 %v6914_v12 }
0x18f5   :  { %6997 = vmatpush1.msra.mxu0 %v6916_v44  ;;  %7071 = vmatprep.subr.mxu1 %v6911_v24 }
0x18f6   :  { %7072 = vmatpush1.msra.mxu1 %v6910_v21 }
0x18f8   :  { %6801 = vperm.xlu0 %8706, %v6735_v40   ;;  %v6913_v40 = vld [vmem:[#allocation12 + $0x88] sm:$0xff] }
0x18f9   :  { %6998 = vmatprep.subr.mxu0 %v6913_v40 }
0x18fa   :  { %6999 = vmatpush1.msra.mxu0 %v6912_v47  ;;  %v11306_v47 = vld [vmem:[#allocation7 + $0x30] sm:$0xff] }
0x18fb   :  { %7000 = vmatprep.subr.mxu0 %v6909_v13  ;;  %v11309_v13 = vld [vmem:[#allocation7 + $0x48] sm:$0xff] }
0x18fc   :  { %6806 = vperm.xlu0 %8706, %v6736_v25   ;;  %v6907_v25 = vld [vmem:[#allocation12 + $0x58] sm:$0xff]  ;;  %7001 = vmatpush1.msra.mxu0 %v6908_v22 }
0x18fd   :  { %7002 = vmatprep.subr.mxu0 %v6905_v58  ;;  %7073 = vmatprep.subr.mxu1 %v6907_v25 }
0x18fe   :  { %7003 = vmatpush1.msra.mxu0 %v6904_v51  ;;  %7074 = vmatpush1.msra.mxu1 %v6906_v33 }
0x18ff   :  { %7075 = vmatprep.subr.mxu1 %v6903_v1 }
0x1900   :  { %6816 = vperm.xlu0 %8706, %v6738_v31   ;;  %v6901_v31 = vld [vmem:[#allocation12 + $0x28] sm:$0xff]  ;;  %7076 = vmatpush1.msra.mxu1 %v6902_v19 }
0x1901   :  { %7004 = vmatprep.subr.mxu0 %v6901_v31  ;;  %7077 = vmatprep.subr.mxu1 %v6899_v54 }
0x1902   :  { %7005 = vmatpush1.msra.mxu0 %v6900_v4  ;;  %7078 = vmatpush1.msra.mxu1 %v6898_v60 }
0x1903   :  { %7006 = vmatprep.subr.mxu0 %v6897_v3  ;;  %7257 = vmatprep.subr.mxu1 %v7185_v57  ;;  %v11312_v3 = vld [vmem:[#allocation7 + $0x50] sm:$0xff] }
0x1904   :  { %7007 = vmatpush1.msra.mxu0 %v6896_v36  ;;  %v11315_v36 = vld [vmem:[#allocation7 + $0x58] sm:$0xff] }
0x1905   :  { %7186 = vmatprep.subr.mxu0 %v7183_v30 }
0x1947   :  { %v6742_v48 = vpop.permute.xlu0 %6741  ;;  %v6787_v14 = vpop.permute.xlu1 %6786 }
0x1948   :  { %v6819_v40 = vmul.f32 %v11303_v16, %v6742_v48  ;;  %v6828_v24 = vmul.f32 %v11309_v13, %v6787_v14 }
0x194b   :  { %v6747_v38 = vpop.permute.xlu0 %6746  ;;  %v6812_v14 = vpop.permute.xlu1 %6811 }
0x194c   :  { %v6820_v2 = vmul.f32 %v11288_v10, %v6747_v38 }
0x194e   :  { %v6835_v58 = vadd.f32 %v6820_v2, %v6819_v40 }
0x194f   :  { %v6752_v26 = vpop.permute.xlu0 %6751 }
0x1950   :  { %v6821_v35 = vmul.f32 %v11291_v53, %v6752_v26  ;;  %v6836_v4 = vrot.slane %v6835_v58, 4 }
0x1953   :  { %v6757_v56 = vpop.permute.xlu0 %6756 }
0x1954   :  { %v6822_v5 = vmul.f32 %v11282_v45, %v6757_v56  ;;  %v6837_v56 = vadd.f32 %v6836_v4, %v6835_v58  ;;  %v11327_v4 = vld [vmem:[#allocation7 + $0x78] sm:$0xff] }
0x1956   :  { %v6842_v20 = vadd.f32 %v6822_v5, %v6821_v35  ;;  %v6838_v2 = vrot.slane %v6837_v56, 2 }
0x1957   :  { %v6762_v29 = vpop.permute.xlu0 %6761 }
0x1958   :  { %v6823_v27 = vmul.f32 %v11297_v46, %v6762_v29  ;;  %v6843_v33 = vrot.slane %v6842_v20, 4 }
0x195a   :  { %v6844_v57 = vadd.f32 %v6843_v33, %v6842_v20  ;;  %v6839_v33 = vadd.f32 %v6838_v2, %v6837_v56 }
0x195b   :  { %v6767_v32 = vpop.permute.xlu0 %6766 }
0x195c   :  { %v6824_v43 = vmul.f32 %v11285_v49, %v6767_v32 }
0x195e   :  { %v6849_v22 = vadd.f32 %v6824_v43, %v6823_v27 }
0x195f   :  { %v6772_v50 = vpop.permute.xlu0 %6771 }
0x1960   :  { %v6825_v12 = vmul.f32 %v11306_v47, %v6772_v50  ;;  %v6850_v31 = vrot.slane %v6849_v22, 4 }
0x1962   :  { %v6851_v38 = vadd.f32 %v6850_v31, %v6849_v22 }
0x1963   :  { %v6777_v52 = vpop.permute.xlu0 %6776 }
0x1964   :  { %v6826_v18 = vmul.f32 %v11294_v63, %v6777_v52  ;;  %v6845_v52 = vrot.slane %v6844_v57, 2  ;;  %v6852_v43 = vrot.slane %v6851_v38, 2 }
0x1966   :  { %v6856_v25 = vadd.f32 %v6826_v18, %v6825_v12  ;;  %v11318_v18 = vld [vmem:[#allocation7 + $0x60] sm:$0xff]  ;;  %v6846_v12 = vadd.f32 %v6845_v52, %v6844_v57 }
0x1967   :  { %v6782_v28 = vpop.permute.xlu0 %6781 }
0x1968   :  { %v6827_v44 = vmul.f32 %v11300_v41, %v6782_v28  ;;  %v6857_v19 = vrot.slane %v6856_v25, 4 }
0x196a   :  { %v6863_v51 = vadd.f32 %v6828_v24, %v6827_v44  ;;  %v6858_v29 = vadd.f32 %v6857_v19, %v6856_v25  ;;  %v11321_v44 = vld [vmem:[#allocation7 + $0x68] sm:$0xff]  ;;  %v6853_v25 = vadd.f32 %v6852_v43, %v6851_v38 }
0x196b   :  { %v6792_v21 = vpop.permute.xlu0 %6791 }
0x196c   :  { %v6829_v54 = vmul.f32 %v11312_v3, %v6792_v21  ;;  %v6864_v30 = vrot.slane %v6863_v51, 4  ;;  %v6859_v35 = vrot.slane %v6858_v29, 2  ;;  %v11324_v21 = vld [vmem:[#allocation7 + $0x70] sm:$0xff] }
0x196d   :  { %v6833_v58 = vmul.f32 %v11324_v21, %v6812_v14 }
0x196e   :  { %v6865_v50 = vadd.f32 %v6864_v30, %v6863_v51  ;;  %v6860_v31 = vadd.f32 %v6859_v35, %v6858_v29 }
0x196f   :  { %v6797_v1 = vpop.permute.xlu0 %6796 }
0x1970   :  { %v6830_v60 = vmul.f32 %v11315_v36, %v6797_v1  ;;  %v6866_v20 = vrot.slane %v6865_v50, 2  ;;  %v6861_v52 = vrot.slane %v6860_v31, 1 }
0x1972   :  { %v6870_v48 = vadd.f32 %v6830_v60, %v6829_v54  ;;  %v6867_v54 = vadd.f32 %v6866_v20, %v6865_v50  ;;  %v6847_v60 = vrot.slane %v6846_v12, 1 }
0x1973   :  { %v6802_v26 = vpop.permute.xlu0 %6801 }
0x1974   :  { %v6871_v32 = vrot.slane %v6870_v48, 4  ;;  %v6831_v27 = vmul.f32 %v11318_v18, %v6802_v26  ;;  %v6854_v26 = vrot.slane %v6853_v25, 1  ;;  %v6868_v14 = vrot.slane %v6867_v54, 1 }
0x1975   :  { %v6848_v38 = vadd.f32 %v6847_v60, %v6846_v12 }
0x1976   :  { %v6872_v5 = vadd.f32 %v6871_v32, %v6870_v48  ;;  %v6840_v32 = vrot.slane %v6839_v33, 1  ;;  %v6855_v2 = vadd.f32 %v6854_v26, %v6853_v25  ;;  %v6869_v50 = vadd.f32 %v6868_v14, %v6867_v54  ;;  %v7178_v26 = vld [vmem:[#allocation13 + $0x1c0] sm:$0xff]  ;;  %v7171_v14 = vld [vmem:[#allocation13 + $0x188] sm:$0xff] }
0x1977   :  { %v6807_v28 = vpop.permute.xlu0 %6806 }
0x1978   :  { %v6832_v40 = vmul.f32 %v11321_v44, %v6807_v28  ;;  %v6873_v24 = vrot.slane %v6872_v5, 2  ;;  %v6841_v35 = vadd.f32 %v6840_v32, %v6839_v33  ;;  %v7175_v32 = vld [vmem:[#allocation13 + $0x1a8] sm:$0xff] }
0x197a   :  { %v6877_v22 = vadd.f32 %v6832_v40, %v6831_v27  ;;  %v6874_v30 = vadd.f32 %v6873_v24, %v6872_v5  ;;  %v6862_v40 = vadd.f32 %v6861_v52, %v6860_v31  ;;  %v6968_v5 = vsel %vm708_vm1, %v6848_v38, %v6841_v35  ;;  %v7182_v31 = vld [vmem:[#allocation13 + $0x1e0] sm:$0xff]  ;;  %v7177_v52 = vld [vmem:[#allocation13 + $0x1b8] sm:$0xff] }
0x197b   :  { %v6817_v51 = vpop.permute.xlu0 %6816  ;;  %v7173_v38 = vld [vmem:[#allocation13 + $0x198] sm:$0xff]  ;;  %v7166_v35 = vld [vmem:[#allocation13 + $0x160] sm:$0xff] }
0x197c   :  { %v6878_v1 = vrot.slane %v6877_v22, 4  ;;  %v6834_v19 = vmul.f32 %v11327_v4, %v6817_v51  ;;  %v6875_v43 = vrot.slane %v6874_v30, 1 }
0x197e   :  { %v6879_v48 = vadd.f32 %v6878_v1, %v6877_v22  ;;  %v6884_v57 = vadd.f32 %v6834_v19, %v6833_v58  ;;  %v6876_v20 = vadd.f32 %v6875_v43, %v6874_v30  ;;  %v6969_v22 = vsel %vm710_vm2, %v6855_v2, %v6968_v5  ;;  %v7181_v30 = vld [vmem:[#allocation13 + $0x1d8] sm:$0xff]  ;;  %v7170_v43 = vld [vmem:[#allocation13 + $0x180] sm:$0xff] }
0x197f   :  { %v6970_v19 = vsel %vm712_vm3, %v6862_v40, %v6969_v22  ;;  %v7169_v2 = vld [vmem:[#allocation13 + $0x178] sm:$0xff]  ;;  %v7168_v40 = vld [vmem:[#allocation13 + $0x170] sm:$0xff]  ;;  %v7162_v5 = vld [vmem:[#allocation13 + $0x140] sm:$0xff] }
0x1980   :  { %v6880_v28 = vrot.slane %v6879_v48, 2  ;;  %v6885_v27 = vrot.slane %v6884_v57, 4  ;;  %v6971_v12 = vsel %vm714_vm4, %v6869_v50, %v6970_v19  ;;  %v7165_v50 = vld [vmem:[#allocation13 + $0x158] sm:$0xff]  ;;  %v7155_v19 = vld [vmem:[#allocation13 + $0x108] sm:$0xff] }
0x1981   :  { %v6972_v25 = vsel %vm716_vm5, %v6876_v20, %v6971_v12  ;;  %v7164_v20 = vld [vmem:[#allocation13 + $0x150] sm:$0xff]  ;;  %v7161_v22 = vld [vmem:[#allocation13 + $0x138] sm:$0xff] }
0x1982   :  { %v6881_v56 = vadd.f32 %v6880_v28, %v6879_v48  ;;  %v6886_v29 = vadd.f32 %v6885_v27, %v6884_v57  ;;  %v7184_v48 = vld [vmem:[#allocation13 + $0x1f0] sm:$0xff]  ;;  %v7179_v57 = vld [vmem:[#allocation13 + $0x1c8] sm:$0xff]  ;;  %v7174_v28 = vld [vmem:[#allocation13 + $0x1a0] sm:$0xff] }
0x1983   :  { %v7176_v27 = vld [vmem:[#allocation13 + $0x1b0] sm:$0xff]  ;;  %v7157_v12 = vld [vmem:[#allocation13 + $0x118] sm:$0xff] }
0x1984   :  { %v6882_v42 = vrot.slane %v6881_v56, 1  ;;  %v6887_v51 = vrot.slane %v6886_v29, 2 }
0x1986   :  { %v6888_v24 = vadd.f32 %v6887_v51, %v6886_v29  ;;  %v6883_v58 = vadd.f32 %v6882_v42, %v6881_v56  ;;  %v7180_v42 = vld [vmem:[#allocation13 + $0x1d0] sm:$0xff]  ;;  %v7167_v29 = vld [vmem:[#allocation13 + $0x168] sm:$0xff] }
0x1987   :  { %v7172_v56 = vld [vmem:[#allocation13 + $0x190] sm:$0xff]  ;;  %v7163_v51 = vld [vmem:[#allocation13 + $0x148] sm:$0xff] }
0x1988   :  { %v6889_v1 = vrot.slane %v6888_v24, 1  ;;  %v6973_v33 = vsel %vm718_vm6, %v6883_v58, %v6972_v25  ;;  %v7158_v58 = vld [vmem:[#allocation13 + $0x120] sm:$0xff]  ;;  %v7156_v25 = vld [vmem:[#allocation13 + $0x110] sm:$0xff] }
0x198a   :  { %v6890_v60 = vadd.f32 %v6889_v1, %v6888_v24  ;;  %v7159_v24 = vld [vmem:[#allocation13 + $0x128] sm:$0xff]  ;;  %v7160_v1 = vld [vmem:[#allocation13 + $0x130] sm:$0xff] }
0x198c   :  { %v6974_v54 = vsel %vm720_vm7, %v6890_v60, %v6973_v33  ;;  %v7154_v60 = vld [vmem:[#allocation13 + $0x100] sm:$0xff]  ;;  %v7151_v33 = vld [vmem:[#allocation13 + $0xe8] sm:$0xff] }
0x198d   :  { %7041 = vmatmul.mubr.f32.vlgmr.msra.gmra.mxu0 %v6974_v54  ;;  %7112 = vmatmul.mubr.f32.vlgmr.msra.gmra.mxu1 %v6974_v54  ;;  %v7152_v54 = vld [vmem:[#allocation13 + $0xf0] sm:$0xff] }
0x198e   :  { %7187 = vmatpush1.msra.mxu0 %v7182_v31  ;;  %7258 = vmatpush1.msra.mxu1 %v7184_v48  ;;  %v7153_v31 = vld [vmem:[#allocation13 + $0xf8] sm:$0xff]  ;;  %v7150_v48 = vld [vmem:[#allocation13 + $0xe0] sm:$0xff] }
0x198f   :  { %7188 = vmatprep.subr.mxu0 %v7179_v57  ;;  %7259 = vmatprep.subr.mxu1 %v7181_v30  ;;  %v7147_v57 = vld [vmem:[#allocation13 + $0xc8] sm:$0xff]  ;;  %v7149_v30 = vld [vmem:[#allocation13 + $0xd8] sm:$0xff] }
0x1990   :  { %7189 = vmatpush1.msra.mxu0 %v7178_v26  ;;  %7260 = vmatpush1.msra.mxu1 %v7180_v42  ;;  %v7146_v26 = vld [vmem:[#allocation13 + $0xc0] sm:$0xff]  ;;  %v7148_v42 = vld [vmem:[#allocation13 + $0xd0] sm:$0xff] }
0x1991   :  { %7190 = vmatprep.subr.mxu0 %v7175_v32  ;;  %7261 = vmatprep.subr.mxu1 %v7177_v52  ;;  %v7143_v32 = vld [vmem:[#allocation13 + $0xa8] sm:$0xff]  ;;  %v7145_v52 = vld [vmem:[#allocation13 + $0xb8] sm:$0xff] }
0x1992   :  { %7191 = vmatpush1.msra.mxu0 %v7174_v28  ;;  %7262 = vmatpush1.msra.mxu1 %v7176_v27  ;;  %v7142_v28 = vld [vmem:[#allocation13 + $0xa0] sm:$0xff]  ;;  %v7144_v27 = vld [vmem:[#allocation13 + $0xb0] sm:$0xff] }
0x1993   :  { %7192 = vmatprep.subr.mxu0 %v7171_v14  ;;  %7263 = vmatprep.subr.mxu1 %v7173_v38  ;;  %v7139_v14 = vld [vmem:[#allocation13 + $0x88] sm:$0xff]  ;;  %v7141_v38 = vld [vmem:[#allocation13 + $0x98] sm:$0xff] }
0x1994   :  { %7193 = vmatpush1.msra.mxu0 %v7170_v43  ;;  %7264 = vmatpush1.msra.mxu1 %v7172_v56  ;;  %v7138_v43 = vld [vmem:[#allocation13 + $0x80] sm:$0xff]  ;;  %v7140_v56 = vld [vmem:[#allocation13 + $0x90] sm:$0xff] }
0x1995   :  { %7194 = vmatprep.subr.mxu0 %v7167_v29  ;;  %7265 = vmatprep.subr.mxu1 %v7169_v2  ;;  %v7135_v29 = vld [vmem:[#allocation13 + $0x68] sm:$0xff]  ;;  %v7137_v2 = vld [vmem:[#allocation13 + $0x78] sm:$0xff] }
0x1996   :  { %7195 = vmatpush1.msra.mxu0 %v7166_v35  ;;  %7266 = vmatpush1.msra.mxu1 %v7168_v40  ;;  %v7134_v35 = vld [vmem:[#allocation13 + $0x60] sm:$0xff]  ;;  %v7136_v40 = vld [vmem:[#allocation13 + $0x70] sm:$0xff] }
0x1997   :  { %7196 = vmatprep.subr.mxu0 %v7163_v51  ;;  %7267 = vmatprep.subr.mxu1 %v7165_v50  ;;  %v7131_v51 = vld [vmem:[#allocation13 + $0x48] sm:$0xff]  ;;  %v7133_v50 = vld [vmem:[#allocation13 + $0x58] sm:$0xff] }
0x1998   :  { %7197 = vmatpush1.msra.mxu0 %v7162_v5  ;;  %7268 = vmatpush1.msra.mxu1 %v7164_v20  ;;  %v7130_v5 = vld [vmem:[#allocation13 + $0x40] sm:$0xff]  ;;  %v7132_v20 = vld [vmem:[#allocation13 + $0x50] sm:$0xff] }
0x1999   :  { %7198 = vmatprep.subr.mxu0 %v7159_v24  ;;  %7269 = vmatprep.subr.mxu1 %v7161_v22  ;;  %v7127_v24 = vld [vmem:[#allocation13 + $0x28] sm:$0xff]  ;;  %v7129_v22 = vld [vmem:[#allocation13 + $0x38] sm:$0xff] }
0x199a   :  { %7199 = vmatpush1.msra.mxu0 %v7158_v58  ;;  %7270 = vmatpush1.msra.mxu1 %v7160_v1  ;;  %v7126_v58 = vld [vmem:[#allocation13 + $0x20] sm:$0xff]  ;;  %v7128_v1 = vld [vmem:[#allocation13 + $0x30] sm:$0xff] }
0x199b   :  { %7200 = vmatprep.subr.mxu0 %v7155_v19  ;;  %7271 = vmatprep.subr.mxu1 %v7157_v12  ;;  %v7123_v19 = vld [vmem:[#allocation13 + $0x8] sm:$0xff]  ;;  %v7125_v12 = vld [vmem:[#allocation13 + $0x18] sm:$0xff] }
0x199c   :  { %7201 = vmatpush1.msra.mxu0 %v7154_v60  ;;  %7272 = vmatpush1.msra.mxu1 %v7156_v25  ;;  %v7122_v60 = vld [vmem:[#allocation13] sm:$0xff]  ;;  %v7124_v25 = vld [vmem:[#allocation13 + $0x10] sm:$0xff] }
0x199d   :  { %7202 = vmatprep.subr.mxu0 %v7151_v33  ;;  %7273 = vmatprep.subr.mxu1 %v7153_v31 }
0x199e   :  { %7203 = vmatpush1.msra.mxu0 %v7150_v48  ;;  %7274 = vmatpush1.msra.mxu1 %v7152_v54  ;;  %v11674_v54 = vld [vmem:[#allocation29_spill] sm:$0xff] }
0x199f   :  { %7204 = vmatprep.subr.mxu0 %v7147_v57  ;;  %7275 = vmatprep.subr.mxu1 %v7149_v30 }
0x19a0   :  { %7205 = vmatpush1.msra.mxu0 %v7146_v26  ;;  %7276 = vmatpush1.msra.mxu1 %v7148_v42  ;;  %v11675_v42 = vld [vmem:[#allocation30_spill] sm:$0xff] }
0x19a1   :  { %7206 = vmatprep.subr.mxu0 %v7143_v32  ;;  %7277 = vmatprep.subr.mxu1 %v7145_v52 }
0x19a2   :  { %7207 = vmatpush1.msra.mxu0 %v7142_v28  ;;  %7278 = vmatpush1.msra.mxu1 %v7144_v27 }
0x19a3   :  { %7208 = vmatprep.subr.mxu0 %v7139_v14  ;;  %7279 = vmatprep.subr.mxu1 %v7141_v38  ;;  %v11676_v14 = vld [vmem:[#allocation40_spill] sm:$0xff] }
0x19a4   :  { %7209 = vmatpush1.msra.mxu0 %v7138_v43  ;;  %7280 = vmatpush1.msra.mxu1 %v7140_v56 }
0x19a5   :  { %7210 = vmatprep.subr.mxu0 %v7135_v29  ;;  %7281 = vmatprep.subr.mxu1 %v7137_v2 }
0x19a6   :  { %7211 = vmatpush1.msra.mxu0 %v7134_v35  ;;  %7282 = vmatpush1.msra.mxu1 %v7136_v40  ;;  %v11677_v40 = vld [vmem:[#allocation41_spill] sm:$0xff] }
0x19a7   :  { %7212 = vmatprep.subr.mxu0 %v7131_v51  ;;  %7283 = vmatprep.subr.mxu1 %v7133_v50 }
0x19a8   :  { %7213 = vmatpush1.msra.mxu0 %v7130_v5  ;;  %7284 = vmatpush1.msra.mxu1 %v7132_v20 }
0x19a9   :  { %7214 = vmatprep.subr.mxu0 %v7127_v24  ;;  %7285 = vmatprep.subr.mxu1 %v7129_v22 }
0x19aa   :  { %7215 = vmatpush1.msra.mxu0 %v7126_v58  ;;  %7286 = vmatpush1.msra.mxu1 %v7128_v1 }
0x19ab   :  { %7216 = vmatprep.subr.mxu0 %v7123_v19  ;;  %7287 = vmatprep.subr.mxu1 %v7125_v12 }
0x19ac   :  { %7217 = vmatpush1.msra.mxu0 %v7122_v60  ;;  %7250 = vmatprep.mubr.f32.mxu0 %v11658_v7 }
0x19ad   :  { %7288 = vmatpush1.msra.mxu1 %v7124_v25  ;;  %7321 = vmatprep.mubr.f32.mxu1 %v11658_v7 }
0x19ae   :  { %7251 = vmatmul.mubr.f32.vlgmr.msra.gmra.mxu0 %v11059_v37  ;;  %7322 = vmatmul.mubr.f32.vlgmr.msra.gmra.mxu1 %v11059_v37 }
0x19af   :  { %8184 = vmatprep.mubr.f32.mxu0 %v11658_v7  ;;  %8255 = vmatprep.mubr.f32.mxu1 %v11658_v7 }
0x1a4d   :  { %v7042_v33 = vpop.f32.mrf.mxu0  ;;  %v7113_v31 = vpop.f32.mrf.mxu1 }
0x1a4e   :  { %v7118_v57 = vadd.f32 %v7042_v33, %v11674_v54  ;;  %v7120_v38 = vadd.f32 %v7113_v31, %v11676_v14 }
0x1a4f   :  { %v7044_v48 = vpop.f32.mrf.mxu0  ;;  %v7115_v30 = vpop.f32.mrf.mxu1 }
0x1a50   :  { %v7119_v32 = vadd.f32 %v7044_v48, %v11675_v42  ;;  %v7121_v51 = vadd.f32 %v7115_v30, %v11677_v40 }
0x1a6e   :  { %v7252_v26 = vpop.f32.mrf.mxu0  ;;  %v7323_v28 = vpop.f32.mrf.mxu1 }
0x1a6f   :  { %v7328_v52 = vadd.f32 %v7252_v26, %v7118_v57  ;;  %v7330_v29 = vadd.f32 %v7323_v28, %v7120_v38 }
0x1a70   :  { %v7254_v27 = vpop.f32.mrf.mxu0  ;;  %v7325_v35 = vpop.f32.mrf.mxu1 }
0x1a71   :  { %v7332_v43 = vmul.f32 0.5, %v7328_v52  ;;  %v7329_v56 = vadd.f32 %v7254_v27, %v7119_v32  ;;  %v7331_v50 = vadd.f32 %v7325_v35, %v7121_v51 }
0x1a73   :  { %8962 = vtanh.f32 %v7332_v43  ;;  %v7336_v2 = vmul.f32 0.5, %v7329_v56  ;;  %v7341_v5 = vmul.f32 0.5, %v7331_v50 }
0x1a75   :  { %8964 = vtanh.f32 %v7336_v2 }
0x1a76   :  { %8966 = vtanh.f32 %v7330_v29 }
0x1a77   :  { %8968 = vtanh.f32 %v7341_v5 }
0x1a80   :  { %v8963_v20 = vpop.eup %8962 }
0x1a81   :  { %v7334_v24 = vadd.f32 1.0, %v8963_v20 }
0x1a82   :  { %v8965_v22 = vpop.eup %8964 }
0x1a83   :  { %v7335_v58 = vmul.f32 0.5, %v7334_v24  ;;  %v7338_v1 = vadd.f32 1.0, %v8965_v22  ;;  %v8967_v19 = vpop.eup %8966 }
0x1a84   :  { %v8969_v31 = vpop.eup %8968 }
0x1a85   :  { %v7339_v12 = vmul.f32 0.5, %v7338_v1  ;;  %v7346_v60 = vmul.f32 %v8967_v19, %v7335_v58  ;;  %v7343_v48 = vadd.f32 1.0, %v8969_v31 }
0x1a87   :  { %v7345_v25 = vmul.f32 %v7339_v12, %v11056_v15  ;;  %v7344_v54 = vmul.f32 0.5, %v7343_v48 }
0x1a89   :  { %v11348_v33 = vadd.f32 %v7346_v60, %v7345_v25 }
0x1a8b   :  { %8970 = vtanh.f32 %v11348_v33 }
0x1a98   :  { %v8971_v57 = vpop.eup %8970 }
0x1a99   :  { %v11351_v30 = vmul.f32 %v8971_v57, %v7344_v54 }
0x1a9b   :  { %v7360_v26 = vrot.slane %v11351_v30, %v9411_v8  ;;  %v7353_v42 = vcombine.high %v11351_v30, %v11351_v30 }
0x1a9d   :  { %v7376_v32 = vrot.slane %v7360_v26, %v9411_v8  ;;  %v7368_v52 = vcombine.high %v7360_v26, %v7360_v26  ;;  %v7367_v27 = vrot.slane %v7353_v42, %v9411_v8 }
0x1a9f   :  { %v7405_v15 = vrot.slane %v7376_v32, %v9417_v11  ;;  %v7390_v28 = vrot.slane %v7368_v52, %v9411_v8  ;;  %v7398_v56 = vcombine.high %v7376_v32, %v7376_v32  ;;  %v7383_v40 = vrot.slane %v7367_v27, %v9411_v8 }
0x1aa0   :  { %v7369_v51 = vcombine.high %v7367_v27, %v7367_v27 }
0x1aa1   :  { %v7443_v14 = vmul.f32 %v11288_v10, %v7405_v15  ;;  %v7442_v38 = vmul.f32 %v11303_v16, %v7405_v15  ;;  %v7409_v43 = vrot.slane %v7390_v28, %v9417_v11  ;;  %v7413_v35 = vrot.slane %v7398_v56, %v9417_v11 }
0x1aa2   :  { %v7421_v50 = vrot.slane %v7383_v40, %v9417_v11  ;;  %v7400_v5 = vcombine.high %v7390_v28, %v7390_v28  ;;  %v7397_v24 = vrot.slane %v7369_v51, %v9411_v8  ;;  %v7399_v58 = vcombine.high %v7383_v40, %v7383_v40 }
0x1aa3   :  { %7460 = vadd.xlane.f32.xlu0 %v7443_v14  ;;  %7458 = vadd.xlane.f32.xlu1 %v7442_v38  ;;  %v7445_v29 = vmul.f32 %v11282_v45, %v7409_v43  ;;  %v7444_v2 = vmul.f32 %v11291_v53, %v7409_v43  ;;  %v7447_v10 = vmul.f32 %v11285_v49, %v7413_v35 }
0x1aa4   :  { %v7446_v16 = vmul.f32 %v11297_v46, %v7413_v35  ;;  %v7451_v45 = vmul.f32 %v11309_v13, %v7421_v50  ;;  %v7450_v53 = vmul.f32 %v11300_v41, %v7421_v50  ;;  %v7417_v20 = vrot.slane %v7400_v5, %v9417_v11 }
0x1aa5   :  { %v7425_v46 = vrot.slane %v7397_v24, %v9417_v11  ;;  %v7429_v41 = vrot.slane %v7399_v58, %v9417_v11  ;;  %v7401_v19 = vcombine.high %v7397_v24, %v7397_v24 }
0x1aa6   :  { %v7449_v22 = vmul.f32 %v11294_v63, %v7417_v20  ;;  %v7448_v49 = vmul.f32 %v11306_v47, %v7417_v20 }
0x1aa7   :  { %7464 = vadd.xlane.f32.xlu1 %v7445_v29  ;;  %7462 = vadd.xlane.f32.xlu0 %v7444_v2  ;;  %v7453_v1 = vmul.f32 %v11315_v36, %v7425_v46  ;;  %v7452_v13 = vmul.f32 %v11312_v3, %v7425_v46  ;;  %v7455_v8 = vmul.f32 %v11321_v44, %v7429_v41 }
0x1aa8   :  { %v7454_v63 = vmul.f32 %v11318_v18, %v7429_v41  ;;  %v7433_v47 = vrot.slane %v7401_v19, %v9417_v11 }
0x1aaa   :  { %v7457_v12 = vmul.f32 %v11327_v4, %v7433_v47  ;;  %v7456_v60 = vmul.f32 %v11324_v21, %v7433_v47 }
0x1aab   :  { %7468 = vadd.xlane.f32.xlu1 %v7447_v10  ;;  %7466 = vadd.xlane.f32.xlu0 %v7446_v16 }
0x1aaf   :  { %7476 = vadd.xlane.f32.xlu1 %v7451_v45  ;;  %7474 = vadd.xlane.f32.xlu0 %v7450_v53 }
0x1ab3   :  { %7472 = vadd.xlane.f32.xlu1 %v7449_v22  ;;  %7470 = vadd.xlane.f32.xlu0 %v7448_v49 }
0x1ab7   :  { %7480 = vadd.xlane.f32.xlu1 %v7453_v1  ;;  %7478 = vadd.xlane.f32.xlu0 %v7452_v13 }
0x1abb   :  { %7484 = vadd.xlane.f32.xlu1 %v7455_v8  ;;  %7482 = vadd.xlane.f32.xlu0 %v7454_v63 }
0x1abf   :  { %7488 = vadd.xlane.f32.xlu1 %v7457_v12  ;;  %7486 = vadd.xlane.f32.xlu0 %v7456_v60 }
0x1b2c   :  { %v7461_v3 = vpop.xlane.xlu0 %7460  ;;  %v7459_v36 = vpop.xlane.xlu1 %7458 }
0x1b2d   :  { %v7513_v52 = vrot.slane %v7461_v3, %v9414_v9  ;;  %v7509_v15 = vrot.slane %v7459_v36, %v9408_v6 }
0x1b2f   :  { %v7514_v29 = vsel %vm643_vm0, %v7513_v52, %v7509_v15 }
0x1b30   :  { %v11386_v25 = vpop.xlane.xlu1 %7464  ;;  %v7463_v31 = vpop.xlane.xlu0 %7462 }
0x1b31   :  { %v7522_v21 = vrot.slane %v11386_v25, %v9414_v9  ;;  %v7518_v4 = vrot.slane %v7463_v31, %v9408_v6 }
0x1b33   :  { %v7523_v43 = vsel %vm643_vm0, %v7522_v21, %v7518_v4 }
0x1b34   :  { %v11388_v48 = vpop.xlane.xlu1 %7468  ;;  %v7467_v44 = vpop.xlane.xlu0 %7466  ;;  %v7578_v51 = vsel %vm708_vm1, %v7523_v43, %v7514_v29 }
0x1b35   :  { %v7531_v42 = vrot.slane %v11388_v48, %v9414_v9  ;;  %v7527_v32 = vrot.slane %v7467_v44, %v9408_v6 }
0x1b37   :  { %v7532_v56 = vsel %vm643_vm0, %v7531_v42, %v7527_v32 }
0x1b38   :  { %v11390_v54 = vpop.xlane.xlu1 %7476  ;;  %v11392_v18 = vpop.xlane.xlu0 %7474  ;;  %v7579_v45 = vsel %vm710_vm2, %v7532_v56, %v7578_v51 }
0x1b39   :  { %v7549_v10 = vrot.slane %v11390_v54, %v9414_v9  ;;  %v7545_v16 = vrot.slane %v11392_v18, %v9408_v6 }
0x1b3b   :  { %v7550_v49 = vsel %vm643_vm0, %v7549_v10, %v7545_v16 }
0x1b3c   :  { %v11394_v57 = vpop.xlane.xlu1 %7472  ;;  %v11396_v26 = vpop.xlane.xlu0 %7470 }
0x1b3d   :  { %v7540_v28 = vrot.slane %v11394_v57, %v9414_v9  ;;  %v7536_v27 = vrot.slane %v11396_v26, %v9408_v6 }
0x1b3f   :  { %v7541_v2 = vsel %vm643_vm0, %v7540_v28, %v7536_v27 }
0x1b40   :  { %v11410_v14 = vpop.xlane.xlu1 %7480  ;;  %v11412_v38 = vpop.xlane.xlu0 %7478  ;;  %v7580_v24 = vsel %vm712_vm3, %v7541_v2, %v7579_v45 }
0x1b41   :  { %v7558_v35 = vrot.slane %v11410_v14, %v9414_v9  ;;  %v7554_v40 = vrot.slane %v11412_v38, %v9408_v6  ;;  %v7581_v19 = vsel %vm714_vm4, %v7550_v49, %v7580_v24 }
0x1b43   :  { %v7559_v22 = vsel %vm643_vm0, %v7558_v35, %v7554_v40 }
0x1b44   :  { %v11427_v50 = vpop.xlane.xlu1 %7484  ;;  %v11429_v5 = vpop.xlane.xlu0 %7482  ;;  %v7582_v8 = vsel %vm716_vm5, %v7559_v22, %v7581_v19 }
0x1b45   :  { %v7567_v53 = vrot.slane %v11427_v50, %v9414_v9  ;;  %v7563_v20 = vrot.slane %v11429_v5, %v9408_v6 }
0x1b47   :  { %v7568_v46 = vsel %vm643_vm0, %v7567_v53, %v7563_v20 }
0x1b48   :  { %v11440_v58 = vpop.xlane.xlu1 %7488  ;;  %v11442_v1 = vpop.xlane.xlu0 %7486  ;;  %v7583_v47 = vsel %vm718_vm6, %v7568_v46, %v7582_v8 }
0x1b49   :  { %v7576_v13 = vrot.slane %v11440_v58, %v9414_v9  ;;  %v7572_v41 = vrot.slane %v11442_v1, %v9408_v6 }
0x1b4b   :  { %v7577_v63 = vsel %vm643_vm0, %v7576_v13, %v7572_v41 }
0x1b4c   :  { %v7584_v12 = vsel %vm720_vm7, %v7577_v63, %v7583_v47 }
0x1b4d   :  { %v7586_v60 = vsel %vm723_vm8, %v7584_v12, -inf }
0x1b4e   :  { %7587 = vmax.xlane.f32.xlu0 %v7586_v60 }
0x1bd7   :  { %v7588_v21 = vpop.xlane.xlu0 %7587 }
0x1bd8   :  { %v7593_v4 = vrot.slane %v7588_v21, %v9417_v11  ;;  %v7597_v42 = vrot.slane %v7588_v21, %v9514_v55  ;;  %v7601_v32 = vrot.slane %v7588_v21, %v9524_v62  ;;  %v7605_v27 = vrot.slane %v7588_v21, %v9542_v23 }
0x1bd9   :  { %v7609_v40 = vrot.slane %v7588_v21, %v9551_v34  ;;  %v7617_v53 = vrot.slane %v7588_v21, %v9528_v0 }
0x1bda   :  { %v7630_v52 = vsub.f32 %v7459_v36, %v7593_v4  ;;  %v7631_v15 = vsub.f32 %v7461_v3, %v7593_v4  ;;  %v7632_v28 = vsub.f32 %v7463_v31, %v7597_v42  ;;  %v7634_v43 = vsub.f32 %v7467_v44, %v7601_v32 }
0x1bdb   :  { %v7633_v2 = vsub.f32 %v11386_v25, %v7597_v42  ;;  %v7636_v51 = vsub.f32 %v11396_v26, %v7605_v27  ;;  %v7635_v16 = vsub.f32 %v11388_v48, %v7601_v32  ;;  %v7613_v36 = vrot.slane %v7588_v21, %v9519_v59 }
0x1bdc   :  { %v7646_v56 = vmul.f32 1.442695, %v7630_v52  ;;  %v7648_v29 = vmul.f32 1.442695, %v7631_v15  ;;  %v7650_v35 = vmul.f32 1.442695, %v7632_v28  ;;  %v7638_v31 = vsub.f32 %v11392_v18, %v7609_v40 }
0x1bdd   :  { %v7654_v10 = vmul.f32 1.442695, %v7634_v43  ;;  %v7652_v3 = vmul.f32 1.442695, %v7633_v2  ;;  %v7658_v44 = vmul.f32 1.442695, %v7636_v51  ;;  %v7637_v25 = vsub.f32 %v11394_v57, %v7605_v27 }
0x1bde   :  { %8972 = vpow2.f32 %v7646_v56  ;;  %v7656_v45 = vmul.f32 1.442695, %v7635_v16  ;;  %v7640_v26 = vsub.f32 %v11412_v38, %v7613_v36  ;;  %v7662_v20 = vmul.f32 1.442695, %v7638_v31 }
0x1bdf   :  { %8974 = vpow2.f32 %v7648_v29  ;;  %v7639_v48 = vsub.f32 %v11390_v54, %v7609_v40  ;;  %v7660_v24 = vmul.f32 1.442695, %v7637_v25  ;;  %v7621_v18 = vrot.slane %v7588_v21, %v11659_v17 }
0x1be0   :  { %8976 = vpow2.f32 %v7650_v35  ;;  %v7642_v49 = vsub.f32 %v11429_v5, %v7617_v53  ;;  %v7666_v57 = vmul.f32 1.442695, %v7640_v26  ;;  %v7641_v38 = vsub.f32 %v11410_v14, %v7613_v36 }
0x1be1   :  { %8978 = vpow2.f32 %v7654_v10  ;;  %v7664_v54 = vmul.f32 1.442695, %v7639_v48  ;;  %v7644_v41 = vsub.f32 %v11442_v1, %v7621_v18  ;;  %v7643_v5 = vsub.f32 %v11427_v50, %v7617_v53 }
0x1be2   :  { %8980 = vpow2.f32 %v7652_v3  ;;  %v7670_v19 = vmul.f32 1.442695, %v7642_v49  ;;  %v7668_v63 = vmul.f32 1.442695, %v7641_v38  ;;  %v7645_v1 = vsub.f32 %v11440_v58, %v7621_v18 }
0x1be3   :  { %8982 = vpow2.f32 %v7658_v44  ;;  %v7674_v14 = vmul.f32 1.442695, %v7644_v41  ;;  %v7672_v60 = vmul.f32 1.442695, %v7643_v5 }
0x1be4   :  { %8984 = vpow2.f32 %v7656_v45  ;;  %v7676_v4 = vmul.f32 1.442695, %v7645_v1 }
0x1be5   :  { %8986 = vpow2.f32 %v7662_v20 }
0x1be6   :  { %8988 = vpow2.f32 %v7660_v24 }
0x1be7   :  { %8990 = vpow2.f32 %v7666_v57 }
0x1be8   :  { %8992 = vpow2.f32 %v7664_v54 }
0x1be9   :  { %8994 = vpow2.f32 %v7670_v19 }
0x1bea   :  { %8996 = vpow2.f32 %v7668_v63 }
0x1beb   :  { %v11468_v22 = vpop.eup %8972  ;;  %8998 = vpow2.f32 %v7674_v14 }
0x1bec   :  { %v11472_v46 = vpop.eup %8974  ;;  %7695 = vperm.xlu1 %8705, %v11468_v22   ;;  %9000 = vpow2.f32 %v7672_v60 }
0x1bed   :  { %7698 = vperm.xlu0 %8706, %v11472_v46   ;;  %v11477_v13 = vpop.eup %8976  ;;  %9002 = vpow2.f32 %v7676_v4 }
0x1bee   :  { %v11480_v8 = vpop.eup %8978 }
0x1bef   :  { %v11485_v47 = vpop.eup %8980 }
0x1bf0   :  { %7701 = vperm.xlu1 %8705, %v11477_v13   ;;  %v11487_v12 = vpop.eup %8982 }
0x1bf1   :  { %7707 = vperm.xlu0 %8706, %v11480_v8   ;;  %v11492_v21 = vpop.eup %8984 }
0x1bf2   :  { %v11494_v50 = vpop.eup %8986 }
0x1bf3   :  { %v11498_v42 = vpop.eup %8988 }
0x1bf4   :  { %7704 = vperm.xlu1 %8705, %v11485_v47   ;;  %v11500_v32 = vpop.eup %8990 }
0x1bf5   :  { %7713 = vperm.xlu0 %8706, %v11487_v12   ;;  %v11504_v58 = vpop.eup %8992 }
0x1bf6   :  { %v11506_v52 = vpop.eup %8994 }
0x1bf7   :  { %v11510_v15 = vpop.eup %8996 }
0x1bf8   :  { %7710 = vperm.xlu1 %8705, %v11492_v21   ;;  %v11512_v28 = vpop.eup %8998 }
0x1bf9   :  { %7719 = vperm.xlu0 %8706, %v11494_v50   ;;  %v11516_v27 = vpop.eup %9000 }
0x1bfa   :  { %v11519_v43 = vpop.eup %9002 }
0x1bfc   :  { %7716 = vperm.xlu1 %8705, %v11498_v42  }
0x1bfd   :  { %7725 = vperm.xlu0 %8706, %v11500_v32  }
0x1c00   :  { %7722 = vperm.xlu1 %8705, %v11504_v58  }
0x1c01   :  { %7731 = vperm.xlu0 %8706, %v11506_v52  }
0x1c04   :  { %7728 = vperm.xlu1 %8705, %v11510_v15  }
0x1c05   :  { %7737 = vperm.xlu0 %8706, %v11512_v28  }
0x1c08   :  { %7734 = vperm.xlu1 %8705, %v11516_v27  }
0x1c0c   :  { %7740 = vperm.xlu1 %8705, %v11519_v43  }
0x1c67   :  { %v7696_v56 = vpop.permute.xlu1 %7695 }
0x1c68   :  { %v7699_v29 = vpop.permute.xlu0 %7698  ;;  %v7745_v20 = vrot.slane %v7696_v56, %v9408_v6 }
0x1c69   :  { %v7749_v26 = vrot.slane %v7699_v29, %v9414_v9 }
0x1c6b   :  { %v7702_v2 = vpop.permute.xlu1 %7701  ;;  %v7750_v63 = vsel %vm643_vm0, %v7749_v26, %v7745_v20 }
0x1c6c   :  { %v7708_v35 = vpop.permute.xlu0 %7707  ;;  %v7754_v48 = vrot.slane %v7702_v2, %v9408_v6 }
0x1c6d   :  { %v7763_v18 = vrot.slane %v7708_v35, %v9408_v6 }
0x1c6f   :  { %v7705_v40 = vpop.permute.xlu1 %7704 }
0x1c70   :  { %v7714_v51 = vpop.permute.xlu0 %7713  ;;  %v7758_v44 = vrot.slane %v7705_v40, %v9414_v9 }
0x1c71   :  { %v7772_v57 = vrot.slane %v7714_v51, %v9408_v6 }
0x1c72   :  { %v7759_v38 = vsel %vm643_vm0, %v7758_v44, %v7754_v48 }
0x1c73   :  { %v7711_v10 = vpop.permute.xlu1 %7710  ;;  %v7814_v4 = vsel %vm708_vm1, %v7759_v38, %v7750_v63  ;;  %v8100_v63 = vld [vmem:[#allocation12 + $0x1e0] sm:$0xff] }
0x1c74   :  { %v7720_v16 = vpop.permute.xlu0 %7719  ;;  %v7767_v25 = vrot.slane %v7711_v10, %v9414_v9 }
0x1c75   :  { %v7781_v41 = vrot.slane %v7720_v16, %v9408_v6 }
0x1c76   :  { %v7768_v19 = vsel %vm643_vm0, %v7767_v25, %v7763_v18 }
0x1c77   :  { %v7717_v3 = vpop.permute.xlu1 %7716  ;;  %v7815_v35 = vsel %vm710_vm2, %v7768_v19, %v7814_v4  ;;  %v8094_v4 = vld [vmem:[#allocation12 + $0x1b0] sm:$0xff] }
0x1c78   :  { %v7726_v36 = vpop.permute.xlu0 %7725  ;;  %v7776_v24 = vrot.slane %v7717_v3, %v9414_v9 }
0x1c79   :  { %v7790_v14 = vrot.slane %v7726_v36, %v9408_v6 }
0x1c7a   :  { %v7777_v1 = vsel %vm643_vm0, %v7776_v24, %v7772_v57 }
0x1c7b   :  { %v7723_v31 = vpop.permute.xlu1 %7722  ;;  %v7816_v51 = vsel %vm712_vm3, %v7777_v1, %v7815_v35  ;;  %v8095_v1 = vld [vmem:[#allocation12 + $0x1b8] sm:$0xff]  ;;  %v8090_v35 = vld [vmem:[#allocation12 + $0x190] sm:$0xff] }
0x1c7c   :  { %v7732_v45 = vpop.permute.xlu0 %7731  ;;  %v7785_v49 = vrot.slane %v7723_v31, %v9414_v9 }
0x1c7d   :  { %v7799_v56 = vrot.slane %v7732_v45, %v9408_v6 }
0x1c7e   :  { %v7786_v29 = vsel %vm643_vm0, %v7785_v49, %v7781_v41 }
0x1c7f   :  { %v7729_v53 = vpop.permute.xlu1 %7728  ;;  %v7817_v3 = vsel %vm714_vm4, %v7786_v29, %v7816_v51  ;;  %v8091_v29 = vld [vmem:[#allocation12 + $0x198] sm:$0xff]  ;;  %v8084_v51 = vld [vmem:[#allocation12 + $0x160] sm:$0xff] }
0x1c80   :  { %v7794_v54 = vrot.slane %v7729_v53, %v9414_v9  ;;  %v7738_v2 = vpop.permute.xlu0 %7737 }
0x1c81   :  { %v7808_v36 = vrot.slane %v7738_v2, %v9408_v6  ;;  %v8088_v2 = vld [vmem:[#allocation12 + $0x180] sm:$0xff] }
0x1c82   :  { %v7795_v40 = vsel %vm643_vm0, %v7794_v54, %v7790_v14  ;;  %v8099_v14 = vld [vmem:[#allocation12 + $0x1d8] sm:$0xff] }
0x1c83   :  { %v7735_v5 = vpop.permute.xlu1 %7734  ;;  %v7818_v44 = vsel %vm716_vm5, %v7795_v40, %v7817_v3  ;;  %v8085_v40 = vld [vmem:[#allocation12 + $0x168] sm:$0xff]  ;;  %v8080_v3 = vld [vmem:[#allocation12 + $0x140] sm:$0xff] }
0x1c84   :  { %v7803_v60 = vrot.slane %v7735_v5, %v9414_v9  ;;  %v8103_v5 = vld [vmem:[#allocation12 + $0x1f8] sm:$0xff] }
0x1c85   :  { %8191 = vmatprep.subr.mxu1 %v8103_v5  ;;  %v8050_v5 = vld [vmem:[#allocation12 + $0x50] sm:$0xff] }
0x1c86   :  { %v7804_v10 = vsel %vm643_vm0, %v7803_v60, %v7799_v56  ;;  %v8092_v60 = vld [vmem:[#allocation12 + $0x1a0] sm:$0xff]  ;;  %v8089_v56 = vld [vmem:[#allocation12 + $0x188] sm:$0xff] }
0x1c87   :  { %v7741_v16 = vpop.permute.xlu1 %7740  ;;  %v7819_v45 = vsel %vm718_vm6, %v7804_v10, %v7818_v44  ;;  %v8081_v10 = vld [vmem:[#allocation12 + $0x148] sm:$0xff]  ;;  %v8079_v44 = vld [vmem:[#allocation12 + $0x138] sm:$0xff] }
0x1c88   :  { %v7812_v31 = vrot.slane %v7741_v16, %v9414_v9  ;;  %v8083_v16 = vld [vmem:[#allocation12 + $0x158] sm:$0xff] }
0x1c8a   :  { %v7813_v25 = vsel %vm643_vm0, %v7812_v31, %v7808_v36  ;;  %v8082_v36 = vld [vmem:[#allocation12 + $0x150] sm:$0xff]  ;;  %v8077_v31 = vld [vmem:[#allocation12 + $0x128] sm:$0xff] }
0x1c8b   :  { %v7820_v53 = vsel %vm720_vm7, %v7813_v25, %v7819_v45  ;;  %v8076_v25 = vld [vmem:[#allocation12 + $0x120] sm:$0xff]  ;;  %v8078_v45 = vld [vmem:[#allocation12 + $0x130] sm:$0xff] }
0x1c8c   :  { %v7822_v26 = vsel %vm723_vm8, %v7820_v53, 0.0  ;;  %v8073_v53 = vld [vmem:[#allocation12 + $0x108] sm:$0xff] }
0x1c8d   :  { %7823 = vadd.xlane.f32.xlu0 %v7822_v26  ;;  %v8075_v26 = vld [vmem:[#allocation12 + $0x118] sm:$0xff] }
0x1d16   :  { %v7824_v20 = vpop.xlane.xlu0 %7823 }
0x1d17   :  { %9004 = vrcp.f32 %v7824_v20  ;;  %v8072_v20 = vld [vmem:[#allocation12 + $0x100] sm:$0xff] }
0x1d24   :  { %v9005_v48 = vpop.eup %9004 }
0x1d25   :  { %v7846_v24 = vrot.slane %v9005_v48, %v9551_v34  ;;  %v7830_v6 = vrot.slane %v9005_v48, %v9417_v11  ;;  %v7858_v49 = vrot.slane %v9005_v48, %v11659_v17  ;;  %v7834_v54 = vrot.slane %v9005_v48, %v9514_v55 }
0x1d27   :  { %v7875_v9 = vmul.f32 %v11494_v50, %v7846_v24  ;;  %v7867_v18 = vmul.f32 %v11468_v22, %v7830_v6  ;;  %v7881_v57 = vmul.f32 %v11512_v28, %v7858_v49  ;;  %v7868_v38 = vmul.f32 %v11472_v46, %v7830_v6  ;;  %v8071_v6 = vld [vmem:[#allocation12 + $0xf8] sm:$0xff] }
0x1d28   :  { %v7869_v34 = vmul.f32 %v11477_v13, %v7834_v54  ;;  %v7870_v41 = vmul.f32 %v11485_v47, %v7834_v54  ;;  %v7838_v50 = vrot.slane %v9005_v48, %v9524_v62  ;;  %v7842_v28 = vrot.slane %v9005_v48, %v9542_v23  ;;  %v8066_v54 = vld [vmem:[#allocation12 + $0xd0] sm:$0xff] }
0x1d29   :  { %7925 = vperm.xlu0 %8706, %v7875_v9   ;;  %7885 = vperm.xlu1 %8705, %v7867_v18   ;;  %v7876_v13 = vmul.f32 %v11504_v58, %v7846_v24  ;;  %v7850_v47 = vrot.slane %v9005_v48, %v9519_v59  ;;  %v8097_v58 = vld [vmem:[#allocation12 + $0x1c8] sm:$0xff]  ;;  %v8096_v59 = vld [vmem:[#allocation12 + $0x1c0] sm:$0xff]  ;;  %v8070_v18 = vld [vmem:[#allocation12 + $0xf0] sm:$0xff] }
0x1d2a   :  { %v7871_v17 = vmul.f32 %v11480_v8, %v7838_v50  ;;  %v7872_v22 = vmul.f32 %v11492_v21, %v7838_v50  ;;  %v7873_v46 = vmul.f32 %v11487_v12, %v7842_v28  ;;  %v7874_v19 = vmul.f32 %v11498_v42, %v7842_v28  ;;  %v8101_v12 = vld [vmem:[#allocation12 + $0x1e8] sm:$0xff]  ;;  %v8102_v42 = vld [vmem:[#allocation12 + $0x1f0] sm:$0xff]  ;;  %v8068_v9 = vld [vmem:[#allocation12 + $0xe0] sm:$0xff] }
0x1d2b   :  { %v7877_v62 = vmul.f32 %v11500_v32, %v7850_v47  ;;  %v7878_v8 = vmul.f32 %v11510_v15, %v7850_v47  ;;  %v7854_v21 = vrot.slane %v9005_v48, %v9528_v0  ;;  %8120 = vmatprep.subr.mxu0 %v8101_v12  ;;  %v8098_v32 = vld [vmem:[#allocation12 + $0x1d0] sm:$0xff]  ;;  %8192 = vmatpush1.msra.mxu1 %v8102_v42  ;;  %v8069_v24 = vld [vmem:[#allocation12 + $0xe8] sm:$0xff]  ;;  %v8060_v50 = vld [vmem:[#allocation12 + $0xa0] sm:$0xff] }
0x1d2c   :  { %8121 = vmatpush1.msra.mxu0 %v8100_v63  ;;  %8193 = vmatprep.subr.mxu1 %v8099_v14  ;;  %v7882_v0 = vmul.f32 %v11519_v43, %v7858_v49  ;;  %v8086_v43 = vld [vmem:[#allocation12 + $0x170] sm:$0xff]  ;;  %v8065_v49 = vld [vmem:[#allocation12 + $0xc8] sm:$0xff]  ;;  %v8059_v28 = vld [vmem:[#allocation12 + $0x98] sm:$0xff] }
0x1d2d   :  { %7955 = vperm.xlu0 %8706, %v7881_v57   ;;  %7890 = vperm.xlu1 %8705, %v7868_v38   ;;  %v7879_v23 = vmul.f32 %v11506_v52, %v7854_v21  ;;  %v7880_v15 = vmul.f32 %v11516_v27, %v7854_v21  ;;  %v8093_v52 = vld [vmem:[#allocation12 + $0x1a8] sm:$0xff]  ;;  %v8087_v27 = vld [vmem:[#allocation12 + $0x178] sm:$0xff]  ;;  %v8074_v48 = vld [vmem:[#allocation12 + $0x110] sm:$0xff] }
0x1d2e   :  { %8122 = vmatprep.subr.mxu0 %v8097_v58  ;;  %8194 = vmatpush1.msra.mxu1 %v8098_v32  ;;  %v8067_v57 = vld [vmem:[#allocation12 + $0xd8] sm:$0xff]  ;;  %v8064_v38 = vld [vmem:[#allocation12 + $0xc0] sm:$0xff]  ;;  %v8049_v21 = vld [vmem:[#allocation12 + $0x48] sm:$0xff] }
0x1d2f   :  { %8123 = vmatpush1.msra.mxu0 %v8096_v59  ;;  %8195 = vmatprep.subr.mxu1 %v8095_v1  ;;  %v8055_v47 = vld [vmem:[#allocation12 + $0x78] sm:$0xff]  ;;  %v8048_v12 = vld [vmem:[#allocation12 + $0x40] sm:$0xff]  ;;  %v8045_v63 = vld [vmem:[#allocation12 + $0x28] sm:$0xff] }
0x1d30   :  { %8124 = vmatprep.subr.mxu0 %v8093_v52  ;;  %8196 = vmatpush1.msra.mxu1 %v8094_v4  ;;  %v8047_v42 = vld [vmem:[#allocation12 + $0x38] sm:$0xff]  ;;  %v8044_v58 = vld [vmem:[#allocation12 + $0x20] sm:$0xff]  ;;  %v8046_v14 = vld [vmem:[#allocation12 + $0x30] sm:$0xff] }
0x1d31   :  { %7895 = vperm.xlu1 %8705, %v7869_v34   ;;  %8125 = vmatpush1.msra.mxu0 %v8092_v60  ;;  %v8061_v34 = vld [vmem:[#allocation12 + $0xa8] sm:$0xff]  ;;  %v8043_v32 = vld [vmem:[#allocation12 + $0x18] sm:$0xff] }
0x1d32   :  { %8126 = vmatprep.subr.mxu0 %v8089_v56  ;;  %8197 = vmatprep.subr.mxu1 %v8091_v29  ;;  %v8041_v59 = vld [vmem:[#allocation12 + $0x8] sm:$0xff]  ;;  %v8329_v1 = vld [vmem:[#allocation13 + $0x1f8] sm:$0xff] }
0x1d33   :  { %8127 = vmatpush1.msra.mxu0 %v8088_v2  ;;  %8198 = vmatpush1.msra.mxu1 %v8090_v35  ;;  %v8327_v52 = vld [vmem:[#allocation13 + $0x1e8] sm:$0xff] }
0x1d34   :  { %8128 = vmatprep.subr.mxu0 %v8085_v40  ;;  %8199 = vmatprep.subr.mxu1 %v8087_v27 }
0x1d35   :  { %7900 = vperm.xlu1 %8705, %v7870_v41   ;;  %8129 = vmatpush1.msra.mxu0 %v8084_v51  ;;  %v8063_v41 = vld [vmem:[#allocation12 + $0xb8] sm:$0xff]  ;;  %v9113_v51 = vld [vmem:[#allocation7 + $0x18] sm:$0xff] }
0x1d36   :  { %8200 = vmatpush1.msra.mxu1 %v8086_v43  ;;  %8130 = vmatprep.subr.mxu0 %v8081_v10  ;;  %v9114_v10 = vld [vmem:[#allocation7 + $0x28] sm:$0xff] }
0x1d37   :  { %8201 = vmatprep.subr.mxu1 %v8083_v16  ;;  %8131 = vmatpush1.msra.mxu0 %v8080_v3 }
0x1d38   :  { %8202 = vmatpush1.msra.mxu1 %v8082_v36  ;;  %8132 = vmatprep.subr.mxu0 %v8077_v31  ;;  %v9115_v31 = vld [vmem:[#allocation7 + $0x8] sm:$0xff] }
0x1d39   :  { %7905 = vperm.xlu1 %8705, %v7871_v17   ;;  %8203 = vmatprep.subr.mxu1 %v8079_v44  ;;  %v8062_v17 = vld [vmem:[#allocation12 + $0xb0] sm:$0xff] }
0x1d3a   :  { %8133 = vmatpush1.msra.mxu0 %v8076_v25  ;;  %8204 = vmatpush1.msra.mxu1 %v8078_v45  ;;  %v9116_v25 = vld [vmem:[#allocation7 + $0x10] sm:$0xff] }
0x1d3b   :  { %8134 = vmatprep.subr.mxu0 %v8073_v53  ;;  %8205 = vmatprep.subr.mxu1 %v8075_v26  ;;  %v9117_v53 = vld [vmem:[#allocation7 + $0x38] sm:$0xff] }
0x1d3c   :  { %8135 = vmatpush1.msra.mxu0 %v8072_v20  ;;  %8206 = vmatpush1.msra.mxu1 %v8074_v48  ;;  %v9118_v20 = vld [vmem:[#allocation7 + $0x20] sm:$0xff] }
0x1d3d   :  { %7910 = vperm.xlu1 %8705, %v7872_v22   ;;  %8136 = vmatprep.subr.mxu0 %v8069_v24  ;;  %v8057_v22 = vld [vmem:[#allocation12 + $0x88] sm:$0xff]  ;;  %v9119_v24 = vld [vmem:[#allocation7 + $0x48] sm:$0xff] }
0x1d3e   :  { %8207 = vmatprep.subr.mxu1 %v8071_v6  ;;  %8137 = vmatpush1.msra.mxu0 %v8068_v9  ;;  %v9120_v9 = vld [vmem:[#allocation7] sm:$0xff] }
0x1d3f   :  { %8208 = vmatpush1.msra.mxu1 %v8070_v18  ;;  %8138 = vmatprep.subr.mxu0 %v8065_v49 }
0x1d40   :  { %8209 = vmatprep.subr.mxu1 %v8067_v57  ;;  %8139 = vmatpush1.msra.mxu0 %v8064_v38  ;;  %v9121_v57 = vld [vmem:[#allocation7 + $0x30] sm:$0xff] }
0x1d41   :  { %7915 = vperm.xlu1 %8705, %v7873_v46   ;;  %8210 = vmatpush1.msra.mxu1 %v8066_v54  ;;  %v8056_v46 = vld [vmem:[#allocation12 + $0x80] sm:$0xff]  ;;  %v9122_v54 = vld [vmem:[#allocation7 + $0x40] sm:$0xff] }
0x1d42   :  { %8140 = vmatprep.subr.mxu0 %v8061_v34  ;;  %8211 = vmatprep.subr.mxu1 %v8063_v41 }
0x1d43   :  { %8141 = vmatpush1.msra.mxu0 %v8060_v50  ;;  %8212 = vmatpush1.msra.mxu1 %v8062_v17 }
0x1d44   :  { %8142 = vmatprep.subr.mxu0 %v8057_v22  ;;  %8213 = vmatprep.subr.mxu1 %v8059_v28 }
0x1d45   :  { %7920 = vperm.xlu1 %8705, %v7874_v19   ;;  %v8058_v19 = vld [vmem:[#allocation12 + $0x90] sm:$0xff]  ;;  %8143 = vmatpush1.msra.mxu0 %v8056_v46 }
0x1d46   :  { %8214 = vmatpush1.msra.mxu1 %v8058_v19 }
0x1d47   :  { %8215 = vmatprep.subr.mxu1 %v8055_v47 }
0x1d49   :  { %7930 = vperm.xlu1 %8705, %v7876_v13   ;;  %v8053_v13 = vld [vmem:[#allocation12 + $0x68] sm:$0xff] }
0x1d4a   :  { %8144 = vmatprep.subr.mxu0 %v8053_v13 }
0x1d4d   :  { %7935 = vperm.xlu1 %8705, %v7877_v62   ;;  %v8052_v62 = vld [vmem:[#allocation12 + $0x60] sm:$0xff] }
0x1d4e   :  { %8145 = vmatpush1.msra.mxu0 %v8052_v62 }
0x1d4f   :  { %8146 = vmatprep.subr.mxu0 %v8049_v21 }
0x1d50   :  { %8147 = vmatpush1.msra.mxu0 %v8048_v12 }
0x1d51   :  { %7940 = vperm.xlu1 %8705, %v7878_v8   ;;  %v8054_v8 = vld [vmem:[#allocation12 + $0x70] sm:$0xff]  ;;  %8148 = vmatprep.subr.mxu0 %v8045_v63 }
0x1d52   :  { %8216 = vmatpush1.msra.mxu1 %v8054_v8  ;;  %8149 = vmatpush1.msra.mxu0 %v8044_v58  ;;  %v9123_v8 = vld [vmem:[#allocation7 + $0x50] sm:$0xff] }
0x1d53   :  { %8150 = vmatprep.subr.mxu0 %v8041_v59 }
0x1d55   :  { %7945 = vperm.xlu1 %8705, %v7879_v23   ;;  %v8051_v23 = vld [vmem:[#allocation12 + $0x58] sm:$0xff] }
0x1d56   :  { %8217 = vmatprep.subr.mxu1 %v8051_v23  ;;  %v9124_v23 = vld [vmem:[#allocation7 + $0x58] sm:$0xff] }
0x1d57   :  { %8218 = vmatpush1.msra.mxu1 %v8050_v5 }
0x1d58   :  { %8219 = vmatprep.subr.mxu1 %v8047_v42 }
0x1d59   :  { %7950 = vperm.xlu1 %8705, %v7880_v15   ;;  %v8040_v15 = vld [vmem:[#allocation12] sm:$0xff]  ;;  %8220 = vmatpush1.msra.mxu1 %v8046_v14 }
0x1d5a   :  { %8221 = vmatprep.subr.mxu1 %v8043_v32  ;;  %8151 = vmatpush1.msra.mxu0 %v8040_v15 }
0x1d5b   :  { %8330 = vmatprep.subr.mxu0 %v8327_v52 }
0x1d5d   :  { %7960 = vperm.xlu1 %8705, %v7882_v0   ;;  %v8042_v0 = vld [vmem:[#allocation12 + $0x10] sm:$0xff] }
0x1d5e   :  { %8222 = vmatpush1.msra.mxu1 %v8042_v0 }
0x1d5f   :  { %8401 = vmatprep.subr.mxu1 %v8329_v1 }
0x1da4   :  { %v7886_v60 = vpop.permute.xlu1 %7885  ;;  %v7926_v36 = vpop.permute.xlu0 %7925 }
0x1da5   :  { %v7963_v18 = vmul.f32 %v9120_v9, %v7886_v60  ;;  %v7971_v34 = vmul.f32 %v9122_v54, %v7926_v36  ;;  %v9127_v36 = vld [vmem:[#allocation7 + $0x70] sm:$0xff] }
0x1da8   :  { %v7891_v4 = vpop.permute.xlu1 %7890 }
0x1da9   :  { %v7964_v44 = vmul.f32 %v9115_v31, %v7891_v4 }
0x1dab   :  { %v7979_v17 = vadd.f32 %v7964_v44, %v7963_v18 }
0x1dac   :  { %v7896_v56 = vpop.permute.xlu1 %7895 }
0x1dad   :  { %v7965_v45 = vmul.f32 %v9116_v25, %v7896_v56  ;;  %v7980_v47 = vrot.slane %v7979_v17, 4  ;;  %v7956_v56 = vpop.permute.xlu0 %7955 }
0x1dae   :  { %v7977_v31 = vmul.f32 %v9127_v36, %v7956_v56  ;;  %v8325_v56 = vld [vmem:[#allocation13 + $0x1d8] sm:$0xff]  ;;  %v8311_v36 = vld [vmem:[#allocation13 + $0x168] sm:$0xff] }
0x1daf   :  { %v7981_v59 = vadd.f32 %v7980_v47, %v7979_v17 }
0x1db0   :  { %v7901_v29 = vpop.permute.xlu1 %7900 }
0x1db1   :  { %v7966_v43 = vmul.f32 %v9113_v51, %v7901_v29  ;;  %v7982_v29 = vrot.slane %v7981_v59, 2 }
0x1db3   :  { %v7986_v49 = vadd.f32 %v7966_v43, %v7965_v45  ;;  %v7983_v45 = vadd.f32 %v7982_v29, %v7981_v59  ;;  %v8322_v29 = vld [vmem:[#allocation13 + $0x1c0] sm:$0xff] }
0x1db4   :  { %v7906_v2 = vpop.permute.xlu1 %7905 }
0x1db5   :  { %v7967_v48 = vmul.f32 %v9118_v20, %v7906_v2  ;;  %v7987_v46 = vrot.slane %v7986_v49, 4  ;;  %v9128_v20 = vld [vmem:[#allocation7 + $0x78] sm:$0xff] }
0x1db7   :  { %v7988_v63 = vadd.f32 %v7987_v46, %v7986_v49 }
0x1db8   :  { %v7911_v35 = vpop.permute.xlu1 %7910 }
0x1db9   :  { %v7968_v16 = vmul.f32 %v9114_v10, %v7911_v35  ;;  %v7989_v52 = vrot.slane %v7988_v63, 2  ;;  %v9125_v35 = vld [vmem:[#allocation7 + $0x60] sm:$0xff] }
0x1dbb   :  { %v7993_v41 = vadd.f32 %v7968_v16, %v7967_v48  ;;  %v7990_v10 = vadd.f32 %v7989_v52, %v7988_v63  ;;  %v8326_v52 = vld [vmem:[#allocation13 + $0x1e0] sm:$0xff] }
0x1dbc   :  { %v7916_v40 = vpop.permute.xlu1 %7915 }
0x1dbd   :  { %v7969_v38 = vmul.f32 %v9121_v57, %v7916_v40  ;;  %v7994_v19 = vrot.slane %v7993_v41, 4 }
0x1dbf   :  { %v7995_v58 = vadd.f32 %v7994_v19, %v7993_v41 }
0x1dc0   :  { %v7921_v27 = vpop.permute.xlu1 %7920 }
0x1dc1   :  { %v7970_v26 = vmul.f32 %v9117_v53, %v7921_v27  ;;  %v7996_v60 = vrot.slane %v7995_v58, 2  ;;  %v9126_v27 = vld [vmem:[#allocation7 + $0x68] sm:$0xff] }
0x1dc3   :  { %v8000_v22 = vadd.f32 %v7970_v26, %v7969_v38  ;;  %v7997_v44 = vadd.f32 %v7996_v60, %v7995_v58  ;;  %v7984_v38 = vrot.slane %v7983_v45, 1 }
0x1dc4   :  { %v7931_v3 = vpop.permute.xlu1 %7930 }
0x1dc5   :  { %v7972_v6 = vmul.f32 %v9119_v24, %v7931_v3  ;;  %v8001_v62 = vrot.slane %v8000_v22, 4  ;;  %v7998_v57 = vrot.slane %v7997_v44, 1 }
0x1dc7   :  { %v8007_v28 = vadd.f32 %v7972_v6, %v7971_v34  ;;  %v8002_v32 = vadd.f32 %v8001_v62, %v8000_v22  ;;  %v7991_v6 = vrot.slane %v7990_v10, 1  ;;  %v7999_v19 = vadd.f32 %v7998_v57, %v7997_v44  ;;  %v8310_v44 = vld [vmem:[#allocation13 + $0x160] sm:$0xff] }
0x1dc8   :  { %v7936_v50 = vpop.permute.xlu1 %7935  ;;  %v8298_v57 = vld [vmem:[#allocation13 + $0x100] sm:$0xff] }
0x1dc9   :  { %v7973_v21 = vmul.f32 %v9123_v8, %v7936_v50  ;;  %v8008_v5 = vrot.slane %v8007_v28, 4  ;;  %v8003_v2 = vrot.slane %v8002_v32, 2  ;;  %v7992_v17 = vadd.f32 %v7991_v6, %v7990_v10  ;;  %v8317_v10 = vld [vmem:[#allocation13 + $0x198] sm:$0xff]  ;;  %v8302_v6 = vld [vmem:[#allocation13 + $0x120] sm:$0xff] }
0x1dcb   :  { %v8009_v0 = vadd.f32 %v8008_v5, %v8007_v28  ;;  %v8004_v53 = vadd.f32 %v8003_v2, %v8002_v32  ;;  %v8324_v2 = vld [vmem:[#allocation13 + $0x1d0] sm:$0xff] }
0x1dcc   :  { %v7941_v13 = vpop.permute.xlu1 %7940 }
0x1dcd   :  { %v7974_v12 = vmul.f32 %v9124_v23, %v7941_v13  ;;  %v8010_v43 = vrot.slane %v8009_v0, 2  ;;  %v8005_v54 = vrot.slane %v8004_v53, 1  ;;  %v7985_v13 = vadd.f32 %v7984_v38, %v7983_v45  ;;  %v8307_v45 = vld [vmem:[#allocation13 + $0x148] sm:$0xff]  ;;  %v8300_v38 = vld [vmem:[#allocation13 + $0x110] sm:$0xff] }
0x1dcf   :  { %v8014_v42 = vadd.f32 %v7974_v12, %v7973_v21  ;;  %v8011_v24 = vadd.f32 %v8010_v43, %v8009_v0  ;;  %v8006_v47 = vadd.f32 %v8005_v54, %v8004_v53  ;;  %v8112_v23 = vsel %vm708_vm1, %v7992_v17, %v7985_v13  ;;  %v8315_v43 = vld [vmem:[#allocation13 + $0x188] sm:$0xff]  ;;  %v8309_v53 = vld [vmem:[#allocation13 + $0x158] sm:$0xff] }
0x1dd0   :  { %v7946_v14 = vpop.permute.xlu1 %7945  ;;  %v8113_v63 = vsel %vm710_vm2, %v7999_v19, %v8112_v23  ;;  %v8295_v54 = vld [vmem:[#allocation13 + $0xe8] sm:$0xff]  ;;  %v8289_v13 = vld [vmem:[#allocation13 + $0xb8] sm:$0xff]  ;;  %v8282_v23 = vld [vmem:[#allocation13 + $0x80] sm:$0xff] }
0x1dd1   :  { %v8015_v15 = vrot.slane %v8014_v42, 4  ;;  %v7975_v40 = vmul.f32 %v9125_v35, %v7946_v14  ;;  %v8012_v50 = vrot.slane %v8011_v24, 1  ;;  %v8114_v14 = vsel %vm712_vm3, %v8006_v47, %v8113_v63  ;;  %v8319_v35 = vld [vmem:[#allocation13 + $0x1a8] sm:$0xff]  ;;  %v8286_v47 = vld [vmem:[#allocation13 + $0xa0] sm:$0xff]  ;;  %v8281_v63 = vld [vmem:[#allocation13 + $0x78] sm:$0xff] }
0x1dd2   :  { %v8291_v17 = vld [vmem:[#allocation13 + $0xc8] sm:$0xff] }
0x1dd3   :  { %v8016_v1 = vadd.f32 %v8015_v15, %v8014_v42  ;;  %v8013_v21 = vadd.f32 %v8012_v50, %v8011_v24  ;;  %v8305_v24 = vld [vmem:[#allocation13 + $0x138] sm:$0xff]  ;;  %v8296_v50 = vld [vmem:[#allocation13 + $0xf0] sm:$0xff]  ;;  %v8287_v19 = vld [vmem:[#allocation13 + $0xa8] sm:$0xff] }
0x1dd4   :  { %v7951_v4 = vpop.permute.xlu1 %7950 }
0x1dd5   :  { %v7976_v51 = vmul.f32 %v9126_v27, %v7951_v4  ;;  %v8017_v16 = vrot.slane %v8016_v1, 2  ;;  %v8115_v59 = vsel %vm714_vm4, %v8013_v21, %v8114_v14  ;;  %v8323_v4 = vld [vmem:[#allocation13 + $0x1c8] sm:$0xff]  ;;  %v8318_v27 = vld [vmem:[#allocation13 + $0x1a0] sm:$0xff]  ;;  %v8285_v21 = vld [vmem:[#allocation13 + $0x98] sm:$0xff] }
0x1dd6   :  { %v8275_v14 = vld [vmem:[#allocation13 + $0x48] sm:$0xff] }
0x1dd7   :  { %v8021_v3 = vadd.f32 %v7976_v51, %v7975_v40  ;;  %v8018_v9 = vadd.f32 %v8017_v16, %v8016_v1  ;;  %v8328_v1 = vld [vmem:[#allocation13 + $0x1f0] sm:$0xff]  ;;  %v8321_v40 = vld [vmem:[#allocation13 + $0x1b8] sm:$0xff]  ;;  %v8314_v16 = vld [vmem:[#allocation13 + $0x180] sm:$0xff] }
0x1dd8   :  { %v7961_v25 = vpop.permute.xlu1 %7960  ;;  %v8320_v51 = vld [vmem:[#allocation13 + $0x1b0] sm:$0xff] }
0x1dd9   :  { %v8022_v26 = vrot.slane %v8021_v3, 4  ;;  %v7978_v48 = vmul.f32 %v9128_v20, %v7961_v25  ;;  %v8019_v22 = vrot.slane %v8018_v9, 1  ;;  %v8312_v25 = vld [vmem:[#allocation13 + $0x170] sm:$0xff] }
0x1dda   :  { %v8308_v20 = vld [vmem:[#allocation13 + $0x150] sm:$0xff] }
0x1ddb   :  { %v8023_v18 = vadd.f32 %v8022_v26, %v8021_v3  ;;  %v8028_v49 = vadd.f32 %v7978_v48, %v7977_v31  ;;  %v8020_v12 = vadd.f32 %v8019_v22, %v8018_v9  ;;  %v8316_v3 = vld [vmem:[#allocation13 + $0x190] sm:$0xff]  ;;  %v8313_v31 = vld [vmem:[#allocation13 + $0x178] sm:$0xff]  ;;  %v8306_v26 = vld [vmem:[#allocation13 + $0x140] sm:$0xff] }
0x1ddc   :  { %v8303_v48 = vld [vmem:[#allocation13 + $0x128] sm:$0xff]  ;;  %v8304_v9 = vld [vmem:[#allocation13 + $0x130] sm:$0xff]  ;;  %v8293_v22 = vld [vmem:[#allocation13 + $0xd8] sm:$0xff] }
0x1ddd   :  { %v8024_v34 = vrot.slane %v8023_v18, 2  ;;  %v8029_v41 = vrot.slane %v8028_v49, 4  ;;  %v8116_v15 = vsel %vm716_vm5, %v8020_v12, %v8115_v59  ;;  %v8284_v12 = vld [vmem:[#allocation13 + $0x90] sm:$0xff]  ;;  %v8277_v59 = vld [vmem:[#allocation13 + $0x58] sm:$0xff] }
0x1ddf   :  { %v8025_v28 = vadd.f32 %v8024_v34, %v8023_v18  ;;  %v8030_v46 = vadd.f32 %v8029_v41, %v8028_v49  ;;  %v8299_v18 = vld [vmem:[#allocation13 + $0x108] sm:$0xff]  ;;  %v8301_v49 = vld [vmem:[#allocation13 + $0x118] sm:$0xff]  ;;  %v8294_v41 = vld [vmem:[#allocation13 + $0xe0] sm:$0xff] }
0x1de0   :  { %v8297_v34 = vld [vmem:[#allocation13 + $0xf8] sm:$0xff] }
0x1de1   :  { %v8026_v62 = vrot.slane %v8025_v28, 1  ;;  %v8031_v8 = vrot.slane %v8030_v46, 2 }
0x1de3   :  { %v8032_v5 = vadd.f32 %v8031_v8, %v8030_v46  ;;  %v8027_v42 = vadd.f32 %v8026_v62, %v8025_v28  ;;  %v8290_v28 = vld [vmem:[#allocation13 + $0xc0] sm:$0xff]  ;;  %v8292_v46 = vld [vmem:[#allocation13 + $0xd0] sm:$0xff]  ;;  %v8283_v8 = vld [vmem:[#allocation13 + $0x88] sm:$0xff] }
0x1de4   :  { %v8288_v62 = vld [vmem:[#allocation13 + $0xb0] sm:$0xff] }
0x1de5   :  { %v8033_v58 = vrot.slane %v8032_v5, 1  ;;  %v8117_v0 = vsel %vm718_vm6, %v8027_v42, %v8116_v15  ;;  %v8278_v42 = vld [vmem:[#allocation13 + $0x60] sm:$0xff]  ;;  %v8276_v15 = vld [vmem:[#allocation13 + $0x50] sm:$0xff] }
0x1de7   :  { %v8034_v32 = vadd.f32 %v8033_v58, %v8032_v5  ;;  %v8279_v5 = vld [vmem:[#allocation13 + $0x68] sm:$0xff]  ;;  %v8280_v58 = vld [vmem:[#allocation13 + $0x70] sm:$0xff] }
0x1de9   :  { %v8118_v60 = vsel %vm720_vm7, %v8034_v32, %v8117_v0  ;;  %v8274_v32 = vld [vmem:[#allocation13 + $0x40] sm:$0xff]  ;;  %v8271_v0 = vld [vmem:[#allocation13 + $0x28] sm:$0xff] }
0x1dea   :  { %8185 = vmatmul.mubr.f32.vlgmr.msra.gmra.mxu0 %v8118_v60  ;;  %8256 = vmatmul.mubr.f32.vlgmr.msra.gmra.mxu1 %v8118_v60  ;;  %v8272_v60 = vld [vmem:[#allocation13 + $0x30] sm:$0xff] }
0x1deb   :  { %8331 = vmatpush1.msra.mxu0 %v8326_v52  ;;  %8402 = vmatpush1.msra.mxu1 %v8328_v1  ;;  %v8273_v52 = vld [vmem:[#allocation13 + $0x38] sm:$0xff]  ;;  %v8270_v1 = vld [vmem:[#allocation13 + $0x20] sm:$0xff] }
0x1dec   :  { %8332 = vmatprep.subr.mxu0 %v8323_v4  ;;  %8403 = vmatprep.subr.mxu1 %v8325_v56  ;;  %v8267_v4 = vld [vmem:[#allocation13 + $0x8] sm:$0xff]  ;;  %v8269_v56 = vld [vmem:[#allocation13 + $0x18] sm:$0xff] }
0x1ded   :  { %8333 = vmatpush1.msra.mxu0 %v8322_v29  ;;  %8404 = vmatpush1.msra.mxu1 %v8324_v2  ;;  %v8266_v29 = vld [vmem:[#allocation13] sm:$0xff]  ;;  %v8268_v2 = vld [vmem:[#allocation13 + $0x10] sm:$0xff] }
0x1dee   :  { %8334 = vmatprep.subr.mxu0 %v8319_v35  ;;  %8405 = vmatprep.subr.mxu1 %v8321_v40  ;;  %v8534_v35 = vld [vmem:[#allocation15 + $0xf8] sm:$0xff]  ;;  %v8533_v40 = vld [vmem:[#allocation15 + $0xf0] sm:$0xff] }
0x1def   :  { %8335 = vmatpush1.msra.mxu0 %v8318_v27  ;;  %8406 = vmatpush1.msra.mxu1 %v8320_v51  ;;  %v8532_v27 = vld [vmem:[#allocation15 + $0xe8] sm:$0xff]  ;;  %v8531_v51 = vld [vmem:[#allocation15 + $0xe0] sm:$0xff] }
0x1df0   :  { %8336 = vmatprep.subr.mxu0 %v8315_v43  ;;  %8407 = vmatprep.subr.mxu1 %v8317_v10  ;;  %v8530_v43 = vld [vmem:[#allocation15 + $0xd8] sm:$0xff]  ;;  %v8529_v10 = vld [vmem:[#allocation15 + $0xd0] sm:$0xff] }
0x1df1   :  { %8337 = vmatpush1.msra.mxu0 %v8314_v16  ;;  %8408 = vmatpush1.msra.mxu1 %v8316_v3  ;;  %v8528_v16 = vld [vmem:[#allocation15 + $0xc8] sm:$0xff]  ;;  %v8527_v3 = vld [vmem:[#allocation15 + $0xc0] sm:$0xff] }
0x1df2   :  { %8338 = vmatprep.subr.mxu0 %v8311_v36  ;;  %8409 = vmatprep.subr.mxu1 %v8313_v31  ;;  %v8526_v36 = vld [vmem:[#allocation15 + $0xb8] sm:$0xff]  ;;  %v8525_v31 = vld [vmem:[#allocation15 + $0xb0] sm:$0xff] }
0x1df3   :  { %8339 = vmatpush1.msra.mxu0 %v8310_v44  ;;  %8410 = vmatpush1.msra.mxu1 %v8312_v25  ;;  %v8524_v44 = vld [vmem:[#allocation15 + $0xa8] sm:$0xff]  ;;  %v8523_v25 = vld [vmem:[#allocation15 + $0xa0] sm:$0xff] }
0x1df4   :  { %8340 = vmatprep.subr.mxu0 %v8307_v45  ;;  %8411 = vmatprep.subr.mxu1 %v8309_v53  ;;  %v8522_v45 = vld [vmem:[#allocation15 + $0x98] sm:$0xff]  ;;  %v8521_v53 = vld [vmem:[#allocation15 + $0x90] sm:$0xff] }
0x1df5   :  { %8341 = vmatpush1.msra.mxu0 %v8306_v26  ;;  %8412 = vmatpush1.msra.mxu1 %v8308_v20  ;;  %v8520_v26 = vld [vmem:[#allocation15 + $0x88] sm:$0xff]  ;;  %v8519_v20 = vld [vmem:[#allocation15 + $0x80] sm:$0xff] }
0x1df6   :  { %8342 = vmatprep.subr.mxu0 %v8303_v48  ;;  %8413 = vmatprep.subr.mxu1 %v8305_v24  ;;  %v8518_v48 = vld [vmem:[#allocation15 + $0x78] sm:$0xff]  ;;  %v8517_v24 = vld [vmem:[#allocation15 + $0x70] sm:$0xff] }
0x1df7   :  { %8343 = vmatpush1.msra.mxu0 %v8302_v6  ;;  %8414 = vmatpush1.msra.mxu1 %v8304_v9  ;;  %v8516_v6 = vld [vmem:[#allocation15 + $0x68] sm:$0xff]  ;;  %v8515_v9 = vld [vmem:[#allocation15 + $0x60] sm:$0xff] }
0x1df8   :  { %8344 = vmatprep.subr.mxu0 %v8299_v18  ;;  %8415 = vmatprep.subr.mxu1 %v8301_v49  ;;  %v8514_v18 = vld [vmem:[#allocation15 + $0x58] sm:$0xff]  ;;  %v8513_v49 = vld [vmem:[#allocation15 + $0x50] sm:$0xff] }
0x1df9   :  { %8345 = vmatpush1.msra.mxu0 %v8298_v57  ;;  %8416 = vmatpush1.msra.mxu1 %v8300_v38  ;;  %v8512_v57 = vld [vmem:[#allocation15 + $0x48] sm:$0xff]  ;;  %v8511_v38 = vld [vmem:[#allocation15 + $0x40] sm:$0xff] }
0x1dfa   :  { %8346 = vmatprep.subr.mxu0 %v8295_v54  ;;  %8417 = vmatprep.subr.mxu1 %v8297_v34  ;;  %v8510_v54 = vld [vmem:[#allocation15 + $0x38] sm:$0xff]  ;;  %v8509_v34 = vld [vmem:[#allocation15 + $0x30] sm:$0xff] }
0x1dfb   :  { %8347 = vmatpush1.msra.mxu0 %v8294_v41  ;;  %8418 = vmatpush1.msra.mxu1 %v8296_v50  ;;  %v8508_v41 = vld [vmem:[#allocation15 + $0x28] sm:$0xff]  ;;  %v8507_v50 = vld [vmem:[#allocation15 + $0x20] sm:$0xff] }
0x1dfc   :  { %8348 = vmatprep.subr.mxu0 %v8291_v17  ;;  %8419 = vmatprep.subr.mxu1 %v8293_v22  ;;  %v8506_v17 = vld [vmem:[#allocation15 + $0x18] sm:$0xff]  ;;  %v8505_v22 = vld [vmem:[#allocation15 + $0x10] sm:$0xff] }
0x1dfd   :  { %8349 = vmatpush1.msra.mxu0 %v8290_v28  ;;  %8420 = vmatpush1.msra.mxu1 %v8292_v46  ;;  %v8504_v28 = vld [vmem:[#allocation15 + $0x8] sm:$0xff]  ;;  %v8503_v46 = vld [vmem:[#allocation15] sm:$0xff] }
0x1dfe   :  { %8350 = vmatprep.subr.mxu0 %v8287_v19  ;;  %8421 = vmatprep.subr.mxu1 %v8289_v13  ;;  %v11678_v19 = vld [vmem:[#allocation22_spill] sm:$0xff]  ;;  %v11679_v13 = vld [vmem:[#allocation23_spill] sm:$0xff] }
0x1dff   :  { %8351 = vmatpush1.msra.mxu0 %v8286_v47  ;;  %8422 = vmatpush1.msra.mxu1 %v8288_v62  ;;  %v11680_v62 = vld [vmem:[#allocation31_spill] sm:$0xff] }
0x1e00   :  { %8352 = vmatprep.subr.mxu0 %v8283_v8  ;;  %8423 = vmatprep.subr.mxu1 %v8285_v21 }
0x1e01   :  { %8353 = vmatpush1.msra.mxu0 %v8282_v23  ;;  %8424 = vmatpush1.msra.mxu1 %v8284_v12  ;;  %v11681_v12 = vld [vmem:[#allocation32_spill] sm:$0xff] }
0x1e02   :  { %8354 = vmatprep.subr.mxu0 %v8279_v5  ;;  %8425 = vmatprep.subr.mxu1 %v8281_v63 }
0x1e03   :  { %8355 = vmatpush1.msra.mxu0 %v8278_v42  ;;  %8426 = vmatpush1.msra.mxu1 %v8280_v58 }
0x1e04   :  { %8356 = vmatprep.subr.mxu0 %v8275_v14  ;;  %8427 = vmatprep.subr.mxu1 %v8277_v59  ;;  %v11682_v14 = vld [vmem:[#allocation42_spill] sm:$0xff] }
0x1e05   :  { %8357 = vmatpush1.msra.mxu0 %v8274_v32  ;;  %8428 = vmatpush1.msra.mxu1 %v8276_v15 }
0x1e06   :  { %8358 = vmatprep.subr.mxu0 %v8271_v0  ;;  %8429 = vmatprep.subr.mxu1 %v8273_v52  ;;  %v11684_v0 = vld [vmem:[#allocation43_spill] sm:$0xff] }
0x1e07   :  { %8359 = vmatpush1.msra.mxu0 %v8270_v1  ;;  %8430 = vmatpush1.msra.mxu1 %v8272_v60 }
0x1e08   :  { %8360 = vmatprep.subr.mxu0 %v8267_v4  ;;  %8431 = vmatprep.subr.mxu1 %v8269_v56 }
0x1e09   :  { %8361 = vmatpush1.msra.mxu0 %v8266_v29  ;;  %8394 = vmatprep.mubr.f32.mxu0 %v11658_v7 }
0x1e0a   :  { %8432 = vmatpush1.msra.mxu1 %v8268_v2  ;;  %8465 = vmatprep.mubr.f32.mxu1 %v11658_v7 }
0x1e0b   :  { %8395 = vmatmul.mubr.f32.vlgmr.msra.gmra.mxu0 %v11351_v30  ;;  %8466 = vmatmul.mubr.f32.vlgmr.msra.gmra.mxu1 %v11351_v30 }
0x1e0c   :  { %8547 = vmatprep.subr.mxu0 %v8534_v35  ;;  %8611 = vmatprep.mubr.f32.mxu0 %v11658_v7 }
0x1e0d   :  { %8548 = vmatpush1.msra.mxu0 %v8533_v40 }
0x1e0e   :  { %8549 = vmatprep.subr.mxu0 %v8532_v27 }
0x1e0f   :  { %8550 = vmatpush1.msra.mxu0 %v8531_v51 }
0x1e10   :  { %8551 = vmatprep.subr.mxu0 %v8530_v43 }
0x1e11   :  { %8552 = vmatpush1.msra.mxu0 %v8529_v10 }
0x1e12   :  { %8553 = vmatprep.subr.mxu0 %v8528_v16 }
0x1e13   :  { %8554 = vmatpush1.msra.mxu0 %v8527_v3 }
0x1e14   :  { %8555 = vmatprep.subr.mxu0 %v8526_v36  ;;  %v8535_v36 = vld [vmem:[%s11627_s8] sm:$0x3]  ;;  %s9315_s8 = smov [#allocation16]  }
0x1e15   :  { %8556 = vmatpush1.msra.mxu0 %v8525_v31  ;;  %v8540_v31 = vrot.slane %v8535_v36, %v9417_v11  ;;  %s8673_s20 = sshll.u32 %s9315_s8, 4  ;;  %s8674_s20 = int_to_ptr.vmem [resolvable:$true] %s8673_s20 }
0x1e16   :  { %8557 = vmatprep.subr.mxu0 %v8524_v44  ;;  %v8544_v44 = vrot.slane %v8535_v36, %v9514_v55  ;;  %s9269_s1 = scalar_lea.vmem %s8674_s20, 1792  ;;  %p9274_p8 = scmp.lt.s32.totalorder %s8674_s20, %s8674_s20 }
0x1e17   :  { %8558 = vmatpush1.msra.mxu0 %v8523_v25  ;;  %p9270_p7 = scmp.ne.s32.totalorder %s8674_s20, %s9269_s1  ;;  %p9275_p9 = scmp.lt.s32.totalorder %s9269_s1, %s9269_s1 }
0x1e18   :  { %8559 = vmatprep.subr.mxu0 %v8522_v45 }
0x1e19   :  { %8560 = vmatpush1.msra.mxu0 %v8521_v53  ;;  %p9276_p10 = por %p9275_p9, %p9274_p8 }
0x1e1a   :  { %8561 = vmatprep.subr.mxu0 %v8520_v26 }
0x1e1b   :  { %8562 = vmatpush1.msra.mxu0 %v8519_v20  ;;  %p9277_p11 = pnand %p9276_p10, %p9270_p7 }
0x1e1c   :  { %8563 = vmatprep.subr.mxu0 %v8518_v48 }
0x1e1d   :  { %8564 = vmatpush1.msra.mxu0 %v8517_v24 }
0x1e1e   :  { %8565 = vmatprep.subr.mxu0 %v8516_v6 }
0x1e1f   :  { %8566 = vmatpush1.msra.mxu0 %v8515_v9 }
0x1e20   :  { %8567 = vmatprep.subr.mxu0 %v8514_v18 }
0x1e21   :  { %8568 = vmatpush1.msra.mxu0 %v8513_v49 }
0x1e22   :  { %8569 = vmatprep.subr.mxu0 %v8512_v57 }
0x1e23   :  { %8570 = vmatpush1.msra.mxu0 %v8511_v38 }
0x1e24   :  { %8571 = vmatprep.subr.mxu0 %v8510_v54 }
0x1e25   :  { %8572 = vmatpush1.msra.mxu0 %v8509_v34 }
0x1e26   :  { %8573 = vmatprep.subr.mxu0 %v8508_v41 }
0x1e27   :  { %8574 = vmatpush1.msra.mxu0 %v8507_v50 }
0x1e28   :  { %8575 = vmatprep.subr.mxu0 %v8506_v17 }
0x1e29   :  { %8576 = vmatpush1.msra.mxu0 %v8505_v22 }
0x1e2a   :  { %8577 = vmatprep.subr.mxu0 %v8504_v28 }
0x1e2b   :  { %8578 = vmatpush1.msra.mxu0 %v8503_v46 }
0x1e2c   :  { %8612 = vmatmul.mubr.f32.vlgmr.msra.gmra.mxu0 %v9883_v39 }
0x1e2d   :  { %8617 = vmatprep.mubr.f32.mxu0 %v11658_v7 }
0x1e30   :  { %8618 = vmatmul.mubr.f32.gmra.mxu0 %v10175_v61 }
0x1e31   :  { %8623 = vmatprep.mubr.f32.mxu0 %v11658_v7 }
0x1e34   :  { %8624 = vmatmul.mubr.f32.gmra.mxu0 %v11678_v19 }
0x1e35   :  { %8629 = vmatprep.mubr.f32.mxu0 %v11658_v7 }
0x1e38   :  { %8630 = vmatmul.mubr.f32.gmra.mxu0 %v11679_v13 }
0x1e39   :  { %8635 = vmatprep.mubr.f32.mxu0 %v11658_v7 }
0x1e3c   :  { %8636 = vmatmul.mubr.f32.gmra.mxu0 %v11059_v37 }
0x1e3d   :  { %8641 = vmatprep.mubr.f32.mxu0 %v11658_v7 }
0x1e40   :  { %8642 = vmatmul.mubr.f32.gmra.mxu0 %v11351_v30 }
0x1e41   :  { %8647 = vmatprep.mubr.f32.mxu0 %v11658_v7  ;;  %v11683_v7 = vld [vmem:[#allocation33_spill] sm:$0xff] }
0x1e42   :  { %v431_v52 = vadd.f32 %v11684_v0, %v11683_v7 }
0x1eaa   :  { %v8186_v39 = vpop.f32.mrf.mxu0  ;;  %v8257_v61 = vpop.f32.mrf.mxu1 }
0x1eab   :  { %v8262_v8 = vadd.f32 %v8186_v39, %v11680_v62  ;;  %v8264_v37 = vadd.f32 %v8257_v61, %v11682_v14 }
0x1eac   :  { %v8188_v47 = vpop.f32.mrf.mxu0  ;;  %v8259_v21 = vpop.f32.mrf.mxu1 }
0x1ead   :  { %v8263_v5 = vadd.f32 %v8188_v47, %v11681_v12  ;;  %v8265_v60 = vadd.f32 %v8259_v21, %v431_v52 }
0x1ecb   :  { %v8396_v23 = vpop.f32.mrf.mxu0  ;;  %v8467_v42 = vpop.f32.mrf.mxu1 }
0x1ecc   :  { %v8472_v63 = vadd.f32 %v8396_v23, %v8262_v8  ;;  %v8474_v30 = vadd.f32 %v8467_v42, %v8264_v37 }
0x1ecd   :  { %v8398_v58 = vpop.f32.mrf.mxu0  ;;  %v8469_v1 = vpop.f32.mrf.mxu1 }
0x1ece   :  { %v8476_v59 = vmul.f32 0.5, %v8472_v63  ;;  %v8473_v32 = vadd.f32 %v8398_v58, %v8263_v5  ;;  %v8475_v4 = vadd.f32 %v8469_v1, %v8265_v60 }
0x1ed0   :  { %9006 = vtanh.f32 %v8476_v59  ;;  %v8480_v15 = vmul.f32 0.5, %v8473_v32  ;;  %v8485_v56 = vmul.f32 0.5, %v8475_v4 }
0x1ed2   :  { %9008 = vtanh.f32 %v8480_v15 }
0x1ed3   :  { %9010 = vtanh.f32 %v8474_v30 }
0x1ed4   :  { %9012 = vtanh.f32 %v8485_v56 }
0x1edd   :  { %v9007_v29 = vpop.eup %9006 }
0x1ede   :  { %v8478_v2 = vadd.f32 1.0, %v9007_v29 }
0x1edf   :  { %v9009_v35 = vpop.eup %9008 }
0x1ee0   :  { %v8479_v40 = vmul.f32 0.5, %v8478_v2  ;;  %v8482_v27 = vadd.f32 1.0, %v9009_v35  ;;  %v9011_v51 = vpop.eup %9010 }
0x1ee1   :  { %v9013_v45 = vpop.eup %9012 }
0x1ee2   :  { %v8483_v43 = vmul.f32 0.5, %v8482_v27  ;;  %v8490_v10 = vmul.f32 %v9011_v51, %v8479_v40  ;;  %v8487_v48 = vadd.f32 1.0, %v9013_v45 }
0x1ee4   :  { %v8489_v16 = vmul.f32 %v8483_v43, %v11348_v33  ;;  %v8488_v18 = vmul.f32 0.5, %v8487_v48 }
0x1ee6   :  { %v8491_v3 = vadd.f32 %v8490_v10, %v8489_v16 }
0x1ee8   :  { %9014 = vtanh.f32 %v8491_v3 }
0x1eec   :  { %v8613_v25 = vpop.f32.mrf.mxu0 }
0x1eed   :  { %v8614_v53 = vadd.f32 %v8613_v25, %v8540_v31 }
0x1eee   :  { %v8615_v26 = vpop.f32.mrf.mxu0 }
0x1eef   :  { %8654 = vst [vmem:[#allocation16] sm:$0xff] %v8614_v53  ;;  %v8616_v20 = vadd.f32 %v8615_v26, %v8544_v44 }
0x1ef0   :  { %v8619_v24 = vpop.f32.mrf.mxu0 }
0x1ef1   :  { %8655 = vst [vmem:[#allocation16 + $0x8] sm:$0xff] %v8616_v20  ;;  %v8620_v33 = vadd.f32 %v8619_v24, %v8540_v31 }
0x1ef2   :  { %v8621_v6 = vpop.f32.mrf.mxu0 }
0x1ef3   :  { %8656 = vst [vmem:[#allocation16 + $0x10] sm:$0xff] %v8620_v33  ;;  %v8622_v9 = vadd.f32 %v8621_v6, %v8544_v44 }
0x1ef4   :  { %v8625_v49 = vpop.f32.mrf.mxu0 }
0x1ef5   :  { %v9015_v57 = vpop.eup %9014  ;;  %8657 = vst [vmem:[#allocation16 + $0x18] sm:$0xff] %v8622_v9  ;;  %v8626_v11 = vadd.f32 %v8625_v49, %v8540_v31 }
0x1ef6   :  { %v8627_v38 = vpop.f32.mrf.mxu0  ;;  %v8493_v55 = vmul.f32 %v9015_v57, %v8488_v18 }
0x1ef7   :  { %8658 = vst [vmem:[#allocation16 + $0x20] sm:$0xff] %v8626_v11  ;;  %v8628_v54 = vadd.f32 %v8627_v38, %v8544_v44 }
0x1ef8   :  { %v8631_v34 = vpop.f32.mrf.mxu0  ;;  %8648 = vmatmul.mubr.f32.gmra.mxu0 %v8493_v55 }
0x1ef9   :  { %8659 = vst [vmem:[#allocation16 + $0x28] sm:$0xff] %v8628_v54  ;;  %v8632_v41 = vadd.f32 %v8631_v34, %v8540_v31 }
0x1efa   :  { %v8633_v50 = vpop.f32.mrf.mxu0 }
0x1efb   :  { %8660 = vst [vmem:[#allocation16 + $0x30] sm:$0xff] %v8632_v41  ;;  %v8634_v17 = vadd.f32 %v8633_v50, %v8544_v44 }
0x1efc   :  { %v8637_v22 = vpop.f32.mrf.mxu0 }
0x1efd   :  { %8661 = vst [vmem:[#allocation16 + $0x38] sm:$0xff] %v8634_v17  ;;  %v8638_v28 = vadd.f32 %v8637_v22, %v8540_v31 }
0x1efe   :  { %v8639_v46 = vpop.f32.mrf.mxu0 }
0x1eff   :  { %8662 = vst [vmem:[#allocation16 + $0x40] sm:$0xff] %v8638_v28  ;;  %v8640_v19 = vadd.f32 %v8639_v46, %v8544_v44 }
0x1f00   :  { %v8643_v13 = vpop.f32.mrf.mxu0 }
0x1f01   :  { %8663 = vst [vmem:[#allocation16 + $0x48] sm:$0xff] %v8640_v19  ;;  %v8644_v39 = vadd.f32 %v8643_v13, %v8540_v31 }
0x1f02   :  { %v8645_v61 = vpop.f32.mrf.mxu0 }
0x1f03   :  { %8664 = vst [vmem:[#allocation16 + $0x50] sm:$0xff] %v8644_v39  ;;  %v8646_v47 = vadd.f32 %v8645_v61, %v8544_v44 }
0x1f05   :  { %8665 = vst [vmem:[#allocation16 + $0x58] sm:$0xff] %v8646_v47 }
0x1fb8   :  { %v8649_v62 = vpop.f32.mrf.mxu0 }
0x1fb9   :  { %v8650_v8 = vadd.f32 %v8649_v62, %v8540_v31 }
0x1fba   :  { %v8651_v21 = vpop.f32.mrf.mxu0 }
0x1fbb   :  { %8666 = vst [vmem:[#allocation16 + $0x60] sm:$0xff] %v8650_v8  ;;  %v8652_v23 = vadd.f32 %v8651_v21, %v8544_v44 }
0x1fbd   :  { %8667 = vst [vmem:[#allocation16 + $0x68] sm:$0xff] %v8652_v23 }
0x1fbe   :  { %9280 = shalt.err (!%p9277_p11)
}
0x1fbf   :  { %8679 = dma.vmem_to_hbm [thread:$0]  %s8674_s20, 1792, %s11628_s9, [#allocation6], %s9310_s2, %s9310_s2, %s9311_s23  }
0x1fc0   :  { %9297 = dma.done.wait [#allocation6], 1792  }
0x1fc1   :  { %9298 = vsyncadd [#allocation6], 4294965504 }
0x1fc2   :  { %8683 = vsyncpa [#allocation5], 1 }
0x1fc3   :  { %8684 = vsyncpa [#allocation8], 1 }
0x1fc4   :  { %8685 = vsyncpa [#allocation11], 1 }
0x1fc5   :  { %8686 = vsyncpa [#allocation14], 1 }
0x1fc6   :  { %8687 = vsyncpa [#allocation6], 1 }

</bundles_post_ra>
